<compile_context>
chip_gen: v5e
topology: v5e:2x2
jax: 0.10.0
libtpu: 0.0.40
codegen_flags: <defaults>
</compile_context>

<pallas_src>
import functools
import math

import numpy as np
import jax
import jax.numpy as jnp
from jax.experimental import pallas as pl
from jax.experimental.pallas import tpu as pltpu


# ---------------------------------------------------------------------------
# Fused MAB kernel: projections + per-head attention + output projection
# ---------------------------------------------------------------------------
def _mab_kernel(num_heads, head_dim, dense_out,
                qin_ref, kin_ref, wq_ref, bq_ref, wk_ref, bk_ref,
                wv_ref, bv_ref, wo_ref, bo_ref, o_ref):
    bl, seq, cin = qin_ref.shape
    d_model = wq_ref.shape[1]
    cout = wo_ref.shape[1]

    xq = qin_ref[...].reshape(bl * seq, cin)           # bf16
    xk = kin_ref[...].reshape(bl * seq, cin)           # bf16

    # --- 1x1-conv projections (BN + 1/sqrt(d) folded into wq/bq) + ReLU -----
    # Cast to bf16 ONCE so every attention operand below is already bf16.
    q = jnp.maximum(
        jnp.dot(xq, wq_ref[...], preferred_element_type=jnp.float32)
        + bq_ref[...], 0.0).astype(jnp.bfloat16)
    k = jnp.maximum(
        jnp.dot(xk, wk_ref[...], preferred_element_type=jnp.float32)
        + bk_ref[...], 0.0).astype(jnp.bfloat16)
    v = jnp.maximum(
        jnp.dot(xk, wv_ref[...], preferred_element_type=jnp.float32)
        + bv_ref[...], 0.0).astype(jnp.bfloat16)

    q = q.reshape(bl, seq, d_model)
    k = k.reshape(bl, seq, d_model)
    v = v.reshape(bl, seq, d_model)

    # --- per-head attention; heads are channel slices of the D axis ---------
    # (This realizes torch's split(K, dim=-1)/cat(dim=0) ... split(batch)/
    #  cat(dim=-1) pair with no data movement between HBM and VMEM.)
    head_outs = []
    for h in range(num_heads):
        lo = h * head_dim
        hi = lo + head_dim
        qh = q[:, :, lo:hi]
        kh = k[:, :, lo:hi]
        vh = v[:, :, lo:hi]

        s = jnp.einsum("bqd,bkd->bqk", qh, kh,
                       preferred_element_type=jnp.float32)
        m = jnp.max(s, axis=-1, keepdims=True)
        p = jnp.exp(s - m)
        # approx reciprocal runs on the EUP slot; rows of p sum to ~1.
        p = p * pl.reciprocal(jnp.sum(p, axis=-1, keepdims=True), approx=True)
        head_outs.append(
            jnp.einsum("bqk,bkd->bqd", p.astype(jnp.bfloat16), vh,
                       preferred_element_type=jnp.float32))

    # Re-merge heads along the channel axis (== torch cat(split(.., B), -1)).
    res = jnp.concatenate(head_outs, axis=-1)          # (bl, seq, D) f32
    res = res.reshape(bl * seq, d_model).astype(jnp.bfloat16)

    # --- output projection + ReLU -------------------------------------------
    out = jnp.maximum(
        jnp.dot(res, wo_ref[...], preferred_element_type=jnp.float32)
        + bo_ref[...], 0.0)                            # (bl*seq, cout) f32

    if dense_out:
        # Lane-dense store: fold (seq, cout) onto the lane axis so the store
        # and HBM writeback are full-lane instead of cout(<128)-wide.
        out3 = out.reshape(bl, seq, cout)
        dense = jnp.concatenate(
            [out3[:, s:s + 1, :] for s in range(seq)], axis=-1)
        o_ref[...] = dense                             # (bl, 1, seq*cout)
    else:
        o_ref[...] = out.reshape(bl, seq, cout)


# ---------------------------------------------------------------------------
# Per-generation VMEM plan + block size selection
# ---------------------------------------------------------------------------
def _vmem_plan():
    kind = ""
    try:
        kind = jax.devices()[0].device_kind.lower()
    except Exception:
        pass
    is_v7 = ("v7" in kind) or ("7x" in kind)
    # Megacore (2 TensorCores/chip): v4 / v5p / v7x.
    megacore = is_v7 or ("v4" in kind) or ("v5p" in kind)
    # v7x has 64 MiB physical VMEM per TensorCore; v5e/v6e have 128 MiB.
    vmem_limit = (40 << 20) if is_v7 else (64 << 20)
    return vmem_limit, (2 if megacore else 1)


def _pick_block_l(L, seq, cin, d_model, cout, budget_bytes, num_cores):
    """Largest block_l whose per-row VMEM footprint fits the budget."""
    per_row = (
        2 * 2 * seq * cin * 2        # 2 bf16 input tiles, double buffered
        + 2 * seq * cout * 4         # f32 output tile, double buffered
        + 3 * seq * d_model * 2      # resident bf16 q, k, v
        + 3 * seq * d_model * 4      # f32 projection temporaries (pre-cast)
        + 3 * seq * seq * 4          # score/prob buffers for the live head
        + 2 * seq * d_model * 4      # head outputs (all heads) + merged result
        + 2 * seq * cout * 4         # final activation + store staging
    )
    cdiv = lambda a, b: -(-a // b)
    budget_rows = max(8, (budget_bytes // max(per_row, 1)) // 8 * 8)
    # Single-TC chips (v5e/v6e): one big block is best (grid is a serial loop).
    # Megacore: keep >= num_cores blocks so both TensorCores get work.
    target_blocks = num_cores if (num_cores > 1 and L > 8) else 1
    want = cdiv(cdiv(L, target_blocks), 8) * 8
    return max(8, min(budget_rows, want))


# ---------------------------------------------------------------------------
# Wrapper around pallas_call
# ---------------------------------------------------------------------------
def _run_fused_mab(q_in, k_in, wq, bq, wk, bk, wv, bv, wo, bo,
                   num_heads, head_dim, block_l=None):
    """q_in/k_in: [L, seq, Cin] (bf16) -> [L, seq, Cout] (f32)."""
    L, seq, cin = q_in.shape
    d_model = wq.shape[1]
    cout = wo.shape[1]

    vmem_limit, num_cores = _vmem_plan()
    if block_l is None:
        block_l = _pick_block_l(L, seq, cin, d_model, cout,
                                budget_bytes=vmem_limit // 2,
                                num_cores=num_cores)

    cdiv = lambda a, b: -(-a // b)
    lp = cdiv(L, block_l) * block_l                    # pad instead of asserting
    if lp != L:
        pad = lp - L
        q_in = jnp.pad(q_in, ((0, pad), (0, 0), (0, 0)))
        k_in = jnp.pad(k_in, ((0, pad), (0, 0), (0, 0)))

    dense_out = seq <= 64                              # unrolled lane-concat stays small
    kernel = functools.partial(_mab_kernel, num_heads, head_dim, dense_out)

    if dense_out:
        out_shape = jax.ShapeDtypeStruct((lp, 1, seq * cout), jnp.float32)
        out_spec = pl.BlockSpec((block_l, 1, seq * cout), lambda i: (i, 0, 0))
    else:
        out_shape = jax.ShapeDtypeStruct((lp, seq, cout), jnp.float32)
        out_spec = pl.BlockSpec((block_l, seq, cout), lambda i: (i, 0, 0))

    out = pl.pallas_call(
        kernel,
        out_shape=out_shape,
        grid=(lp // block_l,),
        in_specs=[
            pl.BlockSpec((block_l, seq, cin), lambda i: (i, 0, 0)),
            pl.BlockSpec((block_l, seq, cin), lambda i: (i, 0, 0)),
            pl.BlockSpec((cin, d_model), lambda i: (0, 0)),
            pl.BlockSpec((1, d_model), lambda i: (0, 0)),
            pl.BlockSpec((cin, d_model), lambda i: (0, 0)),
            pl.BlockSpec((1, d_model), lambda i: (0, 0)),
            pl.BlockSpec((cin, d_model), lambda i: (0, 0)),
            pl.BlockSpec((1, d_model), lambda i: (0, 0)),
            pl.BlockSpec((d_model, cout), lambda i: (0, 0)),
            pl.BlockSpec((1, cout), lambda i: (0, 0)),
        ],
        out_specs=out_spec,
        compiler_params=pltpu.CompilerParams(
            dimension_semantics=("parallel",),
            vmem_limit_bytes=int(vmem_limit)),
    )(q_in, k_in, wq, bq, wk, bk, wv, bv, wo, bo)

    out = out.reshape(lp, seq, cout)
    if lp != L:
        out = out[:L]
    return out


# ---------------------------------------------------------------------------
# Parameter construction (deterministic, mirrors torch init) + BN folding
# ---------------------------------------------------------------------------
def _xavier_uniform(key, cin, cout):
    limit = math.sqrt(6.0 / (cin + cout))
    return jax.random.uniform(key, (cin, cout), jnp.float32, -limit, limit)


def _make_fc_params(key, cin, cout):
    eps = 1e-5
    w = _xavier_uniform(key, cin, cout)
    b = jnp.zeros((cout,), jnp.float32)                      # zero-init bias
    # eval-mode BN with fresh running stats: scale = 1/sqrt(var+eps), shift = 0
    scale = jnp.full((cout,), 1.0 / math.sqrt(1.0 + eps), jnp.float32)
    shift = jnp.zeros((cout,), jnp.float32)
    return (w, b, scale, shift)


def _fold_bn(w, b, scale, shift, post_scale=1.0):
    """Fold eval-mode BN (and an optional positive post-ReLU scale):
       post_scale * relu((x@w+b)*scale+shift) == relu(x@w' + b')."""
    w_f = (w * scale[None, :] * post_scale).astype(jnp.bfloat16)
    b_f = ((b * scale + shift) * post_scale).astype(jnp.float32).reshape(1, -1)
    return w_f, b_f


def init_mab_params(key, K, d, input_dim, output_dim):
    D = K * d
    k1, k2, k3, k4 = jax.random.split(key, 4)
    return {
        "q": _make_fc_params(k1, input_dim, D),
        "k": _make_fc_params(k2, input_dim, D),
        "v": _make_fc_params(k3, input_dim, D),
        "out": _make_fc_params(k4, D, output_dim),
    }


# ---------------------------------------------------------------------------
# MAB forward (mask=None path), faithful to the torch code (incl. the
# split(size=K) head-split giving D//K == d heads of size K, scaled by sqrt(d))
# ---------------------------------------------------------------------------
def mab_forward(params, Q, K_in, batch_size, K, d, attn_type="spatial",
                block_l=None):
    # `batch_size` kept for API fidelity; the torch split-by-batch / concat on
    # dim -1 is realized by keeping each head in its channel slice in-kernel.
    del batch_size
    D = K * d
    num_heads = D // K          # torch.split(..., K, dim=-1) -> d heads of size K
    head_dim = K
    scale = 1.0 / math.sqrt(d)  # torch divides scores by sqrt(self.d)

    # Fold eval-mode BN into the conv weights/bias; fold the 1/sqrt(d) score
    # scale into the Q projection (ReLU is positively homogeneous).
    wq, bq = _fold_bn(*params["q"], post_scale=scale)
    wk, bk = _fold_bn(*params["k"])
    wv, bv = _fold_bn(*params["v"])
    wo, bo = _fold_bn(*params["out"])

    B, T, N, cin = Q.shape
    if attn_type == "temporal":
        # attention over the time axis per vertex
        Qx = jnp.transpose(Q, (0, 2, 1, 3)).reshape(B * N, T, cin)
        Kx = jnp.transpose(K_in, (0, 2, 1, 3)).reshape(B * N, T, cin)
    else:
        Qx = Q.reshape(B * T, N, cin)
        Kx = K_in.reshape(B * T, N, cin)

    Qx = Qx.astype(jnp.bfloat16)
    Kx = Kx.astype(jnp.bfloat16)

    out = _run_fused_mab(Qx, Kx, wq, bq, wk, bk, wv, bv, wo, bo,
                         num_heads, head_dim, block_l)

    cout = wo.shape[1]
    if attn_type == "temporal":
        out = jnp.transpose(out.reshape(B, N, T, cout), (0, 2, 1, 3))
    else:
        out = out.reshape(B, T, N, cout)
    return out


# ---------------------------------------------------------------------------
# Pure-JAX reference (full f32, mirrors the torch ops) for a sanity check
# ---------------------------------------------------------------------------
def _fc_ref(x, w, b, scale, shift):
    y = x @ w + b
    return jnp.maximum(y * scale + shift, 0.0)


def mab_reference(params, Q, K_in, batch_size, K, d, attn_type="spatial"):
    D = K * d
    H = D // K
    query = _fc_ref(Q, *params["q"])
    key = _fc_ref(K_in, *params["k"])
    value = _fc_ref(K_in, *params["v"])

    def to_heads(x):
        B, T, N, _ = x.shape
        return jnp.moveaxis(x.reshape(B, T, N, H, K), 3, 0).reshape(H * B, T, N, K)

    q, k_, v_ = to_heads(query), to_heads(key), to_heads(value)
    if attn_type == "temporal":
        q, k_, v_ = (jnp.transpose(t, (0, 2, 1, 3)) for t in (q, k_, v_))
    att = jnp.einsum("btqc,btkc->btqk", q, k_) / math.sqrt(d)
    att = jax.nn.softmax(att, axis=-1)
    res = jnp.einsum("btqk,btkc->btqc", att, v_)
    if attn_type == "temporal":
        res = jnp.transpose(res, (0, 2, 1, 3))
    B = batch_size
    _, T2, N2, hd = res.shape
    res = jnp.moveaxis(res.reshape(H, B, T2, N2, hd), 0, 3).reshape(B, T2, N2, H * hd)
    return _fc_ref(res, *params["out"])


# ---------------------------------------------------------------------------
if __name__ == "__main__":
    B, T, N = 2, 4, 16          # batch, num_step, num_vertex
    input_dim = 16
    K_heads, d = 4, 8           # D = K*d = 32
    output_dim = 16

    root = jax.random.PRNGKey(0)
    kq, kk, kp = jax.random.split(root, 3)
    Q = jax.random.normal(kq, (B, T, N, input_dim), jnp.float32)
    Kin = jax.random.normal(kk, (B, T, N, input_dim), jnp.float32)
    params = init_mab_params(kp, K_heads, d, input_dim, output_dim)

    out = mab_forward(params, Q, Kin, batch_size=B, K=K_heads, d=d,
                      attn_type="spatial")
    out = jax.block_until_ready(out)
    assert out.shape == (B, T, N, output_dim), out.shape

    ref = mab_reference(params, Q, Kin, batch_size=B, K=K_heads, d=d,
                        attn_type="spatial")
    np.testing.assert_allclose(np.asarray(out), np.asarray(ref),
                               rtol=2e-2, atol=2e-2)

    print("KERNEL_OK")
</pallas_src>

<mosaic_0001>
module attributes {stable_mosaic.version = 11 : i64} {
  func.func @_mab_kernel(%arg0: i32, %arg1: memref<8x16x16xbf16, #tpu.memory_space<vmem>>, %arg2: memref<8x16x16xbf16, #tpu.memory_space<vmem>>, %arg3: memref<16x32xbf16, #tpu.memory_space<vmem>>, %arg4: memref<1x32xf32, #tpu.memory_space<vmem>>, %arg5: memref<16x32xbf16, #tpu.memory_space<vmem>>, %arg6: memref<1x32xf32, #tpu.memory_space<vmem>>, %arg7: memref<16x32xbf16, #tpu.memory_space<vmem>>, %arg8: memref<1x32xf32, #tpu.memory_space<vmem>>, %arg9: memref<32x16xbf16, #tpu.memory_space<vmem>>, %arg10: memref<1x16xf32, #tpu.memory_space<vmem>>, %arg11: memref<8x1x256xf32, #tpu.memory_space<vmem>>) attributes {dimension_semantics = [#tpu.dimension_semantics<parallel>], iteration_bounds = array<i64: 1>, scalar_prefetch = 0 : i64, scratch_operands = 0 : i64, tpu.core_type = #tpu.core_type<tc>, window_params = [{transform_indices = @transform_0, window_bounds = array<i64: 8, 16, 16>}, {transform_indices = @transform_1, window_bounds = array<i64: 8, 16, 16>}, {pipeline_mode = #tpu.pipeline_mode<synchronous>, transform_indices = @transform_2, window_bounds = array<i64: 16, 32>}, {pipeline_mode = #tpu.pipeline_mode<synchronous>, transform_indices = @transform_3, window_bounds = array<i64: 1, 32>}, {pipeline_mode = #tpu.pipeline_mode<synchronous>, transform_indices = @transform_4, window_bounds = array<i64: 16, 32>}, {pipeline_mode = #tpu.pipeline_mode<synchronous>, transform_indices = @transform_5, window_bounds = array<i64: 1, 32>}, {pipeline_mode = #tpu.pipeline_mode<synchronous>, transform_indices = @transform_6, window_bounds = array<i64: 16, 32>}, {pipeline_mode = #tpu.pipeline_mode<synchronous>, transform_indices = @transform_7, window_bounds = array<i64: 1, 32>}, {pipeline_mode = #tpu.pipeline_mode<synchronous>, transform_indices = @transform_8, window_bounds = array<i64: 32, 16>}, {pipeline_mode = #tpu.pipeline_mode<synchronous>, transform_indices = @transform_9, window_bounds = array<i64: 1, 16>}, {transform_indices = @transform_10, window_bounds = array<i64: 8, 1, 256>}]} {
    %c0 = arith.constant 0 : index
    %c0_0 = arith.constant 0 : index
    %c0_1 = arith.constant 0 : index
    %0 = vector.load %arg1[%c0, %c0_0, %c0_1] : memref<8x16x16xbf16, #tpu.memory_space<vmem>>, vector<8x16x16xbf16>
    %1 = vector.shape_cast %0 : vector<8x16x16xbf16> to vector<128x16xbf16>
    %c0_2 = arith.constant 0 : index
    %c0_3 = arith.constant 0 : index
    %c0_4 = arith.constant 0 : index
    %2 = vector.load %arg2[%c0_2, %c0_3, %c0_4] : memref<8x16x16xbf16, #tpu.memory_space<vmem>>, vector<8x16x16xbf16>
    %3 = vector.shape_cast %2 : vector<8x16x16xbf16> to vector<128x16xbf16>
    %c0_5 = arith.constant 0 : index
    %c0_6 = arith.constant 0 : index
    %4 = vector.load %arg3[%c0_5, %c0_6] : memref<16x32xbf16, #tpu.memory_space<vmem>>, vector<16x32xbf16>
    %cst = arith.constant dense<0.000000e+00> : vector<128x32xf32>
    %5 = tpu.matmul %1, %4, %cst {dimension_numbers = #tpu.dot_dimension_numbers<[1], [0], [0], [1], [0, 0, 1, 1], [], []>} : vector<128x16xbf16>, vector<16x32xbf16>, vector<128x32xf32> -> vector<128x32xf32>
    %c0_7 = arith.constant 0 : index
    %c0_8 = arith.constant 0 : index
    %6 = vector.load %arg4[%c0_7, %c0_8] : memref<1x32xf32, #tpu.memory_space<vmem>>, vector<1x32xf32>
    %7 = vector.broadcast %6 : vector<1x32xf32> to vector<128x32xf32>
    %8 = arith.addf %5, %7 : vector<128x32xf32>
    %cst_9 = arith.constant 0.000000e+00 : f32
    %9 = vector.broadcast %cst_9 : f32 to vector<128x32xf32>
    %10 = arith.maximumf %8, %9 : vector<128x32xf32>
    %11 = arith.truncf %10 : vector<128x32xf32> to vector<128x32xbf16>
    %c0_10 = arith.constant 0 : index
    %c0_11 = arith.constant 0 : index
    %12 = vector.load %arg5[%c0_10, %c0_11] : memref<16x32xbf16, #tpu.memory_space<vmem>>, vector<16x32xbf16>
    %cst_12 = arith.constant dense<0.000000e+00> : vector<128x32xf32>
    %13 = tpu.matmul %3, %12, %cst_12 {dimension_numbers = #tpu.dot_dimension_numbers<[1], [0], [0], [1], [0, 0, 1, 1], [], []>} : vector<128x16xbf16>, vector<16x32xbf16>, vector<128x32xf32> -> vector<128x32xf32>
    %c0_13 = arith.constant 0 : index
    %c0_14 = arith.constant 0 : index
    %14 = vector.load %arg6[%c0_13, %c0_14] : memref<1x32xf32, #tpu.memory_space<vmem>>, vector<1x32xf32>
    %15 = vector.broadcast %14 : vector<1x32xf32> to vector<128x32xf32>
    %16 = arith.addf %13, %15 : vector<128x32xf32>
    %cst_15 = arith.constant 0.000000e+00 : f32
    %17 = vector.broadcast %cst_15 : f32 to vector<128x32xf32>
    %18 = arith.maximumf %16, %17 : vector<128x32xf32>
    %19 = arith.truncf %18 : vector<128x32xf32> to vector<128x32xbf16>
    %c0_16 = arith.constant 0 : index
    %c0_17 = arith.constant 0 : index
    %20 = vector.load %arg7[%c0_16, %c0_17] : memref<16x32xbf16, #tpu.memory_space<vmem>>, vector<16x32xbf16>
    %cst_18 = arith.constant dense<0.000000e+00> : vector<128x32xf32>
    %21 = tpu.matmul %3, %20, %cst_18 {dimension_numbers = #tpu.dot_dimension_numbers<[1], [0], [0], [1], [0, 0, 1, 1], [], []>} : vector<128x16xbf16>, vector<16x32xbf16>, vector<128x32xf32> -> vector<128x32xf32>
    %c0_19 = arith.constant 0 : index
    %c0_20 = arith.constant 0 : index
    %22 = vector.load %arg8[%c0_19, %c0_20] : memref<1x32xf32, #tpu.memory_space<vmem>>, vector<1x32xf32>
    %23 = vector.broadcast %22 : vector<1x32xf32> to vector<128x32xf32>
    %24 = arith.addf %21, %23 : vector<128x32xf32>
    %cst_21 = arith.constant 0.000000e+00 : f32
    %25 = vector.broadcast %cst_21 : f32 to vector<128x32xf32>
    %26 = arith.maximumf %24, %25 : vector<128x32xf32>
    %27 = arith.truncf %26 : vector<128x32xf32> to vector<128x32xbf16>
    %28 = vector.shape_cast %11 : vector<128x32xbf16> to vector<8x16x32xbf16>
    %29 = vector.shape_cast %19 : vector<128x32xbf16> to vector<8x16x32xbf16>
    %30 = vector.shape_cast %27 : vector<128x32xbf16> to vector<8x16x32xbf16>
    %31 = vector.extract_strided_slice %28 {offsets = [0, 0, 0], sizes = [8, 16, 4], strides = [1, 1, 1]} : vector<8x16x32xbf16> to vector<8x16x4xbf16>
    %32 = vector.extract_strided_slice %29 {offsets = [0, 0, 0], sizes = [8, 16, 4], strides = [1, 1, 1]} : vector<8x16x32xbf16> to vector<8x16x4xbf16>
    %33 = vector.extract_strided_slice %30 {offsets = [0, 0, 0], sizes = [8, 16, 4], strides = [1, 1, 1]} : vector<8x16x32xbf16> to vector<8x16x4xbf16>
    "tpu.trace_start"() <{level = 10 : i32, message = "bqd,bkd->bqk"}> : () -> ()
    %cst_22 = arith.constant dense<0.000000e+00> : vector<8x16x16xf32>
    %34 = tpu.matmul %31, %32, %cst_22 {dimension_numbers = #tpu.dot_dimension_numbers<[2], [2], [1], [1], [0, 0, 0, 1, 1, 1], [0], [0]>} : vector<8x16x4xbf16>, vector<8x16x4xbf16>, vector<8x16x16xf32> -> vector<8x16x16xf32>
    "tpu.trace_stop"() : () -> ()
    %cst_23 = arith.constant dense<0xFF800000> : vector<8x16xf32>
    %35 = vector.multi_reduction <maximumf>, %34, %cst_23 [2] : vector<8x16x16xf32> to vector<8x16xf32>
    %36 = vector.shape_cast %35 : vector<8x16xf32> to vector<8x16x1xf32>
    %37 = vector.broadcast %36 : vector<8x16x1xf32> to vector<8x16x16xf32>
    %38 = arith.subf %34, %37 : vector<8x16x16xf32>
    %39 = math.exp %38 : vector<8x16x16xf32>
    %cst_24 = arith.constant dense<0.000000e+00> : vector<8x16xf32>
    %40 = vector.multi_reduction <add>, %39, %cst_24 [2] : vector<8x16x16xf32> to vector<8x16xf32>
    %41 = vector.shape_cast %40 : vector<8x16xf32> to vector<8x16x1xf32>
    %42 = tpu.reciprocal %41 {approx = true} : vector<8x16x1xf32> -> vector<8x16x1xf32>
    %43 = vector.broadcast %42 : vector<8x16x1xf32> to vector<8x16x16xf32>
    %44 = arith.mulf %39, %43 : vector<8x16x16xf32>
    %45 = arith.truncf %44 : vector<8x16x16xf32> to vector<8x16x16xbf16>
    "tpu.trace_start"() <{level = 10 : i32, message = "bqk,bkd->bqd"}> : () -> ()
    %cst_25 = arith.constant dense<0.000000e+00> : vector<8x16x4xf32>
    %46 = tpu.matmul %45, %33, %cst_25 {dimension_numbers = #tpu.dot_dimension_numbers<[2], [1], [1], [2], [0, 0, 0, 1, 1, 2], [0], [0]>} : vector<8x16x16xbf16>, vector<8x16x4xbf16>, vector<8x16x4xf32> -> vector<8x16x4xf32>
    "tpu.trace_stop"() : () -> ()
    %47 = vector.extract_strided_slice %28 {offsets = [0, 0, 4], sizes = [8, 16, 4], strides = [1, 1, 1]} : vector<8x16x32xbf16> to vector<8x16x4xbf16>
    %48 = vector.extract_strided_slice %29 {offsets = [0, 0, 4], sizes = [8, 16, 4], strides = [1, 1, 1]} : vector<8x16x32xbf16> to vector<8x16x4xbf16>
    %49 = vector.extract_strided_slice %30 {offsets = [0, 0, 4], sizes = [8, 16, 4], strides = [1, 1, 1]} : vector<8x16x32xbf16> to vector<8x16x4xbf16>
    "tpu.trace_start"() <{level = 10 : i32, message = "bqd,bkd->bqk"}> : () -> ()
    %cst_26 = arith.constant dense<0.000000e+00> : vector<8x16x16xf32>
    %50 = tpu.matmul %47, %48, %cst_26 {dimension_numbers = #tpu.dot_dimension_numbers<[2], [2], [1], [1], [0, 0, 0, 1, 1, 1], [0], [0]>} : vector<8x16x4xbf16>, vector<8x16x4xbf16>, vector<8x16x16xf32> -> vector<8x16x16xf32>
    "tpu.trace_stop"() : () -> ()
    %cst_27 = arith.constant dense<0xFF800000> : vector<8x16xf32>
    %51 = vector.multi_reduction <maximumf>, %50, %cst_27 [2] : vector<8x16x16xf32> to vector<8x16xf32>
    %52 = vector.shape_cast %51 : vector<8x16xf32> to vector<8x16x1xf32>
    %53 = vector.broadcast %52 : vector<8x16x1xf32> to vector<8x16x16xf32>
    %54 = arith.subf %50, %53 : vector<8x16x16xf32>
    %55 = math.exp %54 : vector<8x16x16xf32>
    %cst_28 = arith.constant dense<0.000000e+00> : vector<8x16xf32>
    %56 = vector.multi_reduction <add>, %55, %cst_28 [2] : vector<8x16x16xf32> to vector<8x16xf32>
    %57 = vector.shape_cast %56 : vector<8x16xf32> to vector<8x16x1xf32>
    %58 = tpu.reciprocal %57 {approx = true} : vector<8x16x1xf32> -> vector<8x16x1xf32>
    %59 = vector.broadcast %58 : vector<8x16x1xf32> to vector<8x16x16xf32>
    %60 = arith.mulf %55, %59 : vector<8x16x16xf32>
    %61 = arith.truncf %60 : vector<8x16x16xf32> to vector<8x16x16xbf16>
    "tpu.trace_start"() <{level = 10 : i32, message = "bqk,bkd->bqd"}> : () -> ()
    %cst_29 = arith.constant dense<0.000000e+00> : vector<8x16x4xf32>
    %62 = tpu.matmul %61, %49, %cst_29 {dimension_numbers = #tpu.dot_dimension_numbers<[2], [1], [1], [2], [0, 0, 0, 1, 1, 2], [0], [0]>} : vector<8x16x16xbf16>, vector<8x16x4xbf16>, vector<8x16x4xf32> -> vector<8x16x4xf32>
    "tpu.trace_stop"() : () -> ()
    %63 = vector.extract_strided_slice %28 {offsets = [0, 0, 8], sizes = [8, 16, 4], strides = [1, 1, 1]} : vector<8x16x32xbf16> to vector<8x16x4xbf16>
    %64 = vector.extract_strided_slice %29 {offsets = [0, 0, 8], sizes = [8, 16, 4], strides = [1, 1, 1]} : vector<8x16x32xbf16> to vector<8x16x4xbf16>
    %65 = vector.extract_strided_slice %30 {offsets = [0, 0, 8], sizes = [8, 16, 4], strides = [1, 1, 1]} : vector<8x16x32xbf16> to vector<8x16x4xbf16>
    "tpu.trace_start"() <{level = 10 : i32, message = "bqd,bkd->bqk"}> : () -> ()
    %cst_30 = arith.constant dense<0.000000e+00> : vector<8x16x16xf32>
    %66 = tpu.matmul %63, %64, %cst_30 {dimension_numbers = #tpu.dot_dimension_numbers<[2], [2], [1], [1], [0, 0, 0, 1, 1, 1], [0], [0]>} : vector<8x16x4xbf16>, vector<8x16x4xbf16>, vector<8x16x16xf32> -> vector<8x16x16xf32>
    "tpu.trace_stop"() : () -> ()
    %cst_31 = arith.constant dense<0xFF800000> : vector<8x16xf32>
    %67 = vector.multi_reduction <maximumf>, %66, %cst_31 [2] : vector<8x16x16xf32> to vector<8x16xf32>
    %68 = vector.shape_cast %67 : vector<8x16xf32> to vector<8x16x1xf32>
    %69 = vector.broadcast %68 : vector<8x16x1xf32> to vector<8x16x16xf32>
    %70 = arith.subf %66, %69 : vector<8x16x16xf32>
    %71 = math.exp %70 : vector<8x16x16xf32>
    %cst_32 = arith.constant dense<0.000000e+00> : vector<8x16xf32>
    %72 = vector.multi_reduction <add>, %71, %cst_32 [2] : vector<8x16x16xf32> to vector<8x16xf32>
    %73 = vector.shape_cast %72 : vector<8x16xf32> to vector<8x16x1xf32>
    %74 = tpu.reciprocal %73 {approx = true} : vector<8x16x1xf32> -> vector<8x16x1xf32>
    %75 = vector.broadcast %74 : vector<8x16x1xf32> to vector<8x16x16xf32>
    %76 = arith.mulf %71, %75 : vector<8x16x16xf32>
    %77 = arith.truncf %76 : vector<8x16x16xf32> to vector<8x16x16xbf16>
    "tpu.trace_start"() <{level = 10 : i32, message = "bqk,bkd->bqd"}> : () -> ()
    %cst_33 = arith.constant dense<0.000000e+00> : vector<8x16x4xf32>
    %78 = tpu.matmul %77, %65, %cst_33 {dimension_numbers = #tpu.dot_dimension_numbers<[2], [1], [1], [2], [0, 0, 0, 1, 1, 2], [0], [0]>} : vector<8x16x16xbf16>, vector<8x16x4xbf16>, vector<8x16x4xf32> -> vector<8x16x4xf32>
    "tpu.trace_stop"() : () -> ()
    %79 = vector.extract_strided_slice %28 {offsets = [0, 0, 12], sizes = [8, 16, 4], strides = [1, 1, 1]} : vector<8x16x32xbf16> to vector<8x16x4xbf16>
    %80 = vector.extract_strided_slice %29 {offsets = [0, 0, 12], sizes = [8, 16, 4], strides = [1, 1, 1]} : vector<8x16x32xbf16> to vector<8x16x4xbf16>
    %81 = vector.extract_strided_slice %30 {offsets = [0, 0, 12], sizes = [8, 16, 4], strides = [1, 1, 1]} : vector<8x16x32xbf16> to vector<8x16x4xbf16>
    "tpu.trace_start"() <{level = 10 : i32, message = "bqd,bkd->bqk"}> : () -> ()
    %cst_34 = arith.constant dense<0.000000e+00> : vector<8x16x16xf32>
    %82 = tpu.matmul %79, %80, %cst_34 {dimension_numbers = #tpu.dot_dimension_numbers<[2], [2], [1], [1], [0, 0, 0, 1, 1, 1], [0], [0]>} : vector<8x16x4xbf16>, vector<8x16x4xbf16>, vector<8x16x16xf32> -> vector<8x16x16xf32>
    "tpu.trace_stop"() : () -> ()
    %cst_35 = arith.constant dense<0xFF800000> : vector<8x16xf32>
    %83 = vector.multi_reduction <maximumf>, %82, %cst_35 [2] : vector<8x16x16xf32> to vector<8x16xf32>
    %84 = vector.shape_cast %83 : vector<8x16xf32> to vector<8x16x1xf32>
    %85 = vector.broadcast %84 : vector<8x16x1xf32> to vector<8x16x16xf32>
    %86 = arith.subf %82, %85 : vector<8x16x16xf32>
    %87 = math.exp %86 : vector<8x16x16xf32>
    %cst_36 = arith.constant dense<0.000000e+00> : vector<8x16xf32>
    %88 = vector.multi_reduction <add>, %87, %cst_36 [2] : vector<8x16x16xf32> to vector<8x16xf32>
    %89 = vector.shape_cast %88 : vector<8x16xf32> to vector<8x16x1xf32>
    %90 = tpu.reciprocal %89 {approx = true} : vector<8x16x1xf32> -> vector<8x16x1xf32>
    %91 = vector.broadcast %90 : vector<8x16x1xf32> to vector<8x16x16xf32>
    %92 = arith.mulf %87, %91 : vector<8x16x16xf32>
    %93 = arith.truncf %92 : vector<8x16x16xf32> to vector<8x16x16xbf16>
    "tpu.trace_start"() <{level = 10 : i32, message = "bqk,bkd->bqd"}> : () -> ()
    %cst_37 = arith.constant dense<0.000000e+00> : vector<8x16x4xf32>
    %94 = tpu.matmul %93, %81, %cst_37 {dimension_numbers = #tpu.dot_dimension_numbers<[2], [1], [1], [2], [0, 0, 0, 1, 1, 2], [0], [0]>} : vector<8x16x16xbf16>, vector<8x16x4xbf16>, vector<8x16x4xf32> -> vector<8x16x4xf32>
    "tpu.trace_stop"() : () -> ()
    %95 = vector.extract_strided_slice %28 {offsets = [0, 0, 16], sizes = [8, 16, 4], strides = [1, 1, 1]} : vector<8x16x32xbf16> to vector<8x16x4xbf16>
    %96 = vector.extract_strided_slice %29 {offsets = [0, 0, 16], sizes = [8, 16, 4], strides = [1, 1, 1]} : vector<8x16x32xbf16> to vector<8x16x4xbf16>
    %97 = vector.extract_strided_slice %30 {offsets = [0, 0, 16], sizes = [8, 16, 4], strides = [1, 1, 1]} : vector<8x16x32xbf16> to vector<8x16x4xbf16>
    "tpu.trace_start"() <{level = 10 : i32, message = "bqd,bkd->bqk"}> : () -> ()
    %cst_38 = arith.constant dense<0.000000e+00> : vector<8x16x16xf32>
    %98 = tpu.matmul %95, %96, %cst_38 {dimension_numbers = #tpu.dot_dimension_numbers<[2], [2], [1], [1], [0, 0, 0, 1, 1, 1], [0], [0]>} : vector<8x16x4xbf16>, vector<8x16x4xbf16>, vector<8x16x16xf32> -> vector<8x16x16xf32>
    "tpu.trace_stop"() : () -> ()
    %cst_39 = arith.constant dense<0xFF800000> : vector<8x16xf32>
    %99 = vector.multi_reduction <maximumf>, %98, %cst_39 [2] : vector<8x16x16xf32> to vector<8x16xf32>
    %100 = vector.shape_cast %99 : vector<8x16xf32> to vector<8x16x1xf32>
    %101 = vector.broadcast %100 : vector<8x16x1xf32> to vector<8x16x16xf32>
    %102 = arith.subf %98, %101 : vector<8x16x16xf32>
    %103 = math.exp %102 : vector<8x16x16xf32>
    %cst_40 = arith.constant dense<0.000000e+00> : vector<8x16xf32>
    %104 = vector.multi_reduction <add>, %103, %cst_40 [2] : vector<8x16x16xf32> to vector<8x16xf32>
    %105 = vector.shape_cast %104 : vector<8x16xf32> to vector<8x16x1xf32>
    %106 = tpu.reciprocal %105 {approx = true} : vector<8x16x1xf32> -> vector<8x16x1xf32>
    %107 = vector.broadcast %106 : vector<8x16x1xf32> to vector<8x16x16xf32>
    %108 = arith.mulf %103, %107 : vector<8x16x16xf32>
    %109 = arith.truncf %108 : vector<8x16x16xf32> to vector<8x16x16xbf16>
    "tpu.trace_start"() <{level = 10 : i32, message = "bqk,bkd->bqd"}> : () -> ()
    %cst_41 = arith.constant dense<0.000000e+00> : vector<8x16x4xf32>
    %110 = tpu.matmul %109, %97, %cst_41 {dimension_numbers = #tpu.dot_dimension_numbers<[2], [1], [1], [2], [0, 0, 0, 1, 1, 2], [0], [0]>} : vector<8x16x16xbf16>, vector<8x16x4xbf16>, vector<8x16x4xf32> -> vector<8x16x4xf32>
    "tpu.trace_stop"() : () -> ()
    %111 = vector.extract_strided_slice %28 {offsets = [0, 0, 20], sizes = [8, 16, 4], strides = [1, 1, 1]} : vector<8x16x32xbf16> to vector<8x16x4xbf16>
    %112 = vector.extract_strided_slice %29 {offsets = [0, 0, 20], sizes = [8, 16, 4], strides = [1, 1, 1]} : vector<8x16x32xbf16> to vector<8x16x4xbf16>
    %113 = vector.extract_strided_slice %30 {offsets = [0, 0, 20], sizes = [8, 16, 4], strides = [1, 1, 1]} : vector<8x16x32xbf16> to vector<8x16x4xbf16>
    "tpu.trace_start"() <{level = 10 : i32, message = "bqd,bkd->bqk"}> : () -> ()
    %cst_42 = arith.constant dense<0.000000e+00> : vector<8x16x16xf32>
    %114 = tpu.matmul %111, %112, %cst_42 {dimension_numbers = #tpu.dot_dimension_numbers<[2], [2], [1], [1], [0, 0, 0, 1, 1, 1], [0], [0]>} : vector<8x16x4xbf16>, vector<8x16x4xbf16>, vector<8x16x16xf32> -> vector<8x16x16xf32>
    "tpu.trace_stop"() : () -> ()
    %cst_43 = arith.constant dense<0xFF800000> : vector<8x16xf32>
    %115 = vector.multi_reduction <maximumf>, %114, %cst_43 [2] : vector<8x16x16xf32> to vector<8x16xf32>
    %116 = vector.shape_cast %115 : vector<8x16xf32> to vector<8x16x1xf32>
    %117 = vector.broadcast %116 : vector<8x16x1xf32> to vector<8x16x16xf32>
    %118 = arith.subf %114, %117 : vector<8x16x16xf32>
    %119 = math.exp %118 : vector<8x16x16xf32>
    %cst_44 = arith.constant dense<0.000000e+00> : vector<8x16xf32>
    %120 = vector.multi_reduction <add>, %119, %cst_44 [2] : vector<8x16x16xf32> to vector<8x16xf32>
    %121 = vector.shape_cast %120 : vector<8x16xf32> to vector<8x16x1xf32>
    %122 = tpu.reciprocal %121 {approx = true} : vector<8x16x1xf32> -> vector<8x16x1xf32>
    %123 = vector.broadcast %122 : vector<8x16x1xf32> to vector<8x16x16xf32>
    %124 = arith.mulf %119, %123 : vector<8x16x16xf32>
    %125 = arith.truncf %124 : vector<8x16x16xf32> to vector<8x16x16xbf16>
    "tpu.trace_start"() <{level = 10 : i32, message = "bqk,bkd->bqd"}> : () -> ()
    %cst_45 = arith.constant dense<0.000000e+00> : vector<8x16x4xf32>
    %126 = tpu.matmul %125, %113, %cst_45 {dimension_numbers = #tpu.dot_dimension_numbers<[2], [1], [1], [2], [0, 0, 0, 1, 1, 2], [0], [0]>} : vector<8x16x16xbf16>, vector<8x16x4xbf16>, vector<8x16x4xf32> -> vector<8x16x4xf32>
    "tpu.trace_stop"() : () -> ()
    %127 = vector.extract_strided_slice %28 {offsets = [0, 0, 24], sizes = [8, 16, 4], strides = [1, 1, 1]} : vector<8x16x32xbf16> to vector<8x16x4xbf16>
    %128 = vector.extract_strided_slice %29 {offsets = [0, 0, 24], sizes = [8, 16, 4], strides = [1, 1, 1]} : vector<8x16x32xbf16> to vector<8x16x4xbf16>
    %129 = vector.extract_strided_slice %30 {offsets = [0, 0, 24], sizes = [8, 16, 4], strides = [1, 1, 1]} : vector<8x16x32xbf16> to vector<8x16x4xbf16>
    "tpu.trace_start"() <{level = 10 : i32, message = "bqd,bkd->bqk"}> : () -> ()
    %cst_46 = arith.constant dense<0.000000e+00> : vector<8x16x16xf32>
    %130 = tpu.matmul %127, %128, %cst_46 {dimension_numbers = #tpu.dot_dimension_numbers<[2], [2], [1], [1], [0, 0, 0, 1, 1, 1], [0], [0]>} : vector<8x16x4xbf16>, vector<8x16x4xbf16>, vector<8x16x16xf32> -> vector<8x16x16xf32>
    "tpu.trace_stop"() : () -> ()
    %cst_47 = arith.constant dense<0xFF800000> : vector<8x16xf32>
    %131 = vector.multi_reduction <maximumf>, %130, %cst_47 [2] : vector<8x16x16xf32> to vector<8x16xf32>
    %132 = vector.shape_cast %131 : vector<8x16xf32> to vector<8x16x1xf32>
    %133 = vector.broadcast %132 : vector<8x16x1xf32> to vector<8x16x16xf32>
    %134 = arith.subf %130, %133 : vector<8x16x16xf32>
    %135 = math.exp %134 : vector<8x16x16xf32>
    %cst_48 = arith.constant dense<0.000000e+00> : vector<8x16xf32>
    %136 = vector.multi_reduction <add>, %135, %cst_48 [2] : vector<8x16x16xf32> to vector<8x16xf32>
    %137 = vector.shape_cast %136 : vector<8x16xf32> to vector<8x16x1xf32>
    %138 = tpu.reciprocal %137 {approx = true} : vector<8x16x1xf32> -> vector<8x16x1xf32>
    %139 = vector.broadcast %138 : vector<8x16x1xf32> to vector<8x16x16xf32>
    %140 = arith.mulf %135, %139 : vector<8x16x16xf32>
    %141 = arith.truncf %140 : vector<8x16x16xf32> to vector<8x16x16xbf16>
    "tpu.trace_start"() <{level = 10 : i32, message = "bqk,bkd->bqd"}> : () -> ()
    %cst_49 = arith.constant dense<0.000000e+00> : vector<8x16x4xf32>
    %142 = tpu.matmul %141, %129, %cst_49 {dimension_numbers = #tpu.dot_dimension_numbers<[2], [1], [1], [2], [0, 0, 0, 1, 1, 2], [0], [0]>} : vector<8x16x16xbf16>, vector<8x16x4xbf16>, vector<8x16x4xf32> -> vector<8x16x4xf32>
    "tpu.trace_stop"() : () -> ()
    %143 = vector.extract_strided_slice %28 {offsets = [0, 0, 28], sizes = [8, 16, 4], strides = [1, 1, 1]} : vector<8x16x32xbf16> to vector<8x16x4xbf16>
    %144 = vector.extract_strided_slice %29 {offsets = [0, 0, 28], sizes = [8, 16, 4], strides = [1, 1, 1]} : vector<8x16x32xbf16> to vector<8x16x4xbf16>
    %145 = vector.extract_strided_slice %30 {offsets = [0, 0, 28], sizes = [8, 16, 4], strides = [1, 1, 1]} : vector<8x16x32xbf16> to vector<8x16x4xbf16>
    "tpu.trace_start"() <{level = 10 : i32, message = "bqd,bkd->bqk"}> : () -> ()
    %cst_50 = arith.constant dense<0.000000e+00> : vector<8x16x16xf32>
    %146 = tpu.matmul %143, %144, %cst_50 {dimension_numbers = #tpu.dot_dimension_numbers<[2], [2], [1], [1], [0, 0, 0, 1, 1, 1], [0], [0]>} : vector<8x16x4xbf16>, vector<8x16x4xbf16>, vector<8x16x16xf32> -> vector<8x16x16xf32>
    "tpu.trace_stop"() : () -> ()
    %cst_51 = arith.constant dense<0xFF800000> : vector<8x16xf32>
    %147 = vector.multi_reduction <maximumf>, %146, %cst_51 [2] : vector<8x16x16xf32> to vector<8x16xf32>
    %148 = vector.shape_cast %147 : vector<8x16xf32> to vector<8x16x1xf32>
    %149 = vector.broadcast %148 : vector<8x16x1xf32> to vector<8x16x16xf32>
    %150 = arith.subf %146, %149 : vector<8x16x16xf32>
    %151 = math.exp %150 : vector<8x16x16xf32>
    %cst_52 = arith.constant dense<0.000000e+00> : vector<8x16xf32>
    %152 = vector.multi_reduction <add>, %151, %cst_52 [2] : vector<8x16x16xf32> to vector<8x16xf32>
    %153 = vector.shape_cast %152 : vector<8x16xf32> to vector<8x16x1xf32>
    %154 = tpu.reciprocal %153 {approx = true} : vector<8x16x1xf32> -> vector<8x16x1xf32>
    %155 = vector.broadcast %154 : vector<8x16x1xf32> to vector<8x16x16xf32>
    %156 = arith.mulf %151, %155 : vector<8x16x16xf32>
    %157 = arith.truncf %156 : vector<8x16x16xf32> to vector<8x16x16xbf16>
    "tpu.trace_start"() <{level = 10 : i32, message = "bqk,bkd->bqd"}> : () -> ()
    %cst_53 = arith.constant dense<0.000000e+00> : vector<8x16x4xf32>
    %158 = tpu.matmul %157, %145, %cst_53 {dimension_numbers = #tpu.dot_dimension_numbers<[2], [1], [1], [2], [0, 0, 0, 1, 1, 2], [0], [0]>} : vector<8x16x16xbf16>, vector<8x16x4xbf16>, vector<8x16x4xf32> -> vector<8x16x4xf32>
    "tpu.trace_stop"() : () -> ()
    %159 = tpu.concatenate %46, %62, %78, %94, %110, %126, %142, %158 in 2 : vector<8x16x4xf32>, vector<8x16x4xf32>, vector<8x16x4xf32>, vector<8x16x4xf32>, vector<8x16x4xf32>, vector<8x16x4xf32>, vector<8x16x4xf32>, vector<8x16x4xf32> -> vector<8x16x32xf32>
    %160 = vector.shape_cast %159 : vector<8x16x32xf32> to vector<128x32xf32>
    %161 = arith.truncf %160 : vector<128x32xf32> to vector<128x32xbf16>
    %c0_54 = arith.constant 0 : index
    %c0_55 = arith.constant 0 : index
    %162 = vector.load %arg9[%c0_54, %c0_55] : memref<32x16xbf16, #tpu.memory_space<vmem>>, vector<32x16xbf16>
    %cst_56 = arith.constant dense<0.000000e+00> : vector<128x16xf32>
    %163 = tpu.matmul %161, %162, %cst_56 {dimension_numbers = #tpu.dot_dimension_numbers<[1], [0], [0], [1], [0, 0, 1, 1], [], []>} : vector<128x32xbf16>, vector<32x16xbf16>, vector<128x16xf32> -> vector<128x16xf32>
    %c0_57 = arith.constant 0 : index
    %c0_58 = arith.constant 0 : index
    %164 = vector.load %arg10[%c0_57, %c0_58] : memref<1x16xf32, #tpu.memory_space<vmem>>, vector<1x16xf32>
    %165 = vector.broadcast %164 : vector<1x16xf32> to vector<128x16xf32>
    %166 = arith.addf %163, %165 : vector<128x16xf32>
    %cst_59 = arith.constant 0.000000e+00 : f32
    %167 = vector.broadcast %cst_59 : f32 to vector<128x16xf32>
    %168 = arith.maximumf %166, %167 : vector<128x16xf32>
    %169 = vector.shape_cast %168 : vector<128x16xf32> to vector<8x16x16xf32>
    %170 = vector.extract_strided_slice %169 {offsets = [0, 0, 0], sizes = [8, 1, 16], strides = [1, 1, 1]} : vector<8x16x16xf32> to vector<8x1x16xf32>
    %171 = vector.extract_strided_slice %169 {offsets = [0, 1, 0], sizes = [8, 1, 16], strides = [1, 1, 1]} : vector<8x16x16xf32> to vector<8x1x16xf32>
    %172 = vector.extract_strided_slice %169 {offsets = [0, 2, 0], sizes = [8, 1, 16], strides = [1, 1, 1]} : vector<8x16x16xf32> to vector<8x1x16xf32>
    %173 = vector.extract_strided_slice %169 {offsets = [0, 3, 0], sizes = [8, 1, 16], strides = [1, 1, 1]} : vector<8x16x16xf32> to vector<8x1x16xf32>
    %174 = vector.extract_strided_slice %169 {offsets = [0, 4, 0], sizes = [8, 1, 16], strides = [1, 1, 1]} : vector<8x16x16xf32> to vector<8x1x16xf32>
    %175 = vector.extract_strided_slice %169 {offsets = [0, 5, 0], sizes = [8, 1, 16], strides = [1, 1, 1]} : vector<8x16x16xf32> to vector<8x1x16xf32>
    %176 = vector.extract_strided_slice %169 {offsets = [0, 6, 0], sizes = [8, 1, 16], strides = [1, 1, 1]} : vector<8x16x16xf32> to vector<8x1x16xf32>
    %177 = vector.extract_strided_slice %169 {offsets = [0, 7, 0], sizes = [8, 1, 16], strides = [1, 1, 1]} : vector<8x16x16xf32> to vector<8x1x16xf32>
    %178 = vector.extract_strided_slice %169 {offsets = [0, 8, 0], sizes = [8, 1, 16], strides = [1, 1, 1]} : vector<8x16x16xf32> to vector<8x1x16xf32>
    %179 = vector.extract_strided_slice %169 {offsets = [0, 9, 0], sizes = [8, 1, 16], strides = [1, 1, 1]} : vector<8x16x16xf32> to vector<8x1x16xf32>
    %180 = vector.extract_strided_slice %169 {offsets = [0, 10, 0], sizes = [8, 1, 16], strides = [1, 1, 1]} : vector<8x16x16xf32> to vector<8x1x16xf32>
    %181 = vector.extract_strided_slice %169 {offsets = [0, 11, 0], sizes = [8, 1, 16], strides = [1, 1, 1]} : vector<8x16x16xf32> to vector<8x1x16xf32>
    %182 = vector.extract_strided_slice %169 {offsets = [0, 12, 0], sizes = [8, 1, 16], strides = [1, 1, 1]} : vector<8x16x16xf32> to vector<8x1x16xf32>
    %183 = vector.extract_strided_slice %169 {offsets = [0, 13, 0], sizes = [8, 1, 16], strides = [1, 1, 1]} : vector<8x16x16xf32> to vector<8x1x16xf32>
    %184 = vector.extract_strided_slice %169 {offsets = [0, 14, 0], sizes = [8, 1, 16], strides = [1, 1, 1]} : vector<8x16x16xf32> to vector<8x1x16xf32>
    %185 = vector.extract_strided_slice %169 {offsets = [0, 15, 0], sizes = [8, 1, 16], strides = [1, 1, 1]} : vector<8x16x16xf32> to vector<8x1x16xf32>
    %186 = tpu.concatenate %170, %171, %172, %173, %174, %175, %176, %177, %178, %179, %180, %181, %182, %183, %184, %185 in 2 : vector<8x1x16xf32>, vector<8x1x16xf32>, vector<8x1x16xf32>, vector<8x1x16xf32>, vector<8x1x16xf32>, vector<8x1x16xf32>, vector<8x1x16xf32>, vector<8x1x16xf32>, vector<8x1x16xf32>, vector<8x1x16xf32>, vector<8x1x16xf32>, vector<8x1x16xf32>, vector<8x1x16xf32>, vector<8x1x16xf32>, vector<8x1x16xf32>, vector<8x1x16xf32> -> vector<8x1x256xf32>
    %c0_60 = arith.constant 0 : index
    %c0_61 = arith.constant 0 : index
    %c0_62 = arith.constant 0 : index
    %187 = vector.load %arg11[%c0_60, %c0_61, %c0_62] : memref<8x1x256xf32, #tpu.memory_space<vmem>>, vector<8x1x256xf32>
    tpu.vector_store %arg11[%c0_60, %c0_61, %c0_62], %186 {strides = array<i32>} : memref<8x1x256xf32, #tpu.memory_space<vmem>>, vector<8x1x256xf32>,
    return
  }
  func.func @transform_0(%arg0: i32) -> (i32, i32, i32) {
    %c0_i32 = arith.constant 0 : i32
    %c0_i32_0 = arith.constant 0 : i32
    %c0_i32_1 = arith.constant 0 : i32
    return %arg0, %c0_i32, %c0_i32_0 : i32, i32, i32
  }
  func.func @transform_1(%arg0: i32) -> (i32, i32, i32) {
    %c0_i32 = arith.constant 0 : i32
    %c0_i32_0 = arith.constant 0 : i32
    %c0_i32_1 = arith.constant 0 : i32
    return %arg0, %c0_i32, %c0_i32_0 : i32, i32, i32
  }
  func.func @transform_2(%arg0: i32) -> (i32, i32) {
    %c0_i32 = arith.constant 0 : i32
    %c0_i32_0 = arith.constant 0 : i32
    %c0_i32_1 = arith.constant 0 : i32
    return %c0_i32, %c0_i32_0 : i32, i32
  }
  func.func @transform_3(%arg0: i32) -> (i32, i32) {
    %c0_i32 = arith.constant 0 : i32
    %c0_i32_0 = arith.constant 0 : i32
    %c0_i32_1 = arith.constant 0 : i32
    return %c0_i32, %c0_i32_0 : i32, i32
  }
  func.func @transform_4(%arg0: i32) -> (i32, i32) {
    %c0_i32 = arith.constant 0 : i32
    %c0_i32_0 = arith.constant 0 : i32
    %c0_i32_1 = arith.constant 0 : i32
    return %c0_i32, %c0_i32_0 : i32, i32
  }
  func.func @transform_5(%arg0: i32) -> (i32, i32) {
    %c0_i32 = arith.constant 0 : i32
    %c0_i32_0 = arith.constant 0 : i32
    %c0_i32_1 = arith.constant 0 : i32
    return %c0_i32, %c0_i32_0 : i32, i32
  }
  func.func @transform_6(%arg0: i32) -> (i32, i32) {
    %c0_i32 = arith.constant 0 : i32
    %c0_i32_0 = arith.constant 0 : i32
    %c0_i32_1 = arith.constant 0 : i32
    return %c0_i32, %c0_i32_0 : i32, i32
  }
  func.func @transform_7(%arg0: i32) -> (i32, i32) {
    %c0_i32 = arith.constant 0 : i32
    %c0_i32_0 = arith.constant 0 : i32
    %c0_i32_1 = arith.constant 0 : i32
    return %c0_i32, %c0_i32_0 : i32, i32
  }
  func.func @transform_8(%arg0: i32) -> (i32, i32) {
    %c0_i32 = arith.constant 0 : i32
    %c0_i32_0 = arith.constant 0 : i32
    %c0_i32_1 = arith.constant 0 : i32
    return %c0_i32, %c0_i32_0 : i32, i32
  }
  func.func @transform_9(%arg0: i32) -> (i32, i32) {
    %c0_i32 = arith.constant 0 : i32
    %c0_i32_0 = arith.constant 0 : i32
    %c0_i32_1 = arith.constant 0 : i32
    return %c0_i32, %c0_i32_0 : i32, i32
  }
  func.func @transform_10(%arg0: i32) -> (i32, i32, i32) {
    %c0_i32 = arith.constant 0 : i32
    %c0_i32_0 = arith.constant 0 : i32
    %c0_i32_1 = arith.constant 0 : i32
    return %arg0, %c0_i32, %c0_i32_0 : i32, i32, i32
  }
}

</mosaic_0001>

<bundles_post_ra>
// kernel: tpu_custom_call.1
= control target key start
LH: loop header
LB: loop body
LE: loop exit
PB: predicated region body
PF: predicated region fallthrough
CT: control target
= control target key end

     0   :  { %15 = vsyncpa [#allocation3], 0  ;;  %s11193_s0 = inlined_call_operand.hbm [shape: bf16[8,16,16], index: 0, kind: input, shape index: {}]   ;;  %s11194_s1 = inlined_call_operand.hbm [shape: bf16[8,16,16], index: 1, kind: input, shape index: {}]   ;;  %s11195_s2 = inlined_call_operand.vmem [shape: bf16[16,32], index: 2, kind: input, shape index: {}]   ;;  %s11196_s3 = inlined_call_operand.vmem [shape: f32[1,32], index: 3, kind: input, shape index: {}]   ;;  %s11197_s4 = inlined_call_operand.vmem [shape: bf16[16,32], index: 4, kind: input, shape index: {}]   ;;  %s11198_s5 = inlined_call_operand.vmem [shape: f32[1,32], index: 5, kind: input, shape index: {}]   ;;  %s11199_s6 = inlined_call_operand.vmem [shape: bf16[16,32], index: 6, kind: input, shape index: {}]   ;;  %s11200_s7 = inlined_call_operand.vmem [shape: f32[1,32], index: 7, kind: input, shape index: {}]   ;;  %s11201_s8 = inlined_call_operand.vmem [shape: bf16[32,16], index: 8, kind: input, shape index: {}]   ;;  %s11202_s9 = inlined_call_operand.vmem [shape: f32[1,16], index: 9, kind: input, shape index: {}]   ;;  %s11203_s10 = inlined_call_operand.hbm [shape: f32[8,1,256], index: 10, kind: output, shape index: {}]  }
   0x1   :  { %16 = vsyncpa [#allocation6], 0 }
   0x2   :  { %17 = vsyncpa [#allocation4], 0  ;;  %s22_s15 = sshll.u32 %s11193_s0, 4  ;;  %s7756_s16 = smov [#allocation2]   ;;  %s23_s15 = int_to_ptr.hbm [resolvable:$true] %s22_s15 }
   0x3   :  { %s24_s17 = sshll.u32 %s7756_s16, 4  ;;  %s35_s20 = sshll.u32 %s11194_s1, 4  ;;  %s25_s17 = int_to_ptr.vmem [resolvable:$true] %s24_s17  ;;  %s36_s20 = int_to_ptr.hbm [resolvable:$true] %s35_s20 }
   0x4   :  { %s7757_s21 = smov 64   ;;  %s7758_s22 = smov 4  }
   0x5   :  { %30 = dma.hbm_to_vmem [thread:$0]  %s23_s15, 1024, %s25_s17, [#allocation3], %s7757_s21, %s7757_s21, %s7758_s22  }
   0x6   :  { %s7759_s23 = smov [#allocation5]  }
   0x7   :  { %s37_s24 = sshll.u32 %s7759_s23, 4  ;;  %s38_s24 = int_to_ptr.vmem [resolvable:$true] %s37_s24 }
   0x8   :  { %43 = dma.hbm_to_vmem [thread:$0]  %s36_s20, 1024, %s38_s24, [#allocation6], %s7757_s21, %s7757_s21, %s7758_s22  }
   0x9   :  { %7750 = dma.done.wait [#allocation3], 1024  }
   0xa   :  { %7751 = vsyncadd [#allocation3], 4294966272 }
   0xb   :  { %7752 = dma.done.wait [#allocation6], 1024  }
   0xc   :  { %7753 = vsyncadd [#allocation6], 4294966272  ;;  %v6851_v0 = vld [vmem:[%s11195_s2] sm:$0xff]  ;;  %v6837_v1 = vld [vmem:[#allocation2 + $0x10] sm:$0xff]  ;;  %vm153_vm0 = vcmask 130048   ;;  %vm519_vm1 = vcmask 31744  }
   0xd   :  { %v6852_v2 = vld [vmem:[%s11197_s4] sm:$0xff]  ;;  %6856 = vmatpush.bf16.msra.mxu1 %v6851_v0  ;;  %185 = vmatpush.bf16.msra.mxu0 %v6851_v0  ;;  %v6838_v4 = vld [vmem:[#allocation2 + $0x18] sm:$0xff]  ;;  %v6836_v5 = vld [vmem:[#allocation2 + $0x8] sm:$0xff]  ;;  %s7762_s11 = smov 116   ;;  %s7763_s12 = smov 112   ;;  %vm5718_vm2 = vcmask 64512  }
   0xe   :  { %v6835_v3 = vld [vmem:[#allocation2] sm:$0xff]  ;;  %6857 = vmatpush.bf16.msra.mxu2 %v6851_v0  ;;  %6858 = vmatpush.bf16.msra.mxu3 %v6851_v0  ;;  %v7860_v7 = vld [vmem:[#allocation5 + $0x8] sm:$0xff]  ;;  %v7865_v9 = vld [vmem:[#allocation5 + $0x10] sm:$0xff]  ;;  %s7764_s13 = smov 108   ;;  %s7765_s14 = smov 104   ;;  %vm5735_vm3 = vcmask 97280  }
   0xf   :  { %v7856_v6 = vld [vmem:[#allocation5] sm:$0xff]  ;;  %v6840_v10 = vld [vmem:[#allocation2 + $0x28] sm:$0xff]  ;;  %v7870_v11 = vld [vmem:[#allocation5 + $0x18] sm:$0xff]  ;;  %s7766_s15 = smov 100   ;;  %s7767_s16 = smov 16   ;;  %vm5768_vm4 = vcmask 162816  }
  0x10   :  { %6629 = vmatmul.msk.bf16.vlgmr.msra.gmra.mxu1 %vm153_vm0, %v6837_v1  ;;  %6627 = vmatmul.msk.bf16.vlgmr.msra.gmra.mxu0 %vm153_vm0, %v6835_v3  ;;  %v6839_v8 = vld [vmem:[#allocation2 + $0x20] sm:$0xff]  ;;  %v6841_v12 = vld [vmem:[#allocation2 + $0x30] sm:$0xff]  ;;  %v7879_v14 = vld [vmem:[#allocation5 + $0x28] sm:$0xff]  ;;  %s7768_s17 = smov 20   ;;  %s7769_s18 = smov 12   ;;  %vm5785_vm5 = vcmask 195584  }
  0x11   :  { %342 = vmatpush.bf16.msrb.mxu1 %v6852_v2  ;;  %6631 = vmatmul.msk.bf16.vlgmr.msra.gmra.mxu2 %vm153_vm0, %v6839_v8  ;;  %v7875_v13 = vld [vmem:[#allocation5 + $0x20] sm:$0xff]  ;;  %v6842_v15 = vld [vmem:[#allocation2 + $0x38] sm:$0xff]  ;;  %v7889_v17 = vld [vmem:[#allocation5 + $0x30] sm:$0xff]  ;;  %s7770_s19 = smov 8   ;;  %s7771_s20 = smov 24   ;;  %vm5802_vm6 = vcmask 228352  }
  0x12   :  { %6633 = vmatmul.msk.bf16.vlgmr.msra.gmra.mxu3 %vm153_vm0, %v6841_v12  ;;  %v7887_v16 = vld [vmem:[%s11196_s3] ss:$0 sm:$0xff]  ;;  %v7895_v28 = vld [vmem:[#allocation5 + $0x38] sm:$0xff]  ;;  %s7760_s3 = smov 124   ;;  %s7772_s23 = smov 28   ;;  %vm5847_vm7 = vcmask 261120  }
  0x13   :  { %v7910_v33 = vld [vmem:[%s11198_s5] ss:$0 sm:$0xff]  ;;  %s7773_s26 = smov 48   ;;  %s7775_s2 = smov 32   ;;  %vm6417_vm8 = vcmask 392192   ;;  %vm6426_vm9 = vcmask 523264  }
  0x14   :  { %s7776_s4 = smov 80   ;;  %vm6435_vm10 = vcmask 654336   ;;  %vm6444_vm11 = vcmask 785408   ;;  %vm6453_vm12 = vcmask 916480   ;;  %vm6542_vm13 = vcmask 1040384   ;;  %s6577_s27 = sshll.u32 %s11203_s10, 4  ;;  %s6578_s27 = int_to_ptr.hbm [resolvable:$true] %s6577_s27 }
  0x15   :  { %s7777_s28 = smov [#allocation7]   ;;  %s7778_s29 = smov 2  }
  0x16   :  { %s6575_s5 = sshll.u32 %s7777_s28, 4  ;;  %s6576_s5 = int_to_ptr.vmem [resolvable:$true] %s6575_s5 }
  0x20   :  { %6630 = vmatmul.msk.bf16.gmra.mxu1 %vm153_vm0, %v6838_v4  ;;  %6628 = vmatmul.msk.bf16.gmra.mxu0 %vm153_vm0, %v6836_v5 }
  0x21   :  { %6632 = vmatmul.msk.bf16.gmra.mxu2 %vm153_vm0, %v6840_v10 }
  0x22   :  { %6634 = vmatmul.msk.bf16.gmra.mxu3 %vm153_vm0, %v6842_v15 }
  0x30   :  { %6671 = vmatmul.msk.bf16.vlgmr.msrb.gmra.mxu1 %vm153_vm0, %v7856_v6 }
  0x40   :  { %6672 = vmatmul.msk.bf16.gmra.mxu1 %vm153_vm0, %v7860_v7 }
  0x50   :  { %6673 = vmatmul.msk.bf16.gmra.mxu1 %vm153_vm0, %v7865_v9 }
  0x60   :  { %6674 = vmatmul.msk.bf16.gmra.mxu1 %vm153_vm0, %v7870_v11 }
  0x70   :  { %6675 = vmatmul.msk.bf16.gmra.mxu1 %vm153_vm0, %v7875_v13 }
  0x80   :  { %6676 = vmatmul.msk.bf16.gmra.mxu1 %vm153_vm0, %v7879_v14 }
  0x8d   :  { %v197_v18 = vpop.f32.mrf.mxu1  ;;  %v187_v32 = vpop.f32.mrf.mxu0 }
  0x8e   :  { %v198_v19 = vadd.f32 %v7887_v16, %v197_v18  ;;  %v188_v39 = vadd.f32 %v7887_v16, %v187_v32 }
  0x90   :  { %6677 = vmatmul.msk.bf16.gmra.mxu1 %vm153_vm0, %v7889_v17  ;;  %v231_v20 = vmax.f32 %v198_v19, 0.0  ;;  %v227_v45 = vmax.f32 %v188_v39, 0.0 }
  0x92   :  { %v247_v23 = vpack.c.bf16 %v231_v20, %v231_v20  ;;  %v243_v51 = vpack.c.bf16 %v227_v45, %v227_v45 }
  0x94   :  { %v572_v26 = vunpack.c.l.b16 %v247_v23  ;;  %v511_v56 = vunpack.c.l.b16 %v243_v51 }
  0x95   :  { %v199_v21 = vpop.f32.mrf.mxu1  ;;  %v189_v35 = vpop.f32.mrf.mxu0 }
  0x96   :  { %v200_v22 = vadd.f32 %v7887_v16, %v199_v21  ;;  %v190_v41 = vadd.f32 %v7887_v16, %v189_v35 }
  0x98   :  { %v232_v24 = vmax.f32 %v200_v22, 0.0  ;;  %v228_v47 = vmax.f32 %v190_v41, 0.0 }
  0x9a   :  { %v248_v25 = vpack.c.bf16 %v232_v24, %v232_v24  ;;  %v244_v53 = vpack.c.bf16 %v228_v47, %v228_v47 }
  0x9c   :  { %v573_v27 = vunpack.c.l.b16 %v248_v25  ;;  %v512_v57 = vunpack.c.l.b16 %v244_v53 }
  0x9d   :  { %v7897_v29 = vpop.f32.mrf.mxu1  ;;  %v192_v44 = vpop.f32.mrf.mxu0 }
  0x9e   :  { %v7899_v30 = vpack.c.b16 %v573_v27, %v572_v26  ;;  %v7923_v61 = vpack.c.b16 %v512_v57, %v511_v56  ;;  %v193_v62 = vadd.f32 %v7887_v16, %v192_v44  ;;  %v207_v44 = vpop.f32.mrf.mxu2  ;;  %v203_v47 = vadd.f32 %v7887_v16, %v7897_v29 }
  0xa0   :  { %6678 = vmatmul.msk.bf16.gmra.mxu1 %vm153_vm0, %v7895_v28  ;;  %1214 = vrot.lane.b32.xlu1 %v7899_v30, %s7760_s3  ;;  %v229_v3 = vmax.f32 %v193_v62, 0.0  ;;  %v233_v53 = vmax.f32 %v203_v47, 0.0 }
  0xa2   :  { %v245_v15 = vpack.c.bf16 %v229_v3, %v229_v3  ;;  %v208_v3 = vadd.f32 %v7887_v16, %v207_v44 }
  0xa4   :  { %v542_v22 = vunpack.c.l.b16 %v245_v15  ;;  %v235_v15 = vmax.f32 %v208_v3, 0.0 }
  0xa5   :  { %v7905_v31 = vpop.f32.mrf.mxu1  ;;  %v194_v58 = vpop.f32.mrf.mxu0 }
  0xa6   :  { %v195_v0 = vadd.f32 %v7887_v16, %v194_v58  ;;  %v205_v45 = vadd.f32 %v7887_v16, %v7905_v31  ;;  %v209_v31 = vpop.f32.mrf.mxu2 }
  0xa8   :  { %v230_v5 = vmax.f32 %v195_v0, 0.0 }
  0xaa   :  { %v246_v19 = vpack.c.bf16 %v230_v5, %v230_v5  ;;  %v210_v5 = vadd.f32 %v7887_v16, %v209_v31 }
  0xac   :  { %v543_v23 = vunpack.c.l.b16 %v246_v19 }
  0xad   :  { %v344_v34 = vpop.f32.mrf.mxu1 }
  0xae   :  { %v345_v36 = vadd.f32 %v7910_v33, %v344_v34  ;;  %v7935_v26 = vpack.c.b16 %v543_v23, %v542_v22 }
  0xb0   :  { %v384_v37 = vmax.f32 %v345_v36, 0.0 }
  0xb2   :  { %v400_v42 = vpack.c.bf16 %v384_v37, %v384_v37 }
  0xb4   :  { %v516_v48 = vunpack.c.l.b16 %v400_v42 }
  0xb5   :  { %v346_v38 = vpop.f32.mrf.mxu1 }
  0xb6   :  { %v347_v40 = vadd.f32 %v7910_v33, %v346_v38 }
  0xb8   :  { %v385_v43 = vmax.f32 %v347_v40, 0.0 }
  0xba   :  { %v401_v46 = vpack.c.bf16 %v385_v43, %v385_v43 }
  0xbc   :  { %v517_v49 = vunpack.c.l.b16 %v401_v46 }
  0xbd   :  { %v349_v50 = vpop.f32.mrf.mxu1 }
  0xbe   :  { %v7916_v52 = vpack.c.b16 %v517_v49, %v516_v48  ;;  %v350_v54 = vadd.f32 %v7910_v33, %v349_v50  ;;  %v234_v50 = vmax.f32 %v205_v45, 0.0 }
  0xc0   :  { %1168 = vrot.lane.b32.xlu2 %v7916_v52, %s7760_s3  ;;  %v524_v55 = vsel %vm519_vm1, %v7916_v52, 0  ;;  %v386_v59 = vmax.f32 %v350_v54, 0.0  ;;  %v250_v57 = vpack.c.bf16 %v234_v50, %v234_v50 }
  0xc1   :  { %533 = vmatpush.bf16.xpose.msrb.mxu3 %v524_v55 }
  0xc2   :  { %v402_v1 = vpack.c.bf16 %v386_v59, %v386_v59  ;;  %v249_v59 = vpack.c.bf16 %v233_v53, %v233_v53  ;;  %v603_v62 = vunpack.c.l.b16 %v250_v57 }
  0xc4   :  { %v547_v8 = vunpack.c.l.b16 %v402_v1 }
  0xc5   :  { %v351_v60 = vpop.f32.mrf.mxu1 }
  0xc6   :  { %v352_v63 = vadd.f32 %v7910_v33, %v351_v60 }
  0xc8   :  { %v387_v2 = vmax.f32 %v352_v63, 0.0  ;;  %6691 = vmatmul.msk.bf16.vlgmr.msrb.gmra.mxu3 %vm519_vm1, %v7923_v61  ;;  %v602_v63 = vunpack.c.l.b16 %v249_v59 }
  0xca   :  { %v403_v4 = vpack.c.bf16 %v387_v2, %v387_v2  ;;  %v7961_v2 = vpack.c.b16 %v603_v62, %v602_v63 }
  0xcc   :  { %v548_v10 = vunpack.c.l.b16 %v403_v4 }
  0xcd   :  { %v354_v12 = vpop.f32.mrf.mxu1 }
  0xce   :  { %v7930_v18 = vpack.c.b16 %v548_v10, %v547_v8  ;;  %v355_v20 = vadd.f32 %v7910_v33, %v354_v12  ;;  %v212_v12 = vpop.f32.mrf.mxu2 }
  0xd0   :  { %v554_v21 = vsel %vm519_vm1, %v7930_v18, 0  ;;  %v388_v24 = vmax.f32 %v355_v20, 0.0  ;;  %v236_v20 = vmax.f32 %v210_v5, 0.0 }
  0xd1   :  { %563 = vmatpush.bf16.xpose.msra.mxu3 %v554_v21 }
  0xd2   :  { %v404_v32 = vpack.c.bf16 %v388_v24, %v388_v24  ;;  %v251_v24 = vpack.c.bf16 %v235_v15, %v235_v15  ;;  %v6853_v15 = vld [vmem:[%s11199_s6] sm:$0xff] }
  0xd3   :  { %435 = vmatpush.bf16.msrb.mxu2 %v6853_v15 }
  0xd4   :  { %v577_v36 = vunpack.c.l.b16 %v404_v32 }
  0xd5   :  { %v356_v25 = vpop.f32.mrf.mxu1 }
  0xd6   :  { %v357_v27 = vadd.f32 %v7910_v33, %v356_v25  ;;  %6683 = vmatmul.msk.bf16.vlgmr.msrb.gmra.mxu2 %vm153_vm0, %v7856_v6 }
  0xd8   :  { %v389_v34 = vmax.f32 %v357_v27, 0.0  ;;  %6692 = vmatmul.msk.bf16.vlgmr.msra.gmra.mxu3 %vm519_vm1, %v7935_v26  ;;  %v252_v27 = vpack.c.bf16 %v236_v20, %v236_v20 }
  0xda   :  { %v405_v35 = vpack.c.bf16 %v389_v34, %v389_v34 }
  0xdc   :  { %v578_v37 = vunpack.c.l.b16 %v405_v35  ;;  %v632_v35 = vunpack.c.l.b16 %v251_v24 }
  0xdd   :  { %v359_v38 = vpop.f32.mrf.mxu1 }
  0xde   :  { %v7940_v39 = vpack.c.b16 %v578_v37, %v577_v36  ;;  %v360_v40 = vadd.f32 %v7910_v33, %v359_v38  ;;  %v633_v36 = vunpack.c.l.b16 %v252_v27  ;;  %v214_v37 = vpop.f32.mrf.mxu2 }
  0xdf   :  { %v215_v45 = vadd.f32 %v7887_v16, %v214_v37 }
  0xe0   :  { %v584_v41 = vsel %vm519_vm1, %v7940_v39, 0  ;;  %1216 = vrot.lane.b32.xlu0 %v7940_v39, %s7760_s3  ;;  %v390_v42 = vmax.f32 %v360_v40, 0.0 }
  0xe1   :  { %593 = vmatpush.bf16.xpose.msrb.mxu3 %v584_v41  ;;  %v217_v41 = vpop.f32.mrf.mxu3  ;;  %v238_v50 = vmax.f32 %v215_v45, 0.0 }
  0xe2   :  { %v406_v48 = vpack.c.bf16 %v390_v42, %v390_v42  ;;  %v7973_v42 = vpack.c.b16 %v633_v36, %v632_v35  ;;  %v218_v3 = vadd.f32 %v7887_v16, %v217_v41 }
  0xe3   :  { %v254_v57 = vpack.c.bf16 %v238_v50, %v238_v50 }
  0xe4   :  { %v607_v54 = vunpack.c.l.b16 %v406_v48 }
  0xe5   :  { %v361_v43 = vpop.f32.mrf.mxu1  ;;  %v663_v62 = vunpack.c.l.b16 %v254_v57 }
  0xe6   :  { %v362_v46 = vadd.f32 %v7910_v33, %v361_v43  ;;  %v213_v43 = vadd.f32 %v7887_v16, %v212_v12  ;;  %6684 = vmatmul.msk.bf16.gmra.mxu2 %vm153_vm0, %v7860_v7 }
  0xe8   :  { %v391_v49 = vmax.f32 %v362_v46, 0.0  ;;  %6693 = vmatmul.msk.bf16.vlgmr.msrb.gmra.mxu3 %vm519_vm1, %v7899_v30  ;;  %v237_v48 = vmax.f32 %v213_v43, 0.0 }
  0xe9   :  { %v219_v31 = vpop.f32.mrf.mxu3 }
  0xea   :  { %v407_v51 = vpack.c.bf16 %v391_v49, %v391_v49  ;;  %v220_v5 = vadd.f32 %v7887_v16, %v219_v31 }
  0xec   :  { %v608_v55 = vunpack.c.l.b16 %v407_v51 }
  0xed   :  { %v364_v56 = vpop.f32.mrf.mxu1 }
  0xee   :  { %v7954_v58 = vpack.c.b16 %v608_v55, %v607_v54  ;;  %v365_v60 = vadd.f32 %v7910_v33, %v364_v56  ;;  %v253_v55 = vpack.c.bf16 %v237_v48, %v237_v48 }
  0xf0   :  { %v614_v29 = vsel %vm519_vm1, %v7954_v58, 0  ;;  %1240 = vrot.lane.b32.xlu0 %v7954_v58, %s7760_s3  ;;  %v392_v0 = vmax.f32 %v365_v60, 0.0 }
  0xf1   :  { %623 = vmatpush.bf16.xpose.msra.mxu3 %v614_v29  ;;  %v662_v29 = vunpack.c.l.b16 %v253_v55 }
  0xf2   :  { %v408_v8 = vpack.c.bf16 %v392_v0, %v392_v0 }
  0xf4   :  { %v637_v21 = vunpack.c.l.b16 %v408_v8  ;;  %v222_v8 = vpop.f32.mrf.mxu3 }
  0xf5   :  { %v366_v1 = vpop.f32.mrf.mxu1  ;;  %v223_v43 = vadd.f32 %v7887_v16, %v222_v8 }
  0xf6   :  { %v367_v4 = vadd.f32 %v7910_v33, %v366_v1  ;;  %v7985_v1 = vpack.c.b16 %v663_v62, %v662_v29  ;;  %6685 = vmatmul.msk.bf16.gmra.mxu2 %vm153_vm0, %v7865_v9 }
  0xf7   :  { %v241_v48 = vmax.f32 %v223_v43, 0.0 }
  0xf8   :  { %v393_v10 = vmax.f32 %v367_v4, 0.0  ;;  %6694 = vmatmul.msk.bf16.vlgmr.msra.gmra.mxu3 %vm519_vm1, %v7961_v2 }
  0xfa   :  { %v409_v19 = vpack.c.bf16 %v393_v10, %v393_v10 }
  0xfc   :  { %v638_v22 = vunpack.c.l.b16 %v409_v19  ;;  %v239_v19 = vmax.f32 %v218_v3, 0.0  ;;  %v224_v37 = vpop.f32.mrf.mxu3 }
  0xfd   :  { %v369_v23 = vpop.f32.mrf.mxu1 }
  0xfe   :  { %v7968_v25 = vpack.c.b16 %v638_v22, %v637_v21  ;;  %v370_v32 = vadd.f32 %v7910_v33, %v369_v23  ;;  %v240_v21 = vmax.f32 %v220_v5, 0.0  ;;  %v255_v27 = vpack.c.bf16 %v239_v19, %v239_v19 }
 0x100   :  { %v644_v34 = vsel %vm519_vm1, %v7968_v25, 0  ;;  %v394_v38 = vmax.f32 %v370_v32, 0.0 }
 0x101   :  { %653 = vmatpush.bf16.xpose.msrb.mxu3 %v644_v34  ;;  %v256_v34 = vpack.c.bf16 %v240_v21, %v240_v21 }
 0x102   :  { %v410_v46 = vpack.c.bf16 %v394_v38, %v394_v38  ;;  %v692_v38 = vunpack.c.l.b16 %v255_v27 }
 0x104   :  { %v667_v51 = vunpack.c.l.b16 %v410_v46 }
 0x105   :  { %v371_v40 = vpop.f32.mrf.mxu1 }
 0x106   :  { %v372_v44 = vadd.f32 %v7910_v33, %v371_v40  ;;  %v693_v40 = vunpack.c.l.b16 %v256_v34  ;;  %6686 = vmatmul.msk.bf16.gmra.mxu2 %vm153_vm0, %v7870_v11 }
 0x108   :  { %v395_v47 = vmax.f32 %v372_v44, 0.0  ;;  %6695 = vmatmul.msk.bf16.vlgmr.msrb.gmra.mxu3 %vm519_vm1, %v7973_v42  ;;  %v225_v44 = vadd.f32 %v7887_v16, %v224_v37  ;;  %v8004_v6 = vpack.c.b16 %v693_v40, %v692_v38 }
 0x10a   :  { %v411_v49 = vpack.c.bf16 %v395_v47, %v395_v47  ;;  %v242_v50 = vmax.f32 %v225_v44, 0.0 }
 0x10c   :  { %v668_v53 = vunpack.c.l.b16 %v411_v49  ;;  %v258_v57 = vpack.c.bf16 %v242_v50, %v242_v50 }
 0x10d   :  { %v374_v54 = vpop.f32.mrf.mxu1 }
 0x10e   :  { %v7980_v56 = vpack.c.b16 %v668_v53, %v667_v51  ;;  %v375_v59 = vadd.f32 %v7910_v33, %v374_v54  ;;  %v257_v54 = vpack.c.bf16 %v241_v48, %v241_v48 }
 0x110   :  { %11212 = vst [vmem:[#allocation11_spill] sm:$0xff] %v7980_v56  ;;  %v674_v60 = vsel %vm519_vm1, %v7980_v56, 0  ;;  %v396_v63 = vmax.f32 %v375_v59, 0.0  ;;  %v722_v31 = vunpack.c.l.b16 %v257_v54  ;;  %v723_v59 = vunpack.c.l.b16 %v258_v57 }
 0x111   :  { %683 = vmatpush.bf16.xpose.msra.mxu3 %v674_v60 }
 0x112   :  { %v412_v10 = vpack.c.bf16 %v396_v63, %v396_v63  ;;  %v8015_v60 = vpack.c.b16 %v723_v59, %v722_v31 }
 0x114   :  { %v697_v22 = vunpack.c.l.b16 %v412_v10 }
 0x115   :  { %v376_v0 = vpop.f32.mrf.mxu1 }
 0x116   :  { %v377_v4 = vadd.f32 %v7910_v33, %v376_v0  ;;  %6687 = vmatmul.msk.bf16.gmra.mxu2 %vm153_vm0, %v7875_v13 }
 0x118   :  { %v397_v12 = vmax.f32 %v377_v4, 0.0  ;;  %6696 = vmatmul.msk.bf16.vlgmr.msra.gmra.mxu3 %vm519_vm1, %v7985_v1 }
 0x11a   :  { %v413_v20 = vpack.c.bf16 %v397_v12, %v397_v12 }
 0x11c   :  { %v698_v23 = vunpack.c.l.b16 %v413_v20 }
 0x11d   :  { %v379_v24 = vpop.f32.mrf.mxu1 }
 0x11e   :  { %v7997_v32 = vpack.c.b16 %v698_v23, %v697_v22  ;;  %v380_v35 = vadd.f32 %v7910_v33, %v379_v24 }
 0x120   :  { %11213 = vst [vmem:[#allocation12_spill] sm:$0xff] %v7997_v32  ;;  %v704_v36 = vsel %vm519_vm1, %v7997_v32, 0  ;;  %v398_v41 = vmax.f32 %v380_v35, 0.0  ;;  %v8086_v35 = vld [vmem:[%s11200_s7] ss:$0 sm:$0xff]  ;;  %s7761_s7 = smov 120  }
 0x121   :  { %713 = vmatpush.bf16.xpose.msrb.mxu3 %v704_v36 }
 0x122   :  { %v414_v46 = vpack.c.bf16 %v398_v41, %v398_v41 }
 0x124   :  { %v727_v51 = vunpack.c.l.b16 %v414_v46  ;;  %v8094_v46 = vpop.permute.xlu1 %1214 }
 0x125   :  { %v381_v45 = vpop.f32.mrf.mxu1 }
 0x126   :  { %v382_v47 = vadd.f32 %v7910_v33, %v381_v45  ;;  %6688 = vmatmul.msk.bf16.gmra.mxu2 %vm153_vm0, %v7879_v14 }
 0x128   :  { %v399_v49 = vmax.f32 %v382_v47, 0.0  ;;  %6697 = vmatmul.msk.bf16.vlgmr.msrb.gmra.mxu3 %vm519_vm1, %v8004_v6 }
 0x12a   :  { %v415_v53 = vpack.c.bf16 %v399_v49, %v399_v49 }
 0x12c   :  { %v728_v55 = vunpack.c.l.b16 %v415_v53 }
 0x12e   :  { %v8011_v16 = vpack.c.b16 %v728_v55, %v727_v51 }
 0x130   :  { %v734_v33 = vsel %vm519_vm1, %v8011_v16, 0 }
 0x131   :  { %743 = vmatpush.bf16.xpose.msra.mxu3 %v734_v33 }
 0x136   :  { %6689 = vmatmul.msk.bf16.gmra.mxu2 %vm153_vm0, %v7889_v17 }
 0x138   :  { %6698 = vmatmul.msk.bf16.vlgmr.msra.gmra.mxu3 %vm519_vm1, %v8015_v60 }
 0x146   :  { %6690 = vmatmul.msk.bf16.gmra.mxu2 %vm153_vm0, %v7895_v28 }
 0x14b   :  { %v8021_v29 = vpop.f32.mrf.mxu3 }
 0x14c   :  { %v750_v7 = vsel %vm153_vm0, %v8021_v29, -inf }
 0x14d   :  { %751 = vmax.xlane.f32.xlu1 %v750_v7 }
 0x153   :  { %v8027_v62 = vpop.f32.mrf.mxu3 }
 0x154   :  { %v753_v63 = vsel %vm153_vm0, %v8027_v62, -inf }
 0x155   :  { %754 = vmax.xlane.f32.xlu1 %v753_v63 }
 0x159   :  { %v437_v36 = vpop.f32.mrf.mxu2 }
 0x15a   :  { %v438_v37 = vadd.f32 %v8086_v35, %v437_v36 }
 0x15b   :  { %v8031_v0 = vpop.f32.mrf.mxu3 }
 0x15c   :  { %v756_v9 = vsel %vm153_vm0, %v8031_v0, -inf  ;;  %v477_v38 = vmax.f32 %v438_v37, 0.0 }
 0x15d   :  { %757 = vmax.xlane.f32.xlu2 %v756_v9 }
 0x15e   :  { %v493_v44 = vpack.c.bf16 %v477_v38, %v477_v38 }
 0x160   :  { %v949_v48 = vunpack.c.l.b16 %v493_v44 }
 0x161   :  { %v439_v43 = vpop.f32.mrf.mxu2 }
 0x162   :  { %v440_v45 = vadd.f32 %v8086_v35, %v439_v43 }
 0x163   :  { %v8037_v3 = vpop.f32.mrf.mxu3 }
 0x164   :  { %v759_v11 = vsel %vm153_vm0, %v8037_v3, -inf  ;;  %v478_v47 = vmax.f32 %v440_v45, 0.0 }
 0x165   :  { %760 = vmax.xlane.f32.xlu0 %v759_v11 }
 0x166   :  { %v494_v49 = vpack.c.bf16 %v478_v47, %v478_v47 }
 0x168   :  { %v950_v53 = vunpack.c.l.b16 %v494_v49 }
 0x169   :  { %v442_v54 = vpop.f32.mrf.mxu2 }
 0x16a   :  { %v8100_v55 = vpack.c.b16 %v950_v53, %v949_v48  ;;  %v443_v57 = vadd.f32 %v8086_v35, %v442_v54 }
 0x16b   :  { %v8041_v4 = vpop.f32.mrf.mxu3 }
 0x16c   :  { %v762_v5 = vsel %vm153_vm0, %v8041_v4, -inf  ;;  %963 = vmatpush.bf16.msrb.mxu0 %v8100_v55  ;;  %v479_v59 = vmax.f32 %v443_v57, 0.0 }
 0x16d   :  { %763 = vmax.xlane.f32.xlu0 %v762_v5  ;;  %v8111_v5 = vpop.permute.xlu0 %1216 }
 0x16e   :  { %v495_v9 = vpack.c.bf16 %v479_v59, %v479_v59 }
 0x171   :  { %v444_v63 = vpop.f32.mrf.mxu2 }
 0x172   :  { %v445_v11 = vadd.f32 %v8086_v35, %v444_v63 }
 0x173   :  { %v8047_v8 = vpop.f32.mrf.mxu3 }
 0x174   :  { %v765_v13 = vsel %vm153_vm0, %v8047_v8, -inf }
 0x175   :  { %766 = vmax.xlane.f32.xlu0 %v765_v13  ;;  %v8117_v38 = vpop.permute.xlu0 %1240 }
 0x17b   :  { %v8051_v10 = vpop.f32.mrf.mxu3 }
 0x17c   :  { %v768_v12 = vsel %vm153_vm0, %v8051_v10, -inf }
 0x17d   :  { %769 = vmax.xlane.f32.xlu2 %v768_v12  ;;  %v480_v12 = vmax.f32 %v445_v11, 0.0  ;;  %v8131_v11 = vpop.permute.xlu2 %1168 }
 0x183   :  { %v8057_v15 = vpop.f32.mrf.mxu3 }
 0x184   :  { %v771_v14 = vsel %vm153_vm0, %v8057_v15, -inf }
 0x185   :  { %772 = vmax.xlane.f32.xlu2 %v771_v14 }
 0x18b   :  { %v8061_v19 = vpop.f32.mrf.mxu3 }
 0x18c   :  { %v774_v20 = vsel %vm153_vm0, %v8061_v19, -inf }
 0x18d   :  { %775 = vmax.xlane.f32.xlu1 %v774_v20  ;;  %v977_v20 = vunpack.c.l.b16 %v495_v9 }
 0x193   :  { %v8067_v21 = vpop.f32.mrf.mxu3 }
 0x194   :  { %v777_v17 = vsel %vm153_vm0, %v8067_v21, -inf }
 0x195   :  { %778 = vmax.xlane.f32.xlu2 %v777_v17  ;;  %v496_v17 = vpack.c.bf16 %v480_v12, %v480_v12 }
 0x19b   :  { %v8071_v22 = vpop.f32.mrf.mxu3 }
 0x19c   :  { %v780_v23 = vsel %vm153_vm0, %v8071_v22, -inf }
 0x19d   :  { %781 = vmax.xlane.f32.xlu2 %v780_v23 }
 0x1a3   :  { %v8075_v24 = vpop.f32.mrf.mxu3 }
 0x1a4   :  { %v783_v27 = vsel %vm153_vm0, %v8075_v24, -inf }
 0x1a5   :  { %784 = vmax.xlane.f32.xlu0 %v783_v27  ;;  %v978_v27 = vunpack.c.l.b16 %v496_v17 }
 0x1a7   :  { %v8114_v36 = vpack.c.b16 %v978_v27, %v977_v20 }
 0x1a9   :  { %991 = vmatpush.bf16.msra.mxu1 %v8114_v36 }
 0x1ab   :  { %v8079_v34 = vpop.f32.mrf.mxu3 }
 0x1ac   :  { %v786_v28 = vsel %vm153_vm0, %v8079_v34, -inf }
 0x1ad   :  { %787 = vmax.xlane.f32.xlu0 %v786_v28  ;;  %v447_v28 = vpop.f32.mrf.mxu2 }
 0x1ae   :  { %v448_v37 = vadd.f32 %v8086_v35, %v447_v28 }
 0x1b3   :  { %v8089_v40 = vpop.f32.mrf.mxu3 }
 0x1b4   :  { %v789_v41 = vsel %vm153_vm0, %v8089_v40, -inf }
 0x1b5   :  { %790 = vmax.xlane.f32.xlu1 %v789_v41  ;;  %v481_v41 = vmax.f32 %v448_v37, 0.0  ;;  %v449_v44 = vpop.f32.mrf.mxu2 }
 0x1b6   :  { %v450_v47 = vadd.f32 %v8086_v35, %v449_v44 }
 0x1b7   :  { %v497_v45 = vpack.c.bf16 %v481_v41, %v481_v41 }
 0x1b8   :  { %v482_v49 = vmax.f32 %v450_v47, 0.0 }
 0x1b9   :  { %v1005_v53 = vunpack.c.l.b16 %v497_v45 }
 0x1ba   :  { %v498_v54 = vpack.c.bf16 %v482_v49, %v482_v49 }
 0x1bb   :  { %v8096_v50 = vpop.f32.mrf.mxu3 }
 0x1bc   :  { %v792_v51 = vsel %vm153_vm0, %v8096_v50, -inf  ;;  %v1006_v59 = vunpack.c.l.b16 %v498_v54 }
 0x1bd   :  { %793 = vmax.xlane.f32.xlu0 %v792_v51 }
 0x1be   :  { %v8128_v63 = vpack.c.b16 %v1006_v59, %v1005_v53 }
 0x1c0   :  { %v8103_v31 = vpop.xlane.xlu1 %751  ;;  %1019 = vmatpush.bf16.msra.mxu2 %v8128_v63 }
 0x1c1   :  { %v798_v44 = vsub.f32 %v8021_v29, %v8103_v31 }
 0x1c3   :  { %v8106_v33 = vpop.f32.mrf.mxu3  ;;  %v814_v54 = vmul.f32 1.442695, %v798_v44 }
 0x1c4   :  { %v795_v7 = vsel %vm153_vm0, %v8106_v33, -inf }
 0x1c5   :  { %796 = vmax.xlane.f32.xlu1 %v795_v7  ;;  %v452_v7 = vpop.f32.mrf.mxu2 }
 0x1c6   :  { %v453_v9 = vadd.f32 %v8086_v35, %v452_v7 }
 0x1c8   :  { %v755_v13 = vpop.xlane.xlu1 %754 }
 0x1c9   :  { %v799_v14 = vsub.f32 %v8027_v62, %v755_v13 }
 0x1cb   :  { %v816_v23 = vmul.f32 1.442695, %v799_v14  ;;  %v483_v14 = vmax.f32 %v453_v9, 0.0 }
 0x1cd   :  { %7166 = vpow2.f32 %v816_v23  ;;  %v454_v23 = vpop.f32.mrf.mxu2  ;;  %v499_v27 = vpack.c.bf16 %v483_v14, %v483_v14 }
 0x1ce   :  { %v455_v28 = vadd.f32 %v8086_v35, %v454_v23 }
 0x1cf   :  { %v1033_v45 = vunpack.c.l.b16 %v499_v27 }
 0x1d0   :  { %v758_v37 = vpop.xlane.xlu2 %757 }
 0x1d1   :  { %1312 = vrot.lane.b32.xlu0 %v7997_v32, %s7760_s3 }
 0x1d3   :  { %v8122_v43 = vpop.eup %7166 }
 0x1d4   :  { %v849_v62 = vsel %vm153_vm0, %v8122_v43, 0.0 }
 0x1d5   :  { %850 = vadd.xlane.f32.xlu1 %v849_v62  ;;  %v484_v62 = vmax.f32 %v455_v28, 0.0 }
 0x1d7   :  { %v500_v47 = vpack.c.bf16 %v484_v62, %v484_v62 }
 0x1d8   :  { %v761_v48 = vpop.xlane.xlu0 %760 }
 0x1d9   :  { %v801_v51 = vsub.f32 %v8037_v3, %v761_v48  ;;  %v1034_v53 = vunpack.c.l.b16 %v500_v47 }
 0x1db   :  { %v820_v57 = vmul.f32 1.442695, %v801_v51  ;;  %v8147_v59 = vpack.c.b16 %v1034_v53, %v1033_v45 }
 0x1dd   :  { %7168 = vpow2.f32 %v820_v57  ;;  %v457_v57 = vpop.f32.mrf.mxu2  ;;  %1047 = vmatpush.bf16.msrb.mxu3 %v8147_v59 }
 0x1de   :  { %v458_v7 = vadd.f32 %v8086_v35, %v457_v57 }
 0x1e0   :  { %v764_v13 = vpop.xlane.xlu0 %763  ;;  %v485_v9 = vmax.f32 %v458_v7, 0.0 }
 0x1e1   :  { %v802_v12 = vsub.f32 %v8041_v4, %v764_v13 }
 0x1e2   :  { %v501_v23 = vpack.c.bf16 %v485_v9, %v485_v9 }
 0x1e3   :  { %v8135_v20 = vpop.eup %7168  ;;  %v822_v3 = vmul.f32 1.442695, %v802_v12 }
 0x1e4   :  { %v855_v17 = vsel %vm153_vm0, %v8135_v20, 0.0  ;;  %v1061_v62 = vunpack.c.l.b16 %v501_v23 }
 0x1e5   :  { %7170 = vpow2.f32 %v822_v3  ;;  %856 = vadd.xlane.f32.xlu1 %v855_v17  ;;  %v459_v17 = vpop.f32.mrf.mxu2 }
 0x1e6   :  { %v460_v27 = vadd.f32 %v8086_v35, %v459_v17 }
 0x1e8   :  { %v767_v41 = vpop.xlane.xlu0 %766 }
 0x1e9   :  { %v803_v4 = vsub.f32 %v8047_v8, %v767_v41  ;;  %v800_v8 = vsub.f32 %v8031_v0, %v758_v37  ;;  %v486_v0 = vmax.f32 %v460_v27, 0.0 }
 0x1eb   :  { %v8143_v48 = vpop.eup %7170  ;;  %v824_v49 = vmul.f32 1.442695, %v803_v4  ;;  %v818_v3 = vmul.f32 1.442695, %v800_v8  ;;  %v502_v44 = vpack.c.bf16 %v486_v0, %v486_v0 }
 0x1ec   :  { %v858_v51 = vsel %vm153_vm0, %v8143_v48, 0.0 }
 0x1ed   :  { %7172 = vpow2.f32 %v824_v49  ;;  %859 = vadd.xlane.f32.xlu1 %v858_v51  ;;  %v1062_v47 = vunpack.c.l.b16 %v502_v44  ;;  %v462_v51 = vpop.f32.mrf.mxu2 }
 0x1ee   :  { %7174 = vpow2.f32 %v814_v54  ;;  %v463_v54 = vadd.f32 %v8086_v35, %v462_v51 }
 0x1ef   :  { %v8167_v53 = vpack.c.b16 %v1062_v47, %v1061_v62 }
 0x1f0   :  { %v770_v29 = vpop.xlane.xlu2 %769  ;;  %v487_v8 = vmax.f32 %v463_v54, 0.0 }
 0x1f1   :  { %v804_v31 = vsub.f32 %v8051_v10, %v770_v29  ;;  %1075 = vmatpush.bf16.msra.mxu0 %v8167_v53 }
 0x1f3   :  { %v8153_v13 = vpop.eup %7172  ;;  %v826_v12 = vmul.f32 1.442695, %v804_v31 }
 0x1f4   :  { %v861_v14 = vsel %vm153_vm0, %v8153_v13, 0.0  ;;  %v8158_v28 = vpop.eup %7174 }
 0x1f5   :  { %7176 = vpow2.f32 %v826_v12  ;;  %862 = vadd.xlane.f32.xlu2 %v861_v14  ;;  %v846_v37 = vsel %vm153_vm0, %v8158_v28, 0.0  ;;  %v464_v9 = vpop.f32.mrf.mxu2  ;;  %v503_v12 = vpack.c.bf16 %v487_v8, %v487_v8 }
 0x1f6   :  { %7178 = vpow2.f32 %v818_v3  ;;  %v465_v14 = vadd.f32 %v8086_v35, %v464_v9 }
 0x1f8   :  { %v773_v41 = vpop.xlane.xlu2 %772  ;;  %v488_v23 = vmax.f32 %v465_v14, 0.0 }
 0x1f9   :  { %v805_v10 = vsub.f32 %v8057_v15, %v773_v41  ;;  %v1089_v41 = vunpack.c.l.b16 %v503_v12 }
 0x1fa   :  { %v504_v0 = vpack.c.bf16 %v488_v23, %v488_v23 }
 0x1fb   :  { %v8163_v4 = vpop.eup %7176  ;;  %847 = vadd.xlane.f32.xlu0 %v846_v37  ;;  %v828_v49 = vmul.f32 1.442695, %v805_v10 }
 0x1fc   :  { %v864_v45 = vsel %vm153_vm0, %v8163_v4, 0.0  ;;  %v8170_v15 = vpop.eup %7178  ;;  %v1090_v44 = vunpack.c.l.b16 %v504_v0 }
 0x1fd   :  { %865 = vadd.xlane.f32.xlu2 %v864_v45  ;;  %7180 = vpow2.f32 %v828_v49  ;;  %v852_v29 = vsel %vm153_vm0, %v8170_v15, 0.0  ;;  %v467_v45 = vpop.f32.mrf.mxu2 }
 0x1fe   :  { %v8186_v47 = vpack.c.b16 %v1090_v44, %v1089_v41 }
 0x200   :  { %v776_v57 = vpop.xlane.xlu1 %775  ;;  %1103 = vmatpush.bf16.msrb.mxu1 %v8186_v47 }
 0x201   :  { %v806_v7 = vsub.f32 %v8061_v19, %v776_v57 }
 0x203   :  { %v830_v31 = vmul.f32 1.442695, %v806_v7  ;;  %853 = vadd.xlane.f32.xlu0 %v852_v29  ;;  %v8177_v3 = vpop.eup %7180 }
 0x204   :  { %v867_v19 = vsel %vm153_vm0, %v8177_v3, 0.0 }
 0x205   :  { %7182 = vpow2.f32 %v830_v31  ;;  %v469_v8 = vpop.f32.mrf.mxu2 }
 0x206   :  { %v470_v9 = vadd.f32 %v8086_v35, %v469_v8 }
 0x208   :  { %v779_v17 = vpop.xlane.xlu2 %778  ;;  %v490_v14 = vmax.f32 %v470_v9, 0.0 }
 0x209   :  { %v807_v27 = vsub.f32 %v8067_v21, %v779_v17  ;;  %v468_v21 = vadd.f32 %v8086_v35, %v467_v45 }
 0x20b   :  { %v8182_v10 = vpop.eup %7182  ;;  %v832_v37 = vmul.f32 1.442695, %v807_v27  ;;  %868 = vadd.xlane.f32.xlu0 %v867_v19  ;;  %v489_v54 = vmax.f32 %v468_v21, 0.0  ;;  %v506_v27 = vpack.c.bf16 %v490_v14, %v490_v14 }
 0x20c   :  { %v870_v62 = vsel %vm153_vm0, %v8182_v10, 0.0 }
 0x20d   :  { %7184 = vpow2.f32 %v832_v37  ;;  %871 = vadd.xlane.f32.xlu2 %v870_v62  ;;  %v505_v31 = vpack.c.bf16 %v489_v54, %v489_v54  ;;  %v1118_v0 = vunpack.c.l.b16 %v506_v27  ;;  %v472_v37 = vpop.f32.mrf.mxu2 }
 0x20e   :  { %v473_v44 = vadd.f32 %v8086_v35, %v472_v37 }
 0x20f   :  { %v1117_v23 = vunpack.c.l.b16 %v505_v31 }
 0x210   :  { %v782_v49 = vpop.xlane.xlu2 %781  ;;  %v491_v21 = vmax.f32 %v473_v44, 0.0 }
 0x211   :  { %v808_v51 = vsub.f32 %v8071_v22, %v782_v49  ;;  %v8201_v62 = vpack.c.b16 %v1118_v0, %v1117_v23 }
 0x213   :  { %v8191_v57 = vpop.eup %7184  ;;  %v834_v7 = vmul.f32 1.442695, %v808_v51  ;;  %1131 = vmatpush.bf16.msrb.mxu2 %v8201_v62 }
 0x214   :  { %v873_v29 = vsel %vm153_vm0, %v8191_v57, 0.0 }
 0x215   :  { %7186 = vpow2.f32 %v834_v7  ;;  %874 = vadd.xlane.f32.xlu0 %v873_v29  ;;  %v474_v7 = vpop.f32.mrf.mxu2  ;;  %v507_v29 = vpack.c.bf16 %v491_v21, %v491_v21 }
 0x216   :  { %v475_v8 = vadd.f32 %v8086_v35, %v474_v7 }
 0x218   :  { %v785_v12 = vpop.xlane.xlu0 %784  ;;  %v492_v9 = vmax.f32 %v475_v8, 0.0 }
 0x219   :  { %v809_v17 = vsub.f32 %v8075_v24, %v785_v12 }
 0x21a   :  { %v508_v14 = vpack.c.bf16 %v492_v9, %v492_v9 }
 0x21b   :  { %v8197_v22 = vpop.eup %7186  ;;  %v836_v19 = vmul.f32 1.442695, %v809_v17 }
 0x21c   :  { %v876_v41 = vsel %vm153_vm0, %v8197_v22, 0.0 }
 0x21d   :  { %7188 = vpow2.f32 %v836_v19  ;;  %877 = vadd.xlane.f32.xlu1 %v876_v41  ;;  %v1146_v19 = vunpack.c.l.b16 %v508_v14 }
 0x220   :  { %v788_v45 = vpop.xlane.xlu0 %787 }
 0x221   :  { %v810_v24 = vsub.f32 %v8079_v34, %v788_v45  ;;  %v1145_v34 = vunpack.c.l.b16 %v507_v29 }
 0x223   :  { %v8206_v49 = vpop.eup %7188  ;;  %v838_v51 = vmul.f32 1.442695, %v810_v24  ;;  %v8218_v41 = vpack.c.b16 %v1146_v19, %v1145_v34 }
 0x224   :  { %v879_v54 = vsel %vm153_vm0, %v8206_v49, 0.0 }
 0x225   :  { %7190 = vpow2.f32 %v838_v51  ;;  %880 = vadd.xlane.f32.xlu2 %v879_v54  ;;  %1159 = vmatpush.bf16.msra.mxu3 %v8218_v41 }
 0x228   :  { %v791_v31 = vpop.xlane.xlu1 %790 }
 0x229   :  { %v811_v12 = vsub.f32 %v8089_v40, %v791_v31  ;;  %1310 = vrot.lane.b32.xlu0 %v8004_v6, %s7760_s3 }
 0x22b   :  { %v8214_v17 = vpop.eup %7190  ;;  %v840_v23 = vmul.f32 1.442695, %v811_v12 }
 0x22c   :  { %v882_v27 = vsel %vm153_vm0, %v8214_v17, 0.0 }
 0x22d   :  { %7192 = vpow2.f32 %v840_v23  ;;  %883 = vadd.xlane.f32.xlu1 %v882_v27 }
 0x230   :  { %v794_v45 = vpop.xlane.xlu0 %793 }
 0x231   :  { %1336 = vrot.lane.b32.xlu0 %v8011_v16, %s7760_s3  ;;  %v812_v24 = vsub.f32 %v8096_v50, %v794_v45 }
 0x233   :  { %v8223_v35 = vpop.eup %7192  ;;  %v842_v51 = vmul.f32 1.442695, %v812_v24 }
 0x234   :  { %v885_v40 = vsel %vm153_vm0, %v8223_v35, 0.0 }
 0x235   :  { %886 = vadd.xlane.f32.xlu2 %v885_v40 }
 0x238   :  { %v797_v0 = vpop.xlane.xlu1 %796 }
 0x239   :  { %1334 = vrot.lane.b32.xlu0 %v8015_v60, %s7760_s3  ;;  %v813_v54 = vsub.f32 %v8106_v33, %v797_v0 }
 0x23b   :  { %v844_v29 = vmul.f32 1.442695, %v813_v54 }
 0x241   :  { %1555 = vrot.lane.b32.xlu0 %v8100_v55, %s7760_s3 }
 0x243   :  { %v8245_v7 = vpop.permute.xlu0 %1312 }
 0x246   :  { %1238 = vrot.lane.b32.xlu1 %v7961_v2, %s7760_s3 }
 0x248   :  { %v851_v37 = vpop.xlane.xlu1 %850 }
 0x249   :  { %1630 = vrot.lane.b32.xlu0 %v8147_v59, %s7760_s3 }
 0x24d   :  { %1166 = vrot.lane.b32.xlu2 %v7923_v61, %s7760_s3 }
 0x251   :  { %1730 = vrot.lane.b32.xlu0 %v8218_v41, %s7760_s3 }
 0x258   :  { %v857_v44 = vpop.xlane.xlu1 %856 }
 0x259   :  { %1824 = vrot.lane.b32.xlu0 %v7954_v58, %s7761_s7 }
 0x260   :  { %v860_v21 = vpop.xlane.xlu1 %859 }
 0x261   :  { %1750 = vrot.lane.b32.xlu0 %v7923_v61, %s7761_s7  ;;  %7194 = vrcp.f32 %v860_v21 }
 0x262   :  { %7196 = vpow2.f32 %v842_v51 }
 0x263   :  { %7198 = vrcp.f32 %v851_v37 }
 0x267   :  { %v7195_v31 = vpop.eup %7194 }
 0x268   :  { %v863_v8 = vpop.xlane.xlu2 %862  ;;  %v8249_v50 = vpop.eup %7196  ;;  %v914_v9 = vmul.f32 %v7195_v31, %v8143_v48 }
 0x269   :  { %7200 = vrcp.f32 %v863_v8  ;;  %1776 = vrot.lane.b32.xlu0 %v7930_v18, %s7761_s7  ;;  %v7199_v12 = vpop.eup %7198  ;;  %v888_v33 = vsel %vm153_vm0, %v8249_v50, 0.0 }
 0x26a   :  { %7202 = vpow2.f32 %v844_v29  ;;  %v930_v23 = vpack.c.bf16 %v914_v9, %v914_v9  ;;  %v911_v40 = vmul.f32 %v7199_v12, %v8122_v43 }
 0x26c   :  { %v1000_v37 = vunpack.c.l.b16 %v930_v23  ;;  %v927_v21 = vpack.c.bf16 %v911_v40, %v911_v40 }
 0x26e   :  { %v848_v34 = vpop.xlane.xlu0 %847  ;;  %v945_v12 = vunpack.c.l.b16 %v927_v21 }
 0x26f   :  { %v7201_v14 = vpop.eup %7200  ;;  %7204 = vrcp.f32 %v848_v34 }
 0x270   :  { %v915_v27 = vmul.f32 %v7201_v14, %v8153_v13  ;;  %889 = vadd.xlane.f32.xlu1 %v888_v33  ;;  %7206 = vrcp.f32 %v857_v44  ;;  %v8255_v19 = vpop.eup %7202  ;;  %v866_v29 = vpop.xlane.xlu2 %865  ;;  %v1222_v44 = vsel %vm519_vm1, %v8111_v5, 0 }
 0x271   :  { %v891_v24 = vsel %vm153_vm0, %v8255_v19, 0.0 }
 0x272   :  { %v931_v0 = vpack.c.bf16 %v915_v27, %v915_v27 }
 0x274   :  { %v1001_v45 = vunpack.c.l.b16 %v931_v0 }
 0x275   :  { %v7205_v48 = vpop.eup %7204 }
 0x276   :  { %v1002_v51 = vpack.c.b16 %v1001_v45, %v1000_v37  ;;  %v910_v54 = vmul.f32 %v7205_v48, %v8158_v28  ;;  %v854_v8 = vpop.xlane.xlu0 %853  ;;  %892 = vadd.xlane.f32.xlu2 %v891_v24  ;;  %v7207_v13 = vpop.eup %7206  ;;  %v1174_v28 = vsel %vm519_vm1, %v8131_v11, 0 }
 0x277   :  { %7208 = vrcp.f32 %v854_v8  ;;  %v913_v31 = vmul.f32 %v7207_v13, %v8135_v20 }
 0x278   :  { %v926_v43 = vpack.c.bf16 %v910_v54, %v910_v54  ;;  %6701 = vmatmul.msk.bf16.vlgmr.msra.gmra.mxu2 %vm153_vm0, %v1002_v51  ;;  %7210 = vrcp.f32 %v866_v29 }
 0x279   :  { %1231 = vmatpush.bf16.xpose.msra.mxu2 %v1222_v44  ;;  %v929_v33 = vpack.c.bf16 %v913_v31, %v913_v31  ;;  %v1246_v44 = vsel %vm519_vm1, %v8117_v38, 0 }
 0x27a   :  { %v944_v9 = vunpack.c.l.b16 %v926_v43 }
 0x27b   :  { %v973_v37 = vunpack.c.l.b16 %v929_v33 }
 0x27c   :  { %v946_v34 = vpack.c.b16 %v945_v12, %v944_v9 }
 0x27d   :  { %v7209_v14 = vpop.eup %7208 }
 0x27e   :  { %v912_v23 = vmul.f32 %v7209_v14, %v8170_v15  ;;  %v869_v27 = vpop.xlane.xlu0 %868  ;;  %6699 = vmatmul.msk.bf16.vlgmr.msrb.gmra.mxu0 %vm153_vm0, %v946_v34  ;;  %v7211_v5 = vpop.eup %7210 }
 0x27f   :  { %7212 = vrcp.f32 %v869_v27  ;;  %1183 = vmatpush.bf16.xpose.msrb.mxu0 %v1174_v28  ;;  %v916_v20 = vmul.f32 %v7211_v5, %v8163_v4 }
 0x280   :  { %v928_v40 = vpack.c.bf16 %v912_v23, %v912_v23  ;;  %v872_v0 = vpop.xlane.xlu2 %871 }
 0x281   :  { %7214 = vrcp.f32 %v872_v0  ;;  %v932_v21 = vpack.c.bf16 %v916_v20, %v916_v20 }
 0x282   :  { %v972_v45 = vunpack.c.l.b16 %v928_v40 }
 0x283   :  { %v1028_v29 = vunpack.c.l.b16 %v932_v21 }
 0x284   :  { %v974_v48 = vpack.c.b16 %v973_v37, %v972_v45 }
 0x285   :  { %v7213_v24 = vpop.eup %7212 }
 0x286   :  { %v917_v11 = vmul.f32 %v7213_v24, %v8177_v3  ;;  %6700 = vmatmul.msk.bf16.vlgmr.msra.gmra.mxu1 %vm153_vm0, %v974_v48 }
 0x287   :  { %v7215_v54 = vpop.eup %7214 }
 0x288   :  { %v933_v15 = vpack.c.bf16 %v917_v11, %v917_v11  ;;  %v875_v51 = vpop.xlane.xlu0 %874  ;;  %v918_v4 = vmul.f32 %v7215_v54, %v8182_v10 }
 0x289   :  { %7216 = vrcp.f32 %v875_v51  ;;  %1264 = vrot.lane.b32.xlu1 %v7968_v25, %s7760_s3 }
 0x28a   :  { %v1029_v8 = vunpack.c.l.b16 %v933_v15  ;;  %v934_v43 = vpack.c.bf16 %v918_v4, %v918_v4 }
 0x28c   :  { %v1030_v13 = vpack.c.b16 %v1029_v8, %v1028_v29  ;;  %v1056_v10 = vunpack.c.l.b16 %v934_v43 }
 0x28e   :  { %6702 = vmatmul.msk.bf16.vlgmr.msrb.gmra.mxu3 %vm153_vm0, %v1030_v13  ;;  %1192 = vrot.lane.b32.xlu2 %v7930_v18, %s7760_s3 }
 0x28f   :  { %v7217_v3 = vpop.eup %7216  ;;  %1255 = vmatpush.bf16.xpose.msrb.mxu3 %v1246_v44 }
 0x290   :  { %v919_v31 = vmul.f32 %v7217_v3, %v8191_v57  ;;  %v878_v9 = vpop.xlane.xlu1 %877 }
 0x291   :  { %1262 = vrot.lane.b32.xlu1 %v7973_v42, %s7760_s3  ;;  %7218 = vrcp.f32 %v878_v9 }
 0x292   :  { %v935_v12 = vpack.c.bf16 %v919_v31, %v919_v31 }
 0x294   :  { %v1057_v34 = vunpack.c.l.b16 %v935_v12 }
 0x296   :  { %v1058_v14 = vpack.c.b16 %v1057_v34, %v1056_v10  ;;  %1190 = vrot.lane.b32.xlu2 %v7935_v26, %s7760_s3 }
 0x297   :  { %v7219_v28 = vpop.eup %7218 }
 0x298   :  { %v881_v38 = vpop.xlane.xlu2 %880  ;;  %6703 = vmatmul.msk.bf16.vlgmr.msra.gmra.mxu0 %vm153_vm0, %v1058_v14  ;;  %v920_v57 = vmul.f32 %v7219_v28, %v8197_v22 }
 0x299   :  { %7220 = vrcp.f32 %v881_v38  ;;  %1286 = vrot.lane.b32.xlu1 %v7985_v1, %s7760_s3 }
 0x29a   :  { %v936_v23 = vpack.c.bf16 %v920_v57, %v920_v57 }
 0x29c   :  { %v1084_v0 = vunpack.c.l.b16 %v936_v23 }
 0x29e   :  { %1288 = vrot.lane.b32.xlu2 %v7980_v56, %s7760_s3 }
 0x29f   :  { %v7221_v33 = vpop.eup %7220 }
 0x2a0   :  { %v921_v27 = vmul.f32 %v7221_v33, %v8206_v49  ;;  %v884_v5 = vpop.xlane.xlu1 %883 }
 0x2a1   :  { %1605 = vrot.lane.b32.xlu1 %v8128_v63, %s7760_s3  ;;  %7222 = vrcp.f32 %v884_v5 }
 0x2a2   :  { %v937_v40 = vpack.c.bf16 %v921_v27, %v921_v27 }
 0x2a4   :  { %v1085_v37 = vunpack.c.l.b16 %v937_v40 }
 0x2a6   :  { %v1086_v20 = vpack.c.b16 %v1085_v37, %v1084_v0  ;;  %1705 = vrot.lane.b32.xlu2 %v8201_v62, %s7760_s3 }
 0x2a7   :  { %v7223_v45 = vpop.eup %7222 }
 0x2a8   :  { %v887_v22 = vpop.xlane.xlu2 %886  ;;  %6704 = vmatmul.msk.bf16.vlgmr.msrb.gmra.mxu1 %vm153_vm0, %v1086_v20  ;;  %v922_v49 = vmul.f32 %v7223_v45, %v8214_v17  ;;  %v1318_v17 = vsel %vm519_vm1, %v8245_v7, 0 }
 0x2a9   :  { %7224 = vrcp.f32 %v887_v22  ;;  %1655 = vrot.lane.b32.xlu1 %v8167_v53, %s7760_s3 }
 0x2aa   :  { %v938_v24 = vpack.c.bf16 %v922_v49, %v922_v49 }
 0x2ac   :  { %v1112_v51 = vunpack.c.l.b16 %v938_v24 }
 0x2ae   :  { %1580 = vrot.lane.b32.xlu2 %v8114_v36, %s7760_s3 }
 0x2af   :  { %v7225_v48 = vpop.eup %7224 }
 0x2b0   :  { %v923_v21 = vmul.f32 %v7225_v48, %v8223_v35  ;;  %v1167_v11 = vpop.permute.xlu2 %1166  ;;  %v1311_v35 = vpop.permute.xlu0 %1310 }
 0x2b1   :  { %1798 = vrot.lane.b32.xlu1 %v7899_v30, %s7761_s7  ;;  %6707 = vmatmul.msk.bf16.vlgmr.msrb.gmra.mxu0 %vm519_vm1, %v1167_v11 }
 0x2b2   :  { %v939_v15 = vpack.c.bf16 %v923_v21, %v923_v21 }
 0x2b4   :  { %v1113_v54 = vunpack.c.l.b16 %v939_v15 }
 0x2b6   :  { %v1114_v29 = vpack.c.b16 %v1113_v54, %v1112_v51  ;;  %1800 = vrot.lane.b32.xlu2 %v7940_v39, %s7761_s7 }
 0x2b8   :  { %6705 = vmatmul.msk.bf16.vlgmr.msrb.gmra.mxu2 %vm153_vm0, %v1114_v29  ;;  %v1239_v7 = vpop.permute.xlu1 %1238  ;;  %v1337_v44 = vpop.permute.xlu0 %1336 }
 0x2b9   :  { %1327 = vmatpush.bf16.xpose.msrb.mxu2 %v1318_v17  ;;  %1752 = vrot.lane.b32.xlu1 %v7916_v52, %s7761_s7  ;;  %v1342_v57 = vsel %vm519_vm1, %v1337_v44, 0 }
 0x2be   :  { %1822 = vrot.lane.b32.xlu2 %v7961_v2, %s7761_s7 }
 0x2c0   :  { %v1335_v34 = vpop.permute.xlu0 %1334 }
 0x2c1   :  { %1680 = vrot.lane.b32.xlu1 %v8186_v47, %s7760_s3 }
 0x2c8   :  { %6709 = vmatmul.msk.bf16.vlgmr.msra.gmra.mxu2 %vm519_vm1, %v8094_v46  ;;  %v1556_v23 = vpop.permute.xlu0 %1555 }
 0x2c9   :  { %1896 = vrot.lane.b32.xlu1 %v7997_v32, %s7761_s7 }
 0x2d0   :  { %v1631_v0 = vpop.permute.xlu0 %1630 }
 0x2d1   :  { %1894 = vrot.lane.b32.xlu1 %v8004_v6, %s7761_s7 }
 0x2d8   :  { %6713 = vmatmul.msk.bf16.vlgmr.msrb.gmra.mxu2 %vm519_vm1, %v1311_v35  ;;  %v1731_v24 = vpop.permute.xlu0 %1730 }
 0x2e3   :  { %v890_v8 = vpop.xlane.xlu1 %889 }
 0x2e4   :  { %7226 = vrcp.f32 %v890_v8 }
 0x2e9   :  { %v893_v13 = vpop.xlane.xlu2 %892 }
 0x2ea   :  { %v7227_v4 = vpop.eup %7226  ;;  %7228 = vrcp.f32 %v893_v13 }
 0x2eb   :  { %v924_v3 = vmul.f32 %v7227_v4, %v8249_v50 }
 0x2ed   :  { %v940_v46 = vpack.c.bf16 %v924_v3, %v924_v3 }
 0x2ef   :  { %v1140_v14 = vunpack.c.l.b16 %v940_v46 }
 0x2f0   :  { %v7229_v43 = vpop.eup %7228 }
 0x2f1   :  { %v925_v31 = vmul.f32 %v7229_v43, %v8255_v19  ;;  %v1193_v9 = vpop.permute.xlu2 %1192 }
 0x2f2   :  { %v1198_v12 = vsel %vm519_vm1, %v1193_v9, 0 }
 0x2f3   :  { %v941_v10 = vpack.c.bf16 %v925_v31, %v925_v31  ;;  %1207 = vmatpush.bf16.xpose.msra.mxu1 %v1198_v12 }
 0x2f5   :  { %v1141_v38 = vunpack.c.l.b16 %v941_v10 }
 0x2f7   :  { %v1142_v28 = vpack.c.b16 %v1141_v38, %v1140_v14 }
 0x2f9   :  { %v1191_v33 = vpop.permute.xlu2 %1190  ;;  %6706 = vmatmul.msk.bf16.vlgmr.msra.gmra.mxu3 %vm153_vm0, %v1142_v28 }
 0x2fa   :  { %1351 = vmatpush.bf16.xpose.msra.mxu3 %v1342_v57  ;;  %6708 = vmatmul.msk.bf16.vlgmr.msra.gmra.mxu1 %vm519_vm1, %v1191_v33 }
 0x2fb   :  { %v1265_v50 = vpop.permute.xlu1 %1264  ;;  %v8334_v20 = vpop.f32.mrf.mxu0 }
 0x2fc   :  { %v1270_v19 = vsel %vm519_vm1, %v1265_v50, 0  ;;  %11214 = vst [vmem:[#allocation13_spill] sm:$0xff] %v8334_v20  ;;  %v8358_v4 = vpop.f32.mrf.mxu2 }
 0x2fd   :  { %1279 = vmatpush.bf16.xpose.msra.mxu0 %v1270_v19  ;;  %11219 = vst [vmem:[#allocation18_spill] sm:$0xff] %v8358_v4 }
 0x301   :  { %v1289_v27 = vpop.permute.xlu2 %1288 }
 0x302   :  { %v1294_v5 = vsel %vm519_vm1, %v1289_v27, 0 }
 0x303   :  { %1303 = vmatpush.bf16.xpose.msrb.mxu1 %v1294_v5  ;;  %v1263_v40 = vpop.permute.xlu1 %1262  ;;  %v8337_v49 = vpop.f32.mrf.mxu0 }
 0x304   :  { %6711 = vmatmul.msk.bf16.vlgmr.msra.gmra.mxu0 %vm519_vm1, %v1263_v40  ;;  %11215 = vst [vmem:[#allocation14_spill] sm:$0xff] %v8337_v49  ;;  %v8356_v13 = vpop.f32.mrf.mxu1  ;;  %v8362_v3 = vpop.f32.mrf.mxu2 }
 0x305   :  { %1568 = vmatpush.bf16.msrb.mxu0 %v1556_v23  ;;  %11218 = vst [vmem:[#allocation17_spill] sm:$0xff] %v8356_v13 }
 0x306   :  { %11221 = vst [vmem:[#allocation20_spill] sm:$0xff] %v8362_v3 }
 0x309   :  { %v1706_v37 = vpop.permute.xlu2 %1705  ;;  %6710 = vmatmul.msk.bf16.vlgmr.msrb.gmra.mxu3 %vm519_vm1, %v1239_v7 }
 0x30a   :  { %1643 = vmatpush.bf16.msrb.mxu3 %v1631_v0 }
 0x30b   :  { %v1287_v22 = vpop.permute.xlu1 %1286 }
 0x30c   :  { %6712 = vmatmul.msk.bf16.vlgmr.msrb.gmra.mxu1 %vm519_vm1, %v1287_v22  ;;  %v8360_v44 = vpop.f32.mrf.mxu1 }
 0x30d   :  { %11220 = vst [vmem:[#allocation19_spill] sm:$0xff] %v8360_v44 }
 0x311   :  { %v1581_v45 = vpop.permute.xlu2 %1580  ;;  %v8368_v31 = vpop.f32.mrf.mxu3 }
 0x312   :  { %1593 = vmatpush.bf16.msra.mxu1 %v1581_v45  ;;  %11224 = vst [vmem:[#allocation23_spill] sm:$0xff] %v8368_v31 }
 0x313   :  { %v1606_v48 = vpop.permute.xlu1 %1605 }
 0x314   :  { %1618 = vmatpush.bf16.msra.mxu2 %v1606_v48 }
 0x315   :  { %v8340_v21 = vpop.f32.mrf.mxu0 }
 0x316   :  { %11216 = vst [vmem:[#allocation15_spill] sm:$0xff] %v8340_v21 }
 0x318   :  { %1718 = vmatpush.bf16.msrb.mxu2 %v1706_v37 }
 0x319   :  { %6714 = vmatmul.msk.bf16.vlgmr.msra.gmra.mxu3 %vm519_vm1, %v1335_v34  ;;  %v8374_v10 = vpop.f32.mrf.mxu3 }
 0x31a   :  { %1743 = vmatpush.bf16.msra.mxu3 %v1731_v24  ;;  %11227 = vst [vmem:[#allocation26_spill] sm:$0xff] %v8374_v10  ;;  %v8410_v24 = vpop.permute.xlu0 %1824 }
 0x31b   :  { %v1656_v11 = vpop.permute.xlu1 %1655 }
 0x31c   :  { %1668 = vmatpush.bf16.msra.mxu0 %v1656_v11 }
 0x31d   :  { %v8344_v51 = vpop.f32.mrf.mxu0 }
 0x31e   :  { %11217 = vst [vmem:[#allocation16_spill] sm:$0xff] %v8344_v51 }
 0x323   :  { %v8342_v15 = vpop.permute.xlu1 %1798 }
 0x325   :  { %v8364_v43 = vpop.f32.mrf.mxu1 }
 0x326   :  { %11222 = vst [vmem:[#allocation21_spill] sm:$0xff] %v8364_v43 }
 0x32b   :  { %v8346_v54 = vpop.permute.xlu1 %1752 }
 0x32d   :  { %v8370_v9 = vpop.f32.mrf.mxu1 }
 0x32e   :  { %v8348_v29 = vpop.f32.mrf.mxu0  ;;  %11225 = vst [vmem:[#allocation24_spill] sm:$0xff] %v8370_v9 }
 0x32f   :  { %v1358_v17 = vsel %vm153_vm0, %v8348_v29, -inf }
 0x330   :  { %1359 = vmax.xlane.f32.xlu1 %v1358_v17 }
 0x333   :  { %v1681_v35 = vpop.permute.xlu1 %1680 }
 0x334   :  { %1693 = vmatpush.bf16.msrb.mxu1 %v1681_v35 }
 0x336   :  { %v8352_v7 = vpop.f32.mrf.mxu0 }
 0x337   :  { %v1361_v8 = vsel %vm153_vm0, %v8352_v7, -inf }
 0x338   :  { %1362 = vmax.xlane.f32.xlu0 %v1361_v8 }
 0x33b   :  { %v8366_v46 = vpop.f32.mrf.mxu2  ;;  %v8412_v11 = vpop.permute.xlu1 %1896 }
 0x33c   :  { %11223 = vst [vmem:[#allocation22_spill] sm:$0xff] %v8366_v46 }
 0x343   :  { %v8372_v12 = vpop.f32.mrf.mxu2 }
 0x344   :  { %11226 = vst [vmem:[#allocation25_spill] sm:$0xff] %v8372_v12 }
 0x34b   :  { %v8380_v38 = vpop.f32.mrf.mxu2 }
 0x34c   :  { %v1370_v5 = vsel %vm153_vm0, %v8380_v38, -inf }
 0x353   :  { %v8392_v23 = vpop.f32.mrf.mxu2 }
 0x354   :  { %v1373_v37 = vsel %vm153_vm0, %v8392_v23, -inf }
 0x35b   :  { %v8408_v48 = vpop.f32.mrf.mxu2 }
 0x377   :  { %v8376_v34 = vpop.f32.mrf.mxu1 }
 0x378   :  { %v1364_v14 = vsel %vm153_vm0, %v8376_v34, -inf }
 0x379   :  { %1365 = vmax.xlane.f32.xlu1 %v1364_v14 }
 0x37c   :  { %v8382_v28 = vpop.f32.mrf.mxu3 }
 0x37d   :  { %11228 = vst [vmem:[#allocation27_spill] sm:$0xff] %v8382_v28 }
 0x37f   :  { %v8384_v57 = vpop.f32.mrf.mxu1 }
 0x380   :  { %v1367_v33 = vsel %vm153_vm0, %v8384_v57, -inf }
 0x381   :  { %1368 = vmax.xlane.f32.xlu0 %v1367_v33  ;;  %v8388_v50 = vpop.f32.mrf.mxu0 }
 0x382   :  { %v1382_v19 = vsel %vm153_vm0, %v8388_v50, -inf }
 0x383   :  { %1383 = vmax.xlane.f32.xlu2 %v1382_v19  ;;  %v8424_v19 = vpop.f32.mrf.mxu2 }
 0x384   :  { %v8394_v27 = vpop.f32.mrf.mxu3 }
 0x385   :  { %11229 = vst [vmem:[#allocation28_spill] sm:$0xff] %v8394_v27 }
 0x389   :  { %1371 = vmax.xlane.f32.xlu0 %v1370_v5  ;;  %v8398_v40 = vpop.f32.mrf.mxu0  ;;  %v8400_v0 = vpop.f32.mrf.mxu1 }
 0x38a   :  { %v1385_v22 = vsel %vm153_vm0, %v8398_v40, -inf  ;;  %v1388_v8 = vsel %vm153_vm0, %v8400_v0, -inf  ;;  %v8426_v5 = vpop.permute.xlu0 %1750 }
 0x38b   :  { %1374 = vmax.xlane.f32.xlu2 %v1373_v37  ;;  %1386 = vmax.xlane.f32.xlu1 %v1385_v22  ;;  %v8428_v37 = vpop.permute.xlu1 %1894  ;;  %v1397_v22 = vsel %vm153_vm0, %v8424_v19, -inf }
 0x38c   :  { %v8406_v45 = vpop.f32.mrf.mxu3 }
 0x38d   :  { %v1376_v35 = vsel %vm153_vm0, %v8406_v45, -inf }
 0x391   :  { %v8414_v17 = vpop.f32.mrf.mxu1 }
 0x392   :  { %v1391_v14 = vsel %vm153_vm0, %v8414_v17, -inf }
 0x393   :  { %1377 = vmax.xlane.f32.xlu2 %v1376_v35  ;;  %1389 = vmax.xlane.f32.xlu1 %v1388_v8  ;;  %v1394_v35 = vsel %vm153_vm0, %v8408_v48, -inf }
 0x394   :  { %v8422_v33 = vpop.f32.mrf.mxu3  ;;  %1392 = vmax.xlane.f32.xlu0 %v1391_v14  ;;  %v8438_v14 = vpop.permute.xlu0 %1776 }
 0x395   :  { %v1379_v31 = vsel %vm153_vm0, %v8422_v33, -inf }
 0x39b   :  { %1398 = vmax.xlane.f32.xlu2 %v1397_v22  ;;  %1380 = vmax.xlane.f32.xlu1 %v1379_v31 }
 0x39c   :  { %v8436_v8 = vpop.f32.mrf.mxu3  ;;  %1395 = vmax.xlane.f32.xlu0 %v1394_v35 }
 0x39d   :  { %v1400_v4 = vsel %vm153_vm0, %v8436_v8, -inf }
 0x3a3   :  { %v1360_v10 = vpop.xlane.xlu1 %1359 }
 0x3a4   :  { %v1406_v3 = vsub.f32 %v8348_v29, %v1360_v10  ;;  %v8443_v13 = vpop.f32.mrf.mxu3  ;;  %1401 = vmax.xlane.f32.xlu0 %v1400_v4 }
 0x3a5   :  { %v1403_v31 = vsel %vm153_vm0, %v8443_v13, -inf }
 0x3a6   :  { %v1422_v22 = vmul.f32 1.442695, %v1406_v3  ;;  %1404 = vmax.xlane.f32.xlu2 %v1403_v31  ;;  %v8456_v3 = vpop.permute.xlu2 %1800 }
 0x3a8   :  { %7230 = vpow2.f32 %v1422_v22 }
 0x3ab   :  { %v1363_v44 = vpop.xlane.xlu0 %1362 }
 0x3ac   :  { %v1407_v35 = vsub.f32 %v8352_v7, %v1363_v44 }
 0x3ae   :  { %v8448_v46 = vpop.eup %7230  ;;  %v1424_v12 = vmul.f32 1.442695, %v1407_v35  ;;  %v8459_v7 = vpop.permute.xlu2 %1822 }
 0x3af   :  { %v1454_v20 = vsel %vm153_vm0, %v8448_v46, 0.0 }
 0x3b0   :  { %7232 = vpow2.f32 %v1424_v12  ;;  %1455 = vadd.xlane.f32.xlu0 %v1454_v20 }
 0x3b6   :  { %v8452_v29 = vpop.eup %7232 }
 0x3b7   :  { %v1457_v4 = vsel %vm153_vm0, %v8452_v29, 0.0 }
 0x3b8   :  { %1458 = vadd.xlane.f32.xlu2 %v1457_v4 }
 0x3ec   :  { %v1366_v10 = vpop.xlane.xlu1 %1365 }
 0x3ed   :  { %v1408_v31 = vsub.f32 %v8376_v34, %v1366_v10 }
 0x3ef   :  { %v1426_v44 = vmul.f32 1.442695, %v1408_v31 }
 0x3f1   :  { %7234 = vpow2.f32 %v1426_v44 }
 0x3f4   :  { %v1369_v22 = vpop.xlane.xlu0 %1368 }
 0x3f5   :  { %v1409_v35 = vsub.f32 %v8384_v57, %v1369_v22 }
 0x3f6   :  { %v1384_v49 = vpop.xlane.xlu2 %1383 }
 0x3f7   :  { %v8462_v12 = vpop.eup %7234  ;;  %v1428_v20 = vmul.f32 1.442695, %v1409_v35  ;;  %v1414_v28 = vsub.f32 %v8388_v50, %v1384_v49 }
 0x3f8   :  { %v1460_v4 = vsel %vm153_vm0, %v8462_v12, 0.0 }
 0x3f9   :  { %7236 = vpow2.f32 %v1428_v20  ;;  %1461 = vadd.xlane.f32.xlu2 %v1460_v4  ;;  %v1438_v27 = vmul.f32 1.442695, %v1414_v28 }
 0x3fb   :  { %7238 = vpow2.f32 %v1438_v27 }
 0x3fc   :  { %v1372_v44 = vpop.xlane.xlu0 %1371 }
 0x3fe   :  { %v1375_v10 = vpop.xlane.xlu2 %1374  ;;  %v1387_v31 = vpop.xlane.xlu1 %1386 }
 0x3ff   :  { %v8467_v34 = vpop.eup %7236  ;;  %v1411_v57 = vsub.f32 %v8392_v23, %v1375_v10  ;;  %v1415_v22 = vsub.f32 %v8398_v40, %v1387_v31 }
 0x400   :  { %v1463_v35 = vsel %vm153_vm0, %v8467_v34, 0.0 }
 0x401   :  { %1464 = vadd.xlane.f32.xlu1 %v1463_v35  ;;  %v8473_v49 = vpop.eup %7238  ;;  %v1432_v50 = vmul.f32 1.442695, %v1411_v57  ;;  %v1440_v20 = vmul.f32 1.442695, %v1415_v22 }
 0x402   :  { %v1478_v28 = vsel %vm153_vm0, %v8473_v49, 0.0 }
 0x403   :  { %7240 = vpow2.f32 %v1432_v50  ;;  %1479 = vadd.xlane.f32.xlu2 %v1478_v28 }
 0x404   :  { %7242 = vpow2.f32 %v1440_v20  ;;  %v1410_v20 = vsub.f32 %v8380_v38, %v1372_v44 }
 0x406   :  { %v1390_v27 = vpop.xlane.xlu1 %1389  ;;  %v1378_v4 = vpop.xlane.xlu2 %1377 }
 0x407   :  { %v1393_v43 = vpop.xlane.xlu0 %1392  ;;  %v1416_v23 = vsub.f32 %v8400_v0, %v1390_v27  ;;  %v1412_v57 = vsub.f32 %v8406_v45, %v1378_v4  ;;  %v1430_v0 = vmul.f32 1.442695, %v1410_v20 }
 0x408   :  { %v1417_v40 = vsub.f32 %v8414_v17, %v1393_v43 }
 0x409   :  { %v8479_v10 = vpop.eup %7240  ;;  %v1442_v31 = vmul.f32 1.442695, %v1416_v23  ;;  %v1434_v43 = vmul.f32 1.442695, %v1412_v57 }
 0x40a   :  { %v8481_v35 = vpop.eup %7242  ;;  %v1444_v22 = vmul.f32 1.442695, %v1417_v40  ;;  %v1469_v50 = vsel %vm153_vm0, %v8479_v10, 0.0 }
 0x40b   :  { %1470 = vadd.xlane.f32.xlu1 %v1469_v50  ;;  %v1481_v28 = vsel %vm153_vm0, %v8481_v35, 0.0 }
 0x40c   :  { %7244 = vpow2.f32 %v1444_v22  ;;  %1482 = vadd.xlane.f32.xlu2 %v1481_v28 }
 0x40d   :  { %7246 = vpow2.f32 %v1442_v31 }
 0x40e   :  { %v1381_v27 = vpop.xlane.xlu1 %1380  ;;  %7248 = vpow2.f32 %v1434_v43  ;;  %v1399_v50 = vpop.xlane.xlu2 %1398 }
 0x40f   :  { %v1396_v17 = vpop.xlane.xlu0 %1395  ;;  %7250 = vpow2.f32 %v1430_v0  ;;  %v1413_v38 = vsub.f32 %v8422_v33, %v1381_v27  ;;  %v1419_v28 = vsub.f32 %v8424_v19, %v1399_v50 }
 0x410   :  { %v1418_v45 = vsub.f32 %v8408_v48, %v1396_v17 }
 0x411   :  { %v1436_v57 = vmul.f32 1.442695, %v1413_v38  ;;  %v1448_v0 = vmul.f32 1.442695, %v1419_v28 }
 0x412   :  { %v8489_v23 = vpop.eup %7244  ;;  %v1446_v31 = vmul.f32 1.442695, %v1418_v45 }
 0x413   :  { %v8492_v4 = vpop.eup %7246  ;;  %v1487_v44 = vsel %vm153_vm0, %v8489_v23, 0.0 }
 0x414   :  { %1488 = vadd.xlane.f32.xlu0 %v1487_v44  ;;  %v1484_v40 = vsel %vm153_vm0, %v8492_v4, 0.0  ;;  %v8499_v22 = vpop.eup %7248  ;;  %7252 = vpow2.f32 %v1446_v31 }
 0x415   :  { %1485 = vadd.xlane.f32.xlu2 %v1484_v40  ;;  %v8501_v20 = vpop.eup %7250  ;;  %7254 = vpow2.f32 %v1436_v57  ;;  %v1472_v33 = vsel %vm153_vm0, %v8499_v22, 0.0 }
 0x416   :  { %v1466_v43 = vsel %vm153_vm0, %v8501_v20, 0.0  ;;  %7256 = vpow2.f32 %v1448_v0 }
 0x417   :  { %v1402_v48 = vpop.xlane.xlu0 %1401 }
 0x419   :  { %v1405_v45 = vpop.xlane.xlu2 %1404 }
 0x41a   :  { %v8508_v17 = vpop.eup %7252 }
 0x41b   :  { %v8510_v27 = vpop.eup %7254  ;;  %v1490_v19 = vsel %vm153_vm0, %v8508_v17, 0.0 }
 0x41c   :  { %1473 = vadd.xlane.f32.xlu0 %v1472_v33  ;;  %v1475_v44 = vsel %vm153_vm0, %v8510_v27, 0.0  ;;  %v8518_v40 = vpop.eup %7256 }
 0x41d   :  { %1467 = vadd.xlane.f32.xlu2 %v1466_v43  ;;  %v1493_v50 = vsel %vm153_vm0, %v8518_v40, 0.0 }
 0x423   :  { %v1456_v38 = vpop.xlane.xlu0 %1455 }
 0x424   :  { %1491 = vadd.xlane.f32.xlu0 %v1490_v19  ;;  %1848 = vrot.lane.b32.xlu1 %v7968_v25, %s7761_s7  ;;  %7258 = vrcp.f32 %v1456_v38 }
 0x425   :  { %1476 = vadd.xlane.f32.xlu2 %v1475_v44  ;;  %v1758_v44 = vsel %vm519_vm1, %v8346_v54, 0  ;;  %v1420_v54 = vsub.f32 %v8436_v8, %v1402_v48 }
 0x42a   :  { %v7259_v57 = vpop.eup %7258 }
 0x42b   :  { %v1459_v31 = vpop.xlane.xlu2 %1458  ;;  %v1518_v28 = vmul.f32 %v7259_v57, %v8448_v46 }
 0x42c   :  { %7260 = vrcp.f32 %v1459_v31  ;;  %v1421_v31 = vsub.f32 %v8443_v13, %v1405_v45 }
 0x42d   :  { %1494 = vadd.xlane.f32.xlu2 %v1493_v50  ;;  %v1534_v43 = vpack.c.bf16 %v1518_v28, %v1518_v28 }
 0x42e   :  { %v1452_v46 = vmul.f32 1.442695, %v1421_v31 }
 0x42f   :  { %v1552_v9 = vunpack.c.l.b16 %v1534_v43 }
 0x430   :  { %7262 = vpow2.f32 %v1452_v46 }
 0x432   :  { %v7261_v33 = vpop.eup %7260 }
 0x433   :  { %v1519_v0 = vmul.f32 %v7261_v33, %v8452_v29 }
 0x435   :  { %v1535_v19 = vpack.c.bf16 %v1519_v0, %v1519_v0 }
 0x436   :  { %v8532_v29 = vpop.eup %7262 }
 0x437   :  { %v1553_v21 = vunpack.c.l.b16 %v1535_v19 }
 0x438   :  { %1920 = vrot.lane.b32.xlu0 %v8011_v16, %s7761_s7 }
 0x439   :  { %v1554_v38 = vpack.c.b16 %v1553_v21, %v1552_v9  ;;  %v1499_v21 = vsel %vm153_vm0, %v8532_v29, 0.0  ;;  %v1450_v9 = vmul.f32 1.442695, %v1420_v54 }
 0x43b   :  { %6715 = vmatmul.msk.bf16.vlgmr.msrb.gmra.mxu0 %vm153_vm0, %v1554_v38  ;;  %7264 = vpow2.f32 %v1450_v9 }
 0x43c   :  { %1767 = vmatpush.bf16.xpose.msrb.mxu0 %v1758_v44 }
 0x441   :  { %v8543_v13 = vpop.eup %7264 }
 0x442   :  { %v1496_v45 = vsel %vm153_vm0, %v8543_v13, 0.0 }
 0x445   :  { %1918 = vrot.lane.b32.xlu2 %v8015_v60, %s7761_s7 }
 0x44d   :  { %2139 = vrot.lane.b32.xlu2 %v8100_v55, %s7761_s7 }
 0x44e   :  { %1500 = vadd.xlane.f32.xlu1 %v1499_v21  ;;  %v1782_v21 = vsel %vm519_vm1, %v8438_v14, 0 }
 0x455   :  { %2214 = vrot.lane.b32.xlu2 %v8147_v59, %s7761_s7 }
 0x45d   :  { %2384 = vrot.lane.b32.xlu2 %v7940_v39, %s7762_s11 }
 0x462   :  { %1497 = vadd.xlane.f32.xlu0 %v1496_v45 }
 0x465   :  { %2336 = vrot.lane.b32.xlu2 %v7916_v52, %s7762_s11 }
 0x467   :  { %1774 = vrot.lane.b32.xlu1 %v7935_v26, %s7761_s7 }
 0x46c   :  { %v1462_v8 = vpop.xlane.xlu2 %1461 }
 0x46d   :  { %2382 = vrot.lane.b32.xlu2 %v7899_v30, %s7762_s11  ;;  %7266 = vrcp.f32 %v1462_v8 }
 0x46f   :  { %1872 = vrot.lane.b32.xlu1 %v7980_v56, %s7761_s7 }
 0x473   :  { %v7267_v57 = vpop.eup %7266 }
 0x474   :  { %v1465_v48 = vpop.xlane.xlu1 %1464  ;;  %v1520_v28 = vmul.f32 %v7267_v57, %v8462_v12 }
 0x475   :  { %7268 = vrcp.f32 %v1465_v48  ;;  %2264 = vrot.lane.b32.xlu2 %v8186_v47, %s7761_s7 }
 0x476   :  { %1846 = vrot.lane.b32.xlu0 %v7973_v42, %s7761_s7  ;;  %v1480_v50 = vpop.xlane.xlu2 %1479  ;;  %v1536_v43 = vpack.c.bf16 %v1520_v28, %v1520_v28 }
 0x477   :  { %2289 = vrot.lane.b32.xlu1 %v8201_v62, %s7761_s7  ;;  %7270 = vrcp.f32 %v1480_v50 }
 0x478   :  { %v1577_v38 = vunpack.c.l.b16 %v1536_v43 }
 0x47b   :  { %v7269_v33 = vpop.eup %7268 }
 0x47c   :  { %v1521_v0 = vmul.f32 %v7269_v33, %v8467_v34 }
 0x47d   :  { %2408 = vrot.lane.b32.xlu2 %v7954_v58, %s7762_s11  ;;  %v7271_v12 = vpop.eup %7270 }
 0x47e   :  { %v1537_v19 = vpack.c.bf16 %v1521_v0, %v1521_v0  ;;  %1870 = vrot.lane.b32.xlu0 %v7985_v1, %s7761_s7  ;;  %v1526_v34 = vmul.f32 %v7271_v12, %v8473_v49  ;;  %v1471_v14 = vpop.xlane.xlu1 %1470 }
 0x47f   :  { %v1483_v31 = vpop.xlane.xlu2 %1482  ;;  %2239 = vrot.lane.b32.xlu1 %v8167_v53, %s7761_s7 }
 0x480   :  { %v1578_v44 = vunpack.c.l.b16 %v1537_v19  ;;  %7272 = vrcp.f32 %v1483_v31  ;;  %v1542_v9 = vpack.c.bf16 %v1526_v34, %v1526_v34 }
 0x482   :  { %v1579_v46 = vpack.c.b16 %v1578_v44, %v1577_v38  ;;  %v1652_v57 = vunpack.c.l.b16 %v1542_v9 }
 0x484   :  { %6716 = vmatmul.msk.bf16.vlgmr.msra.gmra.mxu1 %vm153_vm0, %v1579_v46 }
 0x485   :  { %1791 = vmatpush.bf16.xpose.msra.mxu1 %v1782_v21  ;;  %2480 = vrot.lane.b32.xlu2 %v7997_v32, %s7762_s11 }
 0x486   :  { %v7273_v54 = vpop.eup %7272  ;;  %2189 = vrot.lane.b32.xlu0 %v8128_v63, %s7761_s7 }
 0x487   :  { %v1527_v45 = vmul.f32 %v7273_v54, %v8481_v35  ;;  %v1489_v8 = vpop.xlane.xlu0 %1488  ;;  %2314 = vrot.lane.b32.xlu1 %v8218_v41, %s7761_s7 }
 0x488   :  { %7274 = vrcp.f32 %v1489_v8  ;;  %v1486_v49 = vpop.xlane.xlu2 %1485 }
 0x489   :  { %v1543_v48 = vpack.c.bf16 %v1527_v45, %v1527_v45  ;;  %7276 = vrcp.f32 %v1486_v49 }
 0x48a   :  { %7278 = vrcp.f32 %v1471_v14 }
 0x48b   :  { %v1653_v50 = vunpack.c.l.b16 %v1543_v48 }
 0x48d   :  { %v1654_v28 = vpack.c.b16 %v1653_v50, %v1652_v57 }
 0x48e   :  { %v7275_v33 = vpop.eup %7274  ;;  %2164 = vrot.lane.b32.xlu0 %v8114_v36, %s7761_s7 }
 0x48f   :  { %v7277_v43 = vpop.eup %7276  ;;  %v1529_v35 = vmul.f32 %v7275_v33, %v8489_v23  ;;  %v1474_v0 = vpop.xlane.xlu0 %1473  ;;  %6719 = vmatmul.msk.bf16.vlgmr.msra.gmra.mxu0 %vm153_vm0, %v1654_v28 }
 0x490   :  { %v1528_v19 = vmul.f32 %v7277_v43, %v8492_v4  ;;  %v1468_v38 = vpop.xlane.xlu2 %1467  ;;  %v7279_v44 = vpop.eup %7278 }
 0x491   :  { %v1545_v31 = vpack.c.bf16 %v1529_v35, %v1529_v35  ;;  %7280 = vrcp.f32 %v1468_v38  ;;  %v1523_v21 = vmul.f32 %v7279_v44, %v8479_v10 }
 0x492   :  { %v1544_v12 = vpack.c.bf16 %v1528_v19, %v1528_v19  ;;  %7282 = vrcp.f32 %v1474_v0 }
 0x493   :  { %v1678_v46 = vunpack.c.l.b16 %v1545_v31  ;;  %v1539_v8 = vpack.c.bf16 %v1523_v21, %v1523_v21 }
 0x494   :  { %v1677_v34 = vunpack.c.l.b16 %v1544_v12 }
 0x495   :  { %v1603_v57 = vunpack.c.l.b16 %v1539_v8 }
 0x496   :  { %v1679_v54 = vpack.c.b16 %v1678_v46, %v1677_v34  ;;  %2334 = vrot.lane.b32.xlu0 %v7923_v61, %s7762_s11  ;;  %v1849_v23 = vpop.permute.xlu1 %1848 }
 0x497   :  { %v7281_v9 = vpop.eup %7280  ;;  %v1854_v45 = vsel %vm519_vm1, %v1849_v23, 0  ;;  %v1492_v14 = vpop.xlane.xlu0 %1491 }
 0x498   :  { %v1522_v4 = vmul.f32 %v7281_v9, %v8501_v20  ;;  %v1477_v49 = vpop.xlane.xlu2 %1476  ;;  %6720 = vmatmul.msk.bf16.vlgmr.msrb.gmra.mxu1 %vm153_vm0, %v1679_v54  ;;  %1863 = vmatpush.bf16.xpose.msra.mxu0 %v1854_v45  ;;  %v7283_v48 = vpop.eup %7282  ;;  %v1806_v20 = vsel %vm519_vm1, %v8456_v3, 0 }
 0x499   :  { %7284 = vrcp.f32 %v1477_v49  ;;  %v1524_v50 = vmul.f32 %v7283_v48, %v8499_v22 }
 0x49a   :  { %v1538_v10 = vpack.c.bf16 %v1522_v4, %v1522_v4  ;;  %7286 = vrcp.f32 %v1492_v14 }
 0x49b   :  { %v1540_v35 = vpack.c.bf16 %v1524_v50, %v1524_v50 }
 0x49c   :  { %v1602_v28 = vunpack.c.l.b16 %v1538_v10 }
 0x49d   :  { %v1627_v22 = vunpack.c.l.b16 %v1540_v35 }
 0x49e   :  { %v1604_v33 = vpack.c.b16 %v1603_v57, %v1602_v28 }
 0x49f   :  { %v7285_v43 = vpop.eup %7284  ;;  %6723 = vmatmul.msk.bf16.vlgmr.msrb.gmra.mxu0 %vm519_vm1, %v8426_v5  ;;  %v1830_v5 = vsel %vm519_vm1, %v8410_v24, 0 }
 0x4a0   :  { %v1525_v0 = vmul.f32 %v7285_v43, %v8510_v27  ;;  %v1495_v19 = vpop.xlane.xlu2 %1494  ;;  %6717 = vmatmul.msk.bf16.vlgmr.msra.gmra.mxu2 %vm153_vm0, %v1604_v33  ;;  %v7287_v38 = vpop.eup %7286 }
 0x4a1   :  { %7288 = vrcp.f32 %v1495_v19  ;;  %1815 = vmatpush.bf16.xpose.msra.mxu2 %v1806_v20  ;;  %v1530_v31 = vmul.f32 %v7287_v38, %v8508_v17  ;;  %v1902_v17 = vsel %vm519_vm1, %v8412_v11, 0 }
 0x4a2   :  { %v1541_v44 = vpack.c.bf16 %v1525_v0, %v1525_v0 }
 0x4a3   :  { %v1546_v3 = vpack.c.bf16 %v1530_v31, %v1530_v31 }
 0x4a4   :  { %v1628_v12 = vunpack.c.l.b16 %v1541_v44 }
 0x4a5   :  { %v1702_v23 = vunpack.c.l.b16 %v1546_v3 }
 0x4a6   :  { %v1629_v46 = vpack.c.b16 %v1628_v12, %v1627_v22 }
 0x4a7   :  { %v7289_v21 = vpop.eup %7288 }
 0x4a8   :  { %v1531_v34 = vmul.f32 %v7289_v21, %v8518_v40  ;;  %6718 = vmatmul.msk.bf16.vlgmr.msrb.gmra.mxu3 %vm153_vm0, %v1629_v46  ;;  %v1919_v27 = vpop.permute.xlu2 %1918 }
 0x4a9   :  { %1839 = vmatpush.bf16.xpose.msrb.mxu3 %v1830_v5 }
 0x4aa   :  { %v1547_v54 = vpack.c.bf16 %v1531_v34, %v1531_v34  ;;  %v1921_v24 = vpop.permute.xlu0 %1920 }
 0x4ab   :  { %v1926_v0 = vsel %vm519_vm1, %v1921_v24, 0 }
 0x4ac   :  { %v1703_v9 = vunpack.c.l.b16 %v1547_v54 }
 0x4ae   :  { %v1704_v45 = vpack.c.b16 %v1703_v9, %v1702_v23 }
 0x4b0   :  { %v2140_v8 = vpop.permute.xlu2 %2139  ;;  %6721 = vmatmul.msk.bf16.vlgmr.msrb.gmra.mxu2 %vm153_vm0, %v1704_v45 }
 0x4b1   :  { %1911 = vmatpush.bf16.xpose.msrb.mxu2 %v1902_v17  ;;  %2152 = vmatpush.bf16.msrb.mxu0 %v2140_v8 }
 0x4b8   :  { %v2215_v49 = vpop.permute.xlu2 %2214  ;;  %v8626_v12 = vpop.f32.mrf.mxu0 }
 0x4b9   :  { %11230 = vst [vmem:[#allocation29_spill] sm:$0xff] %v8626_v12 }
 0x4c0   :  { %6725 = vmatmul.msk.bf16.vlgmr.msra.gmra.mxu2 %vm519_vm1, %v8342_v15  ;;  %v8628_v5 = vpop.f32.mrf.mxu0 }
 0x4c1   :  { %v1501_v40 = vpop.xlane.xlu1 %1500  ;;  %11231 = vst [vmem:[#allocation30_spill] sm:$0xff] %v8628_v5 }
 0x4c2   :  { %7290 = vrcp.f32 %v1501_v40 }
 0x4c8   :  { %v7291_v14 = vpop.eup %7290 }
 0x4c9   :  { %v1533_v11 = vmul.f32 %v7291_v14, %v8532_v29 }
 0x4cb   :  { %v1549_v57 = vpack.c.bf16 %v1533_v11, %v1533_v11 }
 0x4cd   :  { %v1728_v28 = vunpack.c.l.b16 %v1549_v57 }
 0x4d0   :  { %6729 = vmatmul.msk.bf16.vlgmr.msrb.gmra.mxu2 %vm519_vm1, %v8428_v37  ;;  %v8614_v37 = vpop.permute.xlu2 %2384 }
 0x4d5   :  { %v1498_v4 = vpop.xlane.xlu0 %1497 }
 0x4d6   :  { %7292 = vrcp.f32 %v1498_v4 }
 0x4d9   :  { %v1775_v48 = vpop.permute.xlu1 %1774 }
 0x4da   :  { %6724 = vmatmul.msk.bf16.vlgmr.msra.gmra.mxu1 %vm519_vm1, %v1775_v48 }
 0x4dc   :  { %v7293_v10 = vpop.eup %7292 }
 0x4dd   :  { %v1532_v50 = vmul.f32 %v7293_v10, %v8543_v13  ;;  %v8619_v13 = vpop.permute.xlu2 %2336 }
 0x4df   :  { %v1548_v15 = vpack.c.bf16 %v1532_v50, %v1532_v50 }
 0x4e1   :  { %v1727_v33 = vunpack.c.l.b16 %v1548_v15  ;;  %v1873_v43 = vpop.permute.xlu1 %1872 }
 0x4e2   :  { %v1878_v20 = vsel %vm519_vm1, %v1873_v43, 0 }
 0x4e3   :  { %v1729_v35 = vpack.c.b16 %v1728_v28, %v1727_v33  ;;  %1887 = vmatpush.bf16.xpose.msrb.mxu1 %v1878_v20 }
 0x4e5   :  { %6722 = vmatmul.msk.bf16.vlgmr.msra.gmra.mxu3 %vm153_vm0, %v1729_v35  ;;  %v8624_v22 = vpop.permute.xlu2 %2382 }
 0x4e6   :  { %1935 = vmatpush.bf16.xpose.msra.mxu3 %v1926_v0 }
 0x4e8   :  { %v1847_v29 = vpop.permute.xlu0 %1846 }
 0x4e9   :  { %6727 = vmatmul.msk.bf16.vlgmr.msra.gmra.mxu0 %vm519_vm1, %v1847_v29  ;;  %v2290_v19 = vpop.permute.xlu1 %2289 }
 0x4ed   :  { %v2265_v21 = vpop.permute.xlu2 %2264 }
 0x4f0   :  { %v1871_v38 = vpop.permute.xlu0 %1870 }
 0x4f1   :  { %6728 = vmatmul.msk.bf16.vlgmr.msrb.gmra.mxu1 %vm519_vm1, %v1871_v38  ;;  %v2240_v44 = vpop.permute.xlu1 %2239 }
 0x4f2   :  { %2252 = vmatpush.bf16.msra.mxu0 %v2240_v44 }
 0x4f5   :  { %6726 = vmatmul.msk.bf16.vlgmr.msrb.gmra.mxu3 %vm519_vm1, %v8459_v7 }
 0x4f6   :  { %2227 = vmatpush.bf16.msrb.mxu3 %v2215_v49 }
 0x4f8   :  { %v2190_v31 = vpop.permute.xlu0 %2189 }
 0x4f9   :  { %2202 = vmatpush.bf16.msra.mxu2 %v2190_v31  ;;  %v2315_v3 = vpop.permute.xlu1 %2314 }
 0x4fd   :  { %2302 = vmatpush.bf16.msrb.mxu2 %v2290_v19 }
 0x500   :  { %v2165_v46 = vpop.permute.xlu0 %2164 }
 0x501   :  { %2177 = vmatpush.bf16.msra.mxu1 %v2165_v46  ;;  %v8643_v17 = vpop.f32.mrf.mxu1 }
 0x502   :  { %11234 = vst [vmem:[#allocation33_spill] sm:$0xff] %v8643_v17 }
 0x505   :  { %2277 = vmatpush.bf16.msrb.mxu1 %v2265_v21  ;;  %6730 = vmatmul.msk.bf16.vlgmr.msra.gmra.mxu3 %vm519_vm1, %v1919_v27 }
 0x506   :  { %2327 = vmatpush.bf16.msra.mxu3 %v2315_v3 }
 0x509   :  { %v8647_v8 = vpop.f32.mrf.mxu1 }
 0x50a   :  { %11236 = vst [vmem:[#allocation35_spill] sm:$0xff] %v8647_v8 }
 0x50c   :  { %v8631_v34 = vpop.f32.mrf.mxu0 }
 0x50d   :  { %11232 = vst [vmem:[#allocation31_spill] sm:$0xff] %v8631_v34 }
 0x514   :  { %v8633_v7 = vpop.f32.mrf.mxu0 }
 0x515   :  { %11233 = vst [vmem:[#allocation32_spill] sm:$0xff] %v8633_v7  ;;  %v8651_v40 = vpop.f32.mrf.mxu1 }
 0x516   :  { %11238 = vst [vmem:[#allocation37_spill] sm:$0xff] %v8651_v40 }
 0x51c   :  { %v8635_v54 = vpop.f32.mrf.mxu0 }
 0x51d   :  { %v1942_v23 = vsel %vm153_vm0, %v8635_v54, -inf  ;;  %v8655_v14 = vpop.f32.mrf.mxu1 }
 0x51e   :  { %1943 = vmax.xlane.f32.xlu0 %v1942_v23  ;;  %11240 = vst [vmem:[#allocation39_spill] sm:$0xff] %v8655_v14 }
 0x523   :  { %v8645_v27 = vpop.f32.mrf.mxu2 }
 0x524   :  { %v8639_v9 = vpop.f32.mrf.mxu0  ;;  %11235 = vst [vmem:[#allocation34_spill] sm:$0xff] %v8645_v27 }
 0x525   :  { %v1945_v45 = vsel %vm153_vm0, %v8639_v9, -inf }
 0x526   :  { %1946 = vmax.xlane.f32.xlu2 %v1945_v45 }
 0x52b   :  { %v8649_v24 = vpop.f32.mrf.mxu2  ;;  %v8657_v49 = vpop.f32.mrf.mxu3 }
 0x52c   :  { %11237 = vst [vmem:[#allocation36_spill] sm:$0xff] %v8649_v24 }
 0x52d   :  { %11241 = vst [vmem:[#allocation40_spill] sm:$0xff] %v8657_v49 }
 0x533   :  { %v8653_v4 = vpop.f32.mrf.mxu2  ;;  %v8667_v50 = vpop.f32.mrf.mxu3 }
 0x534   :  { %11239 = vst [vmem:[#allocation38_spill] sm:$0xff] %v8653_v4 }
 0x535   :  { %11243 = vst [vmem:[#allocation42_spill] sm:$0xff] %v8667_v50 }
 0x53b   :  { %v8659_v11 = vpop.f32.mrf.mxu2 }
 0x53c   :  { %11242 = vst [vmem:[#allocation41_spill] sm:$0xff] %v8659_v11  ;;  %v8719_v11 = vpop.permute.xlu0 %2334 }
 0x543   :  { %v8669_v15 = vpop.f32.mrf.mxu2 }
 0x54b   :  { %v8679_v35 = vpop.f32.mrf.mxu2 }
 0x54c   :  { %v1957_v19 = vsel %vm153_vm0, %v8679_v35, -inf }
 0x553   :  { %v8691_v31 = vpop.f32.mrf.mxu2 }
 0x557   :  { %v8661_v48 = vpop.f32.mrf.mxu1 }
 0x558   :  { %v1948_v10 = vsel %vm153_vm0, %v8661_v48, -inf }
 0x559   :  { %1949 = vmax.xlane.f32.xlu0 %v1948_v10 }
 0x55b   :  { %v8703_v10 = vpop.f32.mrf.mxu2 }
 0x55f   :  { %v8665_v57 = vpop.f32.mrf.mxu1 }
 0x560   :  { %v1951_v28 = vsel %vm153_vm0, %v8665_v57, -inf }
 0x561   :  { %1952 = vmax.xlane.f32.xlu2 %v1951_v28  ;;  %v1954_v28 = vsel %vm153_vm0, %v8669_v15, -inf }
 0x566   :  { %v8673_v33 = vpop.f32.mrf.mxu0 }
 0x567   :  { %v1966_v43 = vsel %vm153_vm0, %v8673_v33, -inf }
 0x568   :  { %1967 = vmax.xlane.f32.xlu1 %v1966_v43  ;;  %v8677_v20 = vpop.f32.mrf.mxu3 }
 0x569   :  { %11244 = vst [vmem:[#allocation43_spill] sm:$0xff] %v8677_v20 }
 0x56e   :  { %v8681_v0 = vpop.f32.mrf.mxu0  ;;  %v8683_v29 = vpop.f32.mrf.mxu1 }
 0x56f   :  { %v1969_v38 = vsel %vm153_vm0, %v8681_v0, -inf  ;;  %v1972_v21 = vsel %vm153_vm0, %v8683_v29, -inf }
 0x570   :  { %1958 = vmax.xlane.f32.xlu1 %v1957_v19  ;;  %v8689_v44 = vpop.f32.mrf.mxu3  ;;  %1970 = vmax.xlane.f32.xlu0 %v1969_v38  ;;  %v1981_v19 = vsel %vm153_vm0, %v8703_v10, -inf }
 0x571   :  { %11245 = vst [vmem:[#allocation44_spill] sm:$0xff] %v8689_v44 }
 0x576   :  { %v8693_v46 = vpop.f32.mrf.mxu1 }
 0x577   :  { %v1975_v3 = vsel %vm153_vm0, %v8693_v46, -inf }
 0x578   :  { %v8699_v23 = vpop.f32.mrf.mxu3  ;;  %1973 = vmax.xlane.f32.xlu0 %v1972_v21  ;;  %1976 = vmax.xlane.f32.xlu2 %v1975_v3  ;;  %v8713_v21 = vpop.permute.xlu2 %2408  ;;  %v1978_v3 = vsel %vm153_vm0, %v8691_v31, -inf }
 0x579   :  { %v1960_v45 = vsel %vm153_vm0, %v8699_v23, -inf }
 0x57a   :  { %1961 = vmax.xlane.f32.xlu1 %v1960_v45 }
 0x580   :  { %v8707_v43 = vpop.f32.mrf.mxu3  ;;  %1955 = vmax.xlane.f32.xlu2 %v1954_v28  ;;  %v8725_v51 = vpop.permute.xlu2 %2480 }
 0x581   :  { %v1963_v38 = vsel %vm153_vm0, %v8707_v43, -inf }
 0x582   :  { %1982 = vmax.xlane.f32.xlu1 %v1981_v19  ;;  %1964 = vmax.xlane.f32.xlu0 %v1963_v38 }
 0x588   :  { %v8717_v45 = vpop.f32.mrf.mxu3  ;;  %1979 = vmax.xlane.f32.xlu2 %v1978_v3 }
 0x589   :  { %v1984_v28 = vsel %vm153_vm0, %v8717_v45, -inf }
 0x590   :  { %v8723_v4 = vpop.f32.mrf.mxu3  ;;  %1985 = vmax.xlane.f32.xlu2 %v1984_v28 }
 0x591   :  { %v1944_v19 = vpop.xlane.xlu0 %1943  ;;  %v1987_v38 = vsel %vm153_vm0, %v8723_v4, -inf }
 0x592   :  { %v1990_v44 = vsub.f32 %v8635_v54, %v1944_v19  ;;  %1988 = vmax.xlane.f32.xlu1 %v1987_v38 }
 0x594   :  { %v2006_v20 = vmul.f32 1.442695, %v1990_v44 }
 0x596   :  { %7294 = vpow2.f32 %v2006_v20 }
 0x599   :  { %v1947_v3 = vpop.xlane.xlu2 %1946 }
 0x59a   :  { %v1991_v7 = vsub.f32 %v8639_v9, %v1947_v3 }
 0x59c   :  { %v8731_v34 = vpop.eup %7294  ;;  %v2008_v14 = vmul.f32 1.442695, %v1991_v7 }
 0x59d   :  { %v2038_v28 = vsel %vm153_vm0, %v8731_v34, 0.0 }
 0x59e   :  { %7296 = vpow2.f32 %v2008_v14  ;;  %2039 = vadd.xlane.f32.xlu2 %v2038_v28 }
 0x5a4   :  { %v8735_v40 = vpop.eup %7296 }
 0x5a5   :  { %v2041_v50 = vsel %vm153_vm0, %v8735_v40, 0.0 }
 0x5a6   :  { %2042 = vadd.xlane.f32.xlu1 %v2041_v50 }
 0x5cc   :  { %v1950_v54 = vpop.xlane.xlu0 %1949 }
 0x5cd   :  { %v1992_v20 = vsub.f32 %v8661_v48, %v1950_v54 }
 0x5cf   :  { %v2010_v44 = vmul.f32 1.442695, %v1992_v20 }
 0x5d1   :  { %7298 = vpow2.f32 %v2010_v44 }
 0x5d4   :  { %v1953_v19 = vpop.xlane.xlu2 %1952 }
 0x5d5   :  { %v1993_v3 = vsub.f32 %v8665_v57, %v1953_v19 }
 0x5d7   :  { %v8740_v9 = vpop.eup %7298  ;;  %v2012_v50 = vmul.f32 1.442695, %v1993_v3 }
 0x5d8   :  { %v2044_v7 = vsel %vm153_vm0, %v8740_v9, 0.0 }
 0x5d9   :  { %2045 = vadd.xlane.f32.xlu0 %v2044_v7 }
 0x5db   :  { %v1968_v14 = vpop.xlane.xlu1 %1967 }
 0x5dc   :  { %v1998_v38 = vsub.f32 %v8673_v33, %v1968_v14 }
 0x5de   :  { %v2022_v28 = vmul.f32 1.442695, %v1998_v38 }
 0x5e0   :  { %7300 = vpow2.f32 %v2022_v28 }
 0x5e1   :  { %7302 = vpow2.f32 %v2012_v50 }
 0x5e3   :  { %v1971_v49 = vpop.xlane.xlu0 %1970  ;;  %v1959_v24 = vpop.xlane.xlu1 %1958 }
 0x5e4   :  { %v1999_v54 = vsub.f32 %v8681_v0, %v1971_v49  ;;  %v1995_v49 = vsub.f32 %v8679_v35, %v1959_v24 }
 0x5e6   :  { %v8746_v48 = vpop.eup %7300  ;;  %v2024_v44 = vmul.f32 1.442695, %v1999_v54  ;;  %v2016_v54 = vmul.f32 1.442695, %v1995_v49 }
 0x5e7   :  { %v2062_v20 = vsel %vm153_vm0, %v8746_v48, 0.0  ;;  %v8751_v33 = vpop.eup %7302 }
 0x5e8   :  { %2063 = vadd.xlane.f32.xlu1 %v2062_v20  ;;  %7304 = vpow2.f32 %v2024_v44  ;;  %v2047_v0 = vsel %vm153_vm0, %v8751_v33, 0.0 }
 0x5eb   :  { %v1974_v7 = vpop.xlane.xlu0 %1973  ;;  %v1977_v27 = vpop.xlane.xlu2 %1976 }
 0x5ec   :  { %v2001_v57 = vsub.f32 %v8693_v46, %v1977_v27  ;;  %v2000_v14 = vsub.f32 %v8683_v29, %v1974_v7 }
 0x5ed   :  { %v1962_v19 = vpop.xlane.xlu1 %1961 }
 0x5ee   :  { %v2028_v38 = vmul.f32 1.442695, %v2001_v57  ;;  %v1996_v3 = vsub.f32 %v8699_v23, %v1962_v19  ;;  %v2026_v50 = vmul.f32 1.442695, %v2000_v14  ;;  %v8759_v27 = vpop.eup %7304 }
 0x5ef   :  { %v2065_v24 = vsel %vm153_vm0, %v8759_v27, 0.0 }
 0x5f0   :  { %v2018_v28 = vmul.f32 1.442695, %v1996_v3  ;;  %2048 = vadd.xlane.f32.xlu1 %v2047_v0  ;;  %7306 = vpow2.f32 %v2028_v38 }
 0x5f2   :  { %7308 = vpow2.f32 %v2018_v28 }
 0x5f3   :  { %v1956_v20 = vpop.xlane.xlu2 %1955  ;;  %7310 = vpow2.f32 %v2026_v50 }
 0x5f4   :  { %v1994_v29 = vsub.f32 %v8669_v15, %v1956_v20  ;;  %7312 = vpow2.f32 %v2016_v54 }
 0x5f5   :  { %v1965_v57 = vpop.xlane.xlu0 %1964  ;;  %v1983_v54 = vpop.xlane.xlu1 %1982 }
 0x5f6   :  { %v8762_v46 = vpop.eup %7306  ;;  %v2014_v7 = vmul.f32 1.442695, %v1994_v29  ;;  %v1997_v3 = vsub.f32 %v8707_v43, %v1965_v57  ;;  %v2003_v29 = vsub.f32 %v8703_v10, %v1983_v54 }
 0x5f7   :  { %v2071_v23 = vsel %vm153_vm0, %v8762_v46, 0.0 }
 0x5f8   :  { %v8766_v35 = vpop.eup %7308  ;;  %2066 = vadd.xlane.f32.xlu1 %v2065_v24  ;;  %2072 = vadd.xlane.f32.xlu0 %v2071_v23  ;;  %7314 = vpow2.f32 %v2014_v7  ;;  %v2020_v50 = vmul.f32 1.442695, %v1997_v3 }
 0x5f9   :  { %v2056_v44 = vsel %vm153_vm0, %v8766_v35, 0.0  ;;  %v8772_v19 = vpop.eup %7310 }
 0x5fa   :  { %2057 = vadd.xlane.f32.xlu2 %v2056_v44  ;;  %v8775_v38 = vpop.eup %7312  ;;  %v2068_v0 = vsel %vm153_vm0, %v8772_v19, 0.0  ;;  %v2032_v44 = vmul.f32 1.442695, %v2003_v29 }
 0x5fb   :  { %v1980_v15 = vpop.xlane.xlu2 %1979  ;;  %v2053_v28 = vsel %vm153_vm0, %v8775_v38, 0.0 }
 0x5fc   :  { %v2002_v14 = vsub.f32 %v8691_v31, %v1980_v15 }
 0x5fe   :  { %v2030_v49 = vmul.f32 1.442695, %v2002_v14  ;;  %v8782_v20 = vpop.eup %7314 }
 0x5ff   :  { %v2050_v43 = vsel %vm153_vm0, %v8782_v20, 0.0 }
 0x600   :  { %7316 = vpow2.f32 %v2030_v49  ;;  %2069 = vadd.xlane.f32.xlu1 %v2068_v0  ;;  %2054 = vadd.xlane.f32.xlu0 %v2053_v28 }
 0x601   :  { %7318 = vpow2.f32 %v2020_v50 }
 0x602   :  { %7320 = vpow2.f32 %v2032_v44 }
 0x603   :  { %v1986_v23 = vpop.xlane.xlu2 %1985 }
 0x605   :  { %v1989_v15 = vpop.xlane.xlu1 %1988 }
 0x606   :  { %v8784_v31 = vpop.eup %7316 }
 0x607   :  { %v2074_v24 = vsel %vm153_vm0, %v8784_v31, 0.0  ;;  %v8791_v7 = vpop.eup %7318 }
 0x608   :  { %2051 = vadd.xlane.f32.xlu1 %v2050_v43  ;;  %2075 = vadd.xlane.f32.xlu2 %v2074_v24  ;;  %v2059_v57 = vsel %vm153_vm0, %v8791_v7, 0.0  ;;  %v8795_v10 = vpop.eup %7320 }
 0x609   :  { %v2077_v3 = vsel %vm153_vm0, %v8795_v10, 0.0 }
 0x610   :  { %2060 = vadd.xlane.f32.xlu1 %v2059_v57 }
 0x611   :  { %v2040_v14 = vpop.xlane.xlu2 %2039 }
 0x612   :  { %7322 = vrcp.f32 %v2040_v14  ;;  %v2342_v14 = vsel %vm519_vm1, %v8619_v13, 0 }
 0x614   :  { %2432 = vrot.lane.b32.xlu0 %v7968_v25, %s7762_s11 }
 0x618   :  { %2078 = vadd.xlane.f32.xlu1 %v2077_v3  ;;  %v7323_v0 = vpop.eup %7322  ;;  %v2005_v3 = vsub.f32 %v8723_v4, %v1989_v15 }
 0x619   :  { %v2043_v49 = vpop.xlane.xlu1 %2042  ;;  %v2102_v28 = vmul.f32 %v7323_v0, %v8731_v34 }
 0x61a   :  { %7324 = vrcp.f32 %v2043_v49  ;;  %v2036_v34 = vmul.f32 1.442695, %v2005_v3  ;;  %v2004_v49 = vsub.f32 %v8717_v45, %v1986_v23 }
 0x61b   :  { %v2118_v54 = vpack.c.bf16 %v2102_v28, %v2102_v28 }
 0x61c   :  { %7326 = vpow2.f32 %v2036_v34  ;;  %v2034_v0 = vmul.f32 1.442695, %v2004_v49 }
 0x61d   :  { %v2136_v24 = vunpack.c.l.b16 %v2118_v54 }
 0x61e   :  { %7328 = vpow2.f32 %v2034_v0 }
 0x620   :  { %v7325_v50 = vpop.eup %7324  ;;  %2406 = vrot.lane.b32.xlu2 %v7961_v2, %s7762_s11 }
 0x621   :  { %v2103_v29 = vmul.f32 %v7325_v50, %v8735_v40 }
 0x622   :  { %v8814_v40 = vpop.eup %7326 }
 0x623   :  { %v2119_v43 = vpack.c.bf16 %v2103_v29, %v2103_v29  ;;  %v2083_v13 = vsel %vm153_vm0, %v8814_v40, 0.0 }
 0x624   :  { %v8820_v4 = vpop.eup %7328 }
 0x625   :  { %v2137_v44 = vunpack.c.l.b16 %v2119_v43  ;;  %v2080_v15 = vsel %vm153_vm0, %v8820_v4, 0.0 }
 0x627   :  { %v2138_v57 = vpack.c.b16 %v2137_v44, %v2136_v24 }
 0x629   :  { %6731 = vmatmul.msk.bf16.vlgmr.msrb.gmra.mxu0 %vm153_vm0, %v2138_v57 }
 0x62a   :  { %2351 = vmatpush.bf16.xpose.msrb.mxu0 %v2342_v14 }
 0x631   :  { %2360 = vrot.lane.b32.xlu1 %v7930_v18, %s7762_s11 }
 0x639   :  { %2478 = vrot.lane.b32.xlu1 %v8004_v6, %s7762_s11 }
 0x63e   :  { %2084 = vadd.xlane.f32.xlu0 %v2083_v13 }
 0x641   :  { %2504 = vrot.lane.b32.xlu1 %v8011_v16, %s7762_s11 }
 0x649   :  { %2081 = vadd.xlane.f32.xlu2 %v2080_v15  ;;  %2454 = vrot.lane.b32.xlu1 %v7985_v1, %s7762_s11 }
 0x64c   :  { %v2046_v45 = vpop.xlane.xlu0 %2045 }
 0x64d   :  { %7330 = vrcp.f32 %v2046_v45 }
 0x651   :  { %2723 = vrot.lane.b32.xlu1 %v8100_v55, %s7762_s11 }
 0x652   :  { %2358 = vrot.lane.b32.xlu0 %v7935_v26, %s7762_s11 }
 0x653   :  { %v7331_v50 = vpop.eup %7330 }
 0x654   :  { %v2104_v54 = vmul.f32 %v7331_v50, %v8740_v9 }
 0x656   :  { %v2120_v43 = vpack.c.bf16 %v2104_v54, %v2104_v54 }
 0x658   :  { %v2161_v34 = vunpack.c.l.b16 %v2120_v43 }
 0x659   :  { %2798 = vrot.lane.b32.xlu1 %v8147_v59, %s7762_s11 }
 0x65a   :  { %2456 = vrot.lane.b32.xlu0 %v7980_v56, %s7762_s11 }
 0x65b   :  { %v2064_v23 = vpop.xlane.xlu1 %2063 }
 0x661   :  { %2430 = vrot.lane.b32.xlu2 %v7973_v42, %s7762_s11  ;;  %2968 = vrot.lane.b32.xlu1 %v7940_v39, %s7763_s12 }
 0x662   :  { %2773 = vrot.lane.b32.xlu0 %v8128_v63, %s7762_s11 }
 0x663   :  { %v2049_v28 = vpop.xlane.xlu1 %2048 }
 0x664   :  { %7332 = vrcp.f32 %v2049_v28 }
 0x665   :  { %7334 = vrcp.f32 %v2064_v23 }
 0x669   :  { %2502 = vrot.lane.b32.xlu2 %v8015_v60, %s7762_s11 }
 0x66a   :  { %v7333_v29 = vpop.eup %7332  ;;  %2823 = vrot.lane.b32.xlu0 %v8167_v53, %s7762_s11 }
 0x66b   :  { %v2105_v24 = vmul.f32 %v7333_v29, %v8751_v33  ;;  %v2067_v44 = vpop.xlane.xlu1 %2066  ;;  %v7335_v57 = vpop.eup %7334 }
 0x66c   :  { %v2073_v14 = vpop.xlane.xlu0 %2072  ;;  %7336 = vrcp.f32 %v2067_v44  ;;  %v2110_v49 = vmul.f32 %v7335_v57, %v8746_v48 }
 0x66d   :  { %v2121_v3 = vpack.c.bf16 %v2105_v24, %v2105_v24  ;;  %7338 = vrcp.f32 %v2073_v14  ;;  %v2058_v44 = vpop.xlane.xlu2 %2057 }
 0x66e   :  { %v2126_v15 = vpack.c.bf16 %v2110_v49, %v2110_v49 }
 0x66f   :  { %v2162_v9 = vunpack.c.l.b16 %v2121_v3 }
 0x670   :  { %v2236_v48 = vunpack.c.l.b16 %v2126_v15 }
 0x671   :  { %v2163_v0 = vpack.c.b16 %v2162_v9, %v2161_v34  ;;  %2748 = vrot.lane.b32.xlu2 %v8114_v36, %s7762_s11 }
 0x672   :  { %v7337_v13 = vpop.eup %7336  ;;  %2920 = vrot.lane.b32.xlu0 %v7916_v52, %s7763_s12 }
 0x673   :  { %v2111_v33 = vmul.f32 %v7337_v13, %v8759_v27  ;;  %6732 = vmatmul.msk.bf16.vlgmr.msra.gmra.mxu1 %vm153_vm0, %v2163_v0  ;;  %v2070_v45 = vpop.xlane.xlu1 %2069  ;;  %v7339_v23 = vpop.eup %7338 }
 0x674   :  { %v2055_v28 = vpop.xlane.xlu0 %2054  ;;  %7340 = vrcp.f32 %v2070_v45  ;;  %v2113_v54 = vmul.f32 %v7339_v23, %v8762_v46 }
 0x675   :  { %v2127_v50 = vpack.c.bf16 %v2111_v33, %v2111_v33  ;;  %7342 = vrcp.f32 %v2055_v28 }
 0x676   :  { %v2129_v24 = vpack.c.bf16 %v2113_v54, %v2113_v54 }
 0x677   :  { %v2237_v29 = vunpack.c.l.b16 %v2127_v50 }
 0x678   :  { %v2262_v49 = vunpack.c.l.b16 %v2129_v24 }
 0x679   :  { %v2238_v43 = vpack.c.b16 %v2237_v29, %v2236_v48  ;;  %2873 = vrot.lane.b32.xlu2 %v8201_v62, %s7762_s11 }
 0x67a   :  { %v7341_v27 = vpop.eup %7340 }
 0x67b   :  { %v2112_v57 = vmul.f32 %v7341_v27, %v8772_v19  ;;  %6735 = vmatmul.msk.bf16.vlgmr.msra.gmra.mxu0 %vm153_vm0, %v2238_v43  ;;  %v2052_v14 = vpop.xlane.xlu1 %2051  ;;  %v7343_v3 = vpop.eup %7342 }
 0x67c   :  { %7344 = vrcp.f32 %v2052_v14  ;;  %v2107_v9 = vmul.f32 %v7343_v3, %v8775_v38  ;;  %v2076_v15 = vpop.xlane.xlu2 %2075  ;;  %v2390_v14 = vsel %vm519_vm1, %v8614_v37, 0 }
 0x67d   :  { %v2128_v34 = vpack.c.bf16 %v2112_v57, %v2112_v57  ;;  %7346 = vrcp.f32 %v2058_v44 }
 0x67e   :  { %v2123_v45 = vpack.c.bf16 %v2107_v9, %v2107_v9 }
 0x67f   :  { %v2261_v46 = vunpack.c.l.b16 %v2128_v34 }
 0x680   :  { %v2187_v38 = vunpack.c.l.b16 %v2123_v45 }
 0x681   :  { %v2263_v0 = vpack.c.b16 %v2262_v49, %v2261_v46  ;;  %2848 = vrot.lane.b32.xlu2 %v8186_v47, %s7762_s11 }
 0x682   :  { %v7345_v13 = vpop.eup %7344 }
 0x683   :  { %6736 = vmatmul.msk.bf16.vlgmr.msrb.gmra.mxu1 %vm153_vm0, %v2263_v0  ;;  %v2061_v19 = vpop.xlane.xlu1 %2060  ;;  %v7347_v33 = vpop.eup %7346  ;;  %v2106_v23 = vmul.f32 %v7345_v13, %v8782_v20 }
 0x684   :  { %7348 = vrcp.f32 %v2061_v19  ;;  %v2108_v50 = vmul.f32 %v7347_v33, %v8766_v35  ;;  %v2486_v33 = vsel %vm519_vm1, %v8725_v51, 0 }
 0x685   :  { %7350 = vrcp.f32 %v2076_v15  ;;  %v2122_v28 = vpack.c.bf16 %v2106_v23, %v2106_v23  ;;  %v2407_v23 = vpop.permute.xlu2 %2406 }
 0x686   :  { %v2433_v48 = vpop.permute.xlu0 %2432  ;;  %v2124_v24 = vpack.c.bf16 %v2108_v50, %v2108_v50 }
 0x687   :  { %v2186_v54 = vunpack.c.l.b16 %v2122_v28  ;;  %v2438_v29 = vsel %vm519_vm1, %v2433_v48, 0 }
 0x688   :  { %2447 = vmatpush.bf16.xpose.msra.mxu0 %v2438_v29  ;;  %v2211_v3 = vunpack.c.l.b16 %v2124_v24 }
 0x689   :  { %v2188_v27 = vpack.c.b16 %v2187_v38, %v2186_v54 }
 0x68a   :  { %v7349_v43 = vpop.eup %7348 }
 0x68b   :  { %v2109_v44 = vmul.f32 %v7349_v43, %v8791_v7  ;;  %6739 = vmatmul.msk.bf16.vlgmr.msrb.gmra.mxu0 %vm519_vm1, %v8719_v11  ;;  %v2079_v20 = vpop.xlane.xlu1 %2078  ;;  %v7351_v57 = vpop.eup %7350  ;;  %6733 = vmatmul.msk.bf16.vlgmr.msra.gmra.mxu2 %vm153_vm0, %v2188_v27  ;;  %v2414_v7 = vsel %vm519_vm1, %v8713_v21, 0 }
 0x68c   :  { %7352 = vrcp.f32 %v2079_v20  ;;  %2399 = vmatpush.bf16.xpose.msra.mxu2 %v2390_v14  ;;  %v2114_v34 = vmul.f32 %v7351_v57, %v8784_v31 }
 0x68d   :  { %v2125_v35 = vpack.c.bf16 %v2109_v44, %v2109_v44 }
 0x68e   :  { %v2130_v11 = vpack.c.bf16 %v2114_v34, %v2114_v34 }
 0x68f   :  { %v2212_v49 = vunpack.c.l.b16 %v2125_v35 }
 0x690   :  { %v2286_v13 = vunpack.c.l.b16 %v2130_v11 }
 0x691   :  { %v2213_v46 = vpack.c.b16 %v2212_v49, %v2211_v3 }
 0x692   :  { %v7353_v9 = vpop.eup %7352 }
 0x693   :  { %v2115_v0 = vmul.f32 %v7353_v9, %v8795_v10  ;;  %6734 = vmatmul.msk.bf16.vlgmr.msrb.gmra.mxu3 %vm153_vm0, %v2213_v46 }
 0x694   :  { %2423 = vmatpush.bf16.xpose.msrb.mxu3 %v2414_v7 }
 0x695   :  { %v2131_v37 = vpack.c.bf16 %v2115_v0, %v2115_v0 }
 0x697   :  { %v2287_v15 = vunpack.c.l.b16 %v2131_v37 }
 0x699   :  { %v2288_v19 = vpack.c.b16 %v2287_v15, %v2286_v13 }
 0x69b   :  { %6737 = vmatmul.msk.bf16.vlgmr.msrb.gmra.mxu2 %vm153_vm0, %v2288_v19 }
 0x69c   :  { %2495 = vmatpush.bf16.xpose.msrb.mxu2 %v2486_v33 }
 0x6a3   :  { %v2361_v31 = vpop.permute.xlu1 %2360 }
 0x6a4   :  { %v2366_v45 = vsel %vm519_vm1, %v2361_v31, 0 }
 0x6a5   :  { %2375 = vmatpush.bf16.xpose.msra.mxu1 %v2366_v45 }
 0x6a6   :  { %v8892_v0 = vpop.f32.mrf.mxu0 }
 0x6a7   :  { %11246 = vst [vmem:[#allocation45_spill] sm:$0xff] %v8892_v0 }
 0x6ab   :  { %v2479_v21 = vpop.permute.xlu1 %2478  ;;  %6741 = vmatmul.msk.bf16.vlgmr.msra.gmra.mxu2 %vm519_vm1, %v8624_v22 }
 0x6ae   :  { %v8895_v37 = vpop.f32.mrf.mxu0 }
 0x6af   :  { %11247 = vst [vmem:[#allocation46_spill] sm:$0xff] %v8895_v37 }
 0x6b1   :  { %v2085_v28 = vpop.xlane.xlu0 %2084 }
 0x6b2   :  { %7354 = vrcp.f32 %v2085_v28 }
 0x6b3   :  { %v2505_v10 = vpop.permute.xlu1 %2504 }
 0x6b4   :  { %v2510_v35 = vsel %vm519_vm1, %v2505_v10, 0 }
 0x6b8   :  { %v7355_v51 = vpop.eup %7354 }
 0x6b9   :  { %v2117_v38 = vmul.f32 %v7355_v51, %v8814_v40 }
 0x6bb   :  { %v2455_v50 = vpop.permute.xlu1 %2454  ;;  %6745 = vmatmul.msk.bf16.vlgmr.msrb.gmra.mxu2 %vm519_vm1, %v2479_v21  ;;  %v2133_v43 = vpack.c.bf16 %v2117_v38, %v2117_v38 }
 0x6bc   :  { %v2082_v48 = vpop.xlane.xlu2 %2081 }
 0x6bd   :  { %7356 = vrcp.f32 %v2082_v48  ;;  %v2312_v20 = vunpack.c.l.b16 %v2133_v43 }
 0x6c3   :  { %v7357_v54 = vpop.eup %7356  ;;  %v2724_v29 = vpop.permute.xlu1 %2723 }
 0x6c4   :  { %v2116_v27 = vmul.f32 %v7357_v54, %v8820_v4  ;;  %v2431_v24 = vpop.permute.xlu2 %2430  ;;  %2736 = vmatpush.bf16.msrb.mxu0 %v2724_v29  ;;  %v2359_v22 = vpop.permute.xlu0 %2358 }
 0x6c5   :  { %6743 = vmatmul.msk.bf16.vlgmr.msra.gmra.mxu0 %vm519_vm1, %v2431_v24  ;;  %6740 = vmatmul.msk.bf16.vlgmr.msra.gmra.mxu1 %vm519_vm1, %v2359_v22 }
 0x6c6   :  { %v2132_v44 = vpack.c.bf16 %v2116_v27, %v2116_v27 }
 0x6c8   :  { %v2311_v57 = vunpack.c.l.b16 %v2132_v44 }
 0x6ca   :  { %v2313_v14 = vpack.c.b16 %v2312_v20, %v2311_v57 }
 0x6cb   :  { %v2799_v46 = vpop.permute.xlu1 %2798 }
 0x6cc   :  { %v2503_v3 = vpop.permute.xlu2 %2502  ;;  %6738 = vmatmul.msk.bf16.vlgmr.msra.gmra.mxu3 %vm153_vm0, %v2313_v14  ;;  %v2457_v40 = vpop.permute.xlu0 %2456 }
 0x6cd   :  { %2519 = vmatpush.bf16.xpose.msra.mxu3 %v2510_v35  ;;  %v2462_v4 = vsel %vm519_vm1, %v2457_v40, 0 }
 0x6ce   :  { %2471 = vmatpush.bf16.xpose.msrb.mxu1 %v2462_v4 }
 0x6d4   :  { %v2749_v34 = vpop.permute.xlu2 %2748  ;;  %v2774_v49 = vpop.permute.xlu0 %2773 }
 0x6d5   :  { %6744 = vmatmul.msk.bf16.vlgmr.msrb.gmra.mxu1 %vm519_vm1, %v2455_v50  ;;  %2786 = vmatpush.bf16.msra.mxu2 %v2774_v49 }
 0x6d6   :  { %2761 = vmatpush.bf16.msra.mxu1 %v2749_v34 }
 0x6dc   :  { %v2874_v9 = vpop.permute.xlu2 %2873  ;;  %6742 = vmatmul.msk.bf16.vlgmr.msrb.gmra.mxu3 %vm519_vm1, %v2407_v23  ;;  %v2824_v7 = vpop.permute.xlu0 %2823 }
 0x6dd   :  { %2811 = vmatpush.bf16.msrb.mxu3 %v2799_v46  ;;  %2886 = vmatpush.bf16.msrb.mxu2 %v2874_v9 }
 0x6de   :  { %2836 = vmatpush.bf16.msra.mxu0 %v2824_v7 }
 0x6e4   :  { %v2849_v11 = vpop.permute.xlu2 %2848 }
 0x6e5   :  { %2861 = vmatpush.bf16.msrb.mxu1 %v2849_v11 }
 0x6ec   :  { %6746 = vmatmul.msk.bf16.vlgmr.msra.gmra.mxu3 %vm519_vm1, %v2503_v3 }
 0x6f0   :  { %v8906_v21 = vpop.f32.mrf.mxu1 }
 0x6f1   :  { %11250 = vst [vmem:[#allocation49_spill] sm:$0xff] %v8906_v21 }
 0x6f8   :  { %v8897_v13 = vpop.f32.mrf.mxu0  ;;  %v8910_v23 = vpop.f32.mrf.mxu1 }
 0x6f9   :  { %11248 = vst [vmem:[#allocation47_spill] sm:$0xff] %v8897_v13 }
 0x6fa   :  { %11252 = vst [vmem:[#allocation51_spill] sm:$0xff] %v8910_v23 }
 0x700   :  { %v8899_v15 = vpop.f32.mrf.mxu0  ;;  %v8914_v50 = vpop.f32.mrf.mxu1 }
 0x701   :  { %11249 = vst [vmem:[#allocation48_spill] sm:$0xff] %v8899_v15 }
 0x702   :  { %11254 = vst [vmem:[#allocation53_spill] sm:$0xff] %v8914_v50 }
 0x708   :  { %v2353_v19 = vpop.f32.mrf.mxu0  ;;  %v8918_v51 = vpop.f32.mrf.mxu1 }
 0x709   :  { %v2526_v33 = vsel %vm153_vm0, %v2353_v19, -inf  ;;  %11256 = vst [vmem:[#allocation55_spill] sm:$0xff] %v8918_v51 }
 0x70a   :  { %2527 = vmax.xlane.f32.xlu0 %v2526_v33 }
 0x70e   :  { %v8908_v10 = vpop.f32.mrf.mxu2 }
 0x70f   :  { %11251 = vst [vmem:[#allocation50_spill] sm:$0xff] %v8908_v10 }
 0x710   :  { %v8902_v31 = vpop.f32.mrf.mxu0 }
 0x711   :  { %v2529_v45 = vsel %vm153_vm0, %v8902_v31, -inf }
 0x712   :  { %2530 = vmax.xlane.f32.xlu2 %v2529_v45 }
 0x716   :  { %v8912_v28 = vpop.f32.mrf.mxu2  ;;  %v8920_v38 = vpop.f32.mrf.mxu3 }
 0x717   :  { %11253 = vst [vmem:[#allocation52_spill] sm:$0xff] %v8912_v28 }
 0x718   :  { %11257 = vst [vmem:[#allocation56_spill] sm:$0xff] %v8920_v38 }
 0x71e   :  { %v8916_v48 = vpop.f32.mrf.mxu2  ;;  %v8932_v22 = vpop.f32.mrf.mxu3 }
 0x71f   :  { %11255 = vst [vmem:[#allocation54_spill] sm:$0xff] %v8916_v48 }
 0x720   :  { %11259 = vst [vmem:[#allocation58_spill] sm:$0xff] %v8932_v22 }
 0x726   :  { %v8922_v54 = vpop.f32.mrf.mxu2 }
 0x727   :  { %11258 = vst [vmem:[#allocation57_spill] sm:$0xff] %v8922_v54 }
 0x72e   :  { %v8934_v44 = vpop.f32.mrf.mxu2 }
 0x72f   :  { %v2538_v34 = vsel %vm153_vm0, %v8934_v44, -inf }
 0x736   :  { %v8946_v40 = vpop.f32.mrf.mxu2 }
 0x737   :  { %v2541_v11 = vsel %vm153_vm0, %v8946_v40, -inf }
 0x73e   :  { %v8956_v9 = vpop.f32.mrf.mxu2 }
 0x742   :  { %v8924_v29 = vpop.f32.mrf.mxu0  ;;  %v8926_v43 = vpop.f32.mrf.mxu1 }
 0x743   :  { %v2550_v27 = vsel %vm153_vm0, %v8924_v29, -inf  ;;  %v2532_v24 = vsel %vm153_vm0, %v8926_v43, -inf }
 0x744   :  { %2551 = vmax.xlane.f32.xlu0 %v2550_v27  ;;  %2533 = vmax.xlane.f32.xlu2 %v2532_v24  ;;  %v2562_v24 = vsel %vm153_vm0, %v8956_v9, -inf }
 0x74a   :  { %v8936_v20 = vpop.f32.mrf.mxu0  ;;  %v8938_v57 = vpop.f32.mrf.mxu1 }
 0x74b   :  { %v2553_v14 = vsel %vm153_vm0, %v8936_v20, -inf  ;;  %v2535_v35 = vsel %vm153_vm0, %v8938_v57, -inf }
 0x74c   :  { %2554 = vmax.xlane.f32.xlu2 %v2553_v14  ;;  %2536 = vmax.xlane.f32.xlu1 %v2535_v35  ;;  %v8970_v14 = vpop.f32.mrf.mxu2 }
 0x74f   :  { %v8944_v3 = vpop.f32.mrf.mxu3 }
 0x750   :  { %11260 = vst [vmem:[#allocation59_spill] sm:$0xff] %v8944_v3 }
 0x752   :  { %v8948_v4 = vpop.f32.mrf.mxu1 }
 0x753   :  { %v2556_v49 = vsel %vm153_vm0, %v8948_v4, -inf }
 0x754   :  { %2539 = vmax.xlane.f32.xlu1 %v2538_v34  ;;  %2557 = vmax.xlane.f32.xlu0 %v2556_v49  ;;  %v2565_v34 = vsel %vm153_vm0, %v8970_v14, -inf }
 0x757   :  { %v8954_v46 = vpop.f32.mrf.mxu3 }
 0x758   :  { %11261 = vst [vmem:[#allocation60_spill] sm:$0xff] %v8954_v46 }
 0x75a   :  { %v8958_v7 = vpop.f32.mrf.mxu1 }
 0x75b   :  { %v2559_v33 = vsel %vm153_vm0, %v8958_v7, -inf }
 0x75c   :  { %2542 = vmax.xlane.f32.xlu0 %v2541_v11  ;;  %2560 = vmax.xlane.f32.xlu2 %v2559_v33 }
 0x75f   :  { %v8964_v45 = vpop.f32.mrf.mxu3 }
 0x760   :  { %v2544_v27 = vsel %vm153_vm0, %v8964_v45, -inf }
 0x761   :  { %2545 = vmax.xlane.f32.xlu1 %v2544_v27  ;;  %v8982_v27 = vpop.permute.xlu0 %2920 }
 0x764   :  { %2563 = vmax.xlane.f32.xlu2 %v2562_v24 }
 0x767   :  { %v8972_v35 = vpop.f32.mrf.mxu3 }
 0x768   :  { %v2547_v49 = vsel %vm153_vm0, %v8972_v35, -inf }
 0x769   :  { %2566 = vmax.xlane.f32.xlu1 %v2565_v34  ;;  %2548 = vmax.xlane.f32.xlu0 %v2547_v49 }
 0x76f   :  { %v8978_v11 = vpop.f32.mrf.mxu3 }
 0x770   :  { %v2568_v33 = vsel %vm153_vm0, %v8978_v11, -inf }
 0x771   :  { %2569 = vmax.xlane.f32.xlu1 %v2568_v33 }
 0x77d   :  { %v2528_v46 = vpop.xlane.xlu0 %2527  ;;  %2898 = vrot.lane.b32.xlu0 %v8218_v41, %s7762_s11 }
 0x77e   :  { %v2574_v24 = vsub.f32 %v2353_v19, %v2528_v46  ;;  %v8995_v19 = vpop.f32.mrf.mxu3 }
 0x780   :  { %v2590_v3 = vmul.f32 1.442695, %v2574_v24 }
 0x782   :  { %7358 = vpow2.f32 %v2590_v3  ;;  %v2571_v3 = vsel %vm153_vm0, %v8995_v19, -inf }
 0x785   :  { %v2531_v51 = vpop.xlane.xlu2 %2530 }
 0x786   :  { %v2575_v50 = vsub.f32 %v8902_v31, %v2531_v51  ;;  %v9003_v31 = vpop.permute.xlu1 %2968 }
 0x788   :  { %v8987_v34 = vpop.eup %7358  ;;  %v2592_v49 = vmul.f32 1.442695, %v2575_v50 }
 0x789   :  { %v2622_v54 = vsel %vm153_vm0, %v8987_v34, 0.0 }
 0x78a   :  { %7360 = vpow2.f32 %v2592_v49  ;;  %2623 = vadd.xlane.f32.xlu2 %v2622_v54 }
 0x790   :  { %v8991_v33 = vpop.eup %7360 }
 0x791   :  { %v2625_v48 = vsel %vm153_vm0, %v8991_v33, 0.0 }
 0x792   :  { %2626 = vadd.xlane.f32.xlu1 %v2625_v48 }
 0x7a7   :  { %2572 = vmax.xlane.f32.xlu0 %v2571_v3 }
 0x7ab   :  { %2966 = vrot.lane.b32.xlu1 %v7899_v30, %s7763_s12 }
 0x7b3   :  { %2992 = vrot.lane.b32.xlu1 %v7954_v58, %s7763_s12 }
 0x7b7   :  { %v2552_v50 = vpop.xlane.xlu0 %2551  ;;  %v2534_v51 = vpop.xlane.xlu2 %2533 }
 0x7b8   :  { %v2576_v54 = vsub.f32 %v8926_v43, %v2534_v51  ;;  %v2582_v48 = vsub.f32 %v8924_v29, %v2552_v50 }
 0x7ba   :  { %v2594_v46 = vmul.f32 1.442695, %v2576_v54  ;;  %v2606_v24 = vmul.f32 1.442695, %v2582_v48 }
 0x7bc   :  { %7362 = vpow2.f32 %v2594_v46 }
 0x7bd   :  { %7364 = vpow2.f32 %v2606_v24 }
 0x7bf   :  { %v2555_v49 = vpop.xlane.xlu2 %2554  ;;  %v2537_v22 = vpop.xlane.xlu1 %2536 }
 0x7c0   :  { %v2583_v3 = vsub.f32 %v8936_v20, %v2555_v49  ;;  %v2577_v13 = vsub.f32 %v8938_v57, %v2537_v22 }
 0x7c2   :  { %v9008_v38 = vpop.eup %7362  ;;  %v2608_v15 = vmul.f32 1.442695, %v2583_v3  ;;  %v2596_v43 = vmul.f32 1.442695, %v2577_v13 }
 0x7c3   :  { %v2628_v23 = vsel %vm153_vm0, %v9008_v38, 0.0  ;;  %v9013_v50 = vpop.eup %7364 }
 0x7c4   :  { %7366 = vpow2.f32 %v2608_v15  ;;  %2629 = vadd.xlane.f32.xlu2 %v2628_v23  ;;  %v2646_v22 = vsel %vm153_vm0, %v9013_v50, 0.0 }
 0x7c5   :  { %7368 = vpow2.f32 %v2596_v43 }
 0x7c7   :  { %v2558_v29 = vpop.xlane.xlu0 %2557  ;;  %v2540_v54 = vpop.xlane.xlu1 %2539 }
 0x7c8   :  { %v2584_v20 = vsub.f32 %v8948_v4, %v2558_v29  ;;  %v2578_v24 = vsub.f32 %v8934_v44, %v2540_v54 }
 0x7ca   :  { %v9015_v51 = vpop.eup %7366  ;;  %v2610_v15 = vmul.f32 1.442695, %v2584_v20  ;;  %v2598_v29 = vmul.f32 1.442695, %v2578_v24 }
 0x7cb   :  { %v2649_v48 = vsel %vm153_vm0, %v9015_v51, 0.0  ;;  %v9022_v13 = vpop.eup %7368 }
 0x7cc   :  { %2650 = vadd.xlane.f32.xlu0 %v2649_v48  ;;  %2647 = vadd.xlane.f32.xlu2 %v2646_v22  ;;  %7370 = vpow2.f32 %v2610_v15  ;;  %v2631_v4 = vsel %vm153_vm0, %v9022_v13, 0.0 }
 0x7cf   :  { %v2561_v23 = vpop.xlane.xlu2 %2560 }
 0x7d0   :  { %v2585_v57 = vsub.f32 %v8958_v7, %v2561_v23 }
 0x7d2   :  { %v2612_v46 = vmul.f32 1.442695, %v2585_v57  ;;  %v9029_v20 = vpop.eup %7370 }
 0x7d3   :  { %v2652_v7 = vsel %vm153_vm0, %v9029_v20, 0.0 }
 0x7d4   :  { %v2546_v49 = vpop.xlane.xlu1 %2545  ;;  %2632 = vadd.xlane.f32.xlu2 %v2631_v4  ;;  %7372 = vpow2.f32 %v2612_v46 }
 0x7d5   :  { %v2580_v3 = vsub.f32 %v8964_v45, %v2546_v49  ;;  %v2543_v45 = vpop.xlane.xlu0 %2542 }
 0x7d7   :  { %v2602_v43 = vmul.f32 1.442695, %v2580_v3  ;;  %v2564_v4 = vpop.xlane.xlu2 %2563 }
 0x7d9   :  { %7374 = vpow2.f32 %v2602_v43 }
 0x7da   :  { %v9031_v48 = vpop.eup %7372  ;;  %7376 = vpow2.f32 %v2598_v29 }
 0x7db   :  { %v2655_v44 = vsel %vm153_vm0, %v9031_v48, 0.0 }
 0x7dc   :  { %2653 = vadd.xlane.f32.xlu2 %v2652_v7  ;;  %2656 = vadd.xlane.f32.xlu0 %v2655_v44  ;;  %v2567_v24 = vpop.xlane.xlu1 %2566 }
 0x7dd   :  { %v2549_v57 = vpop.xlane.xlu0 %2548 }
 0x7df   :  { %v9037_v54 = vpop.eup %7374 }
 0x7e0   :  { %v2640_v22 = vsel %vm153_vm0, %v9037_v54, 0.0  ;;  %v9041_v15 = vpop.eup %7376 }
 0x7e1   :  { %2641 = vadd.xlane.f32.xlu1 %v2640_v22  ;;  %v2634_v23 = vsel %vm153_vm0, %v9041_v15, 0.0 }
 0x7e4   :  { %2635 = vadd.xlane.f32.xlu0 %v2634_v23  ;;  %v2570_v49 = vpop.xlane.xlu1 %2569 }
 0x7ef   :  { %v2899_v46 = vpop.permute.xlu0 %2898 }
 0x7f0   :  { %2911 = vmatpush.bf16.msra.mxu3 %v2899_v46 }
 0x7f4   :  { %2944 = vrot.lane.b32.xlu2 %v7930_v18, %s7763_s12 }
 0x7f8   :  { %2918 = vrot.lane.b32.xlu0 %v7923_v61, %s7763_s12 }
 0x7fa   :  { %3014 = vrot.lane.b32.xlu1 %v7973_v42, %s7763_s12 }
 0x7fc   :  { %3064 = vrot.lane.b32.xlu2 %v7997_v32, %s7763_s12 }
 0x7fd   :  { %v2624_v3 = vpop.xlane.xlu2 %2623 }
 0x7fe   :  { %7378 = vrcp.f32 %v2624_v3  ;;  %v2588_v3 = vsub.f32 %v8978_v11, %v2570_v49  ;;  %v2586_v11 = vsub.f32 %v8956_v9, %v2564_v4  ;;  %v2587_v4 = vsub.f32 %v8970_v14, %v2567_v24 }
 0x800   :  { %3016 = vrot.lane.b32.xlu0 %v7968_v25, %s7763_s12 }
 0x804   :  { %v7379_v29 = vpop.eup %7378 }
 0x805   :  { %v2627_v43 = vpop.xlane.xlu1 %2626  ;;  %v2686_v7 = vmul.f32 %v7379_v29, %v8987_v34  ;;  %v2926_v34 = vsel %vm519_vm1, %v8982_v27, 0  ;;  %v2618_v29 = vmul.f32 1.442695, %v2588_v3 }
 0x806   :  { %7380 = vrcp.f32 %v2627_v43  ;;  %v2579_v43 = vsub.f32 %v8946_v40, %v2543_v45  ;;  %v2581_v40 = vsub.f32 %v8972_v35, %v2549_v57 }
 0x807   :  { %v2702_v22 = vpack.c.bf16 %v2686_v7, %v2686_v7  ;;  %7382 = vpow2.f32 %v2618_v29 }
 0x808   :  { %2942 = vrot.lane.b32.xlu0 %v7935_v26, %s7763_s12  ;;  %v2600_v7 = vmul.f32 1.442695, %v2579_v43  ;;  %v2604_v9 = vmul.f32 1.442695, %v2581_v40 }
 0x809   :  { %v2720_v21 = vunpack.c.l.b16 %v2702_v22 }
 0x80a   :  { %7384 = vpow2.f32 %v2600_v7 }
 0x80c   :  { %v7381_v44 = vpop.eup %7380 }
 0x80d   :  { %v2687_v23 = vmul.f32 %v7381_v44, %v8991_v33  ;;  %v9069_v33 = vpop.eup %7382  ;;  %v2616_v44 = vmul.f32 1.442695, %v2587_v4 }
 0x80f   :  { %v2703_v46 = vpack.c.bf16 %v2687_v23, %v2687_v23 }
 0x810   :  { %3062 = vrot.lane.b32.xlu0 %v8004_v6, %s7763_s12 }
 0x811   :  { %v2721_v8 = vunpack.c.l.b16 %v2703_v46 }
 0x813   :  { %v2722_v17 = vpack.c.b16 %v2721_v8, %v2720_v21  ;;  %v2614_v8 = vmul.f32 1.442695, %v2586_v11  ;;  %v9071_v21 = vpop.eup %7384 }
 0x814   :  { %v2637_v27 = vsel %vm153_vm0, %v9071_v21, 0.0 }
 0x815   :  { %6747 = vmatmul.msk.bf16.vlgmr.msrb.gmra.mxu0 %vm153_vm0, %v2722_v17  ;;  %v2664_v17 = vsel %vm153_vm0, %v9069_v33, 0.0  ;;  %7386 = vpow2.f32 %v2614_v8 }
 0x816   :  { %2935 = vmatpush.bf16.xpose.msrb.mxu0 %v2926_v34  ;;  %7388 = vpow2.f32 %v2604_v9 }
 0x817   :  { %7390 = vpow2.f32 %v2616_v44 }
 0x818   :  { %3038 = vrot.lane.b32.xlu0 %v7985_v1, %s7763_s12 }
 0x81a   :  { %v9093_v22 = vpop.xlane.xlu0 %2572 }
 0x81b   :  { %v9080_v45 = vpop.eup %7386 }
 0x81c   :  { %v2658_v49 = vsel %vm153_vm0, %v9080_v45, 0.0  ;;  %v9087_v35 = vpop.eup %7388 }
 0x81d   :  { %v2643_v57 = vsel %vm153_vm0, %v9087_v35, 0.0  ;;  %v9095_v46 = vpop.eup %7390 }
 0x81e   :  { %v2661_v14 = vsel %vm153_vm0, %v9095_v46, 0.0 }
 0x820   :  { %3407 = vrot.lane.b32.xlu0 %v8167_v53, %s7763_s12 }
 0x824   :  { %2665 = vadd.xlane.f32.xlu1 %v2664_v17 }
 0x825   :  { %2638 = vadd.xlane.f32.xlu2 %v2637_v27 }
 0x828   :  { %3382 = vrot.lane.b32.xlu0 %v8147_v59, %s7763_s12 }
 0x82d   :  { %2659 = vadd.xlane.f32.xlu2 %v2658_v49 }
 0x830   :  { %3482 = vrot.lane.b32.xlu0 %v8218_v41, %s7763_s12 }
 0x835   :  { %2644 = vadd.xlane.f32.xlu2 %v2643_v57 }
 0x837   :  { %v2630_v23 = vpop.xlane.xlu2 %2629 }
 0x838   :  { %3576 = vrot.lane.b32.xlu0 %v7954_v58, %s7764_s13 }
 0x83d   :  { %3040 = vrot.lane.b32.xlu1 %v7980_v56, %s7763_s12  ;;  %2662 = vadd.xlane.f32.xlu2 %v2661_v14 }
 0x83f   :  { %v2651_v24 = vpop.xlane.xlu0 %2650  ;;  %v2648_v3 = vpop.xlane.xlu2 %2647 }
 0x840   :  { %7392 = vrcp.f32 %v2651_v24 }
 0x841   :  { %7394 = vrcp.f32 %v2648_v3 }
 0x842   :  { %7396 = vrcp.f32 %v2630_v23 }
 0x845   :  { %3086 = vrot.lane.b32.xlu1 %v8015_v60, %s7763_s12 }
 0x846   :  { %v7393_v43 = vpop.eup %7392 }
 0x847   :  { %v7395_v34 = vpop.eup %7394  ;;  %v2695_v29 = vmul.f32 %v7393_v43, %v9015_v51  ;;  %v2633_v7 = vpop.xlane.xlu2 %2632 }
 0x848   :  { %v7397_v11 = vpop.eup %7396  ;;  %v2694_v8 = vmul.f32 %v7395_v34, %v9013_v50  ;;  %7398 = vrcp.f32 %v2633_v7 }
 0x849   :  { %v2711_v17 = vpack.c.bf16 %v2695_v29, %v2695_v29  ;;  %v2688_v27 = vmul.f32 %v7397_v11, %v9008_v38 }
 0x84a   :  { %v2710_v40 = vpack.c.bf16 %v2694_v8, %v2694_v8 }
 0x84b   :  { %v2821_v9 = vunpack.c.l.b16 %v2711_v17  ;;  %v2704_v57 = vpack.c.bf16 %v2688_v27, %v2688_v27 }
 0x84c   :  { %v2820_v4 = vunpack.c.l.b16 %v2710_v40  ;;  %v9122_v40 = vpop.permute.xlu1 %2966 }
 0x84d   :  { %3357 = vrot.lane.b32.xlu1 %v8128_v63, %s7763_s12  ;;  %v2745_v24 = vunpack.c.l.b16 %v2704_v57 }
 0x84e   :  { %v7399_v49 = vpop.eup %7398  ;;  %v2822_v44 = vpack.c.b16 %v2821_v9, %v2820_v4 }
 0x84f   :  { %v2689_v23 = vmul.f32 %v7399_v49, %v9022_v13  ;;  %v2654_v51 = vpop.xlane.xlu2 %2653  ;;  %v2657_v14 = vpop.xlane.xlu0 %2656 }
 0x850   :  { %7400 = vrcp.f32 %v2654_v51  ;;  %6751 = vmatmul.msk.bf16.vlgmr.msra.gmra.mxu0 %vm153_vm0, %v2822_v44  ;;  %v2589_v44 = vsub.f32 %v8995_v19, %v9093_v22 }
 0x851   :  { %v2705_v50 = vpack.c.bf16 %v2689_v23, %v2689_v23  ;;  %7402 = vrcp.f32 %v2657_v14 }
 0x852   :  { %v2620_v57 = vmul.f32 1.442695, %v2589_v44 }
 0x853   :  { %v2746_v3 = vunpack.c.l.b16 %v2705_v50 }
 0x854   :  { %7404 = vpow2.f32 %v2620_v57 }
 0x855   :  { %3332 = vrot.lane.b32.xlu1 %v8114_v36, %s7763_s12  ;;  %v2747_v38 = vpack.c.b16 %v2746_v3, %v2745_v24  ;;  %2990 = vrot.lane.b32.xlu2 %v7961_v2, %s7763_s12 }
 0x856   :  { %v7401_v43 = vpop.eup %7400 }
 0x857   :  { %v7403_v34 = vpop.eup %7402  ;;  %6748 = vmatmul.msk.bf16.vlgmr.msra.gmra.mxu1 %vm153_vm0, %v2747_v38  ;;  %v2945_v13 = vpop.permute.xlu2 %2944  ;;  %v2696_v11 = vmul.f32 %v7401_v43, %v9029_v20 }
 0x858   :  { %v2950_v29 = vsel %vm519_vm1, %v2945_v13, 0  ;;  %v2697_v7 = vmul.f32 %v7403_v34, %v9031_v48  ;;  %v2636_v4 = vpop.xlane.xlu0 %2635  ;;  %v9127_v48 = vpop.permute.xlu1 %2992 }
 0x859   :  { %2959 = vmatpush.bf16.xpose.msra.mxu1 %v2950_v29  ;;  %v2712_v17 = vpack.c.bf16 %v2696_v11, %v2696_v11  ;;  %7406 = vrcp.f32 %v2636_v4 }
 0x85a   :  { %v2713_v8 = vpack.c.bf16 %v2697_v7, %v2697_v7  ;;  %v9135_v50 = vpop.eup %7404 }
 0x85b   :  { %v2845_v9 = vunpack.c.l.b16 %v2712_v17  ;;  %v2667_v19 = vsel %vm153_vm0, %v9135_v50, 0.0 }
 0x85c   :  { %v2846_v27 = vunpack.c.l.b16 %v2713_v8 }
 0x85d   :  { %3432 = vrot.lane.b32.xlu1 %v8186_v47, %s7763_s12 }
 0x85e   :  { %v2847_v49 = vpack.c.b16 %v2846_v27, %v2845_v9 }
 0x85f   :  { %v3065_v22 = vpop.permute.xlu2 %3064  ;;  %v7407_v43 = vpop.eup %7406 }
 0x860   :  { %v2642_v23 = vpop.xlane.xlu1 %2641  ;;  %v2690_v34 = vmul.f32 %v7407_v43, %v9041_v15  ;;  %v2974_v15 = vsel %vm519_vm1, %v9003_v31, 0 }
 0x862   :  { %v2706_v29 = vpack.c.bf16 %v2690_v34, %v2690_v34 }
 0x864   :  { %v2770_v17 = vunpack.c.l.b16 %v2706_v29 }
 0x865   :  { %3550 = vrot.lane.b32.xlu1 %v7899_v30, %s7764_s13 }
 0x867   :  { %6752 = vmatmul.msk.bf16.vlgmr.msrb.gmra.mxu1 %vm153_vm0, %v2847_v49 }
 0x86a   :  { %v2919_v20 = vpop.permute.xlu0 %2918 }
 0x86b   :  { %6755 = vmatmul.msk.bf16.vlgmr.msrb.gmra.mxu0 %vm519_vm1, %v2919_v20 }
 0x86c   :  { %v3015_v24 = vpop.permute.xlu1 %3014 }
 0x86d   :  { %3526 = vrot.lane.b32.xlu1 %v7935_v26, %s7764_s13 }
 0x872   :  { %v3017_v51 = vpop.permute.xlu0 %3016 }
 0x873   :  { %v3022_v14 = vsel %vm519_vm1, %v3017_v51, 0 }
 0x874   :  { %3031 = vmatpush.bf16.xpose.msra.mxu0 %v3022_v14 }
 0x87a   :  { %v2943_v3 = vpop.permute.xlu0 %2942 }
 0x87b   :  { %6756 = vmatmul.msk.bf16.vlgmr.msra.gmra.mxu1 %vm519_vm1, %v2943_v3  ;;  %6759 = vmatmul.msk.bf16.vlgmr.msra.gmra.mxu0 %vm519_vm1, %v3015_v24 }
 0x87e   :  { %2668 = vadd.xlane.f32.xlu2 %v2667_v19 }
 0x882   :  { %v3063_v44 = vpop.permute.xlu0 %3062 }
 0x88a   :  { %v3039_v34 = vpop.permute.xlu0 %3038 }
 0x896   :  { %3088 = vrot.lane.b32.xlu2 %v8011_v16, %s7763_s12 }
 0x897   :  { %v9147_v9 = vpop.xlane.xlu1 %2665 }
 0x898   :  { %v2639_v38 = vpop.xlane.xlu2 %2638 }
 0x899   :  { %7408 = vrcp.f32 %v2639_v38 }
 0x89a   :  { %7410 = vrcp.f32 %v2642_v23 }
 0x89e   :  { %3307 = vrot.lane.b32.xlu2 %v8100_v55, %s7763_s12 }
 0x89f   :  { %v7409_v13 = vpop.eup %7408 }
 0x8a0   :  { %v2691_v7 = vmul.f32 %v7409_v13, %v9071_v21  ;;  %v2660_v11 = vpop.xlane.xlu2 %2659  ;;  %v7411_v20 = vpop.eup %7410 }
 0x8a1   :  { %v2692_v21 = vmul.f32 %v7411_v20, %v9037_v54 }
 0x8a2   :  { %v2707_v8 = vpack.c.bf16 %v2691_v7, %v2691_v7 }
 0x8a3   :  { %v2708_v14 = vpack.c.bf16 %v2692_v21, %v2692_v21 }
 0x8a4   :  { %v2771_v27 = vunpack.c.l.b16 %v2707_v8 }
 0x8a5   :  { %v2795_v38 = vunpack.c.l.b16 %v2708_v14 }
 0x8a6   :  { %v2772_v4 = vpack.c.b16 %v2771_v27, %v2770_v17  ;;  %3457 = vrot.lane.b32.xlu2 %v8201_v62, %s7763_s12 }
 0x8a8   :  { %v2645_v49 = vpop.xlane.xlu2 %2644  ;;  %6749 = vmatmul.msk.bf16.vlgmr.msra.gmra.mxu2 %vm153_vm0, %v2772_v4 }
 0x8a9   :  { %7412 = vrcp.f32 %v2645_v49  ;;  %2983 = vmatpush.bf16.xpose.msra.mxu2 %v2974_v15  ;;  %v3070_v49 = vsel %vm519_vm1, %v3065_v22, 0 }
 0x8aa   :  { %7414 = vrcp.f32 %v2660_v11 }
 0x8ae   :  { %3504 = vrot.lane.b32.xlu2 %v7916_v52, %s7764_s13 }
 0x8af   :  { %v3041_v57 = vpop.permute.xlu1 %3040  ;;  %v7413_v23 = vpop.eup %7412 }
 0x8b0   :  { %v3046_v51 = vsel %vm519_vm1, %v3041_v57, 0  ;;  %v2693_v31 = vmul.f32 %v7413_v23, %v9087_v35  ;;  %v2663_v24 = vpop.xlane.xlu2 %2662  ;;  %v7415_v3 = vpop.eup %7414  ;;  %v2998_v35 = vsel %vm519_vm1, %v9127_v48, 0 }
 0x8b1   :  { %3055 = vmatpush.bf16.xpose.msrb.mxu1 %v3046_v51  ;;  %7416 = vrcp.f32 %v2663_v24  ;;  %v2698_v43 = vmul.f32 %v7415_v3, %v9080_v45  ;;  %v9173_v48 = vpop.f32.mrf.mxu0 }
 0x8b2   :  { %v2709_v19 = vpack.c.bf16 %v2693_v31, %v2693_v31  ;;  %11262 = vst [vmem:[#allocation61_spill] sm:$0xff] %v9173_v48  ;;  %7418 = vrcp.f32 %v9147_v9 }
 0x8b3   :  { %v2714_v11 = vpack.c.bf16 %v2698_v43, %v2698_v43 }
 0x8b4   :  { %v2796_v54 = vunpack.c.l.b16 %v2709_v19 }
 0x8b5   :  { %v2870_v17 = vunpack.c.l.b16 %v2714_v11 }
 0x8b6   :  { %v2797_v13 = vpack.c.b16 %v2796_v54, %v2795_v38  ;;  %3502 = vrot.lane.b32.xlu2 %v7923_v61, %s7764_s13 }
 0x8b7   :  { %v9162_v29 = vpop.permute.xlu1 %3086  ;;  %v7417_v7 = vpop.eup %7416 }
 0x8b8   :  { %6760 = vmatmul.msk.bf16.vlgmr.msrb.gmra.mxu1 %vm519_vm1, %v3039_v34  ;;  %v2699_v8 = vmul.f32 %v7417_v7, %v9095_v46  ;;  %6750 = vmatmul.msk.bf16.vlgmr.msrb.gmra.mxu3 %vm153_vm0, %v2797_v13  ;;  %v2991_v31 = vpop.permute.xlu2 %2990  ;;  %v7419_v38 = vpop.eup %7418 }
 0x8b9   :  { %3007 = vmatpush.bf16.xpose.msrb.mxu3 %v2998_v35  ;;  %v9179_v21 = vpop.f32.mrf.mxu0 }
 0x8ba   :  { %v2715_v45 = vpack.c.bf16 %v2699_v8, %v2699_v8  ;;  %11263 = vst [vmem:[#allocation62_spill] sm:$0xff] %v9179_v21 }
 0x8bc   :  { %v2871_v27 = vunpack.c.l.b16 %v2715_v45 }
 0x8be   :  { %v2872_v4 = vpack.c.b16 %v2871_v27, %v2870_v17  ;;  %3552 = vrot.lane.b32.xlu2 %v7940_v39, %s7764_s13 }
 0x8bf   :  { %v3358_v15 = vpop.permute.xlu1 %3357 }
 0x8c0   :  { %6753 = vmatmul.msk.bf16.vlgmr.msrb.gmra.mxu2 %vm153_vm0, %v2872_v4 }
 0x8c1   :  { %3079 = vmatpush.bf16.xpose.msrb.mxu2 %v3070_v49 }
 0x8c6   :  { %3528 = vrot.lane.b32.xlu2 %v7930_v18, %s7764_s13 }
 0x8c7   :  { %v3333_v46 = vpop.permute.xlu1 %3332 }
 0x8c8   :  { %3345 = vmatpush.bf16.msra.mxu1 %v3333_v46 }
 0x8cd   :  { %v9187_v57 = vpop.f32.mrf.mxu0 }
 0x8ce   :  { %3600 = vrot.lane.b32.xlu2 %v7968_v25, %s7764_s13  ;;  %11265 = vst [vmem:[#allocation64_spill] sm:$0xff] %v9187_v57 }
 0x8cf   :  { %v3433_v20 = vpop.permute.xlu1 %3432 }
 0x8d0   :  { %3445 = vmatpush.bf16.msrb.mxu1 %v3433_v20  ;;  %6757 = vmatmul.msk.bf16.vlgmr.msra.gmra.mxu2 %vm519_vm1, %v9122_v40  ;;  %v3408_v20 = vpop.permute.xlu0 %3407 }
 0x8d1   :  { %3370 = vmatpush.bf16.msra.mxu2 %v3358_v15 }
 0x8d4   :  { %v9183_v22 = vpop.f32.mrf.mxu1 }
 0x8d5   :  { %11264 = vst [vmem:[#allocation63_spill] sm:$0xff] %v9183_v22  ;;  %v9192_v51 = vpop.f32.mrf.mxu0 }
 0x8d6   :  { %3598 = vrot.lane.b32.xlu2 %v7973_v42, %s7764_s13  ;;  %11267 = vst [vmem:[#allocation66_spill] sm:$0xff] %v9192_v51 }
 0x8dc   :  { %v9189_v23 = vpop.f32.mrf.mxu1 }
 0x8dd   :  { %11266 = vst [vmem:[#allocation65_spill] sm:$0xff] %v9189_v23 }
 0x8e0   :  { %6761 = vmatmul.msk.bf16.vlgmr.msrb.gmra.mxu2 %vm519_vm1, %v3063_v44  ;;  %v2700_v44 = vmul.f32 %v7419_v38, %v9069_v33 }
 0x8e2   :  { %v2716_v34 = vpack.c.bf16 %v2700_v44, %v2700_v44  ;;  %v3383_v44 = vpop.permute.xlu0 %3382 }
 0x8e4   :  { %v9194_v14 = vpop.f32.mrf.mxu1  ;;  %v2895_v17 = vunpack.c.l.b16 %v2716_v34 }
 0x8e5   :  { %11268 = vst [vmem:[#allocation67_spill] sm:$0xff] %v9194_v14 }
 0x8e8   :  { %v9196_v24 = vpop.f32.mrf.mxu0 }
 0x8e9   :  { %v3110_v27 = vsel %vm153_vm0, %v9196_v24, -inf }
 0x8ec   :  { %v9199_v40 = vpop.f32.mrf.mxu1 }
 0x8ed   :  { %11269 = vst [vmem:[#allocation68_spill] sm:$0xff] %v9199_v40 }
 0x8f0   :  { %v9201_v3 = vpop.f32.mrf.mxu0 }
 0x8f1   :  { %v2669_v19 = vpop.xlane.xlu2 %2668  ;;  %v3113_v43 = vsel %vm153_vm0, %v9201_v3, -inf }
 0x8f2   :  { %7420 = vrcp.f32 %v2669_v19  ;;  %3114 = vmax.xlane.f32.xlu0 %v3113_v43 }
 0x8f8   :  { %v7421_v54 = vpop.eup %7420  ;;  %v9207_v7 = vpop.f32.mrf.mxu1 }
 0x8f9   :  { %v2701_v13 = vmul.f32 %v7421_v54, %v9135_v50  ;;  %v9209_v9 = vpop.f32.mrf.mxu0  ;;  %v3089_v35 = vpop.permute.xlu2 %3088  ;;  %v3116_v11 = vsel %vm153_vm0, %v9207_v7, -inf }
 0x8fa   :  { %v3134_v8 = vsel %vm153_vm0, %v9209_v9, -inf  ;;  %3117 = vmax.xlane.f32.xlu0 %v3116_v11  ;;  %v3094_v4 = vsel %vm519_vm1, %v3089_v35, 0  ;;  %v3483_v54 = vpop.permute.xlu0 %3482 }
 0x8fb   :  { %v2717_v45 = vpack.c.bf16 %v2701_v13, %v2701_v13  ;;  %3135 = vmax.xlane.f32.xlu1 %v3134_v8 }
 0x8fd   :  { %v2896_v33 = vunpack.c.l.b16 %v2717_v45 }
 0x8ff   :  { %v2897_v50 = vpack.c.b16 %v2896_v33, %v2895_v17  ;;  %3111 = vmax.xlane.f32.xlu2 %v3110_v27 }
 0x900   :  { %v2963_v19 = vpop.f32.mrf.mxu1 }
 0x901   :  { %v9218_v15 = vpop.f32.mrf.mxu0  ;;  %6754 = vmatmul.msk.bf16.vlgmr.msra.gmra.mxu3 %vm153_vm0, %v2897_v50  ;;  %v3308_v49 = vpop.permute.xlu2 %3307  ;;  %v3119_v38 = vsel %vm153_vm0, %v2963_v19, -inf }
 0x902   :  { %3103 = vmatpush.bf16.xpose.msra.mxu3 %v3094_v4  ;;  %v3137_v46 = vsel %vm153_vm0, %v9218_v15, -inf  ;;  %3320 = vmatpush.bf16.msrb.mxu0 %v3308_v49 }
 0x903   :  { %3138 = vmax.xlane.f32.xlu0 %v3137_v46 }
 0x906   :  { %3420 = vmatpush.bf16.msra.mxu0 %v3408_v20 }
 0x907   :  { %3120 = vmax.xlane.f32.xlu2 %v3119_v38  ;;  %v9259_v38 = vpop.permute.xlu0 %3576 }
 0x909   :  { %v3458_v43 = vpop.permute.xlu2 %3457 }
 0x90a   :  { %3470 = vmatpush.bf16.msrb.mxu2 %v3458_v43 }
 0x911   :  { %6758 = vmatmul.msk.bf16.vlgmr.msrb.gmra.mxu3 %vm519_vm1, %v2991_v31  ;;  %v9233_v11 = vpop.permute.xlu2 %3504 }
 0x912   :  { %3395 = vmatpush.bf16.msrb.mxu3 %v3383_v44 }
 0x921   :  { %6762 = vmatmul.msk.bf16.vlgmr.msra.gmra.mxu3 %vm519_vm1, %v9162_v29  ;;  %v9241_v29 = vpop.permute.xlu2 %3502 }
 0x922   :  { %3495 = vmatpush.bf16.msra.mxu3 %v3483_v54 }
 0x929   :  { %v9247_v27 = vpop.permute.xlu2 %3552 }
 0x92b   :  { %v9227_v34 = vpop.f32.mrf.mxu2 }
 0x92c   :  { %11270 = vst [vmem:[#allocation69_spill] sm:$0xff] %v9227_v34 }
 0x931   :  { %v9253_v49 = vpop.permute.xlu2 %3528 }
 0x933   :  { %v9235_v8 = vpop.f32.mrf.mxu2 }
 0x934   :  { %11271 = vst [vmem:[#allocation70_spill] sm:$0xff] %v9235_v8 }
 0x935   :  { %v9229_v13 = vpop.f32.mrf.mxu1 }
 0x936   :  { %v3140_v35 = vsel %vm153_vm0, %v9229_v13, -inf }
 0x937   :  { %3141 = vmax.xlane.f32.xlu1 %v3140_v35 }
 0x939   :  { %v9261_v43 = vpop.permute.xlu2 %3600 }
 0x93d   :  { %v9237_v45 = vpop.f32.mrf.mxu1 }
 0x93e   :  { %v3143_v31 = vsel %vm153_vm0, %v9237_v45, -inf }
 0x93f   :  { %3144 = vmax.xlane.f32.xlu0 %v3143_v31 }
 0x941   :  { %v9267_v31 = vpop.permute.xlu2 %3598 }
 0x943   :  { %v9243_v17 = vpop.f32.mrf.mxu2 }
 0x944   :  { %11272 = vst [vmem:[#allocation71_spill] sm:$0xff] %v9243_v17 }
 0x94b   :  { %v9245_v33 = vpop.f32.mrf.mxu2 }
 0x94c   :  { %11273 = vst [vmem:[#allocation72_spill] sm:$0xff] %v9245_v33  ;;  %v9269_v33 = vpop.f32.mrf.mxu3 }
 0x94d   :  { %11274 = vst [vmem:[#allocation73_spill] sm:$0xff] %v9269_v33 }
 0x953   :  { %v9249_v50 = vpop.f32.mrf.mxu2 }
 0x954   :  { %v3122_v4 = vsel %vm153_vm0, %v9249_v50, -inf  ;;  %v9272_v8 = vpop.f32.mrf.mxu3 }
 0x955   :  { %3123 = vmax.xlane.f32.xlu1 %v3122_v4  ;;  %11275 = vst [vmem:[#allocation74_spill] sm:$0xff] %v9272_v8 }
 0x95b   :  { %v9255_v46 = vpop.f32.mrf.mxu2 }
 0x95c   :  { %v3125_v20 = vsel %vm153_vm0, %v9255_v46, -inf }
 0x95d   :  { %3126 = vmax.xlane.f32.xlu2 %v3125_v20 }
 0x963   :  { %v9263_v44 = vpop.f32.mrf.mxu2 }
 0x964   :  { %v3146_v54 = vsel %vm153_vm0, %v9263_v44, -inf }
 0x965   :  { %3147 = vmax.xlane.f32.xlu0 %v3146_v54  ;;  %v3115_v35 = vpop.xlane.xlu0 %3114 }
 0x96d   :  { %v3118_v4 = vpop.xlane.xlu0 %3117 }
 0x972   :  { %v3112_v17 = vpop.xlane.xlu2 %3111 }
 0x973   :  { %v3158_v40 = vsub.f32 %v9196_v24, %v3112_v17  ;;  %v3159_v17 = vsub.f32 %v9201_v3, %v3115_v35 }
 0x975   :  { %v3174_v20 = vmul.f32 1.442695, %v3158_v40 }
 0x976   :  { %v3139_v14 = vpop.xlane.xlu0 %3138 }
 0x977   :  { %7422 = vpow2.f32 %v3174_v20  ;;  %v3167_v54 = vsub.f32 %v9218_v15, %v3139_v14  ;;  %v9295_v14 = vpop.permute.xlu1 %3550  ;;  %v9297_v15 = vpop.f32.mrf.mxu2 }
 0x978   :  { %v3149_v20 = vsel %vm153_vm0, %v9297_v15, -inf }
 0x979   :  { %v3192_v33 = vmul.f32 1.442695, %v3167_v54 }
 0x97a   :  { %v3121_v51 = vpop.xlane.xlu2 %3120 }
 0x97b   :  { %v3161_v57 = vsub.f32 %v2963_v19, %v3121_v51 }
 0x97d   :  { %v9274_v34 = vpop.eup %7422  ;;  %v3180_v21 = vmul.f32 1.442695, %v3161_v57 }
 0x97e   :  { %v3206_v48 = vsel %vm153_vm0, %v9274_v34, 0.0 }
 0x97f   :  { %7424 = vpow2.f32 %v3180_v21  ;;  %3207 = vadd.xlane.f32.xlu0 %v3206_v48 }
 0x980   :  { %7426 = vpow2.f32 %v3192_v33 }
 0x984   :  { %v9279_v37 = vpop.f32.mrf.mxu3 }
 0x985   :  { %11276 = vst [vmem:[#allocation75_spill] sm:$0xff] %v9279_v37  ;;  %v9281_v24 = vpop.eup %7424 }
 0x986   :  { %v3215_v51 = vsel %vm153_vm0, %v9281_v24, 0.0  ;;  %v9285_v40 = vpop.eup %7426 }
 0x987   :  { %3216 = vadd.xlane.f32.xlu0 %v3215_v51  ;;  %v3233_v57 = vsel %vm153_vm0, %v9285_v40, 0.0  ;;  %v3176_v51 = vmul.f32 1.442695, %v3159_v17 }
 0x989   :  { %7428 = vpow2.f32 %v3176_v51 }
 0x98c   :  { %v9287_v19 = vpop.f32.mrf.mxu3 }
 0x98d   :  { %11277 = vst [vmem:[#allocation76_spill] sm:$0xff] %v9287_v19 }
 0x98f   :  { %3234 = vadd.xlane.f32.xlu0 %v3233_v57  ;;  %v9306_v57 = vpop.permute.xlu1 %3526  ;;  %v9313_v8 = vpop.eup %7428 }
 0x990   :  { %v3209_v17 = vsel %vm153_vm0, %v9313_v8, 0.0 }
 0x994   :  { %v9291_v21 = vpop.f32.mrf.mxu3 }
 0x995   :  { %v3128_v48 = vsel %vm153_vm0, %v9291_v21, -inf }
 0x996   :  { %3129 = vmax.xlane.f32.xlu2 %v3128_v48  ;;  %v3160_v48 = vsub.f32 %v9207_v7, %v3118_v4 }
 0x997   :  { %v3136_v37 = vpop.xlane.xlu1 %3135 }
 0x998   :  { %v3178_v35 = vmul.f32 1.442695, %v3160_v48 }
 0x99a   :  { %7430 = vpow2.f32 %v3178_v35 }
 0x99c   :  { %v9300_v33 = vpop.f32.mrf.mxu3 }
 0x99d   :  { %v3131_v54 = vsel %vm153_vm0, %v9300_v33, -inf }
 0x99e   :  { %3150 = vmax.xlane.f32.xlu2 %v3149_v20  ;;  %3132 = vmax.xlane.f32.xlu1 %v3131_v54  ;;  %v3166_v20 = vsub.f32 %v9209_v9, %v3136_v37 }
 0x9a0   :  { %v3190_v4 = vmul.f32 1.442695, %v3166_v20  ;;  %v9322_v48 = vpop.eup %7430 }
 0x9a1   :  { %v3212_v35 = vsel %vm153_vm0, %v9322_v48, 0.0 }
 0x9a2   :  { %7432 = vpow2.f32 %v3190_v4 }
 0x9a4   :  { %v9309_v19 = vpop.f32.mrf.mxu3 }
 0x9a5   :  { %v3152_v3 = vsel %vm153_vm0, %v9309_v19, -inf }
 0x9a6   :  { %3153 = vmax.xlane.f32.xlu2 %v3152_v3 }
 0x9a8   :  { %v9328_v12 = vpop.eup %7432 }
 0x9a9   :  { %v3230_v20 = vsel %vm153_vm0, %v9328_v12, 0.0 }
 0x9aa   :  { %v3142_v51 = vpop.xlane.xlu1 %3141 }
 0x9ab   :  { %v3168_v37 = vsub.f32 %v9229_v13, %v3142_v51 }
 0x9ac   :  { %v9316_v54 = vpop.f32.mrf.mxu3 }
 0x9ad   :  { %v3155_v7 = vsel %vm153_vm0, %v9316_v54, -inf  ;;  %v3194_v5 = vmul.f32 1.442695, %v3168_v37 }
 0x9ae   :  { %3210 = vadd.xlane.f32.xlu2 %v3209_v17  ;;  %3156 = vmax.xlane.f32.xlu1 %v3155_v7 }
 0x9b2   :  { %v3145_v3 = vpop.xlane.xlu0 %3144 }
 0x9b3   :  { %v3169_v0 = vsub.f32 %v9237_v45, %v3145_v3 }
 0x9b5   :  { %v3196_v9 = vmul.f32 1.442695, %v3169_v0 }
 0x9b6   :  { %3213 = vadd.xlane.f32.xlu1 %v3212_v35 }
 0x9b7   :  { %7434 = vpow2.f32 %v3196_v9 }
 0x9b8   :  { %7436 = vpow2.f32 %v3194_v5 }
 0x9bd   :  { %v9330_v17 = vpop.eup %7434 }
 0x9be   :  { %v3239_v45 = vsel %vm153_vm0, %v9330_v17, 0.0  ;;  %3231 = vadd.xlane.f32.xlu1 %v3230_v20  ;;  %v9336_v0 = vpop.eup %7436 }
 0x9bf   :  { %3240 = vadd.xlane.f32.xlu2 %v3239_v45  ;;  %v3236_v13 = vsel %vm153_vm0, %v9336_v0, 0.0 }
 0x9c6   :  { %3237 = vadd.xlane.f32.xlu1 %v3236_v13 }
 0x9c8   :  { %v3124_v7 = vpop.xlane.xlu1 %3123 }
 0x9c9   :  { %v3162_v4 = vsub.f32 %v9249_v50, %v3124_v7 }
 0x9cb   :  { %v3182_v51 = vmul.f32 1.442695, %v3162_v4 }
 0x9cd   :  { %7438 = vpow2.f32 %v3182_v51 }
 0x9d0   :  { %v3127_v5 = vpop.xlane.xlu2 %3126 }
 0x9d1   :  { %v3163_v3 = vsub.f32 %v9255_v46, %v3127_v5 }
 0x9d3   :  { %v9342_v37 = vpop.eup %7438  ;;  %v3184_v9 = vmul.f32 1.442695, %v3163_v3 }
 0x9d4   :  { %v3218_v35 = vsel %vm153_vm0, %v9342_v37, 0.0 }
 0x9d5   :  { %7440 = vpow2.f32 %v3184_v9  ;;  %3219 = vadd.xlane.f32.xlu1 %v3218_v35 }
 0x9d8   :  { %v3148_v50 = vpop.xlane.xlu0 %3147 }
 0x9d9   :  { %v3170_v7 = vsub.f32 %v9263_v44, %v3148_v50 }
 0x9db   :  { %v9346_v20 = vpop.eup %7440  ;;  %v3198_v51 = vmul.f32 1.442695, %v3170_v7 }
 0x9dc   :  { %v3221_v45 = vsel %vm153_vm0, %v9346_v20, 0.0 }
 0x9dd   :  { %3222 = vadd.xlane.f32.xlu0 %v3221_v45 }
 0x9ee   :  { %3648 = vrot.lane.b32.xlu1 %v7997_v32, %s7764_s13 }
 0x9f2   :  { %v3208_v10 = vpop.xlane.xlu0 %3207 }
 0xa09   :  { %v3130_v13 = vpop.xlane.xlu2 %3129 }
 0xa0a   :  { %v3164_v46 = vsub.f32 %v9291_v21, %v3130_v13 }
 0xa0c   :  { %v3186_v4 = vmul.f32 1.442695, %v3164_v46  ;;  %v3217_v46 = vpop.xlane.xlu0 %3216 }
 0xa0e   :  { %7442 = vpow2.f32 %v3186_v4 }
 0xa0f   :  { %7444 = vpow2.f32 %v3198_v51 }
 0xa11   :  { %v3151_v5 = vpop.xlane.xlu2 %3150  ;;  %v3133_v3 = vpop.xlane.xlu1 %3132 }
 0xa12   :  { %v3165_v9 = vsub.f32 %v9300_v33, %v3133_v3  ;;  %v3171_v45 = vsub.f32 %v9297_v15, %v3151_v5 }
 0xa14   :  { %v9355_v35 = vpop.eup %7442  ;;  %v3188_v28 = vmul.f32 1.442695, %v3165_v9  ;;  %v3200_v44 = vmul.f32 1.442695, %v3171_v45 }
 0xa15   :  { %v3224_v23 = vsel %vm153_vm0, %v9355_v35, 0.0  ;;  %v9362_v50 = vpop.eup %7444 }
 0xa16   :  { %3225 = vadd.xlane.f32.xlu0 %v3224_v23  ;;  %7446 = vpow2.f32 %v3188_v28  ;;  %v3242_v13 = vsel %vm153_vm0, %v9362_v50, 0.0 }
 0xa17   :  { %7448 = vrcp.f32 %v3208_v10 }
 0xa18   :  { %7450 = vpow2.f32 %v3200_v44  ;;  %v3235_v44 = vpop.xlane.xlu0 %3234 }
 0xa19   :  { %v9360_v21 = vpop.xlane.xlu2 %3153 }
 0xa1c   :  { %v9364_v33 = vpop.eup %7446 }
 0xa1d   :  { %v3227_v15 = vsel %vm153_vm0, %v9364_v33, 0.0  ;;  %v7449_v23 = vpop.eup %7448 }
 0xa1e   :  { %3243 = vadd.xlane.f32.xlu0 %v3242_v13  ;;  %3228 = vadd.xlane.f32.xlu2 %v3227_v15  ;;  %v9370_v4 = vpop.eup %7450  ;;  %v3270_v5 = vmul.f32 %v7449_v23, %v9274_v34 }
 0xa1f   :  { %v3245_v3 = vsel %vm153_vm0, %v9370_v4, 0.0 }
 0xa20   :  { %v3286_v45 = vpack.c.bf16 %v3270_v5, %v3270_v5 }
 0xa21   :  { %v3211_v28 = vpop.xlane.xlu2 %3210  ;;  %v3157_v7 = vpop.xlane.xlu1 %3156 }
 0xa22   :  { %7452 = vrcp.f32 %v3211_v28  ;;  %v3173_v10 = vsub.f32 %v9316_v54, %v3157_v7  ;;  %v3304_v54 = vunpack.c.l.b16 %v3286_v45 }
 0xa23   :  { %7454 = vrcp.f32 %v3217_v46 }
 0xa24   :  { %v3204_v51 = vmul.f32 1.442695, %v3173_v10 }
 0xa26   :  { %7456 = vpow2.f32 %v3204_v51  ;;  %3246 = vadd.xlane.f32.xlu0 %v3245_v3 }
 0xa28   :  { %v7453_v9 = vpop.eup %7452 }
 0xa29   :  { %v3271_v13 = vmul.f32 %v7453_v9, %v9313_v8  ;;  %v3214_v15 = vpop.xlane.xlu1 %3213  ;;  %v7455_v22 = vpop.eup %7454  ;;  %v3510_v8 = vsel %vm519_vm1, %v9233_v11, 0 }
 0xa2a   :  { %7458 = vrcp.f32 %v3214_v15  ;;  %v3273_v34 = vmul.f32 %v7455_v22, %v9281_v24 }
 0xa2b   :  { %v3287_v28 = vpack.c.bf16 %v3271_v13, %v3271_v13  ;;  %7460 = vrcp.f32 %v3235_v44 }
 0xa2c   :  { %v9377_v32 = vpop.eup %7456  ;;  %v3289_v51 = vpack.c.bf16 %v3273_v34, %v3273_v34 }
 0xa2d   :  { %v3305_v46 = vunpack.c.l.b16 %v3287_v28  ;;  %v3251_v23 = vsel %vm153_vm0, %v9377_v32, 0.0 }
 0xa2e   :  { %3252 = vadd.xlane.f32.xlu1 %v3251_v23  ;;  %v3330_v24 = vunpack.c.l.b16 %v3289_v51 }
 0xa2f   :  { %v3306_v7 = vpack.c.b16 %v3305_v46, %v3304_v54 }
 0xa30   :  { %v7459_v10 = vpop.eup %7458 }
 0xa31   :  { %v3272_v5 = vmul.f32 %v7459_v10, %v9322_v48  ;;  %6763 = vmatmul.msk.bf16.vlgmr.msrb.gmra.mxu0 %vm153_vm0, %v3306_v7  ;;  %v3232_v3 = vpop.xlane.xlu1 %3231  ;;  %v7461_v45 = vpop.eup %7460  ;;  %v3534_v48 = vsel %vm519_vm1, %v9253_v49, 0 }
 0xa32   :  { %v3241_v9 = vpop.xlane.xlu2 %3240  ;;  %3519 = vmatpush.bf16.xpose.msrb.mxu0 %v3510_v8  ;;  %7462 = vrcp.f32 %v3232_v3  ;;  %v3279_v44 = vmul.f32 %v7461_v45, %v9285_v40 }
 0xa33   :  { %v3288_v22 = vpack.c.bf16 %v3272_v5, %v3272_v5  ;;  %7464 = vrcp.f32 %v3241_v9 }
 0xa34   :  { %v3295_v28 = vpack.c.bf16 %v3279_v44, %v3279_v44 }
 0xa35   :  { %v3329_v13 = vunpack.c.l.b16 %v3288_v22 }
 0xa36   :  { %3624 = vrot.lane.b32.xlu2 %v7980_v56, %s7764_s13  ;;  %v3405_v23 = vunpack.c.l.b16 %v3295_v28 }
 0xa37   :  { %v3331_v15 = vpack.c.b16 %v3330_v24, %v3329_v13  ;;  %v3172_v24 = vsub.f32 %v9309_v19, %v9360_v21 }
 0xa38   :  { %v7463_v11 = vpop.eup %7462 }
 0xa39   :  { %v3278_v54 = vmul.f32 %v7463_v11, %v9328_v12  ;;  %6764 = vmatmul.msk.bf16.vlgmr.msra.gmra.mxu1 %vm153_vm0, %v3331_v15  ;;  %v3238_v34 = vpop.xlane.xlu1 %3237  ;;  %v7465_v46 = vpop.eup %7464  ;;  %v3606_v12 = vsel %vm519_vm1, %v9261_v43, 0  ;;  %v3202_v13 = vmul.f32 1.442695, %v3172_v24 }
 0xa3a   :  { %3543 = vmatpush.bf16.xpose.msra.mxu1 %v3534_v48  ;;  %7466 = vrcp.f32 %v3238_v34  ;;  %3574 = vrot.lane.b32.xlu0 %v7961_v2, %s7764_s13  ;;  %v3281_v10 = vmul.f32 %v7465_v46, %v9330_v17 }
 0xa3b   :  { %v3294_v40 = vpack.c.bf16 %v3278_v54, %v3278_v54  ;;  %v3558_v54 = vsel %vm519_vm1, %v9247_v27, 0 }
 0xa3c   :  { %v3297_v51 = vpack.c.bf16 %v3281_v10, %v3281_v10 }
 0xa3d   :  { %v3404_v7 = vunpack.c.l.b16 %v3294_v40 }
 0xa3e   :  { %3672 = vrot.lane.b32.xlu2 %v8011_v16, %s7764_s13  ;;  %v3430_v9 = vunpack.c.l.b16 %v3297_v51 }
 0xa3f   :  { %v3406_v8 = vpack.c.b16 %v3405_v23, %v3404_v7 }
 0xa40   :  { %v7467_v49 = vpop.eup %7466 }
 0xa41   :  { %v3280_v5 = vmul.f32 %v7467_v49, %v9336_v0  ;;  %6767 = vmatmul.msk.bf16.vlgmr.msra.gmra.mxu0 %vm153_vm0, %v3406_v8 }
 0xa42   :  { %3615 = vmatpush.bf16.xpose.msra.mxu0 %v3606_v12 }
 0xa43   :  { %v3296_v3 = vpack.c.bf16 %v3280_v5, %v3280_v5 }
 0xa45   :  { %v3429_v45 = vunpack.c.l.b16 %v3296_v3 }
 0xa46   :  { %3891 = vrot.lane.b32.xlu2 %v8100_v55, %s7764_s13 }
 0xa47   :  { %v3431_v22 = vpack.c.b16 %v3430_v9, %v3429_v45  ;;  %3646 = vrot.lane.b32.xlu1 %v8004_v6, %s7764_s13 }
 0xa48   :  { %v3220_v17 = vpop.xlane.xlu1 %3219 }
 0xa49   :  { %6768 = vmatmul.msk.bf16.vlgmr.msrb.gmra.mxu1 %vm153_vm0, %v3431_v22  ;;  %7468 = vrcp.f32 %v3220_v17 }
 0xa4e   :  { %3941 = vrot.lane.b32.xlu2 %v8128_v63, %s7764_s13 }
 0xa4f   :  { %3670 = vrot.lane.b32.xlu1 %v8015_v60, %s7764_s13  ;;  %v7469_v0 = vpop.eup %7468 }
 0xa50   :  { %v3223_v43 = vpop.xlane.xlu0 %3222  ;;  %v3274_v44 = vmul.f32 %v7469_v0, %v9342_v37 }
 0xa51   :  { %7470 = vrcp.f32 %v3223_v43  ;;  %6771 = vmatmul.msk.bf16.vlgmr.msrb.gmra.mxu0 %vm519_vm1, %v9241_v29  ;;  %v3582_v43 = vsel %vm519_vm1, %v9259_v38, 0 }
 0xa52   :  { %v3290_v11 = vpack.c.bf16 %v3274_v44, %v3274_v44  ;;  %7472 = vpow2.f32 %v3202_v13 }
 0xa54   :  { %v3354_v19 = vunpack.c.l.b16 %v3290_v11 }
 0xa56   :  { %4088 = vrot.lane.b32.xlu2 %v7916_v52, %s7765_s14 }
 0xa57   :  { %v7471_v15 = vpop.eup %7470  ;;  %3991 = vrot.lane.b32.xlu1 %v8167_v53, %s7764_s13 }
 0xa58   :  { %v3275_v48 = vmul.f32 %v7471_v15, %v9346_v20  ;;  %v9427_v28 = vpop.eup %7472 }
 0xa59   :  { %6772 = vmatmul.msk.bf16.vlgmr.msra.gmra.mxu1 %vm519_vm1, %v9306_v57  ;;  %v3248_v57 = vsel %vm153_vm0, %v9427_v28, 0.0 }
 0xa5a   :  { %v3291_v29 = vpack.c.bf16 %v3275_v48, %v3275_v48 }
 0xa5c   :  { %v3355_v21 = vunpack.c.l.b16 %v3291_v29 }
 0xa5e   :  { %v3356_v37 = vpack.c.b16 %v3355_v21, %v3354_v19  ;;  %4016 = vrot.lane.b32.xlu2 %v8186_v47, %s7764_s13 }
 0xa5f   :  { %4041 = vrot.lane.b32.xlu1 %v8201_v62, %s7764_s13 }
 0xa60   :  { %6765 = vmatmul.msk.bf16.vlgmr.msra.gmra.mxu2 %vm153_vm0, %v3356_v37  ;;  %v3649_v13 = vpop.permute.xlu1 %3648 }
 0xa61   :  { %3567 = vmatpush.bf16.xpose.msra.mxu2 %v3558_v54  ;;  %6775 = vmatmul.msk.bf16.vlgmr.msra.gmra.mxu0 %vm519_vm1, %v9267_v31  ;;  %v3654_v15 = vsel %vm519_vm1, %v3649_v13, 0 }
 0xa64   :  { %3249 = vadd.xlane.f32.xlu0 %v3248_v57 }
 0xa66   :  { %4086 = vrot.lane.b32.xlu2 %v7923_v61, %s7765_s14 }
 0xa6e   :  { %4136 = vrot.lane.b32.xlu2 %v7940_v39, %s7765_s14 }
 0xa76   :  { %4112 = vrot.lane.b32.xlu2 %v7930_v18, %s7765_s14 }
 0xa78   :  { %3622 = vrot.lane.b32.xlu0 %v7985_v1, %s7764_s13 }
 0xa7e   :  { %4184 = vrot.lane.b32.xlu2 %v7968_v25, %s7765_s14 }
 0xa80   :  { %3916 = vrot.lane.b32.xlu0 %v8114_v36, %s7764_s13 }
 0xa86   :  { %4066 = vrot.lane.b32.xlu2 %v8218_v41, %s7764_s13 }
 0xa88   :  { %3966 = vrot.lane.b32.xlu0 %v8147_v59, %s7764_s13 }
 0xa89   :  { %v3226_v27 = vpop.xlane.xlu0 %3225 }
 0xa8a   :  { %7474 = vrcp.f32 %v3226_v27 }
 0xa8e   :  { %4110 = vrot.lane.b32.xlu2 %v7935_v26, %s7765_s14 }
 0xa90   :  { %4134 = vrot.lane.b32.xlu0 %v7899_v30, %s7765_s14  ;;  %v7475_v34 = vpop.eup %7474 }
 0xa91   :  { %v3244_v31 = vpop.xlane.xlu0 %3243  ;;  %v3229_v20 = vpop.xlane.xlu2 %3228  ;;  %v3276_v46 = vmul.f32 %v7475_v34, %v9355_v35 }
 0xa92   :  { %7476 = vrcp.f32 %v3229_v20 }
 0xa93   :  { %7478 = vrcp.f32 %v3244_v31  ;;  %v3292_v10 = vpack.c.bf16 %v3276_v46, %v3276_v46 }
 0xa95   :  { %v3379_v3 = vunpack.c.l.b16 %v3292_v10 }
 0xa98   :  { %v7477_v40 = vpop.eup %7476 }
 0xa99   :  { %v3247_v23 = vpop.xlane.xlu0 %3246  ;;  %v7479_v7 = vpop.eup %7478  ;;  %v3277_v8 = vmul.f32 %v7477_v40, %v9364_v33 }
 0xa9a   :  { %7480 = vrcp.f32 %v3247_v23  ;;  %v3625_v49 = vpop.permute.xlu2 %3624  ;;  %v3282_v5 = vmul.f32 %v7479_v7, %v9362_v50 }
 0xa9b   :  { %v3630_v12 = vsel %vm519_vm1, %v3625_v49, 0  ;;  %v3293_v51 = vpack.c.bf16 %v3277_v8, %v3277_v8 }
 0xa9c   :  { %3639 = vmatpush.bf16.xpose.msrb.mxu1 %v3630_v12  ;;  %v3298_v17 = vpack.c.bf16 %v3282_v5, %v3282_v5 }
 0xa9d   :  { %v3380_v9 = vunpack.c.l.b16 %v3293_v51 }
 0xa9e   :  { %v3454_v24 = vunpack.c.l.b16 %v3298_v17 }
 0xa9f   :  { %v3381_v22 = vpack.c.b16 %v3380_v9, %v3379_v3 }
 0xaa0   :  { %v7481_v45 = vpop.eup %7480 }
 0xaa1   :  { %v3283_v35 = vmul.f32 %v7481_v45, %v9370_v4  ;;  %6766 = vmatmul.msk.bf16.vlgmr.msrb.gmra.mxu3 %vm153_vm0, %v3381_v22  ;;  %v3253_v38 = vpop.xlane.xlu1 %3252 }
 0xaa2   :  { %v9464_v33 = vpop.permute.xlu2 %3672  ;;  %3591 = vmatpush.bf16.xpose.msrb.mxu3 %v3582_v43  ;;  %7482 = vrcp.f32 %v3253_v38 }
 0xaa3   :  { %v3299_v0 = vpack.c.bf16 %v3283_v35, %v3283_v35  ;;  %v3678_v38 = vsel %vm519_vm1, %v9464_v33, 0 }
 0xaa5   :  { %v3455_v44 = vunpack.c.l.b16 %v3299_v0 }
 0xaa7   :  { %v3456_v50 = vpack.c.b16 %v3455_v44, %v3454_v24 }
 0xaa8   :  { %v7483_v3 = vpop.eup %7482 }
 0xaa9   :  { %6769 = vmatmul.msk.bf16.vlgmr.msrb.gmra.mxu2 %vm153_vm0, %v3456_v50  ;;  %v3285_v9 = vmul.f32 %v7483_v3, %v9377_v32 }
 0xaaa   :  { %v3892_v11 = vpop.permute.xlu2 %3891  ;;  %3663 = vmatpush.bf16.xpose.msrb.mxu2 %v3654_v15 }
 0xaab   :  { %3904 = vmatpush.bf16.msrb.mxu0 %v3892_v11  ;;  %v3301_v35 = vpack.c.bf16 %v3285_v9, %v3285_v9 }
 0xaac   :  { %v3575_v40 = vpop.permute.xlu0 %3574 }
 0xaad   :  { %v3480_v32 = vunpack.c.l.b16 %v3301_v35 }
 0xaae   :  { %v9468_v4 = vpop.f32.mrf.mxu0 }
 0xaaf   :  { %11278 = vst [vmem:[#allocation77_spill] sm:$0xff] %v9468_v4 }
 0xab2   :  { %v3942_v19 = vpop.permute.xlu2 %3941 }
 0xab6   :  { %v9470_v48 = vpop.f32.mrf.mxu0  ;;  %v9472_v29 = vpop.f32.mrf.mxu1 }
 0xab7   :  { %11279 = vst [vmem:[#allocation78_spill] sm:$0xff] %v9470_v48 }
 0xab8   :  { %11280 = vst [vmem:[#allocation79_spill] sm:$0xff] %v9472_v29 }
 0xab9   :  { %6773 = vmatmul.msk.bf16.vlgmr.msra.gmra.mxu2 %vm519_vm1, %v9295_v14  ;;  %v3647_v21 = vpop.permute.xlu1 %3646 }
 0xaba   :  { %3954 = vmatpush.bf16.msra.mxu2 %v3942_v19  ;;  %v9485_v34 = vpop.permute.xlu2 %4088 }
 0xabb   :  { %v4094_v4 = vsel %vm519_vm1, %v9485_v34, 0 }
 0xabe   :  { %v9476_v37 = vpop.f32.mrf.mxu1  ;;  %v9478_v54 = vpop.f32.mrf.mxu0 }
 0xabf   :  { %11281 = vst [vmem:[#allocation80_spill] sm:$0xff] %v9476_v37 }
 0xac0   :  { %11282 = vst [vmem:[#allocation81_spill] sm:$0xff] %v9478_v54 }
 0xac1   :  { %v3671_v57 = vpop.permute.xlu1 %3670 }
 0xac2   :  { %v4017_v10 = vpop.permute.xlu2 %4016 }
 0xac6   :  { %v9480_v27 = vpop.f32.mrf.mxu0  ;;  %v9482_v31 = vpop.f32.mrf.mxu1 }
 0xac7   :  { %11283 = vst [vmem:[#allocation82_spill] sm:$0xff] %v9480_v27 }
 0xac8   :  { %11284 = vst [vmem:[#allocation83_spill] sm:$0xff] %v9482_v31 }
 0xac9   :  { %6777 = vmatmul.msk.bf16.vlgmr.msrb.gmra.mxu2 %vm519_vm1, %v3647_v21  ;;  %v3992_v20 = vpop.permute.xlu1 %3991 }
 0xaca   :  { %4004 = vmatpush.bf16.msra.mxu0 %v3992_v20  ;;  %v9506_v43 = vpop.permute.xlu2 %4086 }
 0xace   :  { %v9487_v46 = vpop.f32.mrf.mxu1  ;;  %v9489_v14 = vpop.f32.mrf.mxu0 }
 0xacf   :  { %11285 = vst [vmem:[#allocation84_spill] sm:$0xff] %v9487_v46  ;;  %v3694_v23 = vsel %vm153_vm0, %v9489_v14, -inf }
 0xad0   :  { %3695 = vmax.xlane.f32.xlu0 %v3694_v23 }
 0xad1   :  { %v4042_v7 = vpop.permute.xlu1 %4041 }
 0xad2   :  { %4054 = vmatpush.bf16.msrb.mxu2 %v4042_v7  ;;  %v9520_v19 = vpop.permute.xlu2 %4136 }
 0xad6   :  { %v9493_v8 = vpop.f32.mrf.mxu0  ;;  %v9495_v49 = vpop.f32.mrf.mxu1 }
 0xad7   :  { %v3250_v12 = vpop.xlane.xlu0 %3249  ;;  %v3697_v51 = vsel %vm153_vm0, %v9493_v8, -inf  ;;  %v3700_v5 = vsel %vm153_vm0, %v9495_v49, -inf }
 0xad8   :  { %7484 = vrcp.f32 %v3250_v12  ;;  %3698 = vmax.xlane.f32.xlu2 %v3697_v51  ;;  %3701 = vmax.xlane.f32.xlu0 %v3700_v5 }
 0xada   :  { %v9523_v23 = vpop.permute.xlu2 %4112 }
 0xade   :  { %v7485_v45 = vpop.eup %7484  ;;  %v9502_v22 = vpop.f32.mrf.mxu1 }
 0xadf   :  { %v9504_v17 = vpop.f32.mrf.mxu0  ;;  %v3284_v0 = vmul.f32 %v7485_v45, %v9427_v28  ;;  %v3703_v44 = vsel %vm153_vm0, %v9502_v22, -inf }
 0xae0   :  { %v3718_v24 = vsel %vm153_vm0, %v9504_v17, -inf  ;;  %3704 = vmax.xlane.f32.xlu1 %v3703_v44 }
 0xae1   :  { %3719 = vmax.xlane.f32.xlu2 %v3718_v24  ;;  %v3300_v13 = vpack.c.bf16 %v3284_v0, %v3284_v0 }
 0xae2   :  { %v9526_v7 = vpop.permute.xlu2 %4184 }
 0xae3   :  { %v3479_v50 = vunpack.c.l.b16 %v3300_v13  ;;  %v9529_v51 = vpop.f32.mrf.mxu2 }
 0xae4   :  { %11286 = vst [vmem:[#allocation85_spill] sm:$0xff] %v9529_v51 }
 0xae5   :  { %v3481_v15 = vpack.c.b16 %v3480_v32, %v3479_v50 }
 0xae7   :  { %v9513_v11 = vpop.f32.mrf.mxu0  ;;  %6770 = vmatmul.msk.bf16.vlgmr.msra.gmra.mxu3 %vm153_vm0, %v3481_v15 }
 0xae8   :  { %v3721_v28 = vsel %vm153_vm0, %v9513_v11, -inf  ;;  %3687 = vmatpush.bf16.xpose.msra.mxu3 %v3678_v38 }
 0xae9   :  { %3722 = vmax.xlane.f32.xlu0 %v3721_v28 }
 0xaea   :  { %v3623_v21 = vpop.permute.xlu0 %3622  ;;  %v4067_v12 = vpop.permute.xlu2 %4066 }
 0xaeb   :  { %6776 = vmatmul.msk.bf16.vlgmr.msrb.gmra.mxu1 %vm519_vm1, %v3623_v21  ;;  %v9531_v5 = vpop.f32.mrf.mxu2 }
 0xaec   :  { %11287 = vst [vmem:[#allocation86_spill] sm:$0xff] %v9531_v5 }
 0xaf2   :  { %v3917_v20 = vpop.permute.xlu0 %3916  ;;  %v9553_v13 = vpop.permute.xlu2 %4110 }
 0xaf3   :  { %3929 = vmatpush.bf16.msra.mxu1 %v3917_v20 }
 0xaf7   :  { %4029 = vmatpush.bf16.msrb.mxu1 %v4017_v10  ;;  %6774 = vmatmul.msk.bf16.vlgmr.msrb.gmra.mxu3 %vm519_vm1, %v3575_v40 }
 0xafa   :  { %v3967_v33 = vpop.permute.xlu0 %3966 }
 0xafb   :  { %3979 = vmatpush.bf16.msrb.mxu3 %v3967_v33 }
 0xb07   :  { %6778 = vmatmul.msk.bf16.vlgmr.msra.gmra.mxu3 %vm519_vm1, %v3671_v57  ;;  %v9545_v57 = vpop.permute.xlu0 %4134 }
 0xb08   :  { %4079 = vmatpush.bf16.msra.mxu3 %v4067_v12 }
 0xb24   :  { %v9541_v10 = vpop.f32.mrf.mxu3 }
 0xb25   :  { %11290 = vst [vmem:[#allocation89_spill] sm:$0xff] %v9541_v10 }
 0xb2c   :  { %v9533_v3 = vpop.f32.mrf.mxu2  ;;  %v9543_v35 = vpop.f32.mrf.mxu3 }
 0xb2d   :  { %11288 = vst [vmem:[#allocation87_spill] sm:$0xff] %v9533_v3 }
 0xb2e   :  { %11291 = vst [vmem:[#allocation90_spill] sm:$0xff] %v9543_v35 }
 0xb34   :  { %v9535_v9 = vpop.f32.mrf.mxu2 }
 0xb35   :  { %11289 = vst [vmem:[#allocation88_spill] sm:$0xff] %v9535_v9 }
 0xb3c   :  { %v9537_v45 = vpop.f32.mrf.mxu2 }
 0xb3d   :  { %v3706_v40 = vsel %vm153_vm0, %v9537_v45, -inf }
 0xb3e   :  { %3707 = vmax.xlane.f32.xlu1 %v3706_v40 }
 0xb43   :  { %v3696_v32 = vpop.xlane.xlu0 %3695 }
 0xb44   :  { %v9555_v50 = vpop.f32.mrf.mxu2  ;;  %v3742_v15 = vsub.f32 %v9489_v14, %v3696_v32 }
 0xb45   :  { %v3709_v21 = vsel %vm153_vm0, %v9555_v50, -inf }
 0xb46   :  { %v3758_v12 = vmul.f32 1.442695, %v3742_v15 }
 0xb48   :  { %7486 = vpow2.f32 %v3758_v12 }
 0xb4b   :  { %v3699_v33 = vpop.xlane.xlu2 %3698  ;;  %v3702_v40 = vpop.xlane.xlu0 %3701 }
 0xb4c   :  { %v3744_v14 = vsub.f32 %v9495_v49, %v3702_v40  ;;  %v3743_v40 = vsub.f32 %v9493_v8, %v3699_v33 }
 0xb54   :  { %v3720_v3 = vpop.xlane.xlu2 %3719 }
 0xb55   :  { %v3750_v15 = vsub.f32 %v9504_v17, %v3720_v3  ;;  %v3760_v3 = vmul.f32 1.442695, %v3743_v40 }
 0xb68   :  { %v9547_v0 = vpop.f32.mrf.mxu1 }
 0xb69   :  { %v3724_v24 = vsel %vm153_vm0, %v9547_v0, -inf }
 0xb6a   :  { %3725 = vmax.xlane.f32.xlu2 %v3724_v24  ;;  %v9551_v44 = vpop.f32.mrf.mxu3  ;;  %v9566_v24 = vpop.f32.mrf.mxu2 }
 0xb6b   :  { %11292 = vst [vmem:[#allocation91_spill] sm:$0xff] %v9551_v44  ;;  %v3730_v32 = vsel %vm153_vm0, %v9566_v24, -inf }
 0xb70   :  { %v9558_v38 = vpop.f32.mrf.mxu1 }
 0xb71   :  { %v3727_v28 = vsel %vm153_vm0, %v9558_v38, -inf }
 0xb72   :  { %3728 = vmax.xlane.f32.xlu0 %v3727_v28  ;;  %3710 = vmax.xlane.f32.xlu2 %v3709_v21  ;;  %v9564_v20 = vpop.f32.mrf.mxu3  ;;  %v3762_v21 = vmul.f32 1.442695, %v3744_v14  ;;  %v9578_v12 = vpop.f32.mrf.mxu2 }
 0xb73   :  { %11293 = vst [vmem:[#allocation92_spill] sm:$0xff] %v9564_v20  ;;  %v9575_v20 = vpop.eup %7486 }
 0xb74   :  { %7488 = vpow2.f32 %v3762_v21  ;;  %v3790_v49 = vsel %vm153_vm0, %v9575_v20, 0.0  ;;  %v3705_v21 = vpop.xlane.xlu1 %3704 }
 0xb75   :  { %v3745_v33 = vsub.f32 %v9502_v22, %v3705_v21 }
 0xb7a   :  { %v9571_v9 = vpop.f32.mrf.mxu3  ;;  %3731 = vmax.xlane.f32.xlu0 %v3730_v32  ;;  %v3733_v32 = vsel %vm153_vm0, %v9578_v12, -inf  ;;  %v9589_v17 = vpop.eup %7488 }
 0xb7b   :  { %v3712_v28 = vsel %vm153_vm0, %v9571_v9, -inf  ;;  %v3796_v8 = vsel %vm153_vm0, %v9589_v17, 0.0 }
 0xb7c   :  { %3713 = vmax.xlane.f32.xlu1 %v3712_v28  ;;  %v3774_v28 = vmul.f32 1.442695, %v3750_v15 }
 0xb7e   :  { %7490 = vpow2.f32 %v3774_v28 }
 0xb7f   :  { %7492 = vpow2.f32 %v3760_v3 }
 0xb82   :  { %v9583_v44 = vpop.f32.mrf.mxu3  ;;  %3791 = vadd.xlane.f32.xlu0 %v3790_v49 }
 0xb83   :  { %v3715_v14 = vsel %vm153_vm0, %v9583_v44, -inf }
 0xb84   :  { %3716 = vmax.xlane.f32.xlu2 %v3715_v14  ;;  %3734 = vmax.xlane.f32.xlu1 %v3733_v32  ;;  %v9598_v15 = vpop.eup %7490  ;;  %v3764_v14 = vmul.f32 1.442695, %v3745_v33  ;;  %v3723_v32 = vpop.xlane.xlu0 %3722 }
 0xb85   :  { %v9600_v40 = vpop.eup %7492  ;;  %v3814_v28 = vsel %vm153_vm0, %v9598_v15, 0.0  ;;  %v3751_v3 = vsub.f32 %v9513_v11, %v3723_v32 }
 0xb86   :  { %7494 = vpow2.f32 %v3764_v14  ;;  %v3793_v21 = vsel %vm153_vm0, %v9600_v40, 0.0 }
 0xb8a   :  { %3797 = vadd.xlane.f32.xlu0 %v3796_v8  ;;  %v9594_v49 = vpop.f32.mrf.mxu3  ;;  %v3776_v8 = vmul.f32 1.442695, %v3751_v3 }
 0xb8b   :  { %v3736_v27 = vsel %vm153_vm0, %v9594_v49, -inf }
 0xb8c   :  { %3737 = vmax.xlane.f32.xlu1 %v3736_v27  ;;  %v9611_v33 = vpop.eup %7494  ;;  %7496 = vpow2.f32 %v3776_v8 }
 0xb8d   :  { %v3799_v14 = vsel %vm153_vm0, %v9611_v33, 0.0 }
 0xb92   :  { %3815 = vadd.xlane.f32.xlu0 %v3814_v28  ;;  %v9605_v22 = vpop.f32.mrf.mxu3  ;;  %v9615_v11 = vpop.eup %7496 }
 0xb93   :  { %v3739_v27 = vsel %vm153_vm0, %v9605_v22, -inf  ;;  %v3817_v32 = vsel %vm153_vm0, %v9615_v11, 0.0 }
 0xb94   :  { %3794 = vadd.xlane.f32.xlu1 %v3793_v21  ;;  %3740 = vmax.xlane.f32.xlu2 %v3739_v27 }
 0xb9c   :  { %3800 = vadd.xlane.f32.xlu1 %v3799_v14 }
 0xba4   :  { %3818 = vadd.xlane.f32.xlu1 %v3817_v32 }
 0xbb1   :  { %v3708_v21 = vpop.xlane.xlu1 %3707 }
 0xbb2   :  { %v3746_v14 = vsub.f32 %v9537_v45, %v3708_v21 }
 0xbdd   :  { %v3726_v28 = vpop.xlane.xlu2 %3725 }
 0xbde   :  { %v3752_v54 = vsub.f32 %v9547_v0, %v3726_v28 }
 0xbe0   :  { %v3778_v46 = vmul.f32 1.442695, %v3752_v54  ;;  %v3766_v54 = vmul.f32 1.442695, %v3746_v14 }
 0xbe2   :  { %7498 = vpow2.f32 %v3778_v46 }
 0xbe5   :  { %v3729_v3 = vpop.xlane.xlu0 %3728  ;;  %v3711_v27 = vpop.xlane.xlu2 %3710 }
 0xbe6   :  { %v3753_v8 = vsub.f32 %v9558_v38, %v3729_v3  ;;  %v3747_v31 = vsub.f32 %v9555_v50, %v3711_v27 }
 0xbe8   :  { %v9622_v35 = vpop.eup %7498  ;;  %v3780_v10 = vmul.f32 1.442695, %v3753_v8  ;;  %v3768_v5 = vmul.f32 1.442695, %v3747_v31 }
 0xbe9   :  { %v3820_v32 = vsel %vm153_vm0, %v9622_v35, 0.0 }
 0xbea   :  { %7500 = vpow2.f32 %v3780_v10  ;;  %3821 = vadd.xlane.f32.xlu2 %v3820_v32 }
 0xbeb   :  { %7502 = vpow2.f32 %v3768_v5 }
 0xbec   :  { %7504 = vpow2.f32 %v3766_v54 }
 0xbed   :  { %v9633_v50 = vpop.xlane.xlu0 %3731 }
 0xbef   :  { %v9627_v46 = vpop.xlane.xlu1 %3713 }
 0xbf0   :  { %v9629_v0 = vpop.eup %7500 }
 0xbf1   :  { %v9631_v38 = vpop.eup %7502  ;;  %v3823_v45 = vsel %vm153_vm0, %v9629_v0, 0.0 }
 0xbf2   :  { %3824 = vadd.xlane.f32.xlu0 %v3823_v45  ;;  %v3805_v31 = vsel %vm153_vm0, %v9631_v38, 0.0  ;;  %v9639_v10 = vpop.eup %7504  ;;  %v11294_v45 = vld [vmem:[#allocation12_spill] sm:$0xff] }
 0xbf3   :  { %3806 = vadd.xlane.f32.xlu1 %v3805_v31  ;;  %v3802_v28 = vsel %vm153_vm0, %v9639_v10, 0.0 }
 0xbf5   :  { %v3792_v21 = vpop.xlane.xlu0 %3791 }
 0xbf6   :  { %7506 = vrcp.f32 %v3792_v21 }
 0xbf7   :  { %v9641_v5 = vpop.xlane.xlu1 %3734 }
 0xbfa   :  { %3803 = vadd.xlane.f32.xlu0 %v3802_v28 }
 0xbfc   :  { %v7507_v14 = vpop.eup %7506 }
 0xbfd   :  { %v3798_v27 = vpop.xlane.xlu0 %3797  ;;  %v3854_v32 = vmul.f32 %v7507_v14, %v9575_v20 }
 0xbff   :  { %v9645_v3 = vpop.xlane.xlu1 %3737  ;;  %v3870_v31 = vpack.c.bf16 %v3854_v32, %v3854_v32 }
 0xc02   :  { %4160 = vrot.lane.b32.xlu2 %v7954_v58, %s7765_s14 }
 0xc05   :  { %v3816_v28 = vpop.xlane.xlu0 %3815 }
 0xc07   :  { %v3795_v8 = vpop.xlane.xlu1 %3794 }
 0xc08   :  { %7508 = vrcp.f32 %v3795_v8  ;;  %v3888_v8 = vunpack.c.l.b16 %v3870_v31 }
 0xc09   :  { %7510 = vrcp.f32 %v3798_v27 }
 0xc0a   :  { %4208 = vrot.lane.b32.xlu2 %v7980_v56, %s7765_s14 }
 0xc0c   :  { %4182 = vrot.lane.b32.xlu1 %v7973_v42, %s7765_s14 }
 0xc0e   :  { %v7509_v54 = vpop.eup %7508  ;;  %4232 = vrot.lane.b32.xlu0 %v11294_v45, %s7765_s14 }
 0xc0f   :  { %v3855_v21 = vmul.f32 %v7509_v54, %v9600_v40  ;;  %v3801_v51 = vpop.xlane.xlu1 %3800  ;;  %v7511_v37 = vpop.eup %7510 }
 0xc10   :  { %7512 = vrcp.f32 %v3801_v51  ;;  %v3856_v29 = vmul.f32 %v7511_v37, %v9589_v17 }
 0xc11   :  { %v3871_v27 = vpack.c.bf16 %v3855_v21, %v3855_v21  ;;  %7514 = vrcp.f32 %v3816_v28 }
 0xc12   :  { %v3872_v56 = vpack.c.bf16 %v3856_v29, %v3856_v29 }
 0xc13   :  { %v3889_v20 = vunpack.c.l.b16 %v3871_v27  ;;  %v4118_v27 = vsel %vm519_vm1, %v9523_v23, 0 }
 0xc14   :  { %v3913_v28 = vunpack.c.l.b16 %v3872_v56 }
 0xc15   :  { %v3890_v14 = vpack.c.b16 %v3889_v20, %v3888_v8 }
 0xc16   :  { %v7513_v48 = vpop.eup %7512 }
 0xc17   :  { %v3857_v32 = vmul.f32 %v7513_v48, %v9611_v33  ;;  %6779 = vmatmul.msk.bf16.vlgmr.msrb.gmra.mxu0 %vm153_vm0, %v3890_v14  ;;  %v3819_v40 = vpop.xlane.xlu1 %3818  ;;  %v7515_v54 = vpop.eup %7514 }
 0xc18   :  { %4103 = vmatpush.bf16.xpose.msrb.mxu0 %v4094_v4  ;;  %7516 = vrcp.f32 %v3819_v40  ;;  %v3862_v31 = vmul.f32 %v7515_v54, %v9598_v15  ;;  %v3748_v4 = vsub.f32 %v9571_v9, %v9627_v46  ;;  %v3717_v48 = vpop.xlane.xlu2 %3716  ;;  %v3754_v15 = vsub.f32 %v9566_v24, %v9633_v50 }
 0xc19   :  { %v3873_v51 = vpack.c.bf16 %v3857_v32, %v3857_v32  ;;  %v3749_v23 = vsub.f32 %v9583_v44, %v3717_v48 }
 0xc1a   :  { %v3878_v34 = vpack.c.bf16 %v3862_v31, %v3862_v31  ;;  %v3770_v20 = vmul.f32 1.442695, %v3748_v4  ;;  %v3782_v32 = vmul.f32 1.442695, %v3754_v15 }
 0xc1b   :  { %v3914_v37 = vunpack.c.l.b16 %v3873_v51  ;;  %v3772_v46 = vmul.f32 1.442695, %v3749_v23 }
 0xc1c   :  { %v3988_v56 = vunpack.c.l.b16 %v3878_v34  ;;  %7518 = vpow2.f32 %v3770_v20 }
 0xc1d   :  { %v3915_v17 = vpack.c.b16 %v3914_v37, %v3913_v28  ;;  %7520 = vpow2.f32 %v3782_v32  ;;  %v3755_v37 = vsub.f32 %v9578_v12, %v9641_v5 }
 0xc1e   :  { %v7517_v21 = vpop.eup %7516  ;;  %7522 = vpow2.f32 %v3772_v46 }
 0xc1f   :  { %v3863_v29 = vmul.f32 %v7517_v21, %v9615_v11  ;;  %6780 = vmatmul.msk.bf16.vlgmr.msra.gmra.mxu1 %vm153_vm0, %v3915_v17  ;;  %v4190_v11 = vsel %vm519_vm1, %v9526_v7, 0  ;;  %v3756_v17 = vsub.f32 %v9594_v49, %v9645_v3  ;;  %v3784_v34 = vmul.f32 1.442695, %v3755_v37 }
 0xc20   :  { %4127 = vmatpush.bf16.xpose.msra.mxu1 %v4118_v27  ;;  %v3741_v9 = vpop.xlane.xlu2 %3740 }
 0xc21   :  { %v3879_v33 = vpack.c.bf16 %v3863_v29, %v3863_v29  ;;  %v3757_v40 = vsub.f32 %v9605_v22, %v3741_v9  ;;  %v3786_v4 = vmul.f32 1.442695, %v3756_v17 }
 0xc22   :  { %v9676_v54 = vpop.eup %7518 }
 0xc23   :  { %v3989_v8 = vunpack.c.l.b16 %v3879_v33  ;;  %v3788_v24 = vmul.f32 1.442695, %v3757_v40  ;;  %v9678_v50 = vpop.eup %7520  ;;  %v3808_v44 = vsel %vm153_vm0, %v9676_v54, 0.0 }
 0xc24   :  { %v9682_v7 = vpop.eup %7522  ;;  %v3826_v51 = vsel %vm153_vm0, %v9678_v50, 0.0 }
 0xc25   :  { %v3990_v14 = vpack.c.b16 %v3989_v8, %v3988_v56  ;;  %7524 = vpow2.f32 %v3788_v24  ;;  %v3811_v22 = vsel %vm153_vm0, %v9682_v7, 0.0 }
 0xc27   :  { %6783 = vmatmul.msk.bf16.vlgmr.msra.gmra.mxu0 %vm153_vm0, %v3990_v14 }
 0xc28   :  { %4199 = vmatpush.bf16.xpose.msra.mxu0 %v4190_v11 }
 0xc2b   :  { %v9690_v28 = vpop.eup %7524 }
 0xc2c   :  { %v3835_v31 = vsel %vm153_vm0, %v9690_v28, 0.0 }
 0xc33   :  { %3809 = vadd.xlane.f32.xlu2 %v3808_v44 }
 0xc36   :  { %3827 = vadd.xlane.f32.xlu1 %v3826_v51 }
 0xc37   :  { %6787 = vmatmul.msk.bf16.vlgmr.msrb.gmra.mxu0 %vm519_vm1, %v9506_v43 }
 0xc38   :  { %3812 = vadd.xlane.f32.xlu0 %v3811_v22 }
 0xc3e   :  { %3836 = vadd.xlane.f32.xlu1 %v3835_v31  ;;  %v4142_v31 = vsel %vm519_vm1, %v9520_v19, 0 }
 0xc4b   :  { %4230 = vrot.lane.b32.xlu2 %v8004_v6, %s7765_s14 }
 0xc4c   :  { %4158 = vrot.lane.b32.xlu0 %v7961_v2, %s7765_s14 }
 0xc57   :  { %4206 = vrot.lane.b32.xlu1 %v7985_v1, %s7765_s14 }
 0xc5d   :  { %v3822_v43 = vpop.xlane.xlu2 %3821 }
 0xc5e   :  { %7526 = vrcp.f32 %v3822_v43 }
 0xc5f   :  { %4475 = vrot.lane.b32.xlu1 %v8100_v55, %s7765_s14 }
 0xc64   :  { %v7527_v27 = vpop.eup %7526 }
 0xc65   :  { %v3825_v21 = vpop.xlane.xlu0 %3824  ;;  %v9708_v48 = vpop.permute.xlu2 %4160  ;;  %v3864_v33 = vmul.f32 %v7527_v27, %v9622_v35 }
 0xc66   :  { %7528 = vrcp.f32 %v3825_v21  ;;  %v3807_v29 = vpop.xlane.xlu1 %3806 }
 0xc67   :  { %4500 = vrot.lane.b32.xlu1 %v8114_v36, %s7765_s14  ;;  %7530 = vrcp.f32 %v3807_v29  ;;  %v3880_v12 = vpack.c.bf16 %v3864_v33, %v3864_v33 }
 0xc68   :  { %7532 = vpow2.f32 %v3784_v34 }
 0xc69   :  { %7534 = vpow2.f32 %v3786_v4  ;;  %v4013_v20 = vunpack.c.l.b16 %v3880_v12 }
 0xc6c   :  { %v7529_v56 = vpop.eup %7528 }
 0xc6d   :  { %v3865_v49 = vmul.f32 %v7529_v56, %v9629_v0  ;;  %v3804_v5 = vpop.xlane.xlu0 %3803  ;;  %v7531_v3 = vpop.eup %7530 }
 0xc6e   :  { %7536 = vrcp.f32 %v3804_v5  ;;  %v9714_v15 = vpop.eup %7532  ;;  %v3859_v35 = vmul.f32 %v7531_v3, %v9631_v38  ;;  %v4209_v11 = vpop.permute.xlu2 %4208 }
 0xc6f   :  { %v3881_v8 = vpack.c.bf16 %v3865_v49, %v3865_v49  ;;  %4672 = vrot.lane.b32.xlu1 %v7916_v52, %s7766_s15  ;;  %v9717_v23 = vpop.eup %7534  ;;  %v3829_v0 = vsel %vm153_vm0, %v9714_v15, 0.0  ;;  %v4214_v40 = vsel %vm519_vm1, %v4209_v11, 0 }
 0xc70   :  { %v3875_v46 = vpack.c.bf16 %v3859_v35, %v3859_v35  ;;  %v3832_v24 = vsel %vm153_vm0, %v9717_v23, 0.0 }
 0xc71   :  { %v4014_v14 = vunpack.c.l.b16 %v3881_v8 }
 0xc72   :  { %v3939_v44 = vunpack.c.l.b16 %v3875_v46 }
 0xc73   :  { %v4015_v32 = vpack.c.b16 %v4014_v14, %v4013_v20 }
 0xc74   :  { %v7537_v9 = vpop.eup %7536  ;;  %3830 = vadd.xlane.f32.xlu2 %v3829_v0 }
 0xc75   :  { %v3858_v52 = vmul.f32 %v7537_v9, %v9639_v10  ;;  %6784 = vmatmul.msk.bf16.vlgmr.msrb.gmra.mxu1 %vm153_vm0, %v4015_v32 }
 0xc76   :  { %4223 = vmatpush.bf16.xpose.msrb.mxu1 %v4214_v40  ;;  %3833 = vadd.xlane.f32.xlu0 %v3832_v24 }
 0xc77   :  { %v3874_v38 = vpack.c.bf16 %v3858_v52, %v3858_v52  ;;  %4550 = vrot.lane.b32.xlu1 %v8147_v59, %s7765_s14 }
 0xc79   :  { %v3938_v51 = vunpack.c.l.b16 %v3874_v38 }
 0xc7b   :  { %v3940_v22 = vpack.c.b16 %v3939_v44, %v3938_v51 }
 0xc7d   :  { %6781 = vmatmul.msk.bf16.vlgmr.msra.gmra.mxu2 %vm153_vm0, %v3940_v22 }
 0xc7e   :  { %4151 = vmatpush.bf16.xpose.msra.mxu2 %v4142_v31  ;;  %v4183_v10 = vpop.permute.xlu1 %4182 }
 0xc7f   :  { %6791 = vmatmul.msk.bf16.vlgmr.msra.gmra.mxu0 %vm519_vm1, %v4183_v10 }
 0xc80   :  { %v9750_v43 = vpop.permute.xlu0 %4232 }
 0xc85   :  { %6788 = vmatmul.msk.bf16.vlgmr.msra.gmra.mxu1 %vm519_vm1, %v9553_v13 }
 0xc8a   :  { %4256 = vrot.lane.b32.xlu0 %v8011_v16, %s7765_s14 }
 0xc8c   :  { %4254 = vrot.lane.b32.xlu2 %v8015_v60, %s7765_s14 }
 0xc92   :  { %4525 = vrot.lane.b32.xlu0 %v8128_v63, %s7765_s14 }
 0xc94   :  { %4575 = vrot.lane.b32.xlu2 %v8167_v53, %s7765_s14  ;;  %v9742_v19 = vpop.f32.mrf.mxu0 }
 0xc9a   :  { %4670 = vrot.lane.b32.xlu0 %v7923_v61, %s7766_s15 }
 0xc9c   :  { %4600 = vrot.lane.b32.xlu2 %v8186_v47, %s7765_s14  ;;  %v9748_v13 = vpop.f32.mrf.mxu0  ;;  %v9784_v11 = vpop.f32.mrf.mxu1 }
 0xca4   :  { %4625 = vrot.lane.b32.xlu2 %v8201_v62, %s7765_s14  ;;  %v9754_v37 = vpop.f32.mrf.mxu0  ;;  %v9786_v52 = vpop.f32.mrf.mxu1 }
 0xca6   :  { %v3810_v17 = vpop.xlane.xlu2 %3809 }
 0xca7   :  { %7538 = vrcp.f32 %v3810_v17 }
 0xca9   :  { %v3828_v5 = vpop.xlane.xlu1 %3827 }
 0xcab   :  { %v3813_v21 = vpop.xlane.xlu0 %3812 }
 0xcac   :  { %7540 = vrcp.f32 %v3813_v21  ;;  %4696 = vrot.lane.b32.xlu2 %v7930_v18, %s7766_s15  ;;  %v9758_v61 = vpop.f32.mrf.mxu0 }
 0xcad   :  { %v7539_v27 = vpop.eup %7538  ;;  %7542 = vrcp.f32 %v3828_v5 }
 0xcae   :  { %v3860_v34 = vmul.f32 %v7539_v27, %v9676_v54  ;;  %v4166_v54 = vsel %vm519_vm1, %v9708_v48, 0 }
 0xcb0   :  { %v3876_v4 = vpack.c.bf16 %v3860_v34, %v3860_v34 }
 0xcb2   :  { %v7541_v29 = vpop.eup %7540  ;;  %v3963_v18 = vunpack.c.l.b16 %v3876_v4 }
 0xcb3   :  { %v3861_v33 = vmul.f32 %v7541_v29, %v9682_v7  ;;  %v3837_v7 = vpop.xlane.xlu1 %3836  ;;  %v7543_v9 = vpop.eup %7542 }
 0xcb4   :  { %4720 = vrot.lane.b32.xlu2 %v7940_v39, %s7766_s15  ;;  %v9764_v56 = vpop.f32.mrf.mxu0  ;;  %7544 = vrcp.f32 %v3837_v7 }
 0xcb5   :  { %v3877_v12 = vpack.c.bf16 %v3861_v33, %v3861_v33  ;;  %v4278_v49 = vsel %vm153_vm0, %v9764_v56, -inf }
 0xcb6   :  { %4279 = vmax.xlane.f32.xlu1 %v4278_v49 }
 0xcb7   :  { %v3964_v3 = vunpack.c.l.b16 %v3877_v12 }
 0xcb9   :  { %v3965_v8 = vpack.c.b16 %v3964_v3, %v3963_v18 }
 0xcba   :  { %v7545_v40 = vpop.eup %7544 }
 0xcbb   :  { %6782 = vmatmul.msk.bf16.vlgmr.msrb.gmra.mxu3 %vm153_vm0, %v3965_v8  ;;  %v3869_v24 = vmul.f32 %v7545_v40, %v9690_v28  ;;  %v4238_v28 = vsel %vm519_vm1, %v9750_v43, 0 }
 0xcbc   :  { %4175 = vmatpush.bf16.xpose.msrb.mxu3 %v4166_v54  ;;  %4694 = vrot.lane.b32.xlu2 %v7935_v26, %s7766_s15  ;;  %v9773_v39 = vpop.f32.mrf.mxu0  ;;  %v9782_v26 = vpop.permute.xlu2 %4230 }
 0xcbd   :  { %v4281_v20 = vsel %vm153_vm0, %v9773_v39, -inf  ;;  %v3885_v10 = vpack.c.bf16 %v3869_v24, %v3869_v24 }
 0xcbe   :  { %v4159_v32 = vpop.permute.xlu0 %4158 }
 0xcbf   :  { %v4064_v33 = vunpack.c.l.b16 %v3885_v10 }
 0xcc4   :  { %4650 = vrot.lane.b32.xlu2 %v8218_v41, %s7765_s14  ;;  %4282 = vmax.xlane.f32.xlu0 %v4281_v20 }
 0xcc9   :  { %v4207_v14 = vpop.permute.xlu1 %4206 }
 0xcca   :  { %6792 = vmatmul.msk.bf16.vlgmr.msrb.gmra.mxu1 %vm519_vm1, %v4207_v14 }
 0xccc   :  { %4718 = vrot.lane.b32.xlu2 %v7899_v30, %s7766_s15  ;;  %v3866_v30 = vmul.f32 %v7543_v9, %v9678_v50 }
 0xcce   :  { %v3882_v44 = vpack.c.bf16 %v3866_v30, %v3866_v30 }
 0xcd0   :  { %v4038_v34 = vunpack.c.l.b16 %v3882_v44 }
 0xcd1   :  { %v4476_v48 = vpop.permute.xlu1 %4475 }
 0xcd2   :  { %4488 = vmatpush.bf16.msrb.mxu0 %v4476_v48 }
 0xcd9   :  { %v4501_v35 = vpop.permute.xlu1 %4500 }
 0xcda   :  { %4513 = vmatpush.bf16.msra.mxu1 %v4501_v35 }
 0xce1   :  { %v9805_v43 = vpop.permute.xlu1 %4672 }
 0xce7   :  { %v3831_v0 = vpop.xlane.xlu2 %3830 }
 0xce8   :  { %7546 = vrcp.f32 %v3831_v0 }
 0xce9   :  { %v3834_v46 = vpop.xlane.xlu0 %3833  ;;  %v4551_v9 = vpop.permute.xlu1 %4550 }
 0xcea   :  { %7548 = vrcp.f32 %v3834_v46 }
 0xcee   :  { %v7547_v38 = vpop.eup %7546 }
 0xcef   :  { %v3867_v51 = vmul.f32 %v7547_v38, %v9714_v15  ;;  %v4255_v22 = vpop.permute.xlu2 %4254 }
 0xcf0   :  { %v7549_v31 = vpop.eup %7548 }
 0xcf1   :  { %v3883_v17 = vpack.c.bf16 %v3867_v51, %v3867_v51  ;;  %v3868_v21 = vmul.f32 %v7549_v31, %v9717_v23 }
 0xcf2   :  { %v9792_v27 = vpop.f32.mrf.mxu1 }
 0xcf3   :  { %11295 = vst [vmem:[#allocation12_spill] sm:$0xff] %v9792_v27  ;;  %v4039_v29 = vunpack.c.l.b16 %v3883_v17  ;;  %v3884_v4 = vpack.c.bf16 %v3868_v21, %v3868_v21 }
 0xcf5   :  { %v4040_v12 = vpack.c.b16 %v4039_v29, %v4038_v34  ;;  %v4063_v50 = vunpack.c.l.b16 %v3884_v4 }
 0xcf7   :  { %v4065_v49 = vpack.c.b16 %v4064_v33, %v4063_v50  ;;  %v4576_v18 = vpop.permute.xlu2 %4575  ;;  %6785 = vmatmul.msk.bf16.vlgmr.msrb.gmra.mxu2 %vm153_vm0, %v4040_v12 }
 0xcf8   :  { %4247 = vmatpush.bf16.xpose.msrb.mxu2 %v4238_v28  ;;  %4588 = vmatpush.bf16.msra.mxu0 %v4576_v18 }
 0xcf9   :  { %6786 = vmatmul.msk.bf16.vlgmr.msra.gmra.mxu3 %vm153_vm0, %v4065_v49 }
 0xcfa   :  { %v9798_v15 = vpop.f32.mrf.mxu1 }
 0xcfb   :  { %11296 = vst [vmem:[#allocation93_spill] sm:$0xff] %v9798_v15 }
 0xcfc   :  { %v9802_v5 = vpop.f32.mrf.mxu0  ;;  %v4257_v3 = vpop.permute.xlu0 %4256 }
 0xcfd   :  { %v4262_v8 = vsel %vm519_vm1, %v4257_v3, 0  ;;  %v4302_v30 = vsel %vm153_vm0, %v9802_v5, -inf }
 0xcfe   :  { %4271 = vmatpush.bf16.xpose.msra.mxu3 %v4262_v8 }
 0xcff   :  { %v4601_v54 = vpop.permute.xlu2 %4600 }
 0xd00   :  { %4613 = vmatpush.bf16.msrb.mxu1 %v4601_v54  ;;  %v9844_v21 = vpop.f32.mrf.mxu2 }
 0xd02   :  { %v9807_v7 = vpop.f32.mrf.mxu1 }
 0xd03   :  { %v4284_v20 = vsel %vm153_vm0, %v9807_v7, -inf }
 0xd04   :  { %v9811_v14 = vpop.f32.mrf.mxu0  ;;  %4285 = vmax.xlane.f32.xlu2 %v4284_v20  ;;  %v4526_v35 = vpop.permute.xlu0 %4525 }
 0xd05   :  { %v4305_v48 = vsel %vm153_vm0, %v9811_v14, -inf }
 0xd06   :  { %4306 = vmax.xlane.f32.xlu0 %v4305_v48 }
 0xd07   :  { %v4626_v0 = vpop.permute.xlu2 %4625  ;;  %6789 = vmatmul.msk.bf16.vlgmr.msra.gmra.mxu2 %vm519_vm1, %v9545_v57 }
 0xd08   :  { %4538 = vmatpush.bf16.msra.mxu2 %v4526_v35  ;;  %v9846_v34 = vpop.f32.mrf.mxu2 }
 0xd09   :  { %6790 = vmatmul.msk.bf16.vlgmr.msrb.gmra.mxu3 %vm519_vm1, %v4159_v32 }
 0xd0a   :  { %4563 = vmatpush.bf16.msrb.mxu3 %v4551_v9  ;;  %v4131_v46 = vpop.f32.mrf.mxu1 }
 0xd0b   :  { %v4287_v40 = vsel %vm153_vm0, %v4131_v46, -inf }
 0xd0c   :  { %4288 = vmax.xlane.f32.xlu1 %v4287_v40  ;;  %4303 = vmax.xlane.f32.xlu2 %v4302_v30  ;;  %v9860_v49 = vpop.permute.xlu0 %4670 }
 0xd0f   :  { %v9821_v24 = vpop.permute.xlu2 %4696 }
 0xd17   :  { %v9823_v38 = vpop.permute.xlu2 %4720  ;;  %6793 = vmatmul.msk.bf16.vlgmr.msrb.gmra.mxu2 %vm519_vm1, %v9782_v26 }
 0xd18   :  { %4638 = vmatpush.bf16.msrb.mxu2 %v4626_v0 }
 0xd19   :  { %6794 = vmatmul.msk.bf16.vlgmr.msra.gmra.mxu3 %vm519_vm1, %v4255_v22 }
 0xd1f   :  { %v9828_v57 = vpop.permute.xlu2 %4694 }
 0xd27   :  { %v4651_v32 = vpop.permute.xlu2 %4650 }
 0xd28   :  { %4663 = vmatpush.bf16.msra.mxu3 %v4651_v32 }
 0xd29   :  { %v4280_v54 = vpop.xlane.xlu1 %4279 }
 0xd2f   :  { %v9875_v40 = vpop.permute.xlu2 %4718 }
 0xd37   :  { %v4283_v20 = vpop.xlane.xlu0 %4282 }
 0xd38   :  { %v4327_v0 = vsub.f32 %v9773_v39, %v4283_v20 }
 0xd3a   :  { %v4344_v32 = vmul.f32 1.442695, %v4327_v0 }
 0xd3c   :  { %7550 = vpow2.f32 %v4344_v32 }
 0xd3e   :  { %v9830_v44 = vpop.f32.mrf.mxu3 }
 0xd42   :  { %v9890_v12 = vpop.eup %7550 }
 0xd46   :  { %v9832_v51 = vpop.f32.mrf.mxu3 }
 0xd47   :  { %v9836_v10 = vpop.f32.mrf.mxu1 }
 0xd48   :  { %v4308_v17 = vsel %vm153_vm0, %v9836_v10, -inf }
 0xd49   :  { %4309 = vmax.xlane.f32.xlu0 %v4308_v17 }
 0xd4f   :  { %v9840_v26 = vpop.f32.mrf.mxu1 }
 0xd50   :  { %v4311_v22 = vsel %vm153_vm0, %v9840_v26, -inf }
 0xd51   :  { %4312 = vmax.xlane.f32.xlu1 %v4311_v22  ;;  %v4326_v22 = vsub.f32 %v9764_v56, %v4280_v54 }
 0xd77   :  { %v4286_v28 = vpop.xlane.xlu2 %4285 }
 0xd78   :  { %v4328_v31 = vsub.f32 %v9807_v7, %v4286_v28 }
 0xd79   :  { %v4307_v54 = vpop.xlane.xlu0 %4306 }
 0xd7a   :  { %v9848_v29 = vpop.f32.mrf.mxu2 }
 0xd7b   :  { %11297 = vst [vmem:[#allocation94_spill] sm:$0xff] %v9848_v29 }
 0xd7c   :  { %v9850_v4 = vpop.f32.mrf.mxu3 }
 0xd7d   :  { %11298 = vst [vmem:[#allocation95_spill] sm:$0xff] %v9850_v4 }
 0xd7f   :  { %v4289_v17 = vpop.xlane.xlu1 %4288  ;;  %v4304_v7 = vpop.xlane.xlu2 %4303 }
 0xd80   :  { %v4329_v20 = vsub.f32 %v4131_v46, %v4289_v17  ;;  %v4335_v46 = vsub.f32 %v9811_v14, %v4307_v54  ;;  %v4377_v17 = vsel %vm153_vm0, %v9890_v12, 0.0  ;;  %v4334_v14 = vsub.f32 %v9802_v5, %v4304_v7 }
 0xd82   :  { %v9852_v33 = vpop.f32.mrf.mxu2  ;;  %v4348_v56 = vmul.f32 1.442695, %v4329_v20  ;;  %v4360_v20 = vmul.f32 1.442695, %v4335_v46 }
 0xd84   :  { %v9856_v50 = vpop.f32.mrf.mxu3 }
 0xd85   :  { %11299 = vst [vmem:[#allocation96_spill] sm:$0xff] %v9856_v50 }
 0xd8a   :  { %v9862_v18 = vpop.f32.mrf.mxu2 }
 0xd8b   :  { %v4290_v3 = vsel %vm153_vm0, %v9862_v18, -inf }
 0xd8c   :  { %v9866_v8 = vpop.f32.mrf.mxu3  ;;  %4291 = vmax.xlane.f32.xlu1 %v4290_v3 }
 0xd8d   :  { %v4296_v23 = vsel %vm153_vm0, %v9866_v8, -inf }
 0xd92   :  { %v9868_v48 = vpop.f32.mrf.mxu2 }
 0xd93   :  { %v4293_v35 = vsel %vm153_vm0, %v9868_v48, -inf }
 0xd94   :  { %4294 = vmax.xlane.f32.xlu2 %v4293_v35  ;;  %v9873_v9 = vpop.f32.mrf.mxu3 }
 0xd95   :  { %v4299_v30 = vsel %vm153_vm0, %v9873_v9, -inf }
 0xd96   :  { %4300 = vmax.xlane.f32.xlu0 %v4299_v30  ;;  %v4342_v30 = vmul.f32 1.442695, %v4326_v22 }
 0xd98   :  { %7552 = vpow2.f32 %v4342_v30 }
 0xd99   :  { %7554 = vpow2.f32 %v4348_v56 }
 0xd9a   :  { %v9880_v3 = vpop.f32.mrf.mxu2 }
 0xd9b   :  { %v4314_v39 = vsel %vm153_vm0, %v9880_v3, -inf }
 0xd9c   :  { %4297 = vmax.xlane.f32.xlu2 %v4296_v23  ;;  %v9886_v35 = vpop.f32.mrf.mxu3  ;;  %4315 = vmax.xlane.f32.xlu1 %v4314_v39  ;;  %v4346_v39 = vmul.f32 1.442695, %v4328_v31  ;;  %v4358_v31 = vmul.f32 1.442695, %v4334_v14 }
 0xd9d   :  { %v4320_v0 = vsel %vm153_vm0, %v9886_v35, -inf }
 0xd9e   :  { %4321 = vmax.xlane.f32.xlu0 %v4320_v0  ;;  %v9904_v28 = vpop.eup %7552  ;;  %7556 = vpow2.f32 %v4346_v39 }
 0xd9f   :  { %v9906_v0 = vpop.eup %7554  ;;  %v4374_v30 = vsel %vm153_vm0, %v9904_v28, 0.0  ;;  %7558 = vpow2.f32 %v4360_v20 }
 0xda0   :  { %v4383_v56 = vsel %vm153_vm0, %v9906_v0, 0.0  ;;  %7560 = vpow2.f32 %v4358_v31 }
 0xda2   :  { %v9893_v27 = vpop.f32.mrf.mxu2 }
 0xda3   :  { %v4317_v23 = vsel %vm153_vm0, %v9893_v27, -inf }
 0xda4   :  { %4318 = vmax.xlane.f32.xlu2 %v4317_v23  ;;  %v9898_v32 = vpop.f32.mrf.mxu3  ;;  %v9913_v54 = vpop.eup %7556 }
 0xda5   :  { %v4323_v22 = vsel %vm153_vm0, %v9898_v32, -inf  ;;  %v9915_v23 = vpop.eup %7558  ;;  %v4380_v46 = vsel %vm153_vm0, %v9913_v54, 0.0 }
 0xda6   :  { %4378 = vadd.xlane.f32.xlu0 %v4377_v17  ;;  %4324 = vmax.xlane.f32.xlu1 %v4323_v22  ;;  %v4401_v5 = vsel %vm153_vm0, %v9915_v23, 0.0  ;;  %v9921_v17 = vpop.eup %7560 }
 0xda7   :  { %v4398_v22 = vsel %vm153_vm0, %v9921_v17, 0.0 }
 0xdac   :  { %4375 = vadd.xlane.f32.xlu2 %v4374_v30 }
 0xdae   :  { %4384 = vadd.xlane.f32.xlu0 %v4383_v56 }
 0xdb4   :  { %4381 = vadd.xlane.f32.xlu2 %v4380_v46 }
 0xdb6   :  { %4402 = vadd.xlane.f32.xlu0 %v4401_v5 }
 0xdbc   :  { %v4310_v39 = vpop.xlane.xlu0 %4309  ;;  %4399 = vadd.xlane.f32.xlu2 %v4398_v22 }
 0xdbd   :  { %v4336_v7 = vsub.f32 %v9836_v10, %v4310_v39 }
 0xdbf   :  { %v4362_v20 = vmul.f32 1.442695, %v4336_v7 }
 0xdc1   :  { %7562 = vpow2.f32 %v4362_v20 }
 0xdc4   :  { %v4313_v14 = vpop.xlane.xlu1 %4312 }
 0xdc5   :  { %v4337_v30 = vsub.f32 %v9840_v26, %v4313_v14 }
 0xdc7   :  { %v9927_v56 = vpop.eup %7562  ;;  %v4364_v31 = vmul.f32 1.442695, %v4337_v30 }
 0xdc8   :  { %v4404_v46 = vsel %vm153_vm0, %v9927_v56, 0.0 }
 0xdc9   :  { %7564 = vpow2.f32 %v4364_v31  ;;  %4405 = vadd.xlane.f32.xlu0 %v4404_v46 }
 0xdcf   :  { %v9931_v5 = vpop.eup %7564 }
 0xdd0   :  { %v4407_v22 = vsel %vm153_vm0, %v9931_v5, 0.0 }
 0xdd1   :  { %4408 = vadd.xlane.f32.xlu1 %v4407_v22 }
 0xdff   :  { %v4292_v10 = vpop.xlane.xlu1 %4291 }
 0xe00   :  { %v4330_v39 = vsub.f32 %v9862_v18, %v4292_v10 }
 0xe02   :  { %v4350_v7 = vmul.f32 1.442695, %v4330_v39 }
 0xe04   :  { %7566 = vpow2.f32 %v4350_v7 }
 0xe07   :  { %v4295_v26 = vpop.xlane.xlu2 %4294 }
 0xe08   :  { %v4331_v20 = vsub.f32 %v9868_v48, %v4295_v26 }
 0xe09   :  { %v4301_v14 = vpop.xlane.xlu0 %4300 }
 0xe0a   :  { %v9937_v30 = vpop.eup %7566  ;;  %v4352_v15 = vmul.f32 1.442695, %v4331_v20  ;;  %v4333_v31 = vsub.f32 %v9873_v9, %v4301_v14 }
 0xe0b   :  { %v4386_v46 = vsel %vm153_vm0, %v9937_v30, 0.0 }
 0xe0c   :  { %7568 = vpow2.f32 %v4352_v15  ;;  %4387 = vadd.xlane.f32.xlu2 %v4386_v46  ;;  %v4356_v22 = vmul.f32 1.442695, %v4333_v31 }
 0xe0e   :  { %7570 = vpow2.f32 %v4356_v22 }
 0xe0f   :  { %v4298_v4 = vpop.xlane.xlu2 %4297  ;;  %v4316_v50 = vpop.xlane.xlu1 %4315 }
 0xe10   :  { %v4332_v18 = vsub.f32 %v9866_v8, %v4298_v4  ;;  %v4338_v10 = vsub.f32 %v9880_v3, %v4316_v50 }
 0xe11   :  { %v4322_v39 = vpop.xlane.xlu0 %4321 }
 0xe12   :  { %v9944_v48 = vpop.eup %7568  ;;  %v4354_v7 = vmul.f32 1.442695, %v4332_v18  ;;  %v4366_v26 = vmul.f32 1.442695, %v4338_v10  ;;  %v4340_v9 = vsub.f32 %v9886_v35, %v4322_v39 }
 0xe13   :  { %v4389_v20 = vsel %vm153_vm0, %v9944_v48, 0.0 }
 0xe14   :  { %7572 = vpow2.f32 %v4354_v7  ;;  %4390 = vadd.xlane.f32.xlu0 %v4389_v20  ;;  %v4370_v15 = vmul.f32 1.442695, %v4340_v9  ;;  %v9949_v31 = vpop.eup %7570 }
 0xe15   :  { %7574 = vpow2.f32 %v4366_v26  ;;  %v4395_v35 = vsel %vm153_vm0, %v9949_v31, 0.0 }
 0xe16   :  { %7576 = vpow2.f32 %v4370_v15 }
 0xe17   :  { %v4319_v14 = vpop.xlane.xlu2 %4318 }
 0xe18   :  { %v4339_v4 = vsub.f32 %v9893_v27, %v4319_v14 }
 0xe19   :  { %v4379_v50 = vpop.xlane.xlu0 %4378 }
 0xe1a   :  { %v9952_v8 = vpop.eup %7572  ;;  %v4368_v3 = vmul.f32 1.442695, %v4339_v4  ;;  %7578 = vrcp.f32 %v4379_v50 }
 0xe1b   :  { %v9954_v46 = vpop.eup %7574  ;;  %v4392_v22 = vsel %vm153_vm0, %v9952_v8, 0.0 }
 0xe1c   :  { %7580 = vpow2.f32 %v4368_v3  ;;  %4396 = vadd.xlane.f32.xlu0 %v4395_v35  ;;  %4393 = vadd.xlane.f32.xlu2 %v4392_v22  ;;  %v4410_v27 = vsel %vm153_vm0, %v9954_v46, 0.0  ;;  %v9962_v18 = vpop.eup %7576 }
 0xe1d   :  { %4411 = vadd.xlane.f32.xlu1 %v4410_v27  ;;  %v4416_v20 = vsel %vm153_vm0, %v9962_v18, 0.0 }
 0xe1f   :  { %v4376_v10 = vpop.xlane.xlu2 %4375 }
 0xe20   :  { %v7579_v39 = vpop.eup %7578  ;;  %7582 = vrcp.f32 %v4376_v10 }
 0xe21   :  { %v4385_v7 = vpop.xlane.xlu0 %4384  ;;  %v4439_v9 = vmul.f32 %v7579_v39, %v9890_v12 }
 0xe22   :  { %v9964_v26 = vpop.eup %7580  ;;  %7584 = vrcp.f32 %v4385_v7 }
 0xe23   :  { %v4413_v15 = vsel %vm153_vm0, %v9964_v26, 0.0  ;;  %v4455_v4 = vpack.c.bf16 %v4439_v9, %v4439_v9 }
 0xe24   :  { %4417 = vadd.xlane.f32.xlu0 %v4416_v20  ;;  %v4678_v20 = vsel %vm519_vm1, %v9805_v43, 0  ;;  %v4702_v43 = vsel %vm519_vm1, %v9821_v24, 0  ;;  %v11300_v24 = vld [vmem:[#allocation11_spill] sm:$0xff] }
 0xe25   :  { %4414 = vadd.xlane.f32.xlu1 %v4413_v15  ;;  %v4473_v10 = vunpack.c.l.b16 %v4455_v4 }
 0xe26   :  { %v7583_v14 = vpop.eup %7582 }
 0xe27   :  { %v4438_v50 = vmul.f32 %v7583_v14, %v9904_v28  ;;  %v4382_v3 = vpop.xlane.xlu2 %4381 }
 0xe28   :  { %v7585_v35 = vpop.eup %7584  ;;  %7586 = vrcp.f32 %v4382_v3 }
 0xe29   :  { %v4454_v22 = vpack.c.bf16 %v4438_v50, %v4438_v50  ;;  %v4403_v27 = vpop.xlane.xlu0 %4402  ;;  %v4441_v39 = vmul.f32 %v7585_v35, %v9906_v0 }
 0xe2a   :  { %7588 = vrcp.f32 %v4403_v27 }
 0xe2b   :  { %v4472_v12 = vunpack.c.l.b16 %v4454_v22  ;;  %v4457_v15 = vpack.c.bf16 %v4441_v39, %v4441_v39 }
 0xe2d   :  { %v4474_v7 = vpack.c.b16 %v4473_v10, %v4472_v12  ;;  %v4498_v3 = vunpack.c.l.b16 %v4457_v15  ;;  %v4325_v12 = vpop.xlane.xlu1 %4324 }
 0xe2e   :  { %v7587_v29 = vpop.eup %7586 }
 0xe2f   :  { %v4440_v9 = vmul.f32 %v7587_v29, %v9913_v54  ;;  %6795 = vmatmul.msk.bf16.vlgmr.msrb.gmra.mxu0 %vm153_vm0, %v4474_v7  ;;  %v4400_v28 = vpop.xlane.xlu2 %4399 }
 0xe30   :  { %v7589_v14 = vpop.eup %7588  ;;  %4687 = vmatpush.bf16.xpose.msrb.mxu0 %v4678_v20  ;;  %7590 = vrcp.f32 %v4400_v28  ;;  %v11310_v28 = vld [vmem:[#allocation46_spill] sm:$0xff] }
 0xe31   :  { %v4456_v50 = vpack.c.bf16 %v4440_v9, %v4440_v9  ;;  %v4447_v22 = vmul.f32 %v7589_v14, %v9915_v23  ;;  %v11309_v9 = vld [vmem:[#allocation45_spill] sm:$0xff] }
 0xe32   :  { %v6887_v14 = vpack.i.bf16 %v11310_v28, %v11309_v9 }
 0xe33   :  { %v4497_v4 = vunpack.c.l.b16 %v4456_v50  ;;  %v4463_v29 = vpack.c.bf16 %v4447_v22, %v4447_v22 }
 0xe34   :  { %4742 = vrot.lane.b32.xlu2 %v7961_v2, %s7766_s15 }
 0xe35   :  { %v4499_v0 = vpack.c.b16 %v4498_v3, %v4497_v4  ;;  %v4573_v10 = vunpack.c.l.b16 %v4463_v29  ;;  %v11311_v3 = vld [vmem:[#allocation61_spill] sm:$0xff]  ;;  %v11312_v4 = vld [vmem:[#allocation62_spill] sm:$0xff] }
 0xe36   :  { %v7591_v35 = vpop.eup %7590  ;;  %v6892_v22 = vpack.i.bf16 %v11312_v4, %v11311_v3 }
 0xe37   :  { %v4446_v54 = vmul.f32 %v7591_v35, %v9921_v17  ;;  %6796 = vmatmul.msk.bf16.vlgmr.msra.gmra.mxu1 %vm153_vm0, %v4499_v0 }
 0xe38   :  { %4711 = vmatpush.bf16.xpose.msra.mxu1 %v4702_v43  ;;  %4744 = vrot.lane.b32.xlu0 %v7954_v58, %s7766_s15 }
 0xe39   :  { %v4462_v27 = vpack.c.bf16 %v4446_v54, %v4446_v54  ;;  %v11313_v54 = vld [vmem:[#allocation33_spill] sm:$0xff] }
 0xe3b   :  { %v4572_v23 = vunpack.c.l.b16 %v4462_v27  ;;  %v11314_v27 = vld [vmem:[#allocation35_spill] sm:$0xff] }
 0xe3c   :  { %v4406_v39 = vpop.xlane.xlu0 %4405  ;;  %4766 = vrot.lane.b32.xlu2 %v7973_v42, %s7766_s15 }
 0xe3d   :  { %v4574_v2 = vpack.c.b16 %v4573_v10, %v4572_v23  ;;  %7592 = vrcp.f32 %v4406_v39  ;;  %v6907_v10 = vpack.i.bf16 %v11314_v27, %v11313_v54 }
 0xe3e   :  { %4768 = vrot.lane.b32.xlu1 %v7968_v25, %s7766_s15 }
 0xe3f   :  { %6799 = vmatmul.msk.bf16.vlgmr.msra.gmra.mxu0 %vm153_vm0, %v4574_v2 }
 0xe40   :  { %4792 = vrot.lane.b32.xlu0 %v11300_v24, %s7766_s15 }
 0xe43   :  { %v7593_v58 = vpop.eup %7592 }
 0xe44   :  { %v4409_v17 = vpop.xlane.xlu1 %4408  ;;  %4816 = vrot.lane.b32.xlu2 %v11294_v45, %s7766_s15  ;;  %v4448_v42 = vmul.f32 %v7593_v58, %v9927_v56 }
 0xe45   :  { %7594 = vrcp.f32 %v4409_v17 }
 0xe46   :  { %4840 = vrot.lane.b32.xlu1 %v8011_v16, %s7766_s15  ;;  %v4464_v7 = vpack.c.bf16 %v4448_v42, %v4448_v42 }
 0xe48   :  { %4790 = vrot.lane.b32.xlu0 %v7985_v1, %s7766_s15  ;;  %v4597_v16 = vunpack.c.l.b16 %v4464_v7  ;;  %v11315_v7 = vld [vmem:[#allocation79_spill] sm:$0xff] }
 0xe4b   :  { %v7595_v25 = vpop.eup %7594 }
 0xe4c   :  { %v4449_v20 = vmul.f32 %v7595_v25, %v9931_v5  ;;  %4814 = vrot.lane.b32.xlu2 %v8004_v6, %s7766_s15  ;;  %v11301_v6 = vld [vmem:[#allocation77_spill] sm:$0xff] }
 0xe4e   :  { %v4465_v15 = vpack.c.bf16 %v4449_v20, %v4449_v20  ;;  %5109 = vrot.lane.b32.xlu1 %v8128_v63, %s7766_s15  ;;  %v11302_v63 = vld [vmem:[#allocation78_spill] sm:$0xff]  ;;  %v11316_v20 = vld [vmem:[#allocation80_spill] sm:$0xff] }
 0xe4f   :  { %6803 = vmatmul.msk.bf16.vlgmr.msrb.gmra.mxu0 %vm519_vm1, %v9860_v49  ;;  %v6897_v49 = vpack.i.bf16 %v11302_v63, %v11301_v6 }
 0xe50   :  { %v4598_v45 = vunpack.c.l.b16 %v4465_v15  ;;  %4838 = vrot.lane.b32.xlu0 %v8015_v60, %s7766_s15  ;;  %v6902_v60 = vpack.i.bf16 %v9748_v13, %v9742_v19  ;;  %v11307_v13 = vld [vmem:[#allocation29_spill] sm:$0xff]  ;;  %v6922_v15 = vpack.i.bf16 %v11316_v20, %v11315_v7 }
 0xe52   :  { %v4599_v1 = vpack.c.b16 %v4598_v45, %v4597_v16 }
 0xe54   :  { %6800 = vmatmul.msk.bf16.vlgmr.msrb.gmra.mxu1 %vm153_vm0, %v4599_v1  ;;  %5084 = vrot.lane.b32.xlu2 %v8114_v36, %s7766_s15  ;;  %v11304_v36 = vld [vmem:[#allocation65_spill] sm:$0xff] }
 0xe56   :  { %5184 = vrot.lane.b32.xlu1 %v8186_v47, %s7766_s15 }
 0xe58   :  { %5059 = vrot.lane.b32.xlu0 %v8100_v55, %s7766_s15  ;;  %v11303_v55 = vld [vmem:[#allocation63_spill] sm:$0xff] }
 0xe59   :  { %v6917_v47 = vpack.i.bf16 %v11304_v36, %v11303_v55 }
 0xe5c   :  { %5209 = vrot.lane.b32.xlu2 %v8201_v62, %s7766_s15  ;;  %v11306_v62 = vld [vmem:[#allocation52_spill] sm:$0xff] }
 0xe5e   :  { %6898 = vrot.lane.b32.xlu1 %v6897_v49, %s7767_s16 }
 0xe60   :  { %5134 = vrot.lane.b32.xlu0 %v8147_v59, %s7766_s15  ;;  %v11305_v59 = vld [vmem:[#allocation50_spill] sm:$0xff] }
 0xe61   :  { %v6937_v19 = vpack.i.bf16 %v11306_v62, %v11305_v59  ;;  %v11317_v62 = vld [vmem:[#allocation49_spill] sm:$0xff] }
 0xe64   :  { %6804 = vmatmul.msk.bf16.vlgmr.msra.gmra.mxu1 %vm519_vm1, %v9828_v57  ;;  %6903 = vrot.lane.b32.xlu2 %v6902_v60, %s7768_s17  ;;  %v11308_v57 = vld [vmem:[#allocation30_spill] sm:$0xff] }
 0xe65   :  { %v6882_v56 = vpack.i.bf16 %v11308_v57, %v11307_v13 }
 0xe68   :  { %5159 = vrot.lane.b32.xlu0 %v8167_v53, %s7766_s15  ;;  %v4341_v53 = vsub.f32 %v9898_v32, %v4325_v12 }
 0xe6a   :  { %v4372_v5 = vmul.f32 1.442695, %v4341_v53 }
 0xe6c   :  { %6918 = vrot.lane.b32.xlu2 %v6917_v47, %s7769_s18  ;;  %7596 = vpow2.f32 %v4372_v5 }
 0xe70   :  { %5234 = vrot.lane.b32.xlu0 %v8218_v41, %s7766_s15 }
 0xe72   :  { %v10045_v41 = vpop.eup %7596 }
 0xe73   :  { %v4419_v32 = vsel %vm153_vm0, %v10045_v41, 0.0 }
 0xe74   :  { %6938 = vrot.lane.b32.xlu2 %v6937_v19, %s7770_s19  ;;  %v11318_v19 = vld [vmem:[#allocation51_spill] sm:$0xff] }
 0xe75   :  { %v6912_v13 = vpack.i.bf16 %v11318_v19, %v11317_v62 }
 0xe78   :  { %6883 = vrot.lane.b32.xlu0 %v6882_v56, %s7758_s22 }
 0xe7f   :  { %v4388_v50 = vpop.xlane.xlu2 %4387 }
 0xe80   :  { %6888 = vrot.lane.b32.xlu0 %v6887_v14, %s7770_s19  ;;  %7598 = vrcp.f32 %v4388_v50 }
 0xe86   :  { %v7599_v35 = vpop.eup %7598 }
 0xe87   :  { %v4391_v0 = vpop.xlane.xlu0 %4390  ;;  %v4442_v43 = vmul.f32 %v7599_v35, %v9937_v30 }
 0xe88   :  { %7600 = vrcp.f32 %v4391_v0  ;;  %4420 = vadd.xlane.f32.xlu1 %v4419_v32  ;;  %6893 = vrot.lane.b32.xlu0 %v6892_v22, %s7769_s18  ;;  %v11319_v0 = vld [vmem:[#allocation34_spill] sm:$0xff]  ;;  %v11320_v32 = vld [vmem:[#allocation36_spill] sm:$0xff] }
 0xe89   :  { %v4458_v23 = vpack.c.bf16 %v4442_v43, %v4442_v43  ;;  %v6932_v35 = vpack.i.bf16 %v11320_v32, %v11319_v0 }
 0xe8b   :  { %v4522_v58 = vunpack.c.l.b16 %v4458_v23 }
 0xe8e   :  { %v7601_v29 = vpop.eup %7600 }
 0xe8f   :  { %v4443_v12 = vmul.f32 %v7601_v29, %v9944_v48  ;;  %v4397_v39 = vpop.xlane.xlu0 %4396  ;;  %v4394_v2 = vpop.xlane.xlu2 %4393  ;;  %v4726_v48 = vsel %vm519_vm1, %v9823_v38, 0 }
 0xe90   :  { %7602 = vrcp.f32 %v4397_v39  ;;  %v4412_v24 = vpop.xlane.xlu1 %4411  ;;  %6908 = vrot.lane.b32.xlu0 %v6907_v10, %s7758_s22 }
 0xe91   :  { %v4459_v17 = vpack.c.bf16 %v4443_v12, %v4443_v12  ;;  %7604 = vrcp.f32 %v4394_v2 }
 0xe92   :  { %7606 = vrcp.f32 %v4412_v24 }
 0xe93   :  { %v4523_v42 = vunpack.c.l.b16 %v4459_v17 }
 0xe95   :  { %v4524_v25 = vpack.c.b16 %v4523_v42, %v4522_v58 }
 0xe96   :  { %v7603_v30 = vpop.eup %7602 }
 0xe97   :  { %v7605_v16 = vpop.eup %7604  ;;  %v4445_v45 = vmul.f32 %v7603_v30, %v9949_v31  ;;  %6797 = vmatmul.msk.bf16.vlgmr.msra.gmra.mxu2 %vm153_vm0, %v4524_v25  ;;  %v10063_v1 = vpop.permute.xlu2 %4742 }
 0xe98   :  { %v4444_v6 = vmul.f32 %v7605_v16, %v9952_v8  ;;  %4735 = vmatpush.bf16.xpose.msra.mxu2 %v4726_v48  ;;  %v4415_v63 = vpop.xlane.xlu1 %4414  ;;  %6923 = vrot.lane.b32.xlu0 %v6922_v15, %s7767_s16  ;;  %v7607_v49 = vpop.eup %7606 }
 0xe99   :  { %v4461_v60 = vpack.c.bf16 %v4445_v45, %v4445_v45  ;;  %7608 = vrcp.f32 %v4415_v63  ;;  %v4450_v38 = vmul.f32 %v7607_v49, %v9954_v46  ;;  %v10073_v53 = vpop.xlane.xlu0 %4417  ;;  %v6927_v46 = vpack.i.bf16 %v9786_v52, %v9784_v11 }
 0xe9a   :  { %v4460_v55 = vpack.c.bf16 %v4444_v6, %v4444_v6  ;;  %7610 = vrcp.f32 %v10073_v53 }
 0xe9b   :  { %v4548_v36 = vunpack.c.l.b16 %v4461_v60  ;;  %v4466_v56 = vpack.c.bf16 %v4450_v38, %v4450_v38 }
 0xe9c   :  { %v4547_v47 = vunpack.c.l.b16 %v4460_v55 }
 0xe9d   :  { %v4622_v9 = vunpack.c.l.b16 %v4466_v56 }
 0xe9e   :  { %v4549_v59 = vpack.c.b16 %v4548_v36, %v4547_v47 }
 0xe9f   :  { %v7609_v31 = vpop.eup %7608  ;;  %v4767_v57 = vpop.permute.xlu2 %4766 }
 0xea0   :  { %v4451_v8 = vmul.f32 %v7609_v31, %v9964_v26  ;;  %6798 = vmatmul.msk.bf16.vlgmr.msrb.gmra.mxu3 %vm153_vm0, %v4549_v59  ;;  %v7611_v19 = vpop.eup %7610 }
 0xea1   :  { %6913 = vrot.lane.b32.xlu1 %v6912_v13, %s7770_s19  ;;  %v4452_v13 = vmul.f32 %v7611_v19, %v9962_v18 }
 0xea2   :  { %v4467_v5 = vpack.c.bf16 %v4451_v8, %v4451_v8 }
 0xea3   :  { %v4468_v56 = vpack.c.bf16 %v4452_v13, %v4452_v13 }
 0xea4   :  { %v4623_v28 = vunpack.c.l.b16 %v4467_v5 }
 0xea6   :  { %v4624_v14 = vpack.c.b16 %v4623_v28, %v4622_v9  ;;  %v4647_v9 = vunpack.c.l.b16 %v4468_v56 }
 0xea7   :  { %v4817_v50 = vpop.permute.xlu2 %4816 }
 0xea8   :  { %v4822_v3 = vsel %vm519_vm1, %v4817_v50, 0  ;;  %6801 = vmatmul.msk.bf16.vlgmr.msrb.gmra.mxu2 %vm153_vm0, %v4624_v14 }
 0xea9   :  { %6928 = vrot.lane.b32.xlu1 %v6927_v46, %s7768_s17  ;;  %4831 = vmatpush.bf16.xpose.msrb.mxu2 %v4822_v3 }
 0xeaa   :  { %v4745_v26 = vpop.permute.xlu0 %4744 }
 0xeab   :  { %v4750_v4 = vsel %vm519_vm1, %v4745_v26, 0 }
 0xeac   :  { %v4490_v22 = vpop.f32.mrf.mxu0  ;;  %4759 = vmatpush.bf16.xpose.msrb.mxu3 %v4750_v4 }
 0xeaf   :  { %v4815_v43 = vpop.permute.xlu2 %4814 }
 0xeb0   :  { %v4769_v29 = vpop.permute.xlu1 %4768 }
 0xeb1   :  { %v4774_v11 = vsel %vm519_vm1, %v4769_v29, 0  ;;  %6933 = vrot.lane.b32.xlu1 %v6932_v35, %s7758_s22 }
 0xeb2   :  { %4783 = vmatpush.bf16.xpose.msra.mxu0 %v4774_v11  ;;  %v4793_v52 = vpop.permute.xlu0 %4792 }
 0xeb3   :  { %v4798_v54 = vsel %vm519_vm1, %v4793_v52, 0 }
 0xeb4   :  { %v4492_v27 = vpop.f32.mrf.mxu0  ;;  %v4515_v10 = vpop.f32.mrf.mxu1  ;;  %4807 = vmatpush.bf16.xpose.msrb.mxu1 %v4798_v54 }
 0xeb5   :  { %v6942_v23 = vpack.i.bf16 %v4492_v27, %v4490_v22 }
 0xeb7   :  { %6943 = vrot.lane.b32.xlu0 %v6942_v23, %s7771_s20  ;;  %v5085_v12 = vpop.permute.xlu2 %5084 }
 0xeb8   :  { %6805 = vmatmul.msk.bf16.vlgmr.msra.gmra.mxu2 %vm519_vm1, %v9875_v40  ;;  %v4841_v39 = vpop.permute.xlu1 %4840 }
 0xeb9   :  { %6807 = vmatmul.msk.bf16.vlgmr.msra.gmra.mxu0 %vm519_vm1, %v4767_v57  ;;  %v4846_v46 = vsel %vm519_vm1, %v4841_v39, 0 }
 0xeba   :  { %v4791_v2 = vpop.permute.xlu0 %4790 }
 0xebb   :  { %6808 = vmatmul.msk.bf16.vlgmr.msrb.gmra.mxu1 %vm519_vm1, %v4791_v2 }
 0xebc   :  { %5097 = vmatpush.bf16.msra.mxu1 %v5085_v12  ;;  %v4517_v24 = vpop.f32.mrf.mxu1  ;;  %v10091_v17 = vpop.f32.mrf.mxu0 }
 0xebd   :  { %v6947_v58 = vpack.i.bf16 %v4517_v24, %v4515_v10 }
 0xebf   :  { %6948 = vrot.lane.b32.xlu2 %v6947_v58, %s7771_s20  ;;  %v5210_v7 = vpop.permute.xlu2 %5209 }
 0xec0   :  { %v5110_v42 = vpop.permute.xlu1 %5109 }
 0xec1   :  { %5122 = vmatpush.bf16.msra.mxu2 %v5110_v42 }
 0xec2   :  { %v4839_v25 = vpop.permute.xlu0 %4838 }
 0xec4   :  { %v10094_v30 = vpop.f32.mrf.mxu0 }
 0xec7   :  { %v10141_v0 = vpop.permute.xlu2 %6903 }
 0xec8   :  { %6809 = vmatmul.msk.bf16.vlgmr.msrb.gmra.mxu2 %vm519_vm1, %v4815_v43  ;;  %v5185_v40 = vpop.permute.xlu1 %5184 }
 0xec9   :  { %5222 = vmatpush.bf16.msrb.mxu2 %v5210_v7  ;;  %5197 = vmatpush.bf16.msrb.mxu1 %v5185_v40 }
 0xeca   :  { %v5060_v20 = vpop.permute.xlu0 %5059 }
 0xecb   :  { %5072 = vmatpush.bf16.msrb.mxu0 %v5060_v20 }
 0xecc   :  { %v10097_v15 = vpop.f32.mrf.mxu0 }
 0xecd   :  { %v4862_v47 = vsel %vm153_vm0, %v10097_v15, -inf }
 0xecf   :  { %v10156_v54 = vpop.permute.xlu2 %6918 }
 0xed0   :  { %v10119_v31 = vpop.permute.xlu1 %6898 }
 0xed1   :  { %v10099_v16 = vpop.f32.mrf.mxu1 }
 0xed2   :  { %v5135_v48 = vpop.permute.xlu0 %5134 }
 0xed4   :  { %v10101_v45 = vpop.f32.mrf.mxu0 }
 0xed5   :  { %v4865_v60 = vsel %vm153_vm0, %v10101_v45, -inf }
 0xed7   :  { %v10166_v39 = vpop.permute.xlu2 %6938 }
 0xed9   :  { %v10103_v6 = vpop.f32.mrf.mxu1 }
 0xeda   :  { %v7057_v63 = vpack.i.bf16 %v10103_v6, %v10099_v16  ;;  %v5160_v49 = vpop.permute.xlu0 %5159 }
 0xedb   :  { %4866 = vmax.xlane.f32.xlu1 %v4865_v60  ;;  %5172 = vmatpush.bf16.msra.mxu0 %v5160_v49  ;;  %v6962_v49 = vpack.i.bf16 %v9846_v34, %v9844_v21 }
 0xee1   :  { %v10109_v55 = vpop.f32.mrf.mxu1 }
 0xee2   :  { %v4868_v36 = vsel %vm153_vm0, %v10109_v55, -inf  ;;  %v5235_v53 = vpop.permute.xlu0 %5234 }
 0xee3   :  { %4869 = vmax.xlane.f32.xlu0 %v4868_v36 }
 0xee8   :  { %4863 = vmax.xlane.f32.xlu2 %v4862_v47 }
 0xee9   :  { %v10115_v38 = vpop.f32.mrf.mxu1 }
 0xeea   :  { %v4871_v59 = vsel %vm153_vm0, %v10115_v38, -inf }
 0xef0   :  { %4872 = vmax.xlane.f32.xlu2 %v4871_v59 }
 0xefb   :  { %v4421_v62 = vpop.xlane.xlu1 %4420 }
 0xefc   :  { %7612 = vrcp.f32 %v4421_v62 }
 0xf02   :  { %v7613_v57 = vpop.eup %7612 }
 0xf03   :  { %v4453_v8 = vmul.f32 %v7613_v57, %v10045_v41 }
 0xf05   :  { %v4469_v5 = vpack.c.bf16 %v4453_v8, %v4453_v8  ;;  %v10206_v8 = vpop.permute.xlu0 %6883 }
 0xf07   :  { %v4648_v28 = vunpack.c.l.b16 %v4469_v5 }
 0xf09   :  { %v4649_v14 = vpack.c.b16 %v4648_v28, %v4647_v9 }
 0xf0b   :  { %6802 = vmatmul.msk.bf16.vlgmr.msra.gmra.mxu3 %vm153_vm0, %v4649_v14 }
 0xf0c   :  { %4855 = vmatpush.bf16.xpose.msra.mxu3 %v4846_v46 }
 0xf13   :  { %v10186_v36 = vpop.permute.xlu1 %6913 }
 0xf19   :  { %v10172_v58 = vpop.permute.xlu2 %6948 }
 0xf1a   :  { %v10126_v50 = vpop.f32.mrf.mxu2 }
 0xf1b   :  { %6806 = vmatmul.msk.bf16.vlgmr.msrb.gmra.mxu3 %vm519_vm1, %v10063_v1  ;;  %v10190_v47 = vpop.permute.xlu1 %6928 }
 0xf1c   :  { %5147 = vmatpush.bf16.msrb.mxu3 %v5135_v48 }
 0xf22   :  { %v10130_v18 = vpop.f32.mrf.mxu2 }
 0xf23   :  { %v6967_v41 = vpack.i.bf16 %v10130_v18, %v10126_v50  ;;  %v10179_v48 = vpop.f32.mrf.mxu3  ;;  %v10196_v19 = vpop.permute.xlu1 %6933 }
 0xf2b   :  { %v10134_v3 = vpop.f32.mrf.mxu2  ;;  %6810 = vmatmul.msk.bf16.vlgmr.msra.gmra.mxu3 %vm519_vm1, %v4839_v25  ;;  %v10184_v60 = vpop.f32.mrf.mxu3 }
 0xf2c   :  { %5247 = vmatpush.bf16.msra.mxu3 %v5235_v53 }
 0xf33   :  { %v10137_v26 = vpop.f32.mrf.mxu2 }
 0xf36   :  { %v4785_v22 = vpop.f32.mrf.mxu0 }
 0xf37   :  { %v4886_v1 = vsel %vm153_vm0, %v4785_v22, -inf }
 0xf38   :  { %4887 = vmax.xlane.f32.xlu1 %v4886_v1  ;;  %v10144_v32 = vpop.f32.mrf.mxu1 }
 0xf39   :  { %v4892_v29 = vsel %vm153_vm0, %v10144_v32, -inf }
 0xf3b   :  { %v10146_v35 = vpop.f32.mrf.mxu2 }
 0xf3c   :  { %v4874_v23 = vsel %vm153_vm0, %v10146_v35, -inf }
 0xf3e   :  { %v10148_v43 = vpop.f32.mrf.mxu0 }
 0xf3f   :  { %v4889_v11 = vsel %vm153_vm0, %v10148_v43, -inf }
 0xf40   :  { %4893 = vmax.xlane.f32.xlu1 %v4892_v29  ;;  %4890 = vmax.xlane.f32.xlu2 %v4889_v11  ;;  %v10154_v52 = vpop.f32.mrf.mxu1 }
 0xf41   :  { %v4895_v27 = vsel %vm153_vm0, %v10154_v52, -inf }
 0xf42   :  { %4896 = vmax.xlane.f32.xlu0 %v4895_v27 }
 0xf43   :  { %v10160_v10 = vpop.f32.mrf.mxu2 }
 0xf44   :  { %v4877_v12 = vsel %vm153_vm0, %v10160_v10, -inf }
 0xf48   :  { %4875 = vmax.xlane.f32.xlu1 %v4874_v23  ;;  %4878 = vmax.xlane.f32.xlu2 %v4877_v12  ;;  %v10216_v12 = vpop.permute.xlu0 %6888 }
 0xf4b   :  { %v10168_v2 = vpop.f32.mrf.mxu2 }
 0xf4c   :  { %v4898_v24 = vsel %vm153_vm0, %v10168_v2, -inf }
 0xf4e   :  { %v4867_v34 = vpop.xlane.xlu1 %4866 }
 0xf4f   :  { %v4911_v46 = vsub.f32 %v10101_v45, %v4867_v34 }
 0xf50   :  { %4899 = vmax.xlane.f32.xlu1 %v4898_v24 }
 0xf51   :  { %v4928_v27 = vmul.f32 1.442695, %v4911_v46 }
 0xf53   :  { %v10208_v28 = vpop.f32.mrf.mxu2 }
 0xf54   :  { %v4901_v11 = vsel %vm153_vm0, %v10208_v28, -inf }
 0xf5b   :  { %v4864_v42 = vpop.xlane.xlu2 %4863 }
 0xf5c   :  { %v4910_v25 = vsub.f32 %v10097_v15, %v4864_v42 }
 0xf5e   :  { %v4926_v7 = vmul.f32 1.442695, %v4910_v25 }
 0xf60   :  { %7614 = vpow2.f32 %v4926_v7 }
 0xf63   :  { %v4873_v5 = vpop.xlane.xlu2 %4872 }
 0xf64   :  { %v4913_v53 = vsub.f32 %v10115_v38, %v4873_v5 }
 0xf66   :  { %v10175_v40 = vpop.eup %7614  ;;  %v4932_v23 = vmul.f32 1.442695, %v4913_v53 }
 0xf67   :  { %v4958_v20 = vsel %vm153_vm0, %v10175_v40, 0.0 }
 0xf68   :  { %4959 = vadd.xlane.f32.xlu2 %v4958_v20 }
 0xf80   :  { %6963 = vrot.lane.b32.xlu2 %v6962_v49, %s7768_s17 }
 0xf8e   :  { %v10188_v15 = vpop.f32.mrf.mxu3 }
 0xf96   :  { %v10192_v59 = vpop.f32.mrf.mxu3 }
 0xf9e   :  { %v10198_v13 = vpop.f32.mrf.mxu3 }
 0xf9f   :  { %v4880_v21 = vsel %vm153_vm0, %v10198_v13, -inf }
 0xfa0   :  { %4881 = vmax.xlane.f32.xlu0 %v4880_v21 }
 0xfa6   :  { %v10202_v57 = vpop.f32.mrf.mxu3 }
 0xfa7   :  { %v4883_v56 = vsel %vm153_vm0, %v10202_v57, -inf }
 0xfa8   :  { %4884 = vmax.xlane.f32.xlu1 %v4883_v56  ;;  %v10233_v56 = vpop.permute.xlu0 %6893 }
 0xfab   :  { %v4888_v9 = vpop.xlane.xlu1 %4887 }
 0xfac   :  { %v4918_v14 = vsub.f32 %v4785_v22, %v4888_v9 }
 0xfae   :  { %v4942_v1 = vmul.f32 1.442695, %v4918_v14  ;;  %v10212_v29 = vpop.f32.mrf.mxu3 }
 0xfaf   :  { %v4904_v22 = vsel %vm153_vm0, %v10212_v29, -inf }
 0xfb0   :  { %7616 = vpow2.f32 %v4942_v1  ;;  %4902 = vmax.xlane.f32.xlu1 %v4901_v11  ;;  %v10242_v1 = vpop.permute.xlu0 %6908 }
 0xfb1   :  { %7618 = vpow2.f32 %v4928_v27 }
 0xfb2   :  { %7620 = vpow2.f32 %v4932_v23 }
 0xfb3   :  { %v4891_v24 = vpop.xlane.xlu2 %4890  ;;  %v4894_v34 = vpop.xlane.xlu1 %4893 }
 0xfb4   :  { %v4919_v38 = vsub.f32 %v10148_v43, %v4891_v24  ;;  %v4920_v43 = vsub.f32 %v10144_v32, %v4894_v34  ;;  %v11321_v24 = vld [vmem:[#allocation85_spill] sm:$0xff] }
 0xfb6   :  { %v10218_v42 = vpop.eup %7616  ;;  %v10220_v45 = vpop.f32.mrf.mxu3  ;;  %v4944_v49 = vmul.f32 1.442695, %v4919_v38  ;;  %v4946_v14 = vmul.f32 1.442695, %v4920_v43  ;;  %v11322_v38 = vld [vmem:[#allocation86_spill] sm:$0xff] }
 0xfb7   :  { %v4907_v25 = vsel %vm153_vm0, %v10220_v45, -inf  ;;  %v4982_v7 = vsel %vm153_vm0, %v10218_v42, 0.0  ;;  %v10229_v20 = vpop.eup %7618 }
 0xfb8   :  { %4905 = vmax.xlane.f32.xlu1 %v4904_v22  ;;  %4908 = vmax.xlane.f32.xlu0 %v4907_v25  ;;  %v10231_v21 = vpop.eup %7620  ;;  %7622 = vpow2.f32 %v4944_v49  ;;  %v4961_v5 = vsel %vm153_vm0, %v10229_v20, 0.0  ;;  %v6957_v22 = vpack.i.bf16 %v11322_v38, %v11321_v24  ;;  %v11324_v49 = vld [vmem:[#allocation70_spill] sm:$0xff] }
 0xfb9   :  { %4983 = vadd.xlane.f32.xlu2 %v4982_v7  ;;  %v4967_v9 = vsel %vm153_vm0, %v10231_v21, 0.0  ;;  %7624 = vpow2.f32 %v4946_v14  ;;  %v10253_v7 = vpop.permute.xlu0 %6923 }
 0xfbb   :  { %v4879_v46 = vpop.xlane.xlu2 %4878 }
 0xfbc   :  { %v4915_v11 = vsub.f32 %v10160_v10, %v4879_v46  ;;  %v11323_v10 = vld [vmem:[#allocation69_spill] sm:$0xff] }
 0xfbd   :  { %v6952_v34 = vpack.i.bf16 %v11324_v49, %v11323_v10 }
 0xfbe   :  { %v10240_v53 = vpop.eup %7622  ;;  %v4936_v27 = vmul.f32 1.442695, %v4915_v11 }
 0xfbf   :  { %v4985_v32 = vsel %vm153_vm0, %v10240_v53, 0.0  ;;  %v10247_v23 = vpop.eup %7624 }
 0xfc0   :  { %4962 = vadd.xlane.f32.xlu0 %v4961_v5  ;;  %7626 = vpow2.f32 %v4936_v27  ;;  %v4988_v25 = vsel %vm153_vm0, %v10247_v23, 0.0  ;;  %v4876_v27 = vpop.xlane.xlu1 %4875 }
 0xfc1   :  { %4968 = vadd.xlane.f32.xlu2 %v4967_v9  ;;  %v10263_v9 = vpop.permute.xlu0 %6943 }
 0xfc6   :  { %v10259_v43 = vpop.eup %7626 }
 0xfc7   :  { %v4973_v5 = vsel %vm153_vm0, %v10259_v43, 0.0 }
 0xfc8   :  { %v4900_v10 = vpop.xlane.xlu1 %4899 }
 0xfc9   :  { %4986 = vadd.xlane.f32.xlu2 %v4985_v32  ;;  %v4870_v14 = vpop.xlane.xlu0 %4869 }
 0xfca   :  { %v4912_v46 = vsub.f32 %v10109_v55, %v4870_v14 }
 0xfcc   :  { %v4930_v24 = vmul.f32 1.442695, %v4912_v46 }
 0xfce   :  { %7628 = vpow2.f32 %v4930_v24 }
 0xfd1   :  { %4989 = vadd.xlane.f32.xlu2 %v4988_v25  ;;  %6958 = vrot.lane.b32.xlu1 %v6957_v22, %s7767_s16  ;;  %v4897_v11 = vpop.xlane.xlu0 %4896  ;;  %v4914_v22 = vsub.f32 %v10146_v35, %v4876_v27 }
 0xfd2   :  { %v4921_v32 = vsub.f32 %v10154_v52, %v4897_v11 }
 0xfd3   :  { %v4934_v25 = vmul.f32 1.442695, %v4914_v22 }
 0xfd4   :  { %6953 = vrot.lane.b32.xlu0 %v6952_v34, %s7769_s18  ;;  %v4948_v38 = vmul.f32 1.442695, %v4921_v32  ;;  %v10268_v49 = vpop.eup %7628  ;;  %v4922_v34 = vsub.f32 %v10168_v2, %v4900_v10 }
 0xfd5   :  { %v4964_v55 = vsel %vm153_vm0, %v10268_v49, 0.0 }
 0xfd6   :  { %7630 = vpow2.f32 %v4948_v38  ;;  %v4950_v52 = vmul.f32 1.442695, %v4922_v34 }
 0xfd7   :  { %7632 = vpow2.f32 %v4934_v25 }
 0xfd8   :  { %7634 = vpow2.f32 %v4950_v52  ;;  %v11325_v52 = vld [vmem:[#allocation73_spill] sm:$0xff] }
 0xfd9   :  { %4974 = vadd.xlane.f32.xlu2 %v4973_v5 }
 0xfdb   :  { %v4960_v38 = vpop.xlane.xlu2 %4959 }
 0xfdc   :  { %v10271_v5 = vpop.eup %7630 }
 0xfdd   :  { %v4991_v14 = vsel %vm153_vm0, %v10271_v5, 0.0  ;;  %v10277_v35 = vpop.eup %7632 }
 0xfde   :  { %v4970_v46 = vsel %vm153_vm0, %v10277_v35, 0.0  ;;  %v10281_v11 = vpop.eup %7634 }
 0xfdf   :  { %v4994_v2 = vsel %vm153_vm0, %v10281_v11, 0.0 }
 0xffb   :  { %4965 = vadd.xlane.f32.xlu1 %v4964_v55 }
 0xffe   :  { %4992 = vadd.xlane.f32.xlu0 %v4991_v14  ;;  %v11326_v14 = vld [vmem:[#allocation74_spill] sm:$0xff] }
0x1003   :  { %4971 = vadd.xlane.f32.xlu1 %v4970_v46  ;;  %v6982_v46 = vpack.i.bf16 %v11326_v14, %v11325_v52 }
0x100b   :  { %4995 = vadd.xlane.f32.xlu1 %v4994_v2  ;;  %v10293_v2 = vpop.permute.xlu2 %6963 }
0x1013   :  { %v4882_v32 = vpop.xlane.xlu0 %4881 }
0x1014   :  { %v4916_v27 = vsub.f32 %v10198_v13, %v4882_v32  ;;  %v6997_v32 = vpack.i.bf16 %v10184_v60, %v10179_v48 }
0x1016   :  { %v4938_v24 = vmul.f32 1.442695, %v4916_v27 }
0x1018   :  { %7636 = vpow2.f32 %v4938_v24 }
0x101b   :  { %v4885_v22 = vpop.xlane.xlu1 %4884 }
0x101c   :  { %v4917_v25 = vsub.f32 %v10202_v57, %v4885_v22  ;;  %v11327_v22 = vld [vmem:[#allocation47_spill] sm:$0xff] }
0x101e   :  { %v10287_v10 = vpop.eup %7636  ;;  %v4940_v34 = vmul.f32 1.442695, %v4917_v25  ;;  %v11328_v25 = vld [vmem:[#allocation48_spill] sm:$0xff] }
0x101f   :  { %v4976_v55 = vsel %vm153_vm0, %v10287_v10, 0.0 }
0x1020   :  { %7638 = vpow2.f32 %v4940_v34  ;;  %4977 = vadd.xlane.f32.xlu2 %v4976_v55  ;;  %v7007_v34 = vpack.i.bf16 %v11328_v25, %v11327_v22 }
0x1021   :  { %7640 = vrcp.f32 %v4960_v38  ;;  %v7022_v38 = vpack.i.bf16 %v9758_v61, %v9754_v37  ;;  %v11333_v61 = vld [vmem:[#allocation37_spill] sm:$0xff] }
0x1024   :  { %6983 = vrot.lane.b32.xlu1 %v6982_v46, %s7769_s18  ;;  %v11329_v46 = vld [vmem:[#allocation40_spill] sm:$0xff] }
0x1026   :  { %v10296_v13 = vpop.eup %7638 }
0x1027   :  { %v4979_v57 = vsel %vm153_vm0, %v10296_v13, 0.0  ;;  %v7641_v52 = vpop.eup %7640 }
0x1028   :  { %4980 = vadd.xlane.f32.xlu0 %v4979_v57  ;;  %v11330_v57 = vld [vmem:[#allocation42_spill] sm:$0xff]  ;;  %v5022_v48 = vmul.f32 %v7641_v52, %v10175_v40  ;;  %v11331_v40 = vld [vmem:[#allocation89_spill] sm:$0xff] }
0x1029   :  { %v6972_v62 = vpack.i.bf16 %v11330_v57, %v11329_v46 }
0x102b   :  { %v10302_v27 = vpop.xlane.xlu0 %4908 }
0x102c   :  { %v4984_v24 = vpop.xlane.xlu2 %4983  ;;  %6998 = vrot.lane.b32.xlu1 %v6997_v32, %s7771_s20  ;;  %v5038_v32 = vpack.c.bf16 %v5022_v48, %v5022_v48  ;;  %v11335_v48 = vld [vmem:[#allocation56_spill] sm:$0xff] }
0x102e   :  { %v5056_v52 = vunpack.c.l.b16 %v5038_v32 }
0x1033   :  { %v4963_v55 = vpop.xlane.xlu0 %4962 }
0x1034   :  { %7642 = vrcp.f32 %v4963_v55  ;;  %v4969_v14 = vpop.xlane.xlu2 %4968  ;;  %7008 = vrot.lane.b32.xlu1 %v7007_v34, %s7770_s19  ;;  %v11332_v55 = vld [vmem:[#allocation90_spill] sm:$0xff] }
0x1038   :  { %6973 = vrot.lane.b32.xlu2 %v6972_v62, %s7758_s22  ;;  %v6987_v62 = vpack.i.bf16 %v11332_v55, %v11331_v40  ;;  %v11340_v40 = vld [vmem:[#allocation84_spill] sm:$0xff] }
0x103a   :  { %v7643_v60 = vpop.eup %7642 }
0x103b   :  { %v5023_v22 = vmul.f32 %v7643_v60, %v10229_v20  ;;  %v11334_v20 = vld [vmem:[#allocation39_spill] sm:$0xff]  ;;  %v11336_v60 = vld [vmem:[#allocation58_spill] sm:$0xff] }
0x103c   :  { %v4987_v25 = vpop.xlane.xlu2 %4986  ;;  %7023 = vrot.lane.b32.xlu1 %v7022_v38, %s7768_s17  ;;  %6968 = vrot.lane.b32.xlu0 %v6967_v41, %s7771_s20  ;;  %v7032_v57 = vpack.i.bf16 %v11334_v20, %v11333_v61  ;;  %v6977_v38 = vpack.i.bf16 %v11336_v60, %v11335_v48  ;;  %v11337_v41 = vld [vmem:[#allocation64_spill] sm:$0xff]  ;;  %v11344_v48 = vld [vmem:[#allocation81_spill] sm:$0xff]  ;;  %v11345_v60 = vld [vmem:[#allocation82_spill] sm:$0xff] }
0x103d   :  { %v5039_v34 = vpack.c.bf16 %v5023_v22, %v5023_v22  ;;  %7644 = vrcp.f32 %v4987_v25  ;;  %v11343_v61 = vld [vmem:[#allocation32_spill] sm:$0xff] }
0x103e   :  { %7646 = vrcp.f32 %v4984_v24  ;;  %v11338_v24 = vld [vmem:[#allocation66_spill] sm:$0xff] }
0x103f   :  { %v5057_v46 = vunpack.c.l.b16 %v5039_v34  ;;  %v7012_v32 = vpack.i.bf16 %v11338_v24, %v11337_v41  ;;  %v11339_v34 = vld [vmem:[#allocation83_spill] sm:$0xff]  ;;  %7648 = vrcp.f32 %v4969_v14 }
0x1040   :  { %6988 = vrot.lane.b32.xlu2 %v6987_v62, %s7767_s16  ;;  %v7047_v55 = vpack.i.bf16 %v11340_v40, %v11339_v34 }
0x1041   :  { %v5058_v37 = vpack.c.b16 %v5057_v46, %v5056_v52  ;;  %v11341_v52 = vpack.i.bf16 %v9832_v51, %v9830_v44  ;;  %v7017_v44 = vpack.i.bf16 %v11345_v60, %v11344_v48 }
0x1043   :  { %v7645_v4 = vpop.eup %7644  ;;  %6811 = vmatmul.msk.bf16.vlgmr.msrb.gmra.mxu0 %vm153_vm0, %v5058_v37  ;;  %v11342_v37 = vld [vmem:[#allocation31_spill] sm:$0xff] }
0x1044   :  { %v7647_v50 = vpop.eup %7646  ;;  %7033 = vrot.lane.b32.xlu1 %v7032_v57, %s7758_s22  ;;  %6978 = vrot.lane.b32.xlu0 %v6977_v38, %s7770_s19  ;;  %v5031_v18 = vmul.f32 %v7645_v4, %v10240_v53  ;;  %v7027_v53 = vpack.i.bf16 %v10094_v30, %v10091_v17  ;;  %v7002_v20 = vpack.i.bf16 %v11343_v61, %v11342_v37  ;;  %v4903_v57 = vpop.xlane.xlu1 %4902  ;;  %v11346_v38 = vld [vmem:[#allocation67_spill] sm:$0xff]  ;;  %v11347_v17 = vld [vmem:[#allocation68_spill] sm:$0xff] }
0x1045   :  { %v5030_v22 = vmul.f32 %v7647_v50, %v10218_v42  ;;  %v7042_v30 = vpack.i.bf16 %v11347_v17, %v11346_v38  ;;  %v4923_v41 = vsub.f32 %v10208_v28, %v4903_v57  ;;  %v7649_v40 = vpop.eup %7648 }
0x1046   :  { %v5047_v25 = vpack.c.bf16 %v5031_v18, %v5031_v18  ;;  %v4990_v18 = vpop.xlane.xlu2 %4989 }
0x1047   :  { %v5046_v62 = vpack.c.bf16 %v5030_v22, %v5030_v22  ;;  %v4952_v22 = vmul.f32 1.442695, %v4923_v41 }
0x1048   :  { %7013 = vrot.lane.b32.xlu2 %v7012_v32, %s7769_s18  ;;  %v5157_v4 = vunpack.c.l.b16 %v5047_v25  ;;  %v10359_v25 = vpop.permute.xlu0 %6953 }
0x1049   :  { %v5156_v46 = vunpack.c.l.b16 %v5046_v62  ;;  %v11349_v62 = vld [vmem:[#allocation57_spill] sm:$0xff] }
0x104b   :  { %v5158_v42 = vpack.c.b16 %v5157_v4, %v5156_v46 }
0x104c   :  { %7048 = vrot.lane.b32.xlu1 %v7047_v55, %s7767_s16  ;;  %6993 = vrot.lane.b32.xlu0 %v11341_v52, %s7768_s17  ;;  %v4906_v51 = vpop.xlane.xlu1 %4905  ;;  %v11348_v55 = vld [vmem:[#allocation54_spill] sm:$0xff]  ;;  %v5025_v52 = vmul.f32 %v7649_v40, %v10231_v21 }
0x104d   :  { %v4924_v50 = vsub.f32 %v10212_v29, %v4906_v51  ;;  %v7067_v14 = vpack.i.bf16 %v11349_v62, %v11348_v55 }
0x104e   :  { %v4975_v29 = vpop.xlane.xlu2 %4974 }
0x104f   :  { %v4954_v32 = vmul.f32 1.442695, %v4924_v50 }
0x1050   :  { %7028 = vrot.lane.b32.xlu2 %v7027_v53, %s7771_s20 }
0x1051   :  { %7650 = vpow2.f32 %v4954_v32  ;;  %v11352_v32 = vld [vmem:[#allocation43_spill] sm:$0xff] }
0x1052   :  { %7652 = vpow2.f32 %v4952_v22 }
0x1053   :  { %6815 = vmatmul.msk.bf16.vlgmr.msra.gmra.mxu0 %vm153_vm0, %v5158_v42 }
0x1054   :  { %7003 = vrot.lane.b32.xlu0 %v7002_v20, %s7758_s22  ;;  %v10357_v24 = vpop.permute.xlu1 %6958 }
0x1057   :  { %v10365_v28 = vpop.eup %7650 }
0x1058   :  { %v10370_v53 = vpop.eup %7652  ;;  %v5000_v6 = vsel %vm153_vm0, %v10365_v28, 0.0 }
0x1059   :  { %v4997_v21 = vsel %vm153_vm0, %v10370_v53, 0.0 }
0x105c   :  { %7018 = vrot.lane.b32.xlu0 %v7017_v44, %s7767_s16 }
0x1064   :  { %7043 = vrot.lane.b32.xlu0 %v7042_v30, %s7769_s18 }
0x106c   :  { %7058 = vrot.lane.b32.xlu0 %v7057_v63, %s7771_s20  ;;  %v5041_v63 = vpack.c.bf16 %v5025_v52, %v5025_v52  ;;  %v11355_v52 = vld [vmem:[#allocation92_spill] sm:$0xff] }
0x106e   :  { %v4966_v34 = vpop.xlane.xlu1 %4965  ;;  %v5082_v20 = vunpack.c.l.b16 %v5041_v63  ;;  %v11357_v63 = vld [vmem:[#allocation72_spill] sm:$0xff] }
0x106f   :  { %7654 = vrcp.f32 %v4966_v34 }
0x1070   :  { %7656 = vrcp.f32 %v4975_v29 }
0x1071   :  { %v4993_v4 = vpop.xlane.xlu0 %4992 }
0x1072   :  { %7658 = vrcp.f32 %v4993_v4 }
0x1074   :  { %7068 = vrot.lane.b32.xlu0 %v7067_v14, %s7770_s19  ;;  %v11354_v14 = vld [vmem:[#allocation91_spill] sm:$0xff] }
0x1075   :  { %v7655_v16 = vpop.eup %7654  ;;  %v7107_v4 = vpack.i.bf16 %v11355_v52, %v11354_v14 }
0x1076   :  { %v5024_v46 = vmul.f32 %v7655_v16, %v10268_v49  ;;  %5001 = vadd.xlane.f32.xlu1 %v5000_v6  ;;  %v4972_v42 = vpop.xlane.xlu1 %4971  ;;  %v7657_v37 = vpop.eup %7656  ;;  %v11350_v49 = vld [vmem:[#allocation94_spill] sm:$0xff]  ;;  %v11356_v6 = vld [vmem:[#allocation71_spill] sm:$0xff] }
0x1077   :  { %7660 = vrcp.f32 %v4972_v42  ;;  %v5027_v57 = vmul.f32 %v7657_v37, %v10259_v43  ;;  %v11351_v51 = vpack.i.bf16 %v9852_v33, %v11350_v49  ;;  %v11353_v43 = vld [vmem:[#allocation44_spill] sm:$0xff]  ;;  %v11359_v42 = vld [vmem:[#allocation55_spill] sm:$0xff] }
0x1078   :  { %v5040_v61 = vpack.c.bf16 %v5024_v46, %v5024_v46  ;;  %7662 = vrcp.f32 %v4990_v18  ;;  %v7659_v60 = vpop.eup %7658  ;;  %v7092_v22 = vpack.i.bf16 %v11353_v43, %v11352_v32  ;;  %v11358_v46 = vld [vmem:[#allocation53_spill] sm:$0xff]  ;;  %v4925_v43 = vsub.f32 %v10220_v45, %v10302_v27 }
0x1079   :  { %4998 = vadd.xlane.f32.xlu2 %v4997_v21  ;;  %v5043_v17 = vpack.c.bf16 %v5027_v57, %v5027_v57  ;;  %v5033_v18 = vmul.f32 %v7659_v60, %v10271_v5  ;;  %v7037_v37 = vpack.i.bf16 %v11359_v42, %v11358_v46  ;;  %v11360_v21 = vpack.i.bf16 %v10137_v26, %v10134_v3  ;;  %v11362_v60 = vld [vmem:[#allocation60_spill] sm:$0xff] }
0x107a   :  { %v5081_v48 = vunpack.c.l.b16 %v5040_v61  ;;  %v11363_v26 = vld [vmem:[#allocation96_spill] sm:$0xff] }
0x107b   :  { %v5107_v34 = vunpack.c.l.b16 %v5043_v17  ;;  %v5049_v55 = vpack.c.bf16 %v5033_v18, %v5033_v18 }
0x107c   :  { %v5083_v44 = vpack.c.b16 %v5082_v20, %v5081_v48  ;;  %7083 = vrot.lane.b32.xlu0 %v11351_v51, %s7768_s17  ;;  %v11361_v48 = vld [vmem:[#allocation59_spill] sm:$0xff] }
0x107d   :  { %v7661_v38 = vpop.eup %7660 }
0x107e   :  { %v5026_v30 = vmul.f32 %v7661_v38, %v10277_v35  ;;  %6812 = vmatmul.msk.bf16.vlgmr.msra.gmra.mxu1 %vm153_vm0, %v5083_v44  ;;  %v7663_v50 = vpop.eup %7662  ;;  %v5182_v35 = vunpack.c.l.b16 %v5049_v55  ;;  %v7097_v44 = vpack.i.bf16 %v11362_v60, %v11361_v48 }
0x107f   :  { %v5032_v29 = vmul.f32 %v7663_v50, %v10247_v23  ;;  %v7072_v23 = vpack.i.bf16 %v11357_v63, %v11356_v6  ;;  %v10410_v50 = vpop.xlane.xlu1 %4995 }
0x1080   :  { %v5042_v41 = vpack.c.bf16 %v5026_v30, %v5026_v30 }
0x1081   :  { %v5048_v62 = vpack.c.bf16 %v5032_v29, %v5032_v29 }
0x1082   :  { %v5106_v40 = vunpack.c.l.b16 %v5042_v41  ;;  %v11364_v41 = vld [vmem:[#allocation95_spill] sm:$0xff] }
0x1083   :  { %v5181_v5 = vunpack.c.l.b16 %v5048_v62  ;;  %v11365_v32 = vpack.i.bf16 %v11363_v26, %v11364_v41 }
0x1084   :  { %v5108_v33 = vpack.c.b16 %v5107_v34, %v5106_v40  ;;  %7093 = vrot.lane.b32.xlu0 %v7092_v22, %s7758_s22  ;;  %v4956_v22 = vmul.f32 1.442695, %v4925_v43 }
0x1085   :  { %v5183_v16 = vpack.c.b16 %v5182_v35, %v5181_v5 }
0x1086   :  { %6813 = vmatmul.msk.bf16.vlgmr.msra.gmra.mxu2 %vm153_vm0, %v5108_v33 }
0x108c   :  { %7108 = vrot.lane.b32.xlu0 %v7107_v4, %s7767_s16 }
0x108e   :  { %6816 = vmatmul.msk.bf16.vlgmr.msrb.gmra.mxu1 %vm153_vm0, %v5183_v16 }
0x108f   :  { %7073 = vrot.lane.b32.xlu1 %v7072_v23, %s7769_s18 }
0x1091   :  { %7038 = vrot.lane.b32.xlu2 %v7037_v37, %s7770_s19  ;;  %v11366_v37 = vld [vmem:[#allocation16_spill] sm:$0xff] }
0x1093   :  { %v4978_v61 = vpop.xlane.xlu2 %4977 }
0x1094   :  { %7664 = vrcp.f32 %v4978_v61 }
0x1097   :  { %7088 = vrot.lane.b32.xlu1 %v11360_v21, %s7771_s20  ;;  %v11367_v21 = vld [vmem:[#allocation15_spill] sm:$0xff] }
0x109a   :  { %v7665_v57 = vpop.eup %7664 }
0x109b   :  { %v4981_v20 = vpop.xlane.xlu0 %4980  ;;  %v5028_v49 = vmul.f32 %v7665_v57, %v10287_v10  ;;  %v10423_v34 = vpop.permute.xlu2 %6973 }
0x109c   :  { %7666 = vrcp.f32 %v4981_v20 }
0x109d   :  { %v5044_v38 = vpack.c.bf16 %v5028_v49, %v5028_v49  ;;  %7668 = vpow2.f32 %v4956_v22 }
0x109e   :  { %7670 = vrcp.f32 %v10410_v50  ;;  %v11377_v50 = vpack.i.bf16 %v10192_v59, %v10188_v15 }
0x109f   :  { %7098 = vrot.lane.b32.xlu1 %v7097_v44, %s7770_s19  ;;  %v5131_v18 = vunpack.c.l.b16 %v5044_v38 }
0x10a2   :  { %v7667_v51 = vpop.eup %7666 }
0x10a3   :  { %v5029_v17 = vmul.f32 %v7667_v51, %v10296_v13  ;;  %v10421_v13 = vpop.permute.xlu1 %6983  ;;  %v10425_v40 = vpop.eup %7668 }
0x10a4   :  { %v5003_v45 = vsel %vm153_vm0, %v10425_v40, 0.0  ;;  %v10433_v27 = vpop.permute.xlu2 %6988 }
0x10a5   :  { %v5045_v30 = vpack.c.bf16 %v5029_v17, %v5029_v17 }
0x10a7   :  { %v5132_v3 = vunpack.c.l.b16 %v5045_v30  ;;  %7113 = vrot.lane.b32.xlu1 %v11365_v32, %s7768_s17 }
0x10a9   :  { %v5133_v10 = vpack.c.b16 %v5132_v3, %v5131_v18 }
0x10ab   :  { %6814 = vmatmul.msk.bf16.vlgmr.msrb.gmra.mxu3 %vm153_vm0, %v5133_v10  ;;  %v10429_v33 = vpop.permute.xlu1 %6998 }
0x10ac   :  { %v7014_v52 = vpop.permute.xlu2 %7013 }
0x10ad   :  { %v7016_v23 = vunpack.i.h.bf16 %v7014_v52  ;;  %v7015_v42 = vunpack.i.l.bf16 %v7014_v52 }
0x10ae   :  { %v10419_v29 = vpop.permute.xlu0 %6968 }
0x10b3   :  { %v7009_v14 = vpop.permute.xlu1 %7008 }
0x10b4   :  { %v7011_v6 = vunpack.i.h.bf16 %v7009_v14  ;;  %v7010_v63 = vunpack.i.l.bf16 %v7009_v14  ;;  %v7029_v38 = vpop.permute.xlu2 %7028  ;;  %v11369_v14 = vld [vmem:[#allocation12_spill] sm:$0xff] }
0x10b5   :  { %v7031_v41 = vunpack.i.h.bf16 %v7029_v38  ;;  %v7030_v32 = vunpack.i.l.bf16 %v7029_v38 }
0x10b6   :  { %v10427_v55 = vpop.permute.xlu0 %6978 }
0x10ba   :  { %5004 = vadd.xlane.f32.xlu2 %v5003_v45 }
0x10bb   :  { %v7024_v51 = vpop.permute.xlu1 %7023 }
0x10bc   :  { %v7026_v3 = vunpack.i.h.bf16 %v7024_v51  ;;  %v7025_v26 = vunpack.i.l.bf16 %v7024_v51 }
0x10be   :  { %v10435_v62 = vpop.permute.xlu0 %6993 }
0x10c0   :  { %v5074_v35 = vpop.f32.mrf.mxu0 }
0x10c6   :  { %v7004_v4 = vpop.permute.xlu0 %7003 }
0x10c7   :  { %v7006_v5 = vunpack.i.h.bf16 %v7004_v4  ;;  %v7005_v16 = vunpack.i.l.bf16 %v7004_v4 }
0x10c8   :  { %v5076_v46 = vpop.f32.mrf.mxu0 }
0x10c9   :  { %v5711_v61 = vsel %vm519_vm1, %v11366_v37, %v7006_v5  ;;  %v5710_v20 = vsel %vm519_vm1, %v11367_v21, %v7005_v16  ;;  %v7122_v57 = vpack.i.bf16 %v5076_v46, %v5074_v35  ;;  %v11368_v35 = vld [vmem:[#allocation93_spill] sm:$0xff]  ;;  %v11371_v16 = vld [vmem:[#allocation38_spill] sm:$0xff]  ;;  %v11374_v46 = vld [vmem:[#allocation88_spill] sm:$0xff] }
0x10ca   :  { %v5727_v48 = vsel %vm5718_vm2, %v5710_v20, %v7010_v63  ;;  %v5728_v60 = vsel %vm5718_vm2, %v5711_v61, %v7011_v6  ;;  %v11370_v52 = vpack.i.bf16 %v11368_v35, %v11369_v14  ;;  %v11372_v6 = vld [vmem:[#allocation41_spill] sm:$0xff]  ;;  %v7034_v61 = vpop.permute.xlu1 %7033  ;;  %v11375_v21 = vld [vmem:[#allocation75_spill] sm:$0xff]  ;;  %v11376_v20 = vld [vmem:[#allocation76_spill] sm:$0xff] }
0x10cb   :  { %7123 = vrot.lane.b32.xlu0 %v7122_v57, %s7772_s23  ;;  %v5744_v44 = vsel %vm5735_vm3, %v5727_v48, %v7015_v42  ;;  %v5745_v49 = vsel %vm5735_vm3, %v5728_v60, %v7016_v23  ;;  %v7062_v63 = vpack.i.bf16 %v11372_v6, %v11371_v16  ;;  %v11373_v23 = vld [vmem:[#allocation87_spill] sm:$0xff]  ;;  %v7102_v57 = vpack.i.bf16 %v11376_v20, %v11375_v21  ;;  %v7671_v60 = vpop.eup %7670 }
0x10cc   :  { %v7077_v42 = vpack.i.bf16 %v11374_v46, %v11373_v23  ;;  %v7036_v51 = vunpack.i.h.bf16 %v7034_v61 }
0x10ce   :  { %v7019_v17 = vpop.permute.xlu0 %7018 }
0x10cf   :  { %v7021_v30 = vunpack.i.h.bf16 %v7019_v17  ;;  %v7020_v18 = vunpack.i.l.bf16 %v7019_v17  ;;  %v7035_v17 = vunpack.i.l.bf16 %v7034_v61 }
0x10d1   :  { %v5760_v43 = vsel %vm153_vm0, %v5744_v44, %v7020_v18  ;;  %v5761_v10 = vsel %vm153_vm0, %v5745_v49, %v7021_v30  ;;  %v5034_v49 = vmul.f32 %v7671_v60, %v10281_v11 }
0x10d2   :  { %v5777_v22 = vsel %vm5768_vm4, %v5760_v43, %v7025_v26  ;;  %v5778_v45 = vsel %vm5768_vm4, %v5761_v10, %v7026_v3  ;;  %7053 = vrot.lane.b32.xlu2 %v11370_v52, %s7768_s17  ;;  %v7049_v38 = vpop.permute.xlu1 %7048 }
0x10d3   :  { %v10455_v4 = vsel %vm5785_vm5, %v5777_v22, %v7030_v32  ;;  %v10458_v5 = vsel %vm5785_vm5, %v5778_v45, %v7031_v41  ;;  %v5050_v18 = vpack.c.bf16 %v5034_v49, %v5034_v49  ;;  %v11378_v41 = vld [vmem:[#allocation24_spill] sm:$0xff]  ;;  %v11379_v22 = vld [vmem:[#allocation21_spill] sm:$0xff]  ;;  %v7051_v52 = vunpack.i.h.bf16 %v7049_v38 }
0x10d4   :  { %v5713_v32 = vsel %vm519_vm1, %v11378_v41, %v7036_v51  ;;  %v5712_v11 = vsel %vm519_vm1, %v11379_v22, %v7035_v17  ;;  %v7050_v16 = vunpack.i.l.bf16 %v7049_v38  ;;  %v11380_v22 = vld [vmem:[#allocation28_spill] sm:$0xff] }
0x10d5   :  { %v5206_v6 = vunpack.c.l.b16 %v5050_v18 }
0x10d6   :  { %v7044_v37 = vpop.permute.xlu0 %7043 }
0x10d7   :  { %v7046_v45 = vunpack.i.h.bf16 %v7044_v37  ;;  %v7045_v35 = vunpack.i.l.bf16 %v7044_v37 }
0x10da   :  { %7063 = vrot.lane.b32.xlu2 %v7062_v63, %s7758_s22 }
0x10de   :  { %v10470_v44 = vpop.permute.xlu0 %7058 }
0x10e2   :  { %7078 = vrot.lane.b32.xlu2 %v7077_v42, %s7767_s16 }
0x10e9   :  { %v5002_v42 = vpop.xlane.xlu1 %5001 }
0x10ea   :  { %7103 = vrot.lane.b32.xlu2 %v7102_v57, %s7769_s18  ;;  %v5174_v57 = vpop.f32.mrf.mxu0 }
0x10ec   :  { %v4999_v48 = vpop.xlane.xlu2 %4998 }
0x10ed   :  { %7672 = vrcp.f32 %v4999_v48 }
0x10ee   :  { %7674 = vrcp.f32 %v5002_v42  ;;  %v11383_v42 = vld [vmem:[#allocation13_spill] sm:$0xff] }
0x10f2   :  { %7118 = vrot.lane.b32.xlu2 %v11377_v50, %s7771_s20  ;;  %v5176_v38 = vpop.f32.mrf.mxu0 }
0x10f3   :  { %v7673_v30 = vpop.eup %7672 }
0x10f4   :  { %v5035_v3 = vmul.f32 %v7673_v30, %v10370_v53  ;;  %v7039_v26 = vpop.permute.xlu2 %7038  ;;  %v10484_v53 = vpop.permute.xlu0 %7068  ;;  %v7132_v30 = vpack.i.bf16 %v5176_v38, %v5174_v57 }
0x10f5   :  { %v7041_v43 = vunpack.i.h.bf16 %v7039_v26  ;;  %v7040_v10 = vunpack.i.l.bf16 %v7039_v26  ;;  %v7675_v57 = vpop.eup %7674 }
0x10f6   :  { %v5051_v14 = vpack.c.bf16 %v5035_v3, %v5035_v3 }
0x10f7   :  { %v5729_v15 = vsel %vm5718_vm2, %v5712_v11, %v7040_v10  ;;  %v5730_v59 = vsel %vm5718_vm2, %v5713_v32, %v7041_v43 }
0x10f8   :  { %v5207_v63 = vunpack.c.l.b16 %v5051_v14  ;;  %v5746_v23 = vsel %vm5735_vm3, %v5729_v15, %v7045_v35  ;;  %v5747_v46 = vsel %vm5735_vm3, %v5730_v59, %v7046_v45  ;;  %v11381_v45 = vld [vmem:[#allocation27_spill] sm:$0xff] }
0x10f9   :  { %v10489_v61 = vsel %vm153_vm0, %v5746_v23, %v7050_v16  ;;  %v10492_v37 = vsel %vm153_vm0, %v5747_v46, %v7051_v52  ;;  %v6854_v23 = vld [vmem:[%s11201_s8] sm:$0xff]  ;;  %v6886_v46 = vunpack.i.h.bf16 %v10206_v8 }
0x10fa   :  { %v5208_v21 = vpack.c.b16 %v5207_v63, %v5206_v6  ;;  %v6855_v6 = vld [vmem:[%s11201_s8 + $0x8] sm:$0xff] }
0x10fb   :  { %v5099_v20 = vpop.f32.mrf.mxu1  ;;  %5878 = vmatpush.bf16.msrb.mxu0 %v6855_v6 }
0x10fc   :  { %6817 = vmatmul.msk.bf16.vlgmr.msrb.gmra.mxu2 %vm153_vm0, %v5208_v21  ;;  %v10497_v60 = vpop.permute.xlu0 %7083  ;;  %v6885_v21 = vunpack.i.l.bf16 %v10206_v8  ;;  %v5036_v8 = vmul.f32 %v7675_v57, %v10365_v28  ;;  %v6945_v57 = vunpack.i.l.bf16 %v10263_v9 }
0x10ff   :  { %5879 = vmatpush.bf16.msrb.mxu0 %v6854_v23  ;;  %v7061_v23 = vunpack.i.h.bf16 %v10470_v44 }
0x1101   :  { %v10495_v48 = vpop.permute.xlu1 %7073 }
0x1103   :  { %v5101_v49 = vpop.f32.mrf.mxu1 }
0x1104   :  { %v7127_v51 = vpack.i.bf16 %v5101_v49, %v5099_v20  ;;  %v7094_v18 = vpop.permute.xlu0 %7093  ;;  %v6891_v49 = vunpack.i.h.bf16 %v10216_v12 }
0x1105   :  { %v7096_v3 = vunpack.i.h.bf16 %v7094_v18  ;;  %v7095_v26 = vunpack.i.l.bf16 %v7094_v18  ;;  %v11382_v18 = vld [vmem:[#allocation14_spill] sm:$0xff] }
0x1106   :  { %7128 = vrot.lane.b32.xlu0 %v7127_v51, %s7772_s23  ;;  %v6890_v51 = vunpack.i.l.bf16 %v10216_v12 }
0x1107   :  { %v5717_v11 = vsel %vm519_vm1, %v11380_v22, %v7096_v3  ;;  %v5716_v35 = vsel %vm519_vm1, %v11381_v45, %v7095_v26  ;;  %v5703_v3 = vsel %vm519_vm1, %v11382_v18, %v6886_v46  ;;  %v5702_v26 = vsel %vm519_vm1, %v11383_v42, %v6885_v21 }
0x1108   :  { %v6901_v22 = vunpack.i.h.bf16 %v10119_v31  ;;  %v7060_v46 = vunpack.i.l.bf16 %v10470_v44 }
0x1109   :  { %v10500_v17 = vpop.permute.xlu1 %7088  ;;  %v5124_v41 = vpop.f32.mrf.mxu2 }
0x110b   :  { %v5199_v50 = vpop.f32.mrf.mxu1 }
0x110c   :  { %v10538_v45 = vpop.permute.xlu0 %7108 }
0x110e   :  { %7133 = vrot.lane.b32.xlu0 %v7132_v30, %s7772_s23  ;;  %v6895_v30 = vunpack.i.l.bf16 %v10233_v56 }
0x1111   :  { %v7099_v32 = vpop.permute.xlu1 %7098  ;;  %v5126_v59 = vpop.f32.mrf.mxu2 }
0x1112   :  { %v7101_v43 = vunpack.i.h.bf16 %v7099_v32  ;;  %v7100_v10 = vunpack.i.l.bf16 %v7099_v32  ;;  %v7142_v63 = vpack.i.bf16 %v5126_v59, %v5124_v41  ;;  %v5719_v41 = vsel %vm5718_vm2, %v5702_v26, %v6890_v51 }
0x1113   :  { %v5201_v14 = vpop.f32.mrf.mxu1  ;;  %v5720_v32 = vsel %vm5718_vm2, %v5703_v3, %v6891_v49  ;;  %v5736_v12 = vsel %vm5735_vm3, %v5719_v41, %v6895_v30  ;;  %v7071_v26 = vunpack.i.h.bf16 %v10484_v53 }
0x1114   :  { %v10508_v52 = vsel %vm5718_vm2, %v5717_v11, %v7101_v43  ;;  %v10511_v16 = vsel %vm5718_vm2, %v5716_v35, %v7100_v10  ;;  %v7137_v15 = vpack.i.bf16 %v5201_v14, %v5199_v50  ;;  %v6896_v50 = vunpack.i.h.bf16 %v10233_v56 }
0x1115   :  { %v6900_v56 = vunpack.i.l.bf16 %v10119_v31  ;;  %v5052_v11 = vpack.c.bf16 %v5036_v8, %v5036_v8  ;;  %v6946_v31 = vunpack.i.h.bf16 %v10263_v9  ;;  %v6905_v9 = vunpack.i.l.bf16 %v10141_v0 }
0x1116   :  { %7138 = vrot.lane.b32.xlu1 %v7137_v15, %s7772_s23  ;;  %v5737_v43 = vsel %vm5735_vm3, %v5720_v32, %v6896_v50 }
0x1117   :  { %v5752_v28 = vsel %vm153_vm0, %v5736_v12, %v6900_v56  ;;  %v5753_v15 = vsel %vm153_vm0, %v5737_v43, %v6901_v22  ;;  %v5231_v51 = vunpack.c.l.b16 %v5052_v11  ;;  %v7076_v22 = vunpack.i.h.bf16 %v10495_v48 }
0x1118   :  { %v7075_v56 = vunpack.i.l.bf16 %v10495_v48 }
0x111e   :  { %7143 = vrot.lane.b32.xlu1 %v7142_v63, %s7772_s23 }
0x112d   :  { %v5005_v20 = vpop.xlane.xlu2 %5004 }
0x112e   :  { %7676 = vrcp.f32 %v5005_v20  ;;  %v5149_v38 = vpop.f32.mrf.mxu3 }
0x1134   :  { %v7677_v10 = vpop.eup %7676 }
0x1135   :  { %v5037_v35 = vmul.f32 %v7677_v10, %v10425_v40  ;;  %v7054_v14 = vpop.permute.xlu2 %7053  ;;  %v7070_v10 = vunpack.i.l.bf16 %v10484_v53 }
0x1136   :  { %v7056_v59 = vunpack.i.h.bf16 %v7054_v14  ;;  %v7055_v6 = vunpack.i.l.bf16 %v7054_v14  ;;  %v5151_v63 = vpop.f32.mrf.mxu3  ;;  %v11384_v14 = vld [vmem:[#allocation25_spill] sm:$0xff] }
0x1137   :  { %v5053_v21 = vpack.c.bf16 %v5037_v35, %v5037_v35  ;;  %v7147_v20 = vpack.i.bf16 %v5151_v63, %v5149_v38  ;;  %v6906_v38 = vunpack.i.h.bf16 %v10141_v0 }
0x1138   :  { %v5779_v40 = vsel %vm5768_vm4, %v10489_v61, %v7055_v6  ;;  %v5780_v49 = vsel %vm5768_vm4, %v10492_v37, %v7056_v59  ;;  %v5769_v61 = vsel %vm5768_vm4, %v5752_v28, %v6905_v9 }
0x1139   :  { %v5232_v50 = vunpack.c.l.b16 %v5053_v21  ;;  %7148 = vrot.lane.b32.xlu2 %v7147_v20, %s7772_s23  ;;  %v10553_v30 = vsel %vm5785_vm5, %v5779_v40, %v7060_v46  ;;  %v10556_v44 = vsel %vm5785_vm5, %v5780_v49, %v7061_v23  ;;  %v5770_v3 = vsel %vm5768_vm4, %v5753_v15, %v6906_v38  ;;  %v11385_v15 = vld [vmem:[#allocation22_spill] sm:$0xff] }
0x113a   :  { %v5786_v37 = vsel %vm5785_vm5, %v5769_v61, %v6945_v57  ;;  %v5787_v42 = vsel %vm5785_vm5, %v5770_v3, %v6946_v31  ;;  %v7086_v31 = vunpack.i.h.bf16 %v10497_v60  ;;  %v7085_v57 = vunpack.i.l.bf16 %v10497_v60 }
0x113b   :  { %v5233_v18 = vpack.c.b16 %v5232_v50, %v5231_v51  ;;  %v7091_v40 = vunpack.i.h.bf16 %v10500_v17  ;;  %v7090_v49 = vunpack.i.l.bf16 %v10500_v17  ;;  %v7110_v17 = vunpack.i.l.bf16 %v10538_v45 }
0x113d   :  { %v7124_v8 = vpop.permute.xlu0 %7123  ;;  %v7064_v41 = vpop.permute.xlu2 %7063  ;;  %6818 = vmatmul.msk.bf16.vlgmr.msra.gmra.mxu3 %vm153_vm0, %v5233_v18 }
0x113e   :  { %v7126_v32 = vunpack.i.h.bf16 %v7124_v8  ;;  %v7125_v12 = vunpack.i.l.bf16 %v7124_v8  ;;  %v7066_v43 = vunpack.i.h.bf16 %v7064_v41  ;;  %v7065_v0 = vunpack.i.l.bf16 %v7064_v41 }
0x1140   :  { %v5803_v11 = vsel %vm5802_vm6, %v5786_v37, %v7125_v12  ;;  %v5804_v35 = vsel %vm5802_vm6, %v5787_v42, %v7126_v32  ;;  %v5715_v28 = vsel %vm519_vm1, %v11384_v14, %v7066_v43  ;;  %v5714_v59 = vsel %vm519_vm1, %v11385_v15, %v7065_v0  ;;  %v7114_v12 = vpop.permute.xlu1 %7113 }
0x1141   :  { %v5819_v6 = vpack.c.bf16 %v5804_v35, %v5803_v11  ;;  %v5732_v63 = vsel %vm5718_vm2, %v5715_v28, %v7071_v26  ;;  %v5731_v53 = vsel %vm5718_vm2, %v5714_v59, %v7070_v10  ;;  %v7111_v42 = vunpack.i.h.bf16 %v10538_v45  ;;  %v11386_v59 = vld [vmem:[#allocation19_spill] sm:$0xff] }
0x1142   :  { %v5748_v23 = vsel %vm5735_vm3, %v5731_v53, %v7075_v56  ;;  %v5749_v48 = vsel %vm5735_vm3, %v5732_v63, %v7076_v22  ;;  %v7116_v43 = vunpack.i.h.bf16 %v7114_v12  ;;  %v7115_v0 = vunpack.i.l.bf16 %v7114_v12  ;;  %v11387_v63 = vld [vmem:[#allocation17_spill] sm:$0xff] }
0x1143   :  { %6827 = vmatmul.msk.bf16.vlgmr.msrb.gmra.mxu0 %vm5847_vm7, %v5819_v6  ;;  %v6910_v14 = vunpack.i.l.bf16 %v10242_v1  ;;  %v6916_v28 = vunpack.i.h.bf16 %v10186_v36  ;;  %v6915_v15 = vunpack.i.l.bf16 %v10186_v36  ;;  %v6931_v36 = vunpack.i.h.bf16 %v10190_v47 }
0x1145   :  { %v7079_v46 = vpop.permute.xlu2 %7078  ;;  %v5704_v53 = vsel %vm519_vm1, %v11387_v63, %v6910_v14  ;;  %v6956_v14 = vunpack.i.h.bf16 %v10359_v25 }
0x1146   :  { %v7081_v21 = vunpack.i.h.bf16 %v7079_v46  ;;  %v7080_v20 = vunpack.i.l.bf16 %v7079_v46  ;;  %v6921_v46 = vunpack.i.h.bf16 %v10156_v54 }
0x1148   :  { %v5764_v51 = vsel %vm153_vm0, %v5748_v23, %v7080_v20  ;;  %v5765_v50 = vsel %vm153_vm0, %v5749_v48, %v7081_v21  ;;  %v5721_v48 = vsel %vm5718_vm2, %v5704_v53, %v6915_v15  ;;  %v6920_v21 = vunpack.i.l.bf16 %v10156_v54 }
0x1149   :  { %v5781_v38 = vsel %vm5768_vm4, %v5764_v51, %v7085_v57  ;;  %v5782_v9 = vsel %vm5768_vm4, %v5765_v50, %v7086_v31  ;;  %v6930_v31 = vunpack.i.l.bf16 %v10190_v47  ;;  %v6926_v57 = vunpack.i.h.bf16 %v10253_v7 }
0x114a   :  { %v10589_v18 = vsel %vm5785_vm5, %v5781_v38, %v7090_v49  ;;  %v10592_v61 = vsel %vm5785_vm5, %v5782_v9, %v7091_v40  ;;  %v5738_v20 = vsel %vm5735_vm3, %v5721_v48, %v6920_v21  ;;  %v6925_v40 = vunpack.i.l.bf16 %v10253_v7 }
0x114b   :  { %v6951_v38 = vunpack.i.h.bf16 %v10172_v58  ;;  %v6950_v9 = vunpack.i.l.bf16 %v10172_v58  ;;  %v6936_v58 = vunpack.i.h.bf16 %v10196_v19  ;;  %v6960_v21 = vunpack.i.l.bf16 %v10357_v24 }
0x114c   :  { %v5754_v49 = vsel %vm153_vm0, %v5738_v20, %v6925_v40  ;;  %v6965_v40 = vunpack.i.l.bf16 %v10293_v2 }
0x114d   :  { %v7104_v3 = vpop.permute.xlu2 %7103  ;;  %v5771_v50 = vsel %vm5768_vm4, %v5754_v49, %v6930_v31  ;;  %v6971_v49 = vunpack.i.h.bf16 %v10419_v29 }
0x114e   :  { %v7106_v60 = vunpack.i.h.bf16 %v7104_v3  ;;  %v7105_v37 = vunpack.i.l.bf16 %v7104_v3  ;;  %v5788_v47 = vsel %vm5785_vm5, %v5771_v50, %v6950_v9 }
0x1150   :  { %v5750_v26 = vsel %vm5735_vm3, %v10511_v16, %v7105_v37  ;;  %v5751_v8 = vsel %vm5735_vm3, %v10508_v52, %v7106_v60  ;;  %v6911_v52 = vunpack.i.h.bf16 %v10242_v1 }
0x1151   :  { %v5766_v41 = vsel %vm153_vm0, %v5750_v26, %v7110_v17  ;;  %v5767_v32 = vsel %vm153_vm0, %v5751_v8, %v7111_v42 }
0x1152   :  { %v5783_v11 = vsel %vm5768_vm4, %v5766_v41, %v7115_v0  ;;  %v5784_v45 = vsel %vm5768_vm4, %v5767_v32, %v7116_v43  ;;  %v5705_v6 = vsel %vm519_vm1, %v11386_v59, %v6911_v52  ;;  %v6935_v43 = vunpack.i.l.bf16 %v10196_v19 }
0x1153   :  { %v5722_v23 = vsel %vm5718_vm2, %v5705_v6, %v6916_v28  ;;  %v6955_v19 = vunpack.i.l.bf16 %v10359_v25  ;;  %v6940_v28 = vunpack.i.l.bf16 %v10166_v39  ;;  %v6961_v25 = vunpack.i.h.bf16 %v10357_v24 }
0x1154   :  { %v5739_v1 = vsel %vm5735_vm3, %v5722_v23, %v6921_v46 }
0x1155   :  { %v7119_v10 = vpop.permute.xlu2 %7118  ;;  %v5755_v51 = vsel %vm153_vm0, %v5739_v1, %v6926_v57  ;;  %v6966_v57 = vunpack.i.h.bf16 %v10293_v2  ;;  %v6981_v2 = vunpack.i.h.bf16 %v10427_v55 }
0x1156   :  { %v7121_v22 = vunpack.i.h.bf16 %v7119_v10  ;;  %v7120_v56 = vunpack.i.l.bf16 %v7119_v10  ;;  %v5772_v54 = vsel %vm5768_vm4, %v5755_v51, %v6931_v36  ;;  %v6970_v51 = vunpack.i.l.bf16 %v10419_v29 }
0x1157   :  { %v5789_v42 = vsel %vm5785_vm5, %v5772_v54, %v6951_v38  ;;  %v6975_v54 = vunpack.i.l.bf16 %v10423_v34 }
0x1158   :  { %v10605_v35 = vsel %vm5785_vm5, %v5783_v11, %v7120_v56  ;;  %v10608_v16 = vsel %vm5785_vm5, %v5784_v45, %v7121_v22  ;;  %v11388_v56 = vld [vmem:[#allocation20_spill] sm:$0xff]  ;;  %v11389_v45 = vld [vmem:[#allocation18_spill] sm:$0xff] }
0x1159   :  { %v5707_v11 = vsel %vm519_vm1, %v11388_v56, %v6936_v58  ;;  %v5706_v52 = vsel %vm519_vm1, %v11389_v45, %v6935_v43  ;;  %v6996_v43 = vunpack.i.h.bf16 %v10435_v62  ;;  %v6995_v56 = vunpack.i.l.bf16 %v10435_v62 }
0x115a   :  { %v5723_v6 = vsel %vm5718_vm2, %v5706_v52, %v6940_v28  ;;  %v6990_v45 = vunpack.i.l.bf16 %v10433_v27 }
0x115b   :  { %v5740_v48 = vsel %vm5735_vm3, %v5723_v6, %v6955_v19 }
0x115c   :  { %v5756_v36 = vsel %vm153_vm0, %v5740_v48, %v6960_v21 }
0x115d   :  { %v5773_v24 = vsel %vm5768_vm4, %v5756_v36, %v6965_v40 }
0x1178   :  { %v7129_v3 = vpop.permute.xlu0 %7128 }
0x1179   :  { %v7131_v60 = vunpack.i.h.bf16 %v7129_v3  ;;  %v7130_v37 = vunpack.i.l.bf16 %v7129_v3  ;;  %v5790_v3 = vsel %vm5785_vm5, %v5773_v24, %v6970_v51 }
0x117b   :  { %v5805_v7 = vsel %vm5802_vm6, %v5788_v47, %v7130_v37  ;;  %v5806_v17 = vsel %vm5802_vm6, %v5789_v42, %v7131_v60  ;;  %v6980_v37 = vunpack.i.l.bf16 %v10427_v55  ;;  %v6985_v55 = vunpack.i.l.bf16 %v10421_v13 }
0x117c   :  { %v5820_v26 = vpack.c.bf16 %v5806_v17, %v5805_v7  ;;  %v11390_v7 = vld [vmem:[#allocation26_spill] sm:$0xff] }
0x117e   :  { %6828 = vmatmul.msk.bf16.gmra.mxu0 %vm5847_vm7, %v5820_v26  ;;  %v11391_v26 = vld [vmem:[#allocation23_spill] sm:$0xff] }
0x117f   :  { %v5224_v8 = vpop.f32.mrf.mxu2 }
0x1180   :  { %v7134_v41 = vpop.permute.xlu0 %7133 }
0x1181   :  { %v7136_v32 = vunpack.i.h.bf16 %v7134_v41  ;;  %v7135_v12 = vunpack.i.l.bf16 %v7134_v41 }
0x1183   :  { %v10643_v0 = vsel %vm5802_vm6, %v10455_v4, %v7135_v12  ;;  %v10647_v10 = vsel %vm5802_vm6, %v10458_v5, %v7136_v32  ;;  %v6941_v4 = vunpack.i.h.bf16 %v10166_v39  ;;  %v6986_v32 = vunpack.i.h.bf16 %v10421_v13 }
0x1184   :  { %v5823_v22 = vpack.c.bf16 %v10647_v10, %v10643_v0 }
0x1185   :  { %v5724_v63 = vsel %vm5718_vm2, %v5707_v11, %v6941_v4  ;;  %v6991_v11 = vunpack.i.h.bf16 %v10433_v27 }
0x1186   :  { %v5741_v46 = vsel %vm5735_vm3, %v5724_v63, %v6956_v14 }
0x1187   :  { %v5226_v15 = vpop.f32.mrf.mxu2  ;;  %v5757_v31 = vsel %vm153_vm0, %v5741_v46, %v6961_v25 }
0x1188   :  { %v7152_v5 = vpack.i.bf16 %v5226_v15, %v5224_v8  ;;  %v7139_v59 = vpop.permute.xlu1 %7138 }
0x1189   :  { %v7141_v53 = vunpack.i.h.bf16 %v7139_v59  ;;  %v7140_v23 = vunpack.i.l.bf16 %v7139_v59  ;;  %v7000_v59 = vunpack.i.l.bf16 %v10429_v33 }
0x118a   :  { %7153 = vrot.lane.b32.xlu2 %v7152_v5, %s7772_s23  ;;  %v7001_v5 = vunpack.i.h.bf16 %v10429_v33  ;;  %v10719_v33 = vld [vmem:[%s11202_s9] ss:$0 sm:$0xff]  ;;  %s7774_s9 = smov 96  }
0x118b   :  { %v5813_v39 = vsel %vm5802_vm6, %v10553_v30, %v7140_v23  ;;  %v5814_v1 = vsel %vm5802_vm6, %v10556_v44, %v7141_v53  ;;  %v5774_v30 = vsel %vm5768_vm4, %v5757_v31, %v6966_v57  ;;  %v6976_v44 = vunpack.i.h.bf16 %v10423_v34 }
0x118c   :  { %v5824_v20 = vpack.c.bf16 %v5814_v1, %v5813_v39  ;;  %v5791_v60 = vsel %vm5785_vm5, %v5774_v30, %v6971_v49  ;;  %v5708_v34 = vsel %vm519_vm1, %v11391_v26, %v6975_v54 }
0x118d   :  { %v5709_v17 = vsel %vm519_vm1, %v11390_v7, %v6976_v44  ;;  %v5725_v41 = vsel %vm5718_vm2, %v5708_v34, %v6980_v37 }
0x118e   :  { %v5726_v8 = vsel %vm5718_vm2, %v5709_v17, %v6981_v2  ;;  %v5742_v12 = vsel %vm5735_vm3, %v5725_v41, %v6985_v55 }
0x118f   :  { %v5743_v58 = vsel %vm5735_vm3, %v5726_v8, %v6986_v32  ;;  %v5758_v14 = vsel %vm153_vm0, %v5742_v12, %v6990_v45 }
0x1190   :  { %v7144_v50 = vpop.permute.xlu1 %7143  ;;  %v5759_v19 = vsel %vm153_vm0, %v5743_v58, %v6991_v11  ;;  %v5775_v4 = vsel %vm5768_vm4, %v5758_v14, %v6995_v56 }
0x1191   :  { %v7146_v38 = vunpack.i.h.bf16 %v7144_v50  ;;  %v7145_v9 = vunpack.i.l.bf16 %v7144_v50  ;;  %v5776_v13 = vsel %vm5768_vm4, %v5759_v19, %v6996_v43  ;;  %v5792_v62 = vsel %vm5785_vm5, %v5775_v4, %v7000_v59 }
0x1192   :  { %v5793_v6 = vsel %vm5785_vm5, %v5776_v13, %v7001_v5 }
0x1193   :  { %v5807_v29 = vsel %vm5802_vm6, %v5790_v3, %v7145_v9  ;;  %v5808_v47 = vsel %vm5802_vm6, %v5791_v60, %v7146_v38  ;;  %v7149_v52 = vpop.permute.xlu2 %7148 }
0x1194   :  { %v5821_v42 = vpack.c.bf16 %v5808_v47, %v5807_v29  ;;  %v7151_v28 = vunpack.i.h.bf16 %v7149_v52  ;;  %v7150_v15 = vunpack.i.l.bf16 %v7149_v52 }
0x1196   :  { %6829 = vmatmul.msk.bf16.gmra.mxu0 %vm5847_vm7, %v5821_v42  ;;  %v5809_v27 = vsel %vm5802_vm6, %v5792_v62, %v7150_v15  ;;  %v5810_v63 = vsel %vm5802_vm6, %v5793_v6, %v7151_v28 }
0x1197   :  { %v5822_v53 = vpack.c.bf16 %v5810_v63, %v5809_v27 }
0x11a6   :  { %6830 = vmatmul.msk.bf16.gmra.mxu0 %vm5847_vm7, %v5822_v53 }
0x11b6   :  { %6831 = vmatmul.msk.bf16.gmra.mxu0 %vm5847_vm7, %v5823_v22 }
0x11c0   :  { %v5249_v23 = vpop.f32.mrf.mxu3  ;;  %v5881_v48 = vpop.f32.mrf.mxu0 }
0x11c1   :  { %v5882_v46 = vadd.f32 %v10719_v33, %v5881_v48 }
0x11c3   :  { %v10722_v25 = vmax.f32 %v5882_v46, 0.0 }
0x11c5   :  { %v6009_v21 = vrot.slane %v10722_v25, 3  ;;  %v5945_v39 = vrot.slane %v10722_v25, 1  ;;  %v6105_v36 = vrot.slane %v10722_v25, 6  ;;  %v6041_v31 = vrot.slane %v10722_v25, 4 }
0x11c6   :  { %6832 = vmatmul.msk.bf16.gmra.mxu0 %vm5847_vm7, %v5824_v20  ;;  %v5977_v57 = vrot.slane %v10722_v25, 2  ;;  %v6073_v51 = vrot.slane %v10722_v25, 5  ;;  %v6137_v50 = vrot.slane %v10722_v25, 7 }
0x11c7   :  { %6017 = vrot.lane.b32.xlu1 %v6009_v21, %s7773_s26  ;;  %5953 = vrot.lane.b32.xlu2 %v5945_v39, %s7767_s16 }
0x11c8   :  { %v5251_v0 = vpop.f32.mrf.mxu3  ;;  %v5883_v22 = vpop.f32.mrf.mxu0 }
0x11c9   :  { %v7157_v10 = vpack.i.bf16 %v5251_v0, %v5249_v23  ;;  %v5884_v1 = vadd.f32 %v10719_v33, %v5883_v22 }
0x11cb   :  { %7158 = vrot.lane.b32.xlu0 %v7157_v10, %s7772_s23  ;;  %v10735_v20 = vmax.f32 %v5884_v1, 0.0 }
0x11cd   :  { %v6177_v40 = vrot.slane %v10735_v20, 1  ;;  %v6273_v49 = vrot.slane %v10735_v20, 4  ;;  %v6241_v24 = vrot.slane %v10735_v20, 3  ;;  %v6369_v30 = vrot.slane %v10735_v20, 7 }
0x11ce   :  { %v6337_v9 = vrot.slane %v10735_v20, 6  ;;  %v6209_v37 = vrot.slane %v10735_v20, 2  ;;  %v6305_v29 = vrot.slane %v10735_v20, 5 }
0x11cf   :  { %6113 = vrot.lane.b32.xlu1 %v6105_v36, %s7774_s9  ;;  %6049 = vrot.lane.b32.xlu2 %v6041_v31, %s7757_s21 }
0x11d3   :  { %5985 = vrot.lane.b32.xlu0 %v5977_v57, %s7775_s2 }
0x11d7   :  { %6185 = vrot.lane.b32.xlu1 %v6177_v40, %s7767_s16  ;;  %6281 = vrot.lane.b32.xlu2 %v6273_v49, %s7757_s21 }
0x11db   :  { %6081 = vrot.lane.b32.xlu0 %v6073_v51, %s7776_s4 }
0x11df   :  { %6249 = vrot.lane.b32.xlu1 %v6241_v24, %s7773_s26  ;;  %6377 = vrot.lane.b32.xlu2 %v6369_v30, %s7763_s12 }
0x11e3   :  { %6145 = vrot.lane.b32.xlu0 %v6137_v50, %s7763_s12 }
0x11e4   :  { %v7154_v44 = vpop.permute.xlu2 %7153 }
0x11e5   :  { %v7156_v54 = vunpack.i.h.bf16 %v7154_v44  ;;  %v7155_v38 = vunpack.i.l.bf16 %v7154_v44 }
0x11e7   :  { %v5815_v3 = vsel %vm5802_vm6, %v10589_v18, %v7155_v38  ;;  %v5816_v60 = vsel %vm5802_vm6, %v10592_v61, %v7156_v54  ;;  %6345 = vrot.lane.b32.xlu1 %v6337_v9, %s7774_s9 }
0x11e8   :  { %v5825_v2 = vpack.c.bf16 %v5816_v60, %v5815_v3 }
0x11ea   :  { %6833 = vmatmul.msk.bf16.gmra.mxu0 %vm5847_vm7, %v5825_v2 }
0x11eb   :  { %6217 = vrot.lane.b32.xlu0 %v6209_v37, %s7775_s2 }
0x11f3   :  { %6313 = vrot.lane.b32.xlu0 %v6305_v29, %s7776_s4 }
0x11fb   :  { %v5886_v47 = vpop.f32.mrf.mxu0 }
0x11fc   :  { %v5887_v42 = vadd.f32 %v10719_v33, %v5886_v47 }
0x11fe   :  { %v10763_v18 = vmax.f32 %v5887_v42, 0.0 }
0x1200   :  { %v5978_v61 = vrot.slane %v10763_v18, 2  ;;  %v5946_v7 = vrot.slane %v10763_v18, 1  ;;  %v6010_v17 = vrot.slane %v10763_v18, 3  ;;  %v6074_v8 = vrot.slane %v10763_v18, 5 }
0x1201   :  { %v6042_v41 = vrot.slane %v10763_v18, 4  ;;  %v6106_v32 = vrot.slane %v10763_v18, 6  ;;  %v6138_v12 = vrot.slane %v10763_v18, 7 }
0x1202   :  { %5987 = vrot.lane.b32.xlu1 %v5978_v61, %s7775_s2  ;;  %5955 = vrot.lane.b32.xlu0 %v5946_v7, %s7767_s16 }
0x1203   :  { %6019 = vrot.lane.b32.xlu2 %v6010_v17, %s7773_s26  ;;  %v5888_v26 = vpop.f32.mrf.mxu0 }
0x1204   :  { %v5889_v34 = vadd.f32 %v10719_v33, %v5888_v26 }
0x1206   :  { %v10778_v55 = vmax.f32 %v5889_v34, 0.0 }
0x1208   :  { %v6274_v58 = vrot.slane %v10778_v55, 4  ;;  %v6178_v43 = vrot.slane %v10778_v55, 1  ;;  %v6210_v45 = vrot.slane %v10778_v55, 2  ;;  %v6370_v52 = vrot.slane %v10778_v55, 7 }
0x1209   :  { %v6242_v14 = vrot.slane %v10778_v55, 3  ;;  %v6306_v4 = vrot.slane %v10778_v55, 5  ;;  %v6338_v28 = vrot.slane %v10778_v55, 6 }
0x120a   :  { %6083 = vrot.lane.b32.xlu1 %v6074_v8, %s7776_s4  ;;  %6051 = vrot.lane.b32.xlu0 %v6042_v41, %s7757_s21 }
0x120b   :  { %6115 = vrot.lane.b32.xlu2 %v6106_v32, %s7774_s9 }
0x1212   :  { %6147 = vrot.lane.b32.xlu1 %v6138_v12, %s7763_s12  ;;  %6283 = vrot.lane.b32.xlu0 %v6274_v58, %s7757_s21 }
0x1213   :  { %6187 = vrot.lane.b32.xlu2 %v6178_v43, %s7767_s16  ;;  %v5891_v56 = vpop.f32.mrf.mxu0 }
0x1214   :  { %v5892_v11 = vadd.f32 %v10719_v33, %v5891_v56 }
0x1216   :  { %v10793_v19 = vmax.f32 %v5892_v11, 0.0 }
0x1218   :  { %v6011_v13 = vrot.slane %v10793_v19, 3  ;;  %v5947_v59 = vrot.slane %v10793_v19, 1  ;;  %v6107_v62 = vrot.slane %v10793_v19, 6  ;;  %v5979_v6 = vrot.slane %v10793_v19, 2 }
0x1219   :  { %v6043_v63 = vrot.slane %v10793_v19, 4  ;;  %v6075_v23 = vrot.slane %v10793_v19, 5  ;;  %v6139_v39 = vrot.slane %v10793_v19, 7 }
0x121a   :  { %6219 = vrot.lane.b32.xlu1 %v6210_v45, %s7775_s2  ;;  %6379 = vrot.lane.b32.xlu0 %v6370_v52, %s7763_s12 }
0x121b   :  { %6251 = vrot.lane.b32.xlu2 %v6242_v14, %s7773_s26  ;;  %v5893_v15 = vpop.f32.mrf.mxu0 }
0x121c   :  { %v5894_v5 = vadd.f32 %v10719_v33, %v5893_v15 }
0x121e   :  { %v10808_v27 = vmax.f32 %v5894_v5, 0.0  ;;  %v6559_v5 = vlaneseq }
0x1220   :  { %v6179_v53 = vrot.slane %v10808_v27, 1  ;;  %v6275_v46 = vrot.slane %v10808_v27, 4  ;;  %v6243_v21 = vrot.slane %v10808_v27, 3  ;;  %v6371_v31 = vrot.slane %v10808_v27, 7 }
0x1221   :  { %v5954_v48 = vpop.permute.xlu2 %5953  ;;  %v6339_v51 = vrot.slane %v10808_v27, 6  ;;  %v6211_v50 = vrot.slane %v10808_v27, 2  ;;  %v6307_v9 = vrot.slane %v10808_v27, 5  ;;  %vm10888_vm14 = vcmp.lt.s32.totalorder %v6559_v5, 256 }
0x1222   :  { %6315 = vrot.lane.b32.xlu1 %v6306_v4, %s7776_s4  ;;  %6021 = vrot.lane.b32.xlu0 %v6011_v13, %s7773_s26  ;;  %v6401_v43 = vsel %vm153_vm0, %v10722_v25, %v5954_v48 }
0x1223   :  { %6347 = vrot.lane.b32.xlu2 %v6338_v28, %s7774_s9  ;;  %v5896_v0 = vpop.f32.mrf.mxu0 }
0x1224   :  { %v5897_v57 = vadd.f32 %v10719_v33, %v5896_v0 }
0x1226   :  { %v10834_v44 = vmax.f32 %v5897_v57, 0.0 }
0x1228   :  { %v5980_v38 = vrot.slane %v10834_v44, 2  ;;  %v6108_v29 = vrot.slane %v10834_v44, 6  ;;  %v6076_v47 = vrot.slane %v10834_v44, 5  ;;  %v5948_v42 = vrot.slane %v10834_v44, 1 }
0x1229   :  { %v6050_v24 = vpop.permute.xlu2 %6049  ;;  %v6140_v8 = vrot.slane %v10834_v44, 7  ;;  %v6044_v41 = vrot.slane %v10834_v44, 4 }
0x122a   :  { %5957 = vrot.lane.b32.xlu1 %v5947_v59, %s7767_s16  ;;  %6117 = vrot.lane.b32.xlu0 %v6107_v62, %s7774_s9 }
0x122b   :  { %5989 = vrot.lane.b32.xlu2 %v5979_v6, %s7775_s2  ;;  %v5898_v60 = vpop.f32.mrf.mxu0 }
0x122c   :  { %v5899_v37 = vadd.f32 %v10719_v33, %v5898_v60 }
0x122e   :  { %v10851_v7 = vmax.f32 %v5899_v37, 0.0 }
0x1230   :  { %v6180_v34 = vrot.slane %v10851_v7, 1  ;;  %v6244_v52 = vrot.slane %v10851_v7, 3  ;;  %v6212_v14 = vrot.slane %v10851_v7, 2  ;;  %v6276_v4 = vrot.slane %v10851_v7, 4 }
0x1231   :  { %v6282_v3 = vpop.permute.xlu2 %6281  ;;  %v6340_v48 = vrot.slane %v10851_v7, 6 }
0x1232   :  { %6053 = vrot.lane.b32.xlu1 %v6043_v63, %s7757_s21  ;;  %6189 = vrot.lane.b32.xlu0 %v6179_v53, %s7767_s16 }
0x1233   :  { %6085 = vrot.lane.b32.xlu2 %v6075_v23, %s7776_s4  ;;  %v5901_v25 = vpop.f32.mrf.mxu0 }
0x1239   :  { %v6018_v22 = vpop.permute.xlu1 %6017  ;;  %v6378_v17 = vpop.permute.xlu2 %6377 }
0x123a   :  { %6285 = vrot.lane.b32.xlu1 %v6275_v46, %s7757_s21  ;;  %6253 = vrot.lane.b32.xlu0 %v6243_v21, %s7773_s26  ;;  %v5902_v46 = vadd.f32 %v10719_v33, %v5901_v25 }
0x123b   :  { %6149 = vrot.lane.b32.xlu2 %v6139_v39, %s7763_s12  ;;  %v6308_v39 = vrot.slane %v10851_v7, 5 }
0x123c   :  { %v10898_v57 = vmax.f32 %v5902_v46, 0.0 }
0x123d   :  { %v7159_v10 = vpop.permute.xlu0 %7158 }
0x123e   :  { %v7161_v1 = vunpack.i.h.bf16 %v7159_v10  ;;  %v7160_v36 = vunpack.i.l.bf16 %v7159_v10 }
0x1240   :  { %v5817_v40 = vsel %vm5802_vm6, %v10605_v35, %v7160_v36  ;;  %v5818_v49 = vsel %vm5802_vm6, %v10608_v16, %v7161_v1  ;;  %v6012_v16 = vrot.slane %v10834_v44, 3  ;;  %v6372_v1 = vrot.slane %v10851_v7, 7 }
0x1241   :  { %v5826_v30 = vpack.c.bf16 %v5818_v49, %v5817_v40  ;;  %v10836_v54 = vpop.permute.xlu1 %6113  ;;  %v5981_v49 = vrot.slane %v10898_v57, 2 }
0x1242   :  { %6381 = vrot.lane.b32.xlu1 %v6371_v31, %s7763_s12  ;;  %6349 = vrot.lane.b32.xlu0 %v6339_v51, %s7774_s9  ;;  %v5949_v51 = vrot.slane %v10898_v57, 1 }
0x1243   :  { %6221 = vrot.lane.b32.xlu2 %v6211_v50, %s7775_s2  ;;  %6834 = vmatmul.msk.bf16.gmra.mxu0 %vm5847_vm7, %v5826_v30 }
0x1245   :  { %v5986_v35 = vpop.permute.xlu0 %5985 }
0x1246   :  { %v6409_v11 = vsel %vm5847_vm7, %v6401_v43, %v5986_v35  ;;  %v5903_v35 = vpop.f32.mrf.mxu0 }
0x1247   :  { %v6418_v13 = vsel %vm6417_vm8, %v6409_v11, %v6018_v22 }
0x1249   :  { %v6186_v61 = vpop.permute.xlu1 %6185 }
0x124a   :  { %6023 = vrot.lane.b32.xlu1 %v6012_v16, %s7773_s26  ;;  %5991 = vrot.lane.b32.xlu0 %v5980_v38, %s7775_s2  ;;  %v6462_v56 = vsel %vm153_vm0, %v10735_v20, %v6186_v61  ;;  %v6427_v20 = vsel %vm6426_vm9, %v6418_v13, %v6050_v24  ;;  %v6013_v24 = vrot.slane %v10898_v57, 3  ;;  %v5904_v16 = vadd.f32 %v10719_v33, %v5903_v35 }
0x124b   :  { %6317 = vrot.lane.b32.xlu2 %v6307_v9, %s7776_s4  ;;  %v6077_v38 = vrot.slane %v10898_v57, 5  ;;  %v6045_v9 = vrot.slane %v10898_v57, 4 }
0x124c   :  { %v10915_v60 = vmax.f32 %v5904_v16, 0.0 }
0x124d   :  { %v6082_v2 = vpop.permute.xlu0 %6081 }
0x124e   :  { %v6436_v6 = vsel %vm6435_vm10, %v6427_v20, %v6082_v2  ;;  %v6181_v61 = vrot.slane %v10915_v60, 1  ;;  %v6245_v43 = vrot.slane %v10915_v60, 3  ;;  %v6309_v25 = vrot.slane %v10915_v60, 5 }
0x124f   :  { %v6445_v0 = vsel %vm6444_vm11, %v6436_v6, %v10836_v54 }
0x1251   :  { %v6250_v32 = vpop.permute.xlu1 %6249 }
0x1252   :  { %6119 = vrot.lane.b32.xlu1 %v6108_v29, %s7774_s9  ;;  %6087 = vrot.lane.b32.xlu0 %v6076_v47, %s7776_s4  ;;  %v6141_v47 = vrot.slane %v10898_v57, 7 }
0x1253   :  { %5959 = vrot.lane.b32.xlu2 %v5948_v42, %s7767_s16  ;;  %v6277_v42 = vrot.slane %v10915_v60, 4 }
0x1255   :  { %v6146_v26 = vpop.permute.xlu0 %6145 }
0x1256   :  { %v6454_v36 = vsel %vm6453_vm12, %v6445_v0, %v6146_v26 }
0x1259   :  { %v6346_v63 = vpop.permute.xlu1 %6345 }
0x125a   :  { %6191 = vrot.lane.b32.xlu1 %v6180_v34, %s7767_s16  ;;  %6151 = vrot.lane.b32.xlu0 %v6140_v8, %s7763_s12  ;;  %v5906_v34 = vpop.f32.mrf.mxu0 }
0x125b   :  { %6055 = vrot.lane.b32.xlu2 %v6044_v41, %s7757_s21  ;;  %v5907_v41 = vadd.f32 %v10719_v33, %v5906_v34 }
0x125d   :  { %v10859_v12 = vpop.permute.xlu2 %6019  ;;  %v6218_v58 = vpop.permute.xlu0 %6217  ;;  %v10934_v11 = vmax.f32 %v5907_v41, 0.0 }
0x125e   :  { %v6470_v45 = vsel %vm5847_vm7, %v6462_v56, %v6218_v58  ;;  %v6373_v58 = vrot.slane %v10915_v60, 7 }
0x125f   :  { %v6478_v28 = vsel %vm6417_vm8, %v6470_v45, %v6250_v32  ;;  %v6213_v32 = vrot.slane %v10915_v60, 2  ;;  %v6014_v20 = vrot.slane %v10934_v11, 3 }
0x1260   :  { %v6486_v62 = vsel %vm6426_vm9, %v6478_v28, %v6282_v3  ;;  %v6109_v3 = vrot.slane %v10898_v57, 6 }
0x1262   :  { %6255 = vrot.lane.b32.xlu1 %v6244_v52, %s7773_s26  ;;  %6223 = vrot.lane.b32.xlu0 %v6212_v14, %s7775_s2 }
0x1263   :  { %6287 = vrot.lane.b32.xlu2 %v6276_v4, %s7757_s21 }
0x1265   :  { %v10876_v15 = vpop.permute.xlu2 %6115  ;;  %v6314_v59 = vpop.permute.xlu0 %6313 }
0x1266   :  { %v6494_v53 = vsel %vm6435_vm10, %v6486_v62, %v6314_v59  ;;  %v6341_v59 = vrot.slane %v10915_v60, 6 }
0x1267   :  { %v6502_v23 = vsel %vm6444_vm11, %v6494_v53, %v6346_v63  ;;  %v5908_v53 = vpop.f32.mrf.mxu0 }
0x1268   :  { %v6510_v21 = vsel %vm6453_vm12, %v6502_v23, %v6378_v17  ;;  %v5909_v0 = vadd.f32 %v10719_v33, %v5908_v53 }
0x1269   :  { %v6534_v22 = vrot.slane %v6510_v21, 7 }
0x126a   :  { %6351 = vrot.lane.b32.xlu1 %v6340_v48, %s7774_s9  ;;  %6319 = vrot.lane.b32.xlu0 %v6308_v39, %s7776_s4  ;;  %v5950_v39 = vrot.slane %v10934_v11, 1 }
0x126b   :  { %v6543_v31 = vsel %vm6542_vm13, %v6454_v36, %v6534_v22  ;;  %6383 = vrot.lane.b32.xlu2 %v6372_v1, %s7763_s12  ;;  %v6110_v36 = vrot.slane %v10934_v11, 6 }
0x126c   :  { %6563 = vst.msk [vmem:[#allocation7] sm:$0x3] %vm10888_vm14, %v6543_v31 }
0x126d   :  { %v6188_v40 = vpop.permute.xlu2 %6187 }
0x126e   :  { %v6463_v14 = vsel %vm153_vm0, %v10778_v55, %v6188_v40  ;;  %v5982_v40 = vrot.slane %v10934_v11, 2 }
0x1272   :  { %5993 = vrot.lane.b32.xlu1 %v5981_v49, %s7775_s2  ;;  %5961 = vrot.lane.b32.xlu0 %v5949_v51, %s7767_s16  ;;  %v10972_v51 = vmax.f32 %v5909_v0, 0.0 }
0x1273   :  { %6025 = vrot.lane.b32.xlu2 %v6013_v24, %s7773_s26 }
0x1274   :  { %v5988_v30 = vpop.permute.xlu1 %5987  ;;  %v5956_v50 = vpop.permute.xlu0 %5955  ;;  %v6182_v35 = vrot.slane %v10972_v51, 1 }
0x1275   :  { %v6252_v54 = vpop.permute.xlu2 %6251  ;;  %v6402_v56 = vsel %vm153_vm0, %v10763_v18, %v5956_v50  ;;  %v6046_v50 = vrot.slane %v10934_v11, 4 }
0x1276   :  { %v6410_v13 = vsel %vm5847_vm7, %v6402_v56, %v5988_v30 }
0x1277   :  { %v6419_v18 = vsel %vm6417_vm8, %v6410_v13, %v10859_v12 }
0x127a   :  { %6089 = vrot.lane.b32.xlu1 %v6077_v38, %s7776_s4  ;;  %6057 = vrot.lane.b32.xlu0 %v6045_v9, %s7757_s21 }
0x127b   :  { %6121 = vrot.lane.b32.xlu2 %v6109_v3, %s7774_s9 }
0x127c   :  { %v6084_v2 = vpop.permute.xlu1 %6083  ;;  %v6052_v37 = vpop.permute.xlu0 %6051 }
0x127d   :  { %v6348_v29 = vpop.permute.xlu2 %6347  ;;  %v6428_v62 = vsel %vm6426_vm9, %v6419_v18, %v6052_v37  ;;  %v6246_v37 = vrot.slane %v10972_v51, 3 }
0x127e   :  { %v6437_v23 = vsel %vm6435_vm10, %v6428_v62, %v6084_v2  ;;  %v6278_v2 = vrot.slane %v10972_v51, 4 }
0x127f   :  { %v6446_v22 = vsel %vm6444_vm11, %v6437_v23, %v10876_v15 }
0x1282   :  { %6153 = vrot.lane.b32.xlu1 %v6141_v47, %s7763_s12  ;;  %6289 = vrot.lane.b32.xlu0 %v6277_v42, %s7757_s21 }
0x1283   :  { %6193 = vrot.lane.b32.xlu2 %v6181_v61, %s7767_s16 }
0x1284   :  { %v6148_v17 = vpop.permute.xlu1 %6147  ;;  %v6284_v26 = vpop.permute.xlu0 %6283 }
0x1285   :  { %v10923_v8 = vpop.permute.xlu2 %5989  ;;  %v6455_v31 = vsel %vm6453_vm12, %v6446_v22, %v6148_v17  ;;  %v5911_v17 = vpop.f32.mrf.mxu0 }
0x128a   :  { %6225 = vrot.lane.b32.xlu1 %v6213_v32, %s7775_s2  ;;  %6385 = vrot.lane.b32.xlu0 %v6373_v58, %s7763_s12  ;;  %v5912_v58 = vadd.f32 %v10719_v33, %v5911_v17 }
0x128b   :  { %6257 = vrot.lane.b32.xlu2 %v6245_v43, %s7773_s26  ;;  %v6374_v43 = vrot.slane %v10972_v51, 7 }
0x128c   :  { %v6220_v45 = vpop.permute.xlu1 %6219  ;;  %v6380_v52 = vpop.permute.xlu0 %6379 }
0x128d   :  { %v10938_v4 = vpop.permute.xlu2 %6085  ;;  %v6471_v28 = vsel %vm5847_vm7, %v6463_v14, %v6220_v45  ;;  %v6310_v45 = vrot.slane %v10972_v51, 5  ;;  %v11008_v14 = vmax.f32 %v5912_v58, 0.0 }
0x128e   :  { %v6479_v5 = vsel %vm6417_vm8, %v6471_v28, %v6252_v54  ;;  %v6078_v54 = vrot.slane %v10934_v11, 5 }
0x128f   :  { %v6487_v6 = vsel %vm6426_vm9, %v6479_v5, %v6284_v26  ;;  %v5951_v53 = vrot.slane %v11008_v14, 1  ;;  %v6079_v0 = vrot.slane %v11008_v14, 5  ;;  %v6047_v22 = vrot.slane %v11008_v14, 4 }
0x1292   :  { %6321 = vrot.lane.b32.xlu1 %v6309_v25, %s7776_s4  ;;  %6027 = vrot.lane.b32.xlu0 %v6014_v20, %s7773_s26 }
0x1293   :  { %6353 = vrot.lane.b32.xlu2 %v6341_v59, %s7774_s9 }
0x1294   :  { %v6316_v55 = vpop.permute.xlu1 %6315  ;;  %v6022_v63 = vpop.permute.xlu0 %6021 }
0x1295   :  { %v6495_v12 = vsel %vm6435_vm10, %v6487_v6, %v6316_v55  ;;  %v10955_v48 = vpop.permute.xlu2 %6149  ;;  %v6015_v55 = vrot.slane %v11008_v14, 3  ;;  %v5983_v6 = vrot.slane %v11008_v14, 2 }
0x1296   :  { %v6503_v46 = vsel %vm6444_vm11, %v6495_v12, %v6348_v29  ;;  %v6214_v29 = vrot.slane %v10972_v51, 2 }
0x1297   :  { %v6511_v21 = vsel %vm6453_vm12, %v6503_v46, %v6380_v52 }
0x1298   :  { %v6535_v1 = vrot.slane %v6511_v21, 7 }
0x129a   :  { %v6544_v49 = vsel %vm6542_vm13, %v6455_v31, %v6535_v1  ;;  %5963 = vrot.lane.b32.xlu1 %v5950_v39, %s7767_s16  ;;  %6123 = vrot.lane.b32.xlu0 %v6110_v36, %s7774_s9  ;;  %v6111_v39 = vrot.slane %v11008_v14, 6 }
0x129b   :  { %6564 = vst.msk [vmem:[#allocation7 + $0x2] sm:$0x3] %vm10888_vm14, %v6544_v49  ;;  %5995 = vrot.lane.b32.xlu2 %v5982_v40, %s7775_s2 }
0x129c   :  { %v5958_v15 = vpop.permute.xlu1 %5957  ;;  %v6118_v24 = vpop.permute.xlu0 %6117 }
0x129d   :  { %v6222_v30 = vpop.permute.xlu2 %6221  ;;  %v6403_v3 = vsel %vm153_vm0, %v10793_v19, %v5958_v15 }
0x129e   :  { %v6411_v42 = vsel %vm5847_vm7, %v6403_v3, %v10923_v8  ;;  %v6342_v8 = vrot.slane %v10972_v51, 6 }
0x129f   :  { %v6420_v41 = vsel %vm6417_vm8, %v6411_v42, %v6022_v63 }
0x12a2   :  { %6059 = vrot.lane.b32.xlu1 %v6046_v50, %s7757_s21  ;;  %6195 = vrot.lane.b32.xlu0 %v6182_v35, %s7767_s16 }
0x12a3   :  { %6091 = vrot.lane.b32.xlu2 %v6078_v54, %s7776_s4 }
0x12a4   :  { %v6054_v16 = vpop.permute.xlu1 %6053  ;;  %v6190_v38 = vpop.permute.xlu0 %6189 }
0x12a5   :  { %v6318_v9 = vpop.permute.xlu2 %6317  ;;  %v6464_v47 = vsel %vm153_vm0, %v10808_v27, %v6190_v38  ;;  %v6429_v32 = vsel %vm6426_vm9, %v6420_v41, %v6054_v16 }
0x12a6   :  { %v6472_v26 = vsel %vm5847_vm7, %v6464_v47, %v6222_v30  ;;  %v6438_v52 = vsel %vm6435_vm10, %v6429_v32, %v10938_v4 }
0x12a7   :  { %v6447_v20 = vsel %vm6444_vm11, %v6438_v52, %v6118_v24 }
0x12a8   :  { %v6456_v62 = vsel %vm6453_vm12, %v6447_v20, %v10955_v48  ;;  %v5913_v48 = vpop.f32.mrf.mxu0 }
0x12a9   :  { %v5914_v21 = vadd.f32 %v10719_v33, %v5913_v48 }
0x12aa   :  { %6291 = vrot.lane.b32.xlu1 %v6278_v2, %s7757_s21  ;;  %6259 = vrot.lane.b32.xlu0 %v6246_v37, %s7773_s26 }
0x12ab   :  { %6227 = vrot.lane.b32.xlu2 %v6214_v29, %s7775_s2  ;;  %v11032_v1 = vmax.f32 %v5914_v21, 0.0 }
0x12ac   :  { %v6286_v61 = vpop.permute.xlu1 %6285  ;;  %v6254_v19 = vpop.permute.xlu0 %6253 }
0x12ad   :  { %v10993_v34 = vpop.permute.xlu2 %5959  ;;  %v6480_v27 = vsel %vm6417_vm8, %v6472_v26, %v6254_v19  ;;  %v6183_v49 = vrot.slane %v11032_v1, 1  ;;  %v6215_v15 = vrot.slane %v11032_v1, 2  ;;  %v6279_v24 = vrot.slane %v11032_v1, 4 }
0x12ae   :  { %v6488_v56 = vsel %vm6426_vm9, %v6480_v27, %v6286_v61  ;;  %v6247_v38 = vrot.slane %v11032_v1, 3  ;;  %v6375_v3 = vrot.slane %v11032_v1, 7  ;;  %v6404_v47 = vsel %vm153_vm0, %v10834_v44, %v10993_v34 }
0x12af   :  { %v6496_v25 = vsel %vm6435_vm10, %v6488_v56, %v6318_v9  ;;  %v6311_v9 = vrot.slane %v11032_v1, 5  ;;  %v6343_v26 = vrot.slane %v11032_v1, 6 }
0x12b2   :  { %6387 = vrot.lane.b32.xlu1 %v6374_v43, %s7763_s12  ;;  %6355 = vrot.lane.b32.xlu0 %v6342_v8, %s7774_s9 }
0x12b3   :  { %6323 = vrot.lane.b32.xlu2 %v6310_v45, %s7776_s4 }
0x12b4   :  { %v6382_v13 = vpop.permute.xlu1 %6381  ;;  %v6350_v28 = vpop.permute.xlu0 %6349 }
0x12b5   :  { %v6504_v18 = vsel %vm6444_vm11, %v6496_v25, %v6350_v28  ;;  %v6056_v5 = vpop.permute.xlu2 %6055 }
0x12b6   :  { %v6512_v59 = vsel %vm6453_vm12, %v6504_v18, %v6382_v13 }
0x12b7   :  { %v6536_v4 = vrot.slane %v6512_v59, 7 }
0x12b9   :  { %v6545_v63 = vsel %vm6542_vm13, %v6456_v62, %v6536_v4 }
0x12ba   :  { %6565 = vst.msk [vmem:[#allocation7 + $0x4] sm:$0x3] %vm10888_vm14, %v6545_v63  ;;  %6029 = vrot.lane.b32.xlu1 %v6015_v55, %s7773_s26  ;;  %5997 = vrot.lane.b32.xlu0 %v5983_v6, %s7775_s2 }
0x12bb   :  { %5965 = vrot.lane.b32.xlu2 %v5951_v53, %s7767_s16 }
0x12bc   :  { %v6024_v23 = vpop.permute.xlu1 %6023  ;;  %v5992_v12 = vpop.permute.xlu0 %5991 }
0x12bd   :  { %v6288_v46 = vpop.permute.xlu2 %6287  ;;  %v6412_v19 = vsel %vm5847_vm7, %v6404_v47, %v5992_v12 }
0x12be   :  { %v6421_v27 = vsel %vm6417_vm8, %v6412_v19, %v6024_v23 }
0x12bf   :  { %v6430_v44 = vsel %vm6426_vm9, %v6421_v27, %v6056_v5 }
0x12c0   :  { %v5916_v35 = vpop.f32.mrf.mxu0 }
0x12c1   :  { %v5917_v16 = vadd.f32 %v10719_v33, %v5916_v35 }
0x12c2   :  { %6125 = vrot.lane.b32.xlu1 %v6111_v39, %s7774_s9  ;;  %6093 = vrot.lane.b32.xlu0 %v6079_v0, %s7776_s4 }
0x12c3   :  { %6061 = vrot.lane.b32.xlu2 %v6047_v22, %s7757_s21  ;;  %v11049_v2 = vmax.f32 %v5917_v16, 0.0 }
0x12c4   :  { %v6120_v36 = vpop.permute.xlu1 %6119  ;;  %v6088_v31 = vpop.permute.xlu0 %6087 }
0x12c5   :  { %v6384_v40 = vpop.permute.xlu2 %6383  ;;  %v5952_v41 = vrot.slane %v11049_v2, 1  ;;  %v6016_v58 = vrot.slane %v11049_v2, 3  ;;  %v6439_v8 = vsel %vm6435_vm10, %v6430_v44, %v6088_v31  ;;  %v5984_v25 = vrot.slane %v11049_v2, 2 }
0x12c6   :  { %v6448_v18 = vsel %vm6444_vm11, %v6439_v8, %v6120_v36  ;;  %v6048_v59 = vrot.slane %v11049_v2, 4  ;;  %v6112_v62 = vrot.slane %v11049_v2, 6  ;;  %v6080_v23 = vrot.slane %v11049_v2, 5 }
0x12c8   :  { %v5918_v56 = vpop.f32.mrf.mxu0 }
0x12c9   :  { %v5919_v20 = vadd.f32 %v10719_v33, %v5918_v56 }
0x12ca   :  { %6197 = vrot.lane.b32.xlu1 %v6183_v49, %s7767_s16  ;;  %6229 = vrot.lane.b32.xlu0 %v6215_v15, %s7775_s2 }
0x12cb   :  { %6293 = vrot.lane.b32.xlu2 %v6279_v24, %s7757_s21  ;;  %v11086_v33 = vmax.f32 %v5919_v20, 0.0  ;;  %v6143_v24 = vrot.slane %v11008_v14, 7 }
0x12cc   :  { %v6192_v30 = vpop.permute.xlu1 %6191  ;;  %v6152_v50 = vpop.permute.xlu0 %6151 }
0x12cd   :  { %v11040_v54 = vpop.permute.xlu2 %6025  ;;  %v6465_v42 = vsel %vm153_vm0, %v10851_v7, %v6192_v30  ;;  %v6457_v4 = vsel %vm6453_vm12, %v6448_v18, %v6152_v50  ;;  %v6280_v12 = vrot.slane %v11086_v33, 4  ;;  %v6184_v48 = vrot.slane %v11086_v33, 1 }
0x12ce   :  { %v6216_v0 = vrot.slane %v11086_v33, 2  ;;  %v6376_v22 = vrot.slane %v11086_v33, 7  ;;  %v6248_v36 = vrot.slane %v11086_v33, 3  ;;  %v6312_v15 = vrot.slane %v11086_v33, 5 }
0x12cf   :  { %v6344_v30 = vrot.slane %v11086_v33, 6 }
0x12d2   :  { %6261 = vrot.lane.b32.xlu1 %v6247_v38, %s7773_s26  ;;  %6325 = vrot.lane.b32.xlu0 %v6311_v9, %s7776_s4 }
0x12d3   :  { %6389 = vrot.lane.b32.xlu2 %v6375_v3, %s7763_s12 }
0x12d4   :  { %v6256_v37 = vpop.permute.xlu1 %6255  ;;  %v6224_v29 = vpop.permute.xlu0 %6223 }
0x12d5   :  { %v11056_v61 = vpop.permute.xlu2 %6121  ;;  %v6473_v17 = vsel %vm5847_vm7, %v6465_v42, %v6224_v29  ;;  %v6144_v29 = vrot.slane %v11049_v2, 7 }
0x12d6   :  { %v6481_v32 = vsel %vm6417_vm8, %v6473_v17, %v6256_v37 }
0x12d7   :  { %v6489_v43 = vsel %vm6426_vm9, %v6481_v32, %v6288_v46 }
0x12da   :  { %6357 = vrot.lane.b32.xlu1 %v6343_v26, %s7774_s9  ;;  %5967 = vrot.lane.b32.xlu0 %v5952_v41, %s7767_s16 }
0x12db   :  { %6031 = vrot.lane.b32.xlu2 %v6016_v58, %s7773_s26 }
0x12dc   :  { %v6352_v7 = vpop.permute.xlu1 %6351  ;;  %v6320_v34 = vpop.permute.xlu0 %6319 }
0x12dd   :  { %v6497_v45 = vsel %vm6435_vm10, %v6489_v43, %v6320_v34  ;;  %v6194_v52 = vpop.permute.xlu2 %6193 }
0x12de   :  { %v6505_v13 = vsel %vm6444_vm11, %v6497_v45, %v6352_v7  ;;  %v6466_v38 = vsel %vm153_vm0, %v10915_v60, %v6194_v52 }
0x12df   :  { %v6513_v28 = vsel %vm6453_vm12, %v6505_v13, %v6384_v40 }
0x12e0   :  { %v6537_v5 = vrot.slane %v6513_v28, 7 }
0x12e2   :  { %v6546_v55 = vsel %vm6542_vm13, %v6457_v4, %v6537_v5  ;;  %5999 = vrot.lane.b32.xlu1 %v5984_v25, %s7775_s2  ;;  %6063 = vrot.lane.b32.xlu0 %v6048_v59, %s7757_s21 }
0x12e3   :  { %6566 = vst.msk [vmem:[#allocation7 + $0x6] sm:$0x3] %vm10888_vm14, %v6546_v55  ;;  %6127 = vrot.lane.b32.xlu2 %v6112_v62, %s7774_s9 }
0x12e4   :  { %v5994_v6 = vpop.permute.xlu1 %5993  ;;  %v5962_v63 = vpop.permute.xlu0 %5961 }
0x12e5   :  { %v6258_v53 = vpop.permute.xlu2 %6257  ;;  %v6405_v50 = vsel %vm153_vm0, %v10898_v57, %v5962_v63  ;;  %v6142_v57 = vrot.slane %v10934_v11, 7 }
0x12e6   :  { %v6413_v3 = vsel %vm5847_vm7, %v6405_v50, %v5994_v6 }
0x12e7   :  { %v6422_v47 = vsel %vm6417_vm8, %v6413_v3, %v11040_v54 }
0x12ea   :  { %6095 = vrot.lane.b32.xlu1 %v6080_v23, %s7776_s4  ;;  %6295 = vrot.lane.b32.xlu0 %v6280_v12, %s7757_s21 }
0x12eb   :  { %6199 = vrot.lane.b32.xlu2 %v6184_v48, %s7767_s16 }
0x12ec   :  { %v6090_v46 = vpop.permute.xlu1 %6089  ;;  %v6058_v21 = vpop.permute.xlu0 %6057 }
0x12ed   :  { %v6354_v39 = vpop.permute.xlu2 %6353  ;;  %v6431_v19 = vsel %vm6426_vm9, %v6422_v47, %v6058_v21 }
0x12ee   :  { %v6440_v41 = vsel %vm6435_vm10, %v6431_v19, %v6090_v46 }
0x12ef   :  { %v6449_v44 = vsel %vm6444_vm11, %v6440_v41, %v11056_v61 }
0x12f2   :  { %6231 = vrot.lane.b32.xlu1 %v6216_v0, %s7775_s2  ;;  %6391 = vrot.lane.b32.xlu0 %v6376_v22, %s7763_s12 }
0x12f3   :  { %6263 = vrot.lane.b32.xlu2 %v6248_v36, %s7773_s26 }
0x12f4   :  { %v6154_v31 = vpop.permute.xlu1 %6153  ;;  %v6290_v40 = vpop.permute.xlu0 %6289 }
0x12f5   :  { %v5996_v49 = vpop.permute.xlu2 %5995  ;;  %v6458_v34 = vsel %vm6453_vm12, %v6449_v44, %v6154_v31 }
0x12fa   :  { %6327 = vrot.lane.b32.xlu1 %v6312_v15, %s7776_s4  ;;  %6157 = vrot.lane.b32.xlu0 %v6143_v24, %s7763_s12 }
0x12fb   :  { %6359 = vrot.lane.b32.xlu2 %v6344_v30, %s7774_s9 }
0x12fc   :  { %v6226_v35 = vpop.permute.xlu1 %6225  ;;  %v6386_v16 = vpop.permute.xlu0 %6385 }
0x12fd   :  { %v6092_v9 = vpop.permute.xlu2 %6091  ;;  %v6474_v37 = vsel %vm5847_vm7, %v6466_v38, %v6226_v35 }
0x12fe   :  { %v6482_v42 = vsel %vm6417_vm8, %v6474_v37, %v6258_v53 }
0x12ff   :  { %v6490_v17 = vsel %vm6426_vm9, %v6482_v42, %v6290_v40 }
0x1302   :  { %6159 = vrot.lane.b32.xlu1 %v6144_v29, %s7763_s12 }
0x1303   :  { %6155 = vrot.lane.b32.xlu2 %v6142_v57, %s7763_s12 }
0x1304   :  { %v6322_v60 = vpop.permute.xlu1 %6321  ;;  %v6028_v26 = vpop.permute.xlu0 %6027 }
0x1305   :  { %v6498_v27 = vsel %vm6435_vm10, %v6490_v17, %v6322_v60  ;;  %v6228_v32 = vpop.permute.xlu2 %6227 }
0x1306   :  { %v6506_v54 = vsel %vm6444_vm11, %v6498_v27, %v6354_v39 }
0x1307   :  { %v6514_v58 = vsel %vm6453_vm12, %v6506_v54, %v6386_v16 }
0x1308   :  { %v6538_v7 = vrot.slane %v6514_v58, 7 }
0x130a   :  { %v6547_v43 = vsel %vm6542_vm13, %v6458_v34, %v6538_v7 }
0x130b   :  { %6567 = vst.msk [vmem:[#allocation7 + $0x8] sm:$0x3] %vm10888_vm14, %v6547_v43 }
0x130c   :  { %v5964_v8 = vpop.permute.xlu1 %5963  ;;  %v6124_v56 = vpop.permute.xlu0 %6123 }
0x130d   :  { %v6406_v45 = vsel %vm153_vm0, %v10934_v11, %v5964_v8  ;;  %v6324_v52 = vpop.permute.xlu2 %6323 }
0x130e   :  { %v6414_v13 = vsel %vm5847_vm7, %v6406_v45, %v5996_v49 }
0x130f   :  { %v6423_v28 = vsel %vm6417_vm8, %v6414_v13, %v6028_v26 }
0x1314   :  { %v6060_v25 = vpop.permute.xlu1 %6059  ;;  %v6196_v61 = vpop.permute.xlu0 %6195 }
0x1315   :  { %v6432_v20 = vsel %vm6426_vm9, %v6423_v28, %v6060_v25  ;;  %v6467_v18 = vsel %vm153_vm0, %v10972_v51, %v6196_v61  ;;  %v5966_v5 = vpop.permute.xlu2 %5965 }
0x1316   :  { %v6441_v59 = vsel %vm6435_vm10, %v6432_v20, %v6092_v9  ;;  %v6475_v4 = vsel %vm5847_vm7, %v6467_v18, %v6228_v32  ;;  %v6407_v51 = vsel %vm153_vm0, %v11008_v14, %v5966_v5 }
0x1317   :  { %v6450_v62 = vsel %vm6444_vm11, %v6441_v59, %v6124_v56 }
0x131c   :  { %v6292_v11 = vpop.permute.xlu1 %6291  ;;  %v6260_v55 = vpop.permute.xlu0 %6259 }
0x131d   :  { %v6483_v6 = vsel %vm6417_vm8, %v6475_v4, %v6260_v55  ;;  %v6062_v63 = vpop.permute.xlu2 %6061 }
0x131e   :  { %v6491_v53 = vsel %vm6426_vm9, %v6483_v6, %v6292_v11 }
0x131f   :  { %v6499_v23 = vsel %vm6435_vm10, %v6491_v53, %v6324_v52 }
0x1324   :  { %v6388_v12 = vpop.permute.xlu1 %6387  ;;  %v6356_v48 = vpop.permute.xlu0 %6355 }
0x1325   :  { %v6294_v46 = vpop.permute.xlu2 %6293  ;;  %v6507_v42 = vsel %vm6444_vm11, %v6499_v23, %v6356_v48 }
0x1326   :  { %v6515_v57 = vsel %vm6453_vm12, %v6507_v42, %v6388_v12 }
0x1327   :  { %v6539_v26 = vrot.slane %v6515_v57, 7 }
0x132c   :  { %v6030_v21 = vpop.permute.xlu1 %6029  ;;  %v5998_v39 = vpop.permute.xlu0 %5997 }
0x132d   :  { %v6415_v0 = vsel %vm5847_vm7, %v6407_v51, %v5998_v39  ;;  %v6390_v22 = vpop.permute.xlu2 %6389 }
0x132e   :  { %v6424_v36 = vsel %vm6417_vm8, %v6415_v0, %v6030_v21 }
0x132f   :  { %v6433_v31 = vsel %vm6426_vm9, %v6424_v36, %v6062_v63 }
0x1334   :  { %v6126_v40 = vpop.permute.xlu1 %6125  ;;  %v6094_v49 = vpop.permute.xlu0 %6093 }
0x1335   :  { %v6032_v15 = vpop.permute.xlu2 %6031  ;;  %v6442_v45 = vsel %vm6435_vm10, %v6433_v31, %v6094_v49 }
0x1336   :  { %v6451_v5 = vsel %vm6444_vm11, %v6442_v45, %v6126_v40 }
0x133c   :  { %v6198_v24 = vpop.permute.xlu1 %6197  ;;  %v6230_v30 = vpop.permute.xlu0 %6229 }
0x133d   :  { %v6128_v50 = vpop.permute.xlu2 %6127  ;;  %v6468_v19 = vsel %vm153_vm0, %v11032_v1, %v6198_v24 }
0x133e   :  { %v6476_v27 = vsel %vm5847_vm7, %v6468_v19, %v6230_v30 }
0x1344   :  { %v6262_v35 = vpop.permute.xlu1 %6261  ;;  %v6326_v16 = vpop.permute.xlu0 %6325 }
0x1345   :  { %v6200_v38 = vpop.permute.xlu2 %6199  ;;  %v6484_v54 = vsel %vm6417_vm8, %v6476_v27, %v6262_v35 }
0x1346   :  { %v6492_v44 = vsel %vm6426_vm9, %v6484_v54, %v6294_v46  ;;  %v6469_v43 = vsel %vm153_vm0, %v11086_v33, %v6200_v38 }
0x1347   :  { %v6500_v1 = vsel %vm6435_vm10, %v6492_v44, %v6326_v16 }
0x134c   :  { %v6358_v9 = vpop.permute.xlu1 %6357  ;;  %v5968_v14 = vpop.permute.xlu0 %5967 }
0x134d   :  { %v6264_v3 = vpop.permute.xlu2 %6263  ;;  %v6508_v8 = vsel %vm6444_vm11, %v6500_v1, %v6358_v9  ;;  %v6408_v13 = vsel %vm153_vm0, %v11049_v2, %v5968_v14 }
0x134e   :  { %v6516_v52 = vsel %vm6453_vm12, %v6508_v8, %v6390_v22 }
0x134f   :  { %v6540_v61 = vrot.slane %v6516_v52, 7 }
0x1354   :  { %v6000_v37 = vpop.permute.xlu1 %5999  ;;  %v6064_v29 = vpop.permute.xlu0 %6063 }
0x1355   :  { %v6360_v47 = vpop.permute.xlu2 %6359  ;;  %v6416_v25 = vsel %vm5847_vm7, %v6408_v13, %v6000_v37 }
0x1356   :  { %v6425_v59 = vsel %vm6417_vm8, %v6416_v25, %v6032_v15 }
0x1357   :  { %v6434_v55 = vsel %vm6426_vm9, %v6425_v59, %v6064_v29 }
0x135c   :  { %v6096_v60 = vpop.permute.xlu1 %6095  ;;  %v6296_v17 = vpop.permute.xlu0 %6295 }
0x135d   :  { %v6156_v41 = vpop.permute.xlu2 %6155  ;;  %v6443_v6 = vsel %vm6435_vm10, %v6434_v55, %v6096_v60 }
0x135e   :  { %v6459_v32 = vsel %vm6453_vm12, %v6450_v62, %v6156_v41  ;;  %v6452_v12 = vsel %vm6444_vm11, %v6443_v6, %v6128_v50 }
0x135f   :  { %v6548_v58 = vsel %vm6542_vm13, %v6459_v32, %v6539_v26 }
0x1360   :  { %6568 = vst.msk [vmem:[#allocation7 + $0xa] sm:$0x3] %vm10888_vm14, %v6548_v58 }
0x1364   :  { %v6232_v7 = vpop.permute.xlu1 %6231  ;;  %v6392_v34 = vpop.permute.xlu0 %6391 }
0x1365   :  { %v6477_v56 = vsel %vm5847_vm7, %v6469_v43, %v6232_v7 }
0x1366   :  { %v6485_v28 = vsel %vm6417_vm8, %v6477_v56, %v6264_v3 }
0x1367   :  { %v6493_v18 = vsel %vm6426_vm9, %v6485_v28, %v6296_v17 }
0x136c   :  { %v6328_v20 = vpop.permute.xlu1 %6327  ;;  %v6158_v33 = vpop.permute.xlu0 %6157 }
0x136d   :  { %v6501_v4 = vsel %vm6435_vm10, %v6493_v18, %v6328_v20  ;;  %v6460_v62 = vsel %vm6453_vm12, %v6451_v5, %v6158_v33 }
0x136e   :  { %v6509_v11 = vsel %vm6444_vm11, %v6501_v4, %v6360_v47  ;;  %v6549_v2 = vsel %vm6542_vm13, %v6460_v62, %v6540_v61 }
0x136f   :  { %6569 = vst.msk [vmem:[#allocation7 + $0xc] sm:$0x3] %vm10888_vm14, %v6549_v2  ;;  %v6517_v63 = vsel %vm6453_vm12, %v6509_v11, %v6392_v34 }
0x1370   :  { %v6541_v53 = vrot.slane %v6517_v63, 7 }
0x1374   :  { %v6160_v23 = vpop.permute.xlu1 %6159 }
0x1375   :  { %v6461_v48 = vsel %vm6453_vm12, %v6452_v12, %v6160_v23 }
0x1376   :  { %v6550_v46 = vsel %vm6542_vm13, %v6461_v48, %v6541_v53 }
0x1377   :  { %6570 = vst.msk [vmem:[#allocation7 + $0xe] sm:$0x3] %vm10888_vm14, %v6550_v46 }
0x1378   :  { %6583 = dma.vmem_to_hbm [thread:$0]  %s6576_s5, 256, %s6578_s27, [#allocation4], %s7775_s2, %s7775_s2, %s7778_s29  }
0x1379   :  { %7754 = dma.done.wait [#allocation4], 256  }
0x137a   :  { %7755 = vsyncadd [#allocation4], 4294967040 }
0x137b   :  { %6588 = vsyncpa [#allocation3], 1 }
0x137c   :  { %6589 = vsyncpa [#allocation6], 1 }
0x137d   :  { %6590 = vsyncpa [#allocation4], 1 }

</bundles_post_ra>
